<compile_context>
chip_gen: v5e
topology: v5e:2x2
jax: 0.10.0
libtpu: 0.0.40
codegen_flags: <defaults>
</compile_context>

<pallas_src>
import functools

import jax
import jax.numpy as jnp
import numpy as np
from jax import lax
from jax.experimental import pallas as pl
from jax.experimental.pallas import tpu as pltpu

_VMEM_LIMIT = 48 * 1024 * 1024   # < v7x 64 MiB physical, > v5e 16 MiB default scoped


def _round_up(x, m):
    return (x + m - 1) // m * m


def _pick_block_m(m):
    """Row-block size: big enough to pipeline, small enough for v5e/v7x VMEM."""
    if m >= 1024:
        return 512
    if m >= 256:
        return 128
    return _round_up(m, 8)


def _compiler_params():
    return pltpu.CompilerParams(
        dimension_semantics=("parallel",),   # shard the M grid across v7x's 2 TCs
        vmem_limit_bytes=_VMEM_LIMIT,
    )


# ----------------------------------------------------------------------------
# Kernel 1: conv1 as a lane-dense GEMM, y = relu(x @ w)  (no bias operand)
# ----------------------------------------------------------------------------
def _gemm_relu_kernel(x_ref, w_ref, o_ref):
    acc = jnp.dot(x_ref[...], w_ref[...], preferred_element_type=jnp.float32)
    o_ref[...] = jnp.maximum(acc, 0.0).astype(o_ref.dtype)


def conv_gemm_relu(x, w, block_m):
    """x: [M, K], w: [K, N] (K, N 128-aligned) -> relu(x @ w): [M, N]."""
    M, K = x.shape
    K2, N = w.shape
    assert K == K2 and M % block_m == 0
    return pl.pallas_call(
        _gemm_relu_kernel,
        out_shape=jax.ShapeDtypeStruct((M, N), x.dtype),
        grid=(M // block_m,),
        in_specs=[
            pl.BlockSpec((block_m, K), lambda i: (i, 0)),
            pl.BlockSpec((K, N), lambda i: (0, 0)),
        ],
        out_specs=pl.BlockSpec((block_m, N), lambda i: (i, 0)),
        compiler_params=_compiler_params(),
    )(x, w)


# ----------------------------------------------------------------------------
# Kernel 2: conv2 (block-diag GEMM) + fc1 + fc2 + fc3 fused in ONE kernel.
# All intermediates live in VMEM; only the padded logits go back to HBM.
# ----------------------------------------------------------------------------
def _fused_head_kernel(p_ref, w2_ref, w3_ref, b3_ref, w4_ref, b4_ref,
                       w5_ref, b5_ref, o_ref):
    # conv2 as a block-diagonal GEMM over its 25 output spatial positions + ReLU
    h = jnp.dot(p_ref[...], w2_ref[...], preferred_element_type=jnp.float32)
    h = jnp.maximum(h, 0.0)                                   # [bm, 512]
    # fc1 + ReLU
    h = jnp.dot(h.astype(w3_ref.dtype), w3_ref[...],
                preferred_element_type=jnp.float32)
    h = jnp.maximum(h + b3_ref[...], 0.0)                     # [bm, 128]
    # fc2 + ReLU
    h = jnp.dot(h.astype(w4_ref.dtype), w4_ref[...],
                preferred_element_type=jnp.float32)
    h = jnp.maximum(h + b4_ref[...], 0.0)                     # [bm, 128]
    # fc3
    h = jnp.dot(h.astype(w5_ref.dtype), w5_ref[...],
                preferred_element_type=jnp.float32)
    o_ref[...] = (h + b5_ref[...]).astype(o_ref.dtype)        # [bm, 128] (10 valid)


def fused_head(p, packed, block_m):
    M, K = p.shape
    assert M % block_m == 0
    full = lambda i: (0, 0)
    return pl.pallas_call(
        _fused_head_kernel,
        out_shape=jax.ShapeDtypeStruct((M, 128), jnp.float32),
        grid=(M // block_m,),
        in_specs=[
            pl.BlockSpec((block_m, K), lambda i: (i, 0)),
            pl.BlockSpec(packed["w2bd"].shape, full),
            pl.BlockSpec(packed["fc1_w"].shape, full),
            pl.BlockSpec(packed["fc1_b"].shape, full),
            pl.BlockSpec(packed["fc2_w"].shape, full),
            pl.BlockSpec(packed["fc2_b"].shape, full),
            pl.BlockSpec(packed["fc3_w"].shape, full),
            pl.BlockSpec(packed["fc3_b"].shape, full),
        ],
        out_specs=pl.BlockSpec((block_m, 128), lambda i: (i, 0)),
        compiler_params=_compiler_params(),
    )(p, packed["w2bd"], packed["fc1_w"], packed["fc1_b"],
      packed["fc2_w"], packed["fc2_b"], packed["fc3_w"], packed["fc3_b"])


# ----------------------------------------------------------------------------
# One-time weight packing (outside the jitted hot path)
# ----------------------------------------------------------------------------
def pack_params(params, dtype=jnp.float32):
    f32 = jnp.float32

    # conv1: OIHW [6,3,5,5] -> [75,6], rows ordered (cin,kh,kw) to match
    # lax.conv_general_dilated_patches; pad to lane-aligned [128,128].
    w1 = params["conv1_w"].transpose(1, 2, 3, 0).reshape(75, 6)
    w1 = jnp.pad(w1, ((0, 128 - 75), (0, 128 - 6))).astype(dtype)

    # conv2 as one GEMM: block-diagonal [25*150, 25*16] (same [150,16] block on the
    # diagonal, one block per output spatial position), padded to [3840, 512].
    blk = params["conv2_w"].astype(f32).transpose(1, 2, 3, 0).reshape(150, 16)
    w2bd = jnp.kron(jnp.eye(25, dtype=f32), blk)                       # [3750, 400]
    w2bd = jnp.pad(w2bd, ((0, 3840 - 3750), (0, 512 - 400))).astype(dtype)

    # fc1: permute rows from NCHW flatten (c,h,w) to NHWC flatten (h,w,c); pad.
    fc1 = params["fc1_w"].reshape(16, 5, 5, 120).transpose(1, 2, 0, 3).reshape(400, 120)
    fc1 = jnp.pad(fc1, ((0, 512 - 400), (0, 128 - 120))).astype(dtype)
    fc1_b = jnp.pad(params["fc1_b"], ((0, 0), (0, 128 - 120))).astype(f32)

    fc2 = jnp.pad(params["fc2_w"], ((0, 128 - 120), (0, 128 - 84))).astype(dtype)
    fc2_b = jnp.pad(params["fc2_b"], ((0, 0), (0, 128 - 84))).astype(f32)

    fc3 = jnp.pad(params["fc3_w"], ((0, 128 - 84), (0, 128 - 10))).astype(dtype)
    fc3_b = jnp.pad(params["fc3_b"], ((0, 0), (0, 128 - 10))).astype(f32)

    return {"w1": w1, "w2bd": w2bd, "fc1_w": fc1, "fc1_b": fc1_b,
            "fc2_w": fc2, "fc2_b": fc2_b, "fc3_w": fc3, "fc3_b": fc3_b}


# ----------------------------------------------------------------------------
# LeNet forward
# ----------------------------------------------------------------------------
def lenet_forward(x, packed, *, compute_dtype=jnp.float32):
    """x: [B, 3, 32, 32] (NCHW, matching the PyTorch module) -> logits [B, 10]."""
    B = x.shape[0]
    x = jnp.transpose(x, (0, 2, 3, 1)).astype(compute_dtype)          # NHWC, once

    # conv1 patches (single XLA op), features ordered (cin,kh,kw): [B,14,14,75]
    p1 = lax.conv_general_dilated_patches(
        x, (5, 5), (2, 2), "VALID", dimension_numbers=("NHWC", "HWIO", "NHWC"))
    M1 = B * 14 * 14
    bm1 = _pick_block_m(M1)
    m1p = _round_up(M1, bm1)
    p1 = jnp.pad(p1.reshape(M1, 75), ((0, m1p - M1), (0, 128 - 75)))

    # conv1 + ReLU as a lane-dense GEMM (output channels padded to 128)
    y1 = conv_gemm_relu(p1, packed["w1"], bm1)                        # [m1p, 128]
    y1 = y1[:M1].reshape(B, 14, 14, 128)[..., :6]                     # NHWC, no transpose

    # conv2 patches (single XLA op): [B,5,5,150] -> [B, 3750] -> pad K to 3840
    p2 = lax.conv_general_dilated_patches(
        y1, (5, 5), (2, 2), "VALID", dimension_numbers=("NHWC", "HWIO", "NHWC"))
    bm2 = _pick_block_m(B)
    bp = _round_up(B, bm2)
    p2 = jnp.pad(p2.reshape(B, 25 * 150), ((0, bp - B), (0, 3840 - 3750)))

    # TODO(synk): fold the patch gather itself into the Pallas kernels via strided
    # in-kernel loads instead of the XLA conv_general_dilated_patches glue op.
    out = fused_head(p2, packed, bm2)                                 # [bp, 128] f32
    return out[:B, :10]


# ----------------------------------------------------------------------------
# Pure-JAX reference (for correctness check)
# ----------------------------------------------------------------------------
def lenet_reference(x, params):
    dn = lax.conv_dimension_numbers(x.shape, params["conv1_w"].shape,
                                    ("NCHW", "OIHW", "NCHW"))
    y = lax.conv_general_dilated(x, params["conv1_w"], (2, 2), "VALID",
                                 dimension_numbers=dn)
    y = jnp.maximum(y, 0.0)
    dn2 = lax.conv_dimension_numbers(y.shape, params["conv2_w"].shape,
                                     ("NCHW", "OIHW", "NCHW"))
    y = lax.conv_general_dilated(y, params["conv2_w"], (2, 2), "VALID",
                                 dimension_numbers=dn2)
    y = jnp.maximum(y, 0.0)
    y = y.reshape(x.shape[0], -1)
    y = jnp.maximum(y @ params["fc1_w"] + params["fc1_b"], 0.0)
    y = jnp.maximum(y @ params["fc2_w"] + params["fc2_b"], 0.0)
    y = y @ params["fc3_w"] + params["fc3_b"]
    return y


def init_params(key):
    ks = jax.random.split(key, 8)
    return {
        "conv1_w": jax.random.normal(ks[0], (6, 3, 5, 5), jnp.float32) * 0.1,
        "conv2_w": jax.random.normal(ks[1], (16, 6, 5, 5), jnp.float32) * 0.1,
        "fc1_w": jax.random.normal(ks[2], (400, 120), jnp.float32) * 0.05,
        "fc1_b": jax.random.normal(ks[3], (1, 120), jnp.float32) * 0.05,
        "fc2_w": jax.random.normal(ks[4], (120, 84), jnp.float32) * 0.05,
        "fc2_b": jax.random.normal(ks[5], (1, 84), jnp.float32) * 0.05,
        "fc3_w": jax.random.normal(ks[6], (84, 10), jnp.float32) * 0.05,
        "fc3_b": jax.random.normal(ks[7], (1, 10), jnp.float32) * 0.05,
    }


if __name__ == "__main__":
    key = jax.random.PRNGKey(0)
    pkey, xkey = jax.random.split(key)
    params = init_params(pkey)

    # fc1 expects 16*5*5 = 400 features, which implies 32x32 spatial input.
    x = jax.random.normal(xkey, (2, 3, 32, 32), jnp.float32)

    ref = jax.block_until_ready(lenet_reference(x, params))

    # f32 operands: tight correctness check against the pure-JAX reference.
    packed32 = pack_params(params, jnp.float32)
    fwd32 = jax.jit(functools.partial(lenet_forward, compute_dtype=jnp.float32))
    out32 = jax.block_until_ready(fwd32(x, packed32))
    assert out32.shape == (2, 10), out32.shape
    np.testing.assert_allclose(np.asarray(out32), np.asarray(ref),
                               rtol=1e-3, atol=1e-3)

    # bf16 operands (f32 accumulate): half the HBM/VMEM traffic, bf16 MXU path.
    packed16 = pack_params(params, jnp.bfloat16)
    fwd16 = jax.jit(functools.partial(lenet_forward, compute_dtype=jnp.bfloat16))
    out16 = jax.block_until_ready(fwd16(x, packed16))
    np.testing.assert_allclose(np.asarray(out16), np.asarray(ref),
                               rtol=5e-2, atol=5e-2)

    print("KERNEL_OK")
</pallas_src>

<mosaic_0001>
module attributes {stable_mosaic.version = 11 : i64} {
  func.func @_gemm_relu_kernel(%arg0: i32, %arg1: memref<128x128xf32, #tpu.memory_space<vmem>>, %arg2: memref<128x128xf32, #tpu.memory_space<vmem>>, %arg3: memref<128x128xf32, #tpu.memory_space<vmem>>) attributes {dimension_semantics = [#tpu.dimension_semantics<parallel>], iteration_bounds = array<i64: 4>, scalar_prefetch = 0 : i64, scratch_operands = 0 : i64, tpu.core_type = #tpu.core_type<tc>, window_params = [{transform_indices = @transform_0, window_bounds = array<i64: 128, 128>}, {pipeline_mode = #tpu.pipeline_mode<synchronous>, transform_indices = @transform_1, window_bounds = array<i64: 128, 128>}, {transform_indices = @transform_2, window_bounds = array<i64: 128, 128>}]} {
    %c0 = arith.constant 0 : index
    %c0_0 = arith.constant 0 : index
    %0 = vector.load %arg1[%c0, %c0_0] : memref<128x128xf32, #tpu.memory_space<vmem>>, vector<128x128xf32>
    %c0_1 = arith.constant 0 : index
    %c0_2 = arith.constant 0 : index
    %1 = vector.load %arg2[%c0_1, %c0_2] : memref<128x128xf32, #tpu.memory_space<vmem>>, vector<128x128xf32>
    %cst = arith.constant dense<0.000000e+00> : vector<128x128xf32>
    %2 = tpu.matmul %0, %1, %cst {dimension_numbers = #tpu.dot_dimension_numbers<[1], [0], [0], [1], [0, 0, 1, 1], [], []>} : vector<128x128xf32>, vector<128x128xf32>, vector<128x128xf32> -> vector<128x128xf32>
    %cst_3 = arith.constant 0.000000e+00 : f32
    %3 = vector.broadcast %cst_3 : f32 to vector<128x128xf32>
    %4 = arith.maximumf %2, %3 : vector<128x128xf32>
    %c0_4 = arith.constant 0 : index
    %c0_5 = arith.constant 0 : index
    %5 = vector.load %arg3[%c0_4, %c0_5] : memref<128x128xf32, #tpu.memory_space<vmem>>, vector<128x128xf32>
    tpu.vector_store %arg3[%c0_4, %c0_5], %4 {strides = array<i32>} : memref<128x128xf32, #tpu.memory_space<vmem>>, vector<128x128xf32>,
    return
  }
  func.func @transform_0(%arg0: i32) -> (i32, i32) {
    %c0_i32 = arith.constant 0 : i32
    %c0_i32_0 = arith.constant 0 : i32
    return %arg0, %c0_i32 : i32, i32
  }
  func.func @transform_1(%arg0: i32) -> (i32, i32) {
    %c0_i32 = arith.constant 0 : i32
    %c0_i32_0 = arith.constant 0 : i32
    %c0_i32_1 = arith.constant 0 : i32
    return %c0_i32, %c0_i32_0 : i32, i32
  }
  func.func @transform_2(%arg0: i32) -> (i32, i32) {
    %c0_i32 = arith.constant 0 : i32
    %c0_i32_0 = arith.constant 0 : i32
    return %arg0, %c0_i32 : i32, i32
  }
}

module attributes {stable_mosaic.version = 11 : i64} {
  func.func @_fused_head_kernel(%arg0: i32, %arg1: memref<8x3840xf32, #tpu.memory_space<vmem>>, %arg2: memref<3840x512xf32, #tpu.memory_space<vmem>>, %arg3: memref<512x128xf32, #tpu.memory_space<vmem>>, %arg4: memref<1x128xf32, #tpu.memory_space<vmem>>, %arg5: memref<128x128xf32, #tpu.memory_space<vmem>>, %arg6: memref<1x128xf32, #tpu.memory_space<vmem>>, %arg7: memref<128x128xf32, #tpu.memory_space<vmem>>, %arg8: memref<1x128xf32, #tpu.memory_space<vmem>>, %arg9: memref<8x128xf32, #tpu.memory_space<vmem>>) attributes {dimension_semantics = [#tpu.dimension_semantics<parallel>], iteration_bounds = array<i64: 1>, scalar_prefetch = 0 : i64, scratch_operands = 0 : i64, tpu.core_type = #tpu.core_type<tc>, window_params = [{transform_indices = @transform_0, window_bounds = array<i64: 8, 3840>}, {pipeline_mode = #tpu.pipeline_mode<synchronous>, transform_indices = @transform_1, window_bounds = array<i64: 3840, 512>}, {pipeline_mode = #tpu.pipeline_mode<synchronous>, transform_indices = @transform_2, window_bounds = array<i64: 512, 128>}, {pipeline_mode = #tpu.pipeline_mode<synchronous>, transform_indices = @transform_3, window_bounds = array<i64: 1, 128>}, {pipeline_mode = #tpu.pipeline_mode<synchronous>, transform_indices = @transform_4, window_bounds = array<i64: 128, 128>}, {pipeline_mode = #tpu.pipeline_mode<synchronous>, transform_indices = @transform_5, window_bounds = array<i64: 1, 128>}, {pipeline_mode = #tpu.pipeline_mode<synchronous>, transform_indices = @transform_6, window_bounds = array<i64: 128, 128>}, {pipeline_mode = #tpu.pipeline_mode<synchronous>, transform_indices = @transform_7, window_bounds = array<i64: 1, 128>}, {transform_indices = @transform_8, window_bounds = array<i64: 8, 128>}]} {
    %c0 = arith.constant 0 : index
    %c0_0 = arith.constant 0 : index
    %0 = vector.load %arg1[%c0, %c0_0] : memref<8x3840xf32, #tpu.memory_space<vmem>>, vector<8x3840xf32>
    %c0_1 = arith.constant 0 : index
    %c0_2 = arith.constant 0 : index
    %1 = vector.load %arg2[%c0_1, %c0_2] : memref<3840x512xf32, #tpu.memory_space<vmem>>, vector<3840x512xf32>
    %cst = arith.constant dense<0.000000e+00> : vector<8x512xf32>
    %2 = tpu.matmul %0, %1, %cst {dimension_numbers = #tpu.dot_dimension_numbers<[1], [0], [0], [1], [0, 0, 1, 1], [], []>} : vector<8x3840xf32>, vector<3840x512xf32>, vector<8x512xf32> -> vector<8x512xf32>
    %cst_3 = arith.constant 0.000000e+00 : f32
    %3 = vector.broadcast %cst_3 : f32 to vector<8x512xf32>
    %4 = arith.maximumf %2, %3 : vector<8x512xf32>
    %c0_4 = arith.constant 0 : index
    %c0_5 = arith.constant 0 : index
    %5 = vector.load %arg3[%c0_4, %c0_5] : memref<512x128xf32, #tpu.memory_space<vmem>>, vector<512x128xf32>
    %cst_6 = arith.constant dense<0.000000e+00> : vector<8x128xf32>
    %6 = tpu.matmul %4, %5, %cst_6 {dimension_numbers = #tpu.dot_dimension_numbers<[1], [0], [0], [1], [0, 0, 1, 1], [], []>} : vector<8x512xf32>, vector<512x128xf32>, vector<8x128xf32> -> vector<8x128xf32>
    %c0_7 = arith.constant 0 : index
    %c0_8 = arith.constant 0 : index
    %7 = vector.load %arg4[%c0_7, %c0_8] : memref<1x128xf32, #tpu.memory_space<vmem>>, vector<1x128xf32>
    %8 = vector.broadcast %7 : vector<1x128xf32> to vector<8x128xf32>
    %9 = arith.addf %6, %8 : vector<8x128xf32>
    %cst_9 = arith.constant 0.000000e+00 : f32
    %10 = vector.broadcast %cst_9 : f32 to vector<8x128xf32>
    %11 = arith.maximumf %9, %10 : vector<8x128xf32>
    %c0_10 = arith.constant 0 : index
    %c0_11 = arith.constant 0 : index
    %12 = vector.load %arg5[%c0_10, %c0_11] : memref<128x128xf32, #tpu.memory_space<vmem>>, vector<128x128xf32>
    %cst_12 = arith.constant dense<0.000000e+00> : vector<8x128xf32>
    %13 = tpu.matmul %11, %12, %cst_12 {dimension_numbers = #tpu.dot_dimension_numbers<[1], [0], [0], [1], [0, 0, 1, 1], [], []>} : vector<8x128xf32>, vector<128x128xf32>, vector<8x128xf32> -> vector<8x128xf32>
    %c0_13 = arith.constant 0 : index
    %c0_14 = arith.constant 0 : index
    %14 = vector.load %arg6[%c0_13, %c0_14] : memref<1x128xf32, #tpu.memory_space<vmem>>, vector<1x128xf32>
    %15 = vector.broadcast %14 : vector<1x128xf32> to vector<8x128xf32>
    %16 = arith.addf %13, %15 : vector<8x128xf32>
    %cst_15 = arith.constant 0.000000e+00 : f32
    %17 = vector.broadcast %cst_15 : f32 to vector<8x128xf32>
    %18 = arith.maximumf %16, %17 : vector<8x128xf32>
    %c0_16 = arith.constant 0 : index
    %c0_17 = arith.constant 0 : index
    %19 = vector.load %arg7[%c0_16, %c0_17] : memref<128x128xf32, #tpu.memory_space<vmem>>, vector<128x128xf32>
    %cst_18 = arith.constant dense<0.000000e+00> : vector<8x128xf32>
    %20 = tpu.matmul %18, %19, %cst_18 {dimension_numbers = #tpu.dot_dimension_numbers<[1], [0], [0], [1], [0, 0, 1, 1], [], []>} : vector<8x128xf32>, vector<128x128xf32>, vector<8x128xf32> -> vector<8x128xf32>
    %c0_19 = arith.constant 0 : index
    %c0_20 = arith.constant 0 : index
    %21 = vector.load %arg8[%c0_19, %c0_20] : memref<1x128xf32, #tpu.memory_space<vmem>>, vector<1x128xf32>
    %22 = vector.broadcast %21 : vector<1x128xf32> to vector<8x128xf32>
    %23 = arith.addf %20, %22 : vector<8x128xf32>
    %c0_21 = arith.constant 0 : index
    %c0_22 = arith.constant 0 : index
    %24 = vector.load %arg9[%c0_21, %c0_22] : memref<8x128xf32, #tpu.memory_space<vmem>>, vector<8x128xf32>
    tpu.vector_store %arg9[%c0_21, %c0_22], %23 {strides = array<i32>} : memref<8x128xf32, #tpu.memory_space<vmem>>, vector<8x128xf32>,
    return
  }
  func.func @transform_0(%arg0: i32) -> (i32, i32) {
    %c0_i32 = arith.constant 0 : i32
    %c0_i32_0 = arith.constant 0 : i32
    return %arg0, %c0_i32 : i32, i32
  }
  func.func @transform_1(%arg0: i32) -> (i32, i32) {
    %c0_i32 = arith.constant 0 : i32
    %c0_i32_0 = arith.constant 0 : i32
    %c0_i32_1 = arith.constant 0 : i32
    return %c0_i32, %c0_i32_0 : i32, i32
  }
  func.func @transform_2(%arg0: i32) -> (i32, i32) {
    %c0_i32 = arith.constant 0 : i32
    %c0_i32_0 = arith.constant 0 : i32
    %c0_i32_1 = arith.constant 0 : i32
    return %c0_i32, %c0_i32_0 : i32, i32
  }
  func.func @transform_3(%arg0: i32) -> (i32, i32) {
    %c0_i32 = arith.constant 0 : i32
    %c0_i32_0 = arith.constant 0 : i32
    %c0_i32_1 = arith.constant 0 : i32
    return %c0_i32, %c0_i32_0 : i32, i32
  }
  func.func @transform_4(%arg0: i32) -> (i32, i32) {
    %c0_i32 = arith.constant 0 : i32
    %c0_i32_0 = arith.constant 0 : i32
    %c0_i32_1 = arith.constant 0 : i32
    return %c0_i32, %c0_i32_0 : i32, i32
  }
  func.func @transform_5(%arg0: i32) -> (i32, i32) {
    %c0_i32 = arith.constant 0 : i32
    %c0_i32_0 = arith.constant 0 : i32
    %c0_i32_1 = arith.constant 0 : i32
    return %c0_i32, %c0_i32_0 : i32, i32
  }
  func.func @transform_6(%arg0: i32) -> (i32, i32) {
    %c0_i32 = arith.constant 0 : i32
    %c0_i32_0 = arith.constant 0 : i32
    %c0_i32_1 = arith.constant 0 : i32
    return %c0_i32, %c0_i32_0 : i32, i32
  }
  func.func @transform_7(%arg0: i32) -> (i32, i32) {
    %c0_i32 = arith.constant 0 : i32
    %c0_i32_0 = arith.constant 0 : i32
    %c0_i32_1 = arith.constant 0 : i32
    return %c0_i32, %c0_i32_0 : i32, i32
  }
  func.func @transform_8(%arg0: i32) -> (i32, i32) {
    %c0_i32 = arith.constant 0 : i32
    %c0_i32_0 = arith.constant 0 : i32
    return %arg0, %c0_i32 : i32, i32
  }
}

</mosaic_0001>

<bundles_post_ra>
// kernel: lenet_forward.2
= control target key start
LH: loop header
LB: loop body
LE: loop exit
PB: predicated region body
PF: predicated region fallthrough
CT: control target
= control target key end

     0   :  { %7 = vsyncpa [#allocation3], 0  ;;  %s503_s9 = smov 0   ;;  %s570_s0 = inlined_call_operand.vmem [shape: f32[512,128], index: 0, kind: input, shape index: {}]   ;;  %s571_s1 = inlined_call_operand.hbm [shape: f32[128,128], index: 1, kind: input, shape index: {}]   ;;  %s572_s2 = inlined_call_operand.vmem [shape: f32[512,128], index: 2, kind: output, shape index: {}]  }
   0x1 LB: > { %s102_s12 = sshll.u32 %s571_s1, 4  ;;  %s361_s13 = sadd.s32 4294967295, %s483_s9   ;;  %s483_s9 = sphi %s503_s9, %s13_s9   ;;  %s103_s12 = int_to_ptr.hbm [resolvable:$true] %s102_s12 }
   0x2   : > { %p363_p0 = scmp.ge.s32.totalorder %s483_s9, 1  ;;  %p91_p1 = scmp.lt.s32.totalorder %s483_s9, 5 }
   0x3   : > { %p430_p2 = scmp.eq.s32.totalorder %s361_s13, 0  ;;  %s485_s14 = smov [#allocation2]  }
   0x4   : > { %p92_p3 = pnand %p363_p0, %p91_p1  ;;  %s104_s15 = sshll.u32 %s485_s14, 4  ;;  %s105_s15 = int_to_ptr.vmem [resolvable:$true] %s104_s15 }
   0x5   : > { %s486_s16 = smov 128   ;;  %s487_s17 = smov 8  }
   0x6   : > { %p426_p4 = pneg %p92_p3  ;;  %129 = sbr.rel (%p92_p3) target bundleno = 204 (0xcc), region = 28 }
   0x8   : > { %p427_p5 = pnand %p430_p2, %p426_p4 }
   0xa   : > { %429 = dma.hbm_to_vmem [thread:$0]  (!%p427_p5), %s103_s12, 2048, %s105_s15, [#allocation3], %s486_s16, %s486_s16, %s487_s17  }
   0xb   : > { %478 = dma.done.wait (%p430_p2), [#allocation3], 2048  }
   0xc   : > { %480 = vsyncadd (%p430_p2), [#allocation3], 4294965248  ;;  %v195_v0 = vld [vmem:[#allocation2 + $0x78] sm:$0xff]  ;;  %v194_v1 = vld [vmem:[#allocation2 + $0x70] sm:$0xff]  ;;  %s368_s18 = sshll.u32 %s361_s13, 4 }
   0xd   : > { %375 = vmatpush.msra.mxu2 %v195_v0  ;;  %376 = vmatpush.msra.mxu3 %v195_v0  ;;  %v193_v2 = vld [vmem:[#allocation2 + $0x68] sm:$0xff]  ;;  %v192_v3 = vld [vmem:[#allocation2 + $0x60] sm:$0xff]  ;;  %v191_v4 = vld [vmem:[#allocation2 + $0x58] sm:$0xff]  ;;  %p153_p6 = scmp.lt.s32.totalorder %s368_s18, 63 }
   0xe   : > { %196 = vmatpush.msra.mxu0 %v195_v0  ;;  %374 = vmatpush.msra.mxu1 %v195_v0  ;;  %v190_v5 = vld [vmem:[#allocation2 + $0x50] sm:$0xff]  ;;  %v189_v6 = vld [vmem:[#allocation2 + $0x48] sm:$0xff]  ;;  %v188_v7 = vld [vmem:[#allocation2 + $0x40] sm:$0xff] }
   0xf   : > { %378 = vmatpush.msra.mxu2 %v194_v1  ;;  %379 = vmatpush.msra.mxu3 %v194_v1  ;;  %v187_v8 = vld [vmem:[#allocation2 + $0x38] sm:$0xff]  ;;  %v186_v9 = vld [vmem:[#allocation2 + $0x30] sm:$0xff]  ;;  %v185_v10 = vld [vmem:[#allocation2 + $0x28] sm:$0xff]  ;;  %s574_s18 = smov (!%p153_p6, %s368_s18), 63 }
  0x10   : > { %197 = vmatpush.msra.mxu0 %v194_v1  ;;  %377 = vmatpush.msra.mxu1 %v194_v1  ;;  %v184_v11 = vld [vmem:[#allocation2 + $0x20] sm:$0xff]  ;;  %v183_v12 = vld [vmem:[#allocation2 + $0x18] sm:$0xff]  ;;  %s369_s19 = sshll.u32 %s574_s18, 3  ;;  %v182_v13 = vld [vmem:[#allocation2 + $0x10] sm:$0xff] }
  0x11   : > { %381 = vmatpush.msra.mxu2 %v193_v2  ;;  %382 = vmatpush.msra.mxu3 %v193_v2  ;;  %v181_v14 = vld [vmem:[#allocation2 + $0x8] sm:$0xff]  ;;  %s526_s22 = scalar_lea.vmem %s570_s0, %s369_s19  ;;  %v180_v15 = vld [vmem:[#allocation2] sm:$0xff]  ;;  %s549_s25 = scalar_lea.vmem %s572_s2, %s369_s19 }
  0x12   : > { %198 = vmatpush.msra.mxu0 %v193_v2  ;;  %380 = vmatpush.msra.mxu1 %v193_v2  ;;  %v172_v16 = vld [vmem:[%s526_s22 + $0x40] sm:$0xff]  ;;  %v173_v20 = vld [vmem:[%s526_s22 + $0x48] sm:$0xff]  ;;  %v174_v24 = vld [vmem:[%s526_s22 + $0x50] sm:$0xff] }
  0x13   : > { %384 = vmatpush.msra.mxu2 %v192_v3  ;;  %385 = vmatpush.msra.mxu3 %v192_v3  ;;  %v176_v17 = vld [vmem:[%s526_s22 + $0x60] sm:$0xff]  ;;  %v177_v21 = vld [vmem:[%s526_s22 + $0x68] sm:$0xff]  ;;  %v178_v25 = vld [vmem:[%s526_s22 + $0x70] sm:$0xff] }
  0x14   : > { %199 = vmatpush.msra.mxu0 %v192_v3  ;;  %383 = vmatpush.msra.mxu1 %v192_v3  ;;  %v164_v18 = vld [vmem:[%s526_s22] sm:$0xff]  ;;  %v165_v22 = vld [vmem:[%s526_s22 + $0x8] sm:$0xff]  ;;  %v166_v26 = vld [vmem:[%s526_s22 + $0x10] sm:$0xff] }
  0x15   : > { %387 = vmatpush.msra.mxu2 %v191_v4  ;;  %388 = vmatpush.msra.mxu3 %v191_v4  ;;  %v168_v19 = vld [vmem:[%s526_s22 + $0x20] sm:$0xff]  ;;  %v169_v23 = vld [vmem:[%s526_s22 + $0x28] sm:$0xff]  ;;  %v170_v27 = vld [vmem:[%s526_s22 + $0x30] sm:$0xff] }
  0x16   : > { %200 = vmatpush.msra.mxu0 %v191_v4  ;;  %386 = vmatpush.msra.mxu1 %v191_v4  ;;  %v175_v28 = vld [vmem:[%s526_s22 + $0x58] sm:$0xff] }
  0x17   : > { %390 = vmatpush.msra.mxu2 %v190_v5  ;;  %391 = vmatpush.msra.mxu3 %v190_v5  ;;  %v179_v29 = vld [vmem:[%s526_s22 + $0x78] sm:$0xff] }
  0x18   : > { %201 = vmatpush.msra.mxu0 %v190_v5  ;;  %389 = vmatpush.msra.mxu1 %v190_v5  ;;  %v167_v30 = vld [vmem:[%s526_s22 + $0x18] sm:$0xff] }
  0x19   : > { %393 = vmatpush.msra.mxu2 %v189_v6  ;;  %394 = vmatpush.msra.mxu3 %v189_v6  ;;  %v171_v31 = vld [vmem:[%s526_s22 + $0x38] sm:$0xff] }
  0x1a   : > { %202 = vmatpush.msra.mxu0 %v189_v6  ;;  %392 = vmatpush.msra.mxu1 %v189_v6 }
  0x1b   : > { %396 = vmatpush.msra.mxu2 %v188_v7  ;;  %397 = vmatpush.msra.mxu3 %v188_v7 }
  0x1c   : > { %203 = vmatpush.msra.mxu0 %v188_v7  ;;  %395 = vmatpush.msra.mxu1 %v188_v7 }
  0x1d   : > { %399 = vmatpush.msra.mxu2 %v187_v8  ;;  %400 = vmatpush.msra.mxu3 %v187_v8 }
  0x1e   : > { %204 = vmatpush.msra.mxu0 %v187_v8  ;;  %398 = vmatpush.msra.mxu1 %v187_v8 }
  0x1f   : > { %402 = vmatpush.msra.mxu2 %v186_v9  ;;  %403 = vmatpush.msra.mxu3 %v186_v9 }
  0x20   : > { %205 = vmatpush.msra.mxu0 %v186_v9  ;;  %401 = vmatpush.msra.mxu1 %v186_v9 }
  0x21   : > { %405 = vmatpush.msra.mxu2 %v185_v10  ;;  %406 = vmatpush.msra.mxu3 %v185_v10 }
  0x22   : > { %206 = vmatpush.msra.mxu0 %v185_v10  ;;  %404 = vmatpush.msra.mxu1 %v185_v10 }
  0x23   : > { %408 = vmatpush.msra.mxu2 %v184_v11  ;;  %409 = vmatpush.msra.mxu3 %v184_v11 }
  0x24   : > { %207 = vmatpush.msra.mxu0 %v184_v11  ;;  %407 = vmatpush.msra.mxu1 %v184_v11 }
  0x25   : > { %411 = vmatpush.msra.mxu2 %v183_v12  ;;  %412 = vmatpush.msra.mxu3 %v183_v12 }
  0x26   : > { %208 = vmatpush.msra.mxu0 %v183_v12  ;;  %410 = vmatpush.msra.mxu1 %v183_v12 }
  0x27   : > { %414 = vmatpush.msra.mxu2 %v182_v13  ;;  %415 = vmatpush.msra.mxu3 %v182_v13 }
  0x28   : > { %209 = vmatpush.msra.mxu0 %v182_v13  ;;  %413 = vmatpush.msra.mxu1 %v182_v13 }
  0x29   : > { %417 = vmatpush.msra.mxu2 %v181_v14  ;;  %418 = vmatpush.msra.mxu3 %v181_v14 }
  0x2a   : > { %210 = vmatpush.msra.mxu0 %v181_v14  ;;  %416 = vmatpush.msra.mxu1 %v181_v14 }
  0x2b   : > { %420 = vmatpush.msra.mxu2 %v180_v15  ;;  %421 = vmatpush.msra.mxu3 %v180_v15 }
  0x2c   : > { %236 = vmatmul.f32.vlgmr.msra.gmra.mxu2 %v172_v16  ;;  %248 = vmatmul.f32.vlgmr.msra.gmra.mxu3 %v176_v17 }
  0x2d   : > { %211 = vmatpush.msra.mxu0 %v180_v15  ;;  %419 = vmatpush.msra.mxu1 %v180_v15 }
  0x2e   : > { %212 = vmatmul.f32.vlgmr.msra.gmra.mxu0 %v164_v18  ;;  %224 = vmatmul.f32.vlgmr.msra.gmra.mxu1 %v168_v19 }
  0x34   : > { %239 = vmatmul.f32.gmra.mxu2 %v173_v20  ;;  %251 = vmatmul.f32.gmra.mxu3 %v177_v21 }
  0x36   : > { %215 = vmatmul.f32.gmra.mxu0 %v165_v22  ;;  %227 = vmatmul.f32.gmra.mxu1 %v169_v23 }
  0x3c   : > { %242 = vmatmul.f32.gmra.mxu2 %v174_v24  ;;  %254 = vmatmul.f32.gmra.mxu3 %v178_v25 }
  0x3e   : > { %218 = vmatmul.f32.gmra.mxu0 %v166_v26  ;;  %230 = vmatmul.f32.gmra.mxu1 %v170_v27 }
  0x44   : > { %245 = vmatmul.f32.gmra.mxu2 %v175_v28  ;;  %257 = vmatmul.f32.gmra.mxu3 %v179_v29 }
  0x46   : > { %221 = vmatmul.f32.gmra.mxu0 %v167_v30  ;;  %233 = vmatmul.f32.gmra.mxu1 %v171_v31 }
  0xab   : > { %v213_v32 = vpop.f32.mrf.mxu0  ;;  %v225_v33 = vpop.f32.mrf.mxu1 }
  0xac   : > { %v261_v34 = vmax.f32 %v213_v32, 0.0  ;;  %v265_v35 = vmax.f32 %v225_v33, 0.0 }
  0xae   : > { %277 = vst [vmem:[%s549_s25] sm:$0xff] %v261_v34 }
  0xaf   : > { %281 = vst [vmem:[%s549_s25 + $0x20] sm:$0xff] %v265_v35  ;;  %v237_v36 = vpop.f32.mrf.mxu2  ;;  %v249_v37 = vpop.f32.mrf.mxu3 }
  0xb0   : > { %v269_v38 = vmax.f32 %v237_v36, 0.0  ;;  %v273_v39 = vmax.f32 %v249_v37, 0.0 }
  0xb2   : > { %285 = vst [vmem:[%s549_s25 + $0x40] sm:$0xff] %v269_v38 }
  0xb3   : > { %289 = vst [vmem:[%s549_s25 + $0x60] sm:$0xff] %v273_v39  ;;  %v216_v40 = vpop.f32.mrf.mxu0  ;;  %v228_v41 = vpop.f32.mrf.mxu1 }
  0xb4   : > { %v262_v42 = vmax.f32 %v216_v40, 0.0  ;;  %v266_v43 = vmax.f32 %v228_v41, 0.0 }
  0xb6   : > { %278 = vst [vmem:[%s549_s25 + $0x8] sm:$0xff] %v262_v42 }
  0xb7   : > { %282 = vst [vmem:[%s549_s25 + $0x28] sm:$0xff] %v266_v43  ;;  %v240_v44 = vpop.f32.mrf.mxu2  ;;  %v252_v45 = vpop.f32.mrf.mxu3 }
  0xb8   : > { %v270_v46 = vmax.f32 %v240_v44, 0.0  ;;  %v274_v47 = vmax.f32 %v252_v45, 0.0 }
  0xba   : > { %286 = vst [vmem:[%s549_s25 + $0x48] sm:$0xff] %v270_v46 }
  0xbb   : > { %290 = vst [vmem:[%s549_s25 + $0x68] sm:$0xff] %v274_v47  ;;  %v219_v48 = vpop.f32.mrf.mxu0  ;;  %v231_v49 = vpop.f32.mrf.mxu1 }
  0xbc   : > { %v263_v50 = vmax.f32 %v219_v48, 0.0  ;;  %v267_v51 = vmax.f32 %v231_v49, 0.0 }
  0xbe   : > { %279 = vst [vmem:[%s549_s25 + $0x10] sm:$0xff] %v263_v50 }
  0xbf   : > { %283 = vst [vmem:[%s549_s25 + $0x30] sm:$0xff] %v267_v51  ;;  %v243_v52 = vpop.f32.mrf.mxu2  ;;  %v255_v53 = vpop.f32.mrf.mxu3 }
  0xc0   : > { %v271_v54 = vmax.f32 %v243_v52, 0.0  ;;  %v275_v55 = vmax.f32 %v255_v53, 0.0 }
  0xc2   : > { %287 = vst [vmem:[%s549_s25 + $0x50] sm:$0xff] %v271_v54 }
  0xc3   : > { %291 = vst [vmem:[%s549_s25 + $0x70] sm:$0xff] %v275_v55  ;;  %v222_v56 = vpop.f32.mrf.mxu0  ;;  %v234_v57 = vpop.f32.mrf.mxu1 }
  0xc4   : > { %v264_v58 = vmax.f32 %v222_v56, 0.0  ;;  %v268_v59 = vmax.f32 %v234_v57, 0.0 }
  0xc6   : > { %280 = vst [vmem:[%s549_s25 + $0x18] sm:$0xff] %v264_v58 }
  0xc7   : > { %284 = vst [vmem:[%s549_s25 + $0x38] sm:$0xff] %v268_v59  ;;  %v246_v60 = vpop.f32.mrf.mxu2  ;;  %v258_v61 = vpop.f32.mrf.mxu3 }
  0xc8   : > { %v272_v62 = vmax.f32 %v246_v60, 0.0  ;;  %v276_v63 = vmax.f32 %v258_v61, 0.0 }
  0xca   : > { %288 = vst [vmem:[%s549_s25 + $0x58] sm:$0xff] %v272_v62 }
  0xcb   : > { %292 = vst [vmem:[%s549_s25 + $0x78] sm:$0xff] %v276_v63 }
  0xcc PF: > { %s13_s9 = sadd.s32 1, %s483_s9  }
  0xcd   : > { %p10_p7 = scmp.ge.s32.totalorder %s13_s9, 6  }
  0xcf   :  { %12 = sbr.rel (!%p10_p7) target bundleno = 1 (0x1), region = 63 }
  0xd4   :  { %315 = vsyncpa [#allocation3], 1 }
  0xd5   :  { %317 = vsyncpa [#allocation3 + $0x1], 1 }

// kernel: lenet_forward.3
= control target key start
LH: loop header
LB: loop body
LE: loop exit
PB: predicated region body
PF: predicated region fallthrough
CT: control target
= control target key end

     0   :  { %13 = vsyncpa [#allocation3], 0  ;;  %s5625_s0 = inlined_call_operand.vmem [shape: f32[8,3840], index: 0, kind: input, shape index: {}]   ;;  %s5626_s1 = inlined_call_operand.hbm [shape: f32[3840,512], index: 1, kind: input, shape index: {}]   ;;  %s5627_s2 = inlined_call_operand.hbm [shape: f32[512,128], index: 2, kind: input, shape index: {}]   ;;  %s5628_s3 = inlined_call_operand.hbm [shape: f32[1,128], index: 3, kind: input, shape index: {}]   ;;  %s5629_s4 = inlined_call_operand.hbm [shape: f32[128,128], index: 4, kind: input, shape index: {}]   ;;  %s5630_s5 = inlined_call_operand.hbm [shape: f32[1,128], index: 5, kind: input, shape index: {}]   ;;  %s5631_s6 = inlined_call_operand.hbm [shape: f32[128,128], index: 6, kind: input, shape index: {}]   ;;  %s5632_s7 = inlined_call_operand.hbm [shape: f32[1,128], index: 7, kind: input, shape index: {}]   ;;  %s5633_s8 = inlined_call_operand.vmem [shape: f32[8,128], index: 8, kind: output, shape index: {}]  }
   0x1   :  { %14 = vsyncpa [#allocation5], 0 }
   0x2   :  { %15 = vsyncpa [#allocation8], 0  ;;  %s36_s29 = sshll.u32 %s5627_s2, 4  ;;  %s37_s29 = int_to_ptr.hbm [resolvable:$true] %s36_s29 }
   0x3   :  { %16 = vsyncpa [#allocation11], 0  ;;  %s5005_s30 = smov [#allocation4]   ;;  %s60_s12 = sshll.u32 %s5629_s4, 4  ;;  %s61_s12 = int_to_ptr.hbm [resolvable:$true] %s60_s12 }
   0x4   :  { %s38_s9 = sshll.u32 %s5005_s30, 4  ;;  %s5006_s13 = smov 128   ;;  %s39_s9 = int_to_ptr.vmem [resolvable:$true] %s38_s9 }
   0x5   :  { %s5007_s14 = smov 8   ;;  %s5008_s15 = smov [#allocation7]  }
   0x6   :  { %44 = dma.hbm_to_vmem [thread:$0]  %s37_s29, 8192, %s39_s9, [#allocation5], %s5006_s13, %s5006_s13, %s5007_s14  }
   0x7   :  { %s62_s16 = sshll.u32 %s5008_s15, 4  ;;  %s84_s19 = sshll.u32 %s5631_s6, 4  ;;  %s63_s16 = int_to_ptr.vmem [resolvable:$true] %s62_s16  ;;  %s85_s19 = int_to_ptr.hbm [resolvable:$true] %s84_s19 }
   0x8   :  { %68 = dma.hbm_to_vmem [thread:$0]  %s61_s12, 2048, %s63_s16, [#allocation8], %s5006_s13, %s5006_s13, %s5007_s14  }
   0x9   :  { %s23_s21 = sshll.u32 %s5626_s1, 4  ;;  %s5009_s22 = smov [#allocation10]   ;;  %s24_s21 = int_to_ptr.hbm [resolvable:$true] %s23_s21 }
   0xa   :  { %s86_s23 = sshll.u32 %s5009_s22, 4  ;;  %s5010_s4 = smov [#allocation2]   ;;  %s87_s23 = int_to_ptr.vmem [resolvable:$true] %s86_s23 }
   0xb   :  { %92 = dma.hbm_to_vmem [thread:$0]  %s85_s19, 2048, %s87_s23, [#allocation11], %s5006_s13, %s5006_s13, %s5007_s14  }
   0xc   :  { %s25_s24 = sshll.u32 %s5010_s4, 4  ;;  %s5011_s25 = smov 512   ;;  %s26_s24 = int_to_ptr.vmem [resolvable:$true] %s25_s24 }
   0xd   :  { %s5012_s26 = smov 32   ;;  %s50_s28 = sshll.u32 %s5628_s3, 4  ;;  %s51_s28 = int_to_ptr.hbm [resolvable:$true] %s50_s28 }
   0xe   :  { %31 = dma.hbm_to_vmem [thread:$0]  %s24_s21, 245760, %s26_s24, [#allocation3], %s5011_s25, %s5011_s25, %s5012_s26  }
   0xf   :  { %s5013_s29 = smov [#allocation6]   ;;  %s74_s10 = sshll.u32 %s5630_s5, 4  ;;  %s75_s10 = int_to_ptr.hbm [resolvable:$true] %s74_s10 }
  0x10   :  { %s52_s30 = sshll.u32 %s5013_s29, 4  ;;  %s5014_s11 = smov [#allocation9]   ;;  %s53_s30 = int_to_ptr.vmem [resolvable:$true] %s52_s30 }
  0x11   :  { %55 = dma.hbm_to_vmem [thread:$0]  %s51_s28, 16, %s53_s30, [#allocation5]  }
  0x12   :  { %s76_s12 = sshll.u32 %s5014_s11, 4  ;;  %s98_s15 = sshll.u32 %s5632_s7, 4  ;;  %s77_s12 = int_to_ptr.vmem [resolvable:$true] %s76_s12  ;;  %s99_s15 = int_to_ptr.hbm [resolvable:$true] %s98_s15 }
  0x13   :  { %79 = dma.hbm_to_vmem [thread:$0]  %s75_s10, 16, %s77_s12, [#allocation8]  }
  0x14   :  { %s5015_s3 = smov [#allocation12]  }
  0x15   :  { %s100_s16 = sshll.u32 %s5015_s3, 4  ;;  %s101_s16 = int_to_ptr.vmem [resolvable:$true] %s100_s16 }
  0x16   :  { %103 = dma.hbm_to_vmem [thread:$0]  %s99_s15, 16, %s101_s16, [#allocation11]  }
  0x17   :  { %4997 = dma.done.wait [#allocation3], 245760  }
  0x18   :  { %4998 = vsyncadd [#allocation3], 4294721536 }
  0x19   :  { %4999 = dma.done.wait [#allocation5], 8208  }
  0x1a   :  { %5000 = vsyncadd [#allocation5], 4294959088 }
  0x1b   :  { %5001 = dma.done.wait [#allocation8], 2064  }
  0x1c   :  { %5002 = vsyncadd [#allocation8], 4294965232 }
  0x1d   :  { %5003 = dma.done.wait [#allocation11], 2064  }
  0x1e   :  { %5004 = vsyncadd [#allocation11], 4294965232  ;;  %v222_v0 = vld [vmem:[#allocation2 + $0x1e0] sm:$0xff] }
  0x1f   :  { %v286_v1 = vld [vmem:[#allocation2 + $0x3e0] sm:$0xff]  ;;  %2082 = vmatpush.msra.mxu0 %v222_v0 }
  0x20   :  { %v350_v2 = vld [vmem:[#allocation2 + $0x5e0] sm:$0xff]  ;;  %2102 = vmatpush.msra.mxu1 %v286_v1 }
  0x21   :  { %v218_v3 = vld [vmem:[#allocation2 + $0x1c0] sm:$0xff]  ;;  %2122 = vmatpush.msra.mxu2 %v350_v2 }
  0x22   :  { %v282_v4 = vld [vmem:[#allocation2 + $0x3c0] sm:$0xff]  ;;  %2083 = vmatpush.msra.mxu0 %v218_v3 }
  0x23   :  { %v346_v5 = vld [vmem:[#allocation2 + $0x5c0] sm:$0xff]  ;;  %2103 = vmatpush.msra.mxu1 %v282_v4 }
  0x24   :  { %v414_v6 = vld [vmem:[#allocation2 + $0x7e0] sm:$0xff]  ;;  %2123 = vmatpush.msra.mxu2 %v346_v5 }
  0x25   :  { %v214_v7 = vld [vmem:[#allocation2 + $0x1a0] sm:$0xff]  ;;  %2142 = vmatpush.msra.mxu3 %v414_v6 }
  0x26   :  { %v278_v8 = vld [vmem:[#allocation2 + $0x3a0] sm:$0xff]  ;;  %2084 = vmatpush.msra.mxu0 %v214_v7 }
  0x27   :  { %v342_v9 = vld [vmem:[#allocation2 + $0x5a0] sm:$0xff]  ;;  %2104 = vmatpush.msra.mxu1 %v278_v8 }
  0x28   :  { %v410_v10 = vld [vmem:[#allocation2 + $0x7c0] sm:$0xff]  ;;  %2124 = vmatpush.msra.mxu2 %v342_v9 }
  0x29   :  { %v210_v11 = vld [vmem:[#allocation2 + $0x180] sm:$0xff]  ;;  %2143 = vmatpush.msra.mxu3 %v410_v10 }
  0x2a   :  { %v274_v12 = vld [vmem:[#allocation2 + $0x380] sm:$0xff]  ;;  %2085 = vmatpush.msra.mxu0 %v210_v11 }
  0x2b   :  { %v338_v13 = vld [vmem:[#allocation2 + $0x580] sm:$0xff]  ;;  %2105 = vmatpush.msra.mxu1 %v274_v12 }
  0x2c   :  { %v406_v14 = vld [vmem:[#allocation2 + $0x7a0] sm:$0xff]  ;;  %2125 = vmatpush.msra.mxu2 %v338_v13 }
  0x2d   :  { %v206_v15 = vld [vmem:[#allocation2 + $0x160] sm:$0xff]  ;;  %2144 = vmatpush.msra.mxu3 %v406_v14 }
  0x2e   :  { %v270_v16 = vld [vmem:[#allocation2 + $0x360] sm:$0xff]  ;;  %2086 = vmatpush.msra.mxu0 %v206_v15 }
  0x2f   :  { %v334_v17 = vld [vmem:[#allocation2 + $0x560] sm:$0xff]  ;;  %2106 = vmatpush.msra.mxu1 %v270_v16 }
  0x30   :  { %v402_v18 = vld [vmem:[#allocation2 + $0x780] sm:$0xff]  ;;  %2126 = vmatpush.msra.mxu2 %v334_v17 }
  0x31   :  { %v202_v19 = vld [vmem:[#allocation2 + $0x140] sm:$0xff]  ;;  %2145 = vmatpush.msra.mxu3 %v402_v18 }
  0x32   :  { %v266_v20 = vld [vmem:[#allocation2 + $0x340] sm:$0xff]  ;;  %2087 = vmatpush.msra.mxu0 %v202_v19 }
  0x33   :  { %v330_v21 = vld [vmem:[#allocation2 + $0x540] sm:$0xff]  ;;  %2107 = vmatpush.msra.mxu1 %v266_v20 }
  0x34   :  { %v398_v22 = vld [vmem:[#allocation2 + $0x760] sm:$0xff]  ;;  %2127 = vmatpush.msra.mxu2 %v330_v21 }
  0x35   :  { %v198_v23 = vld [vmem:[#allocation2 + $0x120] sm:$0xff]  ;;  %2146 = vmatpush.msra.mxu3 %v398_v22 }
  0x36   :  { %v262_v24 = vld [vmem:[#allocation2 + $0x320] sm:$0xff]  ;;  %2088 = vmatpush.msra.mxu0 %v198_v23 }
  0x37   :  { %v326_v25 = vld [vmem:[#allocation2 + $0x520] sm:$0xff]  ;;  %2108 = vmatpush.msra.mxu1 %v262_v24 }
  0x38   :  { %v394_v26 = vld [vmem:[#allocation2 + $0x740] sm:$0xff]  ;;  %2128 = vmatpush.msra.mxu2 %v326_v25 }
  0x39   :  { %v194_v27 = vld [vmem:[#allocation2 + $0x100] sm:$0xff]  ;;  %2147 = vmatpush.msra.mxu3 %v394_v26 }
  0x3a   :  { %v258_v28 = vld [vmem:[#allocation2 + $0x300] sm:$0xff]  ;;  %2089 = vmatpush.msra.mxu0 %v194_v27 }
  0x3b   :  { %v322_v29 = vld [vmem:[#allocation2 + $0x500] sm:$0xff]  ;;  %2109 = vmatpush.msra.mxu1 %v258_v28 }
  0x3c   :  { %v390_v30 = vld [vmem:[#allocation2 + $0x720] sm:$0xff]  ;;  %2129 = vmatpush.msra.mxu2 %v322_v29 }
  0x3d   :  { %v190_v31 = vld [vmem:[#allocation2 + $0xe0] sm:$0xff]  ;;  %2148 = vmatpush.msra.mxu3 %v390_v30 }
  0x3e   :  { %v254_v32 = vld [vmem:[#allocation2 + $0x2e0] sm:$0xff]  ;;  %2090 = vmatpush.msra.mxu0 %v190_v31 }
  0x3f   :  { %v318_v33 = vld [vmem:[#allocation2 + $0x4e0] sm:$0xff]  ;;  %2110 = vmatpush.msra.mxu1 %v254_v32 }
  0x40   :  { %v386_v34 = vld [vmem:[#allocation2 + $0x700] sm:$0xff]  ;;  %2130 = vmatpush.msra.mxu2 %v318_v33 }
  0x41   :  { %v186_v35 = vld [vmem:[#allocation2 + $0xc0] sm:$0xff]  ;;  %2149 = vmatpush.msra.mxu3 %v386_v34 }
  0x42   :  { %v250_v36 = vld [vmem:[#allocation2 + $0x2c0] sm:$0xff]  ;;  %2091 = vmatpush.msra.mxu0 %v186_v35 }
  0x43   :  { %v314_v37 = vld [vmem:[#allocation2 + $0x4c0] sm:$0xff]  ;;  %2111 = vmatpush.msra.mxu1 %v250_v36 }
  0x44   :  { %v382_v38 = vld [vmem:[#allocation2 + $0x6e0] sm:$0xff]  ;;  %2131 = vmatpush.msra.mxu2 %v314_v37 }
  0x45   :  { %v182_v39 = vld [vmem:[#allocation2 + $0xa0] sm:$0xff]  ;;  %2150 = vmatpush.msra.mxu3 %v382_v38 }
  0x46   :  { %v246_v40 = vld [vmem:[#allocation2 + $0x2a0] sm:$0xff]  ;;  %2092 = vmatpush.msra.mxu0 %v182_v39 }
  0x47   :  { %v310_v41 = vld [vmem:[#allocation2 + $0x4a0] sm:$0xff]  ;;  %2112 = vmatpush.msra.mxu1 %v246_v40 }
  0x48   :  { %v378_v42 = vld [vmem:[#allocation2 + $0x6c0] sm:$0xff]  ;;  %2132 = vmatpush.msra.mxu2 %v310_v41 }
  0x49   :  { %v178_v43 = vld [vmem:[#allocation2 + $0x80] sm:$0xff]  ;;  %2151 = vmatpush.msra.mxu3 %v378_v42 }
  0x4a   :  { %v242_v44 = vld [vmem:[#allocation2 + $0x280] sm:$0xff]  ;;  %2093 = vmatpush.msra.mxu0 %v178_v43 }
  0x4b   :  { %v306_v45 = vld [vmem:[#allocation2 + $0x480] sm:$0xff]  ;;  %2113 = vmatpush.msra.mxu1 %v242_v44 }
  0x4c   :  { %v374_v46 = vld [vmem:[#allocation2 + $0x6a0] sm:$0xff]  ;;  %2133 = vmatpush.msra.mxu2 %v306_v45 }
  0x4d   :  { %v174_v47 = vld [vmem:[#allocation2 + $0x60] sm:$0xff]  ;;  %2152 = vmatpush.msra.mxu3 %v374_v46 }
  0x4e   :  { %v238_v48 = vld [vmem:[#allocation2 + $0x260] sm:$0xff]  ;;  %2094 = vmatpush.msra.mxu0 %v174_v47 }
  0x4f   :  { %v302_v49 = vld [vmem:[#allocation2 + $0x460] sm:$0xff]  ;;  %2114 = vmatpush.msra.mxu1 %v238_v48 }
  0x50   :  { %v370_v50 = vld [vmem:[#allocation2 + $0x680] sm:$0xff]  ;;  %2134 = vmatpush.msra.mxu2 %v302_v49 }
  0x51   :  { %v170_v51 = vld [vmem:[#allocation2 + $0x40] sm:$0xff]  ;;  %2153 = vmatpush.msra.mxu3 %v370_v50 }
  0x52   :  { %v234_v52 = vld [vmem:[#allocation2 + $0x240] sm:$0xff]  ;;  %2095 = vmatpush.msra.mxu0 %v170_v51 }
  0x53   :  { %v298_v53 = vld [vmem:[#allocation2 + $0x440] sm:$0xff]  ;;  %2115 = vmatpush.msra.mxu1 %v234_v52 }
  0x54   :  { %v366_v54 = vld [vmem:[#allocation2 + $0x660] sm:$0xff]  ;;  %2135 = vmatpush.msra.mxu2 %v298_v53 }
  0x55   :  { %v166_v55 = vld [vmem:[#allocation2 + $0x20] sm:$0xff]  ;;  %2154 = vmatpush.msra.mxu3 %v366_v54 }
  0x56   :  { %v230_v56 = vld [vmem:[#allocation2 + $0x220] sm:$0xff]  ;;  %2096 = vmatpush.msra.mxu0 %v166_v55 }
  0x57   :  { %v294_v57 = vld [vmem:[#allocation2 + $0x420] sm:$0xff]  ;;  %2116 = vmatpush.msra.mxu1 %v230_v56 }
  0x58   :  { %v362_v58 = vld [vmem:[#allocation2 + $0x640] sm:$0xff]  ;;  %2136 = vmatpush.msra.mxu2 %v294_v57 }
  0x59   :  { %v162_v59 = vld [vmem:[#allocation2] sm:$0xff]  ;;  %2155 = vmatpush.msra.mxu3 %v362_v58 }
  0x5a   :  { %v226_v60 = vld [vmem:[#allocation2 + $0x200] sm:$0xff]  ;;  %2097 = vmatpush.msra.mxu0 %v162_v59  ;;  %v134_v59 = vld [vmem:[%s5625_s0 + $0x10] sm:$0xff] }
  0x5b   :  { %v290_v61 = vld [vmem:[#allocation2 + $0x400] sm:$0xff]  ;;  %2117 = vmatpush.msra.mxu1 %v226_v60 }
  0x5c   :  { %v358_v62 = vld [vmem:[#allocation2 + $0x620] sm:$0xff]  ;;  %2137 = vmatpush.msra.mxu2 %v290_v61 }
  0x5d   :  { %v478_v63 = vld [vmem:[#allocation2 + $0x9e0] sm:$0xff]  ;;  %2156 = vmatpush.msra.mxu3 %v358_v62  ;;  %2138 = vmatmul.f32.vlgmr.msra.gmra.mxu2 %v134_v59 }
  0x5e   :  { %v542_v0 = vld [vmem:[#allocation2 + $0xbe0] sm:$0xff]  ;;  %2162 = vmatpush.msrb.mxu0 %v478_v63 }
  0x5f   :  { %v606_v1 = vld [vmem:[#allocation2 + $0xde0] sm:$0xff]  ;;  %2182 = vmatpush.msrb.mxu1 %v542_v0 }
  0x60   :  { %v354_v2 = vld [vmem:[#allocation2 + $0x600] sm:$0xff]  ;;  %2202 = vmatpush.msrb.mxu2 %v606_v1  ;;  %v133_v1 = vld [vmem:[%s5625_s0 + $0x8] sm:$0xff] }
  0x61   :  { %v474_v3 = vld [vmem:[#allocation2 + $0x9c0] sm:$0xff]  ;;  %2157 = vmatpush.msra.mxu3 %v354_v2  ;;  %v135_v2 = vld [vmem:[%s5625_s0 + $0x18] sm:$0xff]  ;;  %2118 = vmatmul.f32.vlgmr.msra.gmra.mxu1 %v133_v1 }
  0x62   :  { %v538_v4 = vld [vmem:[#allocation2 + $0xbc0] sm:$0xff]  ;;  %2163 = vmatpush.msrb.mxu0 %v474_v3  ;;  %2158 = vmatmul.f32.vlgmr.msra.gmra.mxu3 %v135_v2 }
  0x63   :  { %v602_v5 = vld [vmem:[#allocation2 + $0xdc0] sm:$0xff]  ;;  %2183 = vmatpush.msrb.mxu1 %v538_v4 }
  0x64   :  { %v670_v6 = vld [vmem:[#allocation2 + $0xfe0] sm:$0xff]  ;;  %2203 = vmatpush.msrb.mxu2 %v602_v5 }
  0x65   :  { %v470_v7 = vld [vmem:[#allocation2 + $0x9a0] sm:$0xff]  ;;  %2222 = vmatpush.msrb.mxu3 %v670_v6 }
  0x66   :  { %v534_v8 = vld [vmem:[#allocation2 + $0xba0] sm:$0xff]  ;;  %2164 = vmatpush.msrb.mxu0 %v470_v7 }
  0x67   :  { %v598_v9 = vld [vmem:[#allocation2 + $0xda0] sm:$0xff]  ;;  %2184 = vmatpush.msrb.mxu1 %v534_v8 }
  0x68   :  { %v666_v10 = vld [vmem:[#allocation2 + $0xfc0] sm:$0xff]  ;;  %2204 = vmatpush.msrb.mxu2 %v598_v9 }
  0x69   :  { %v466_v11 = vld [vmem:[#allocation2 + $0x980] sm:$0xff]  ;;  %2223 = vmatpush.msrb.mxu3 %v666_v10 }
  0x6a   :  { %v530_v12 = vld [vmem:[#allocation2 + $0xb80] sm:$0xff]  ;;  %2165 = vmatpush.msrb.mxu0 %v466_v11 }
  0x6b   :  { %v594_v13 = vld [vmem:[#allocation2 + $0xd80] sm:$0xff]  ;;  %2185 = vmatpush.msrb.mxu1 %v530_v12 }
  0x6c   :  { %v662_v14 = vld [vmem:[#allocation2 + $0xfa0] sm:$0xff]  ;;  %2205 = vmatpush.msrb.mxu2 %v594_v13 }
  0x6d   :  { %v462_v15 = vld [vmem:[#allocation2 + $0x960] sm:$0xff]  ;;  %2224 = vmatpush.msrb.mxu3 %v662_v14 }
  0x6e   :  { %v526_v16 = vld [vmem:[#allocation2 + $0xb60] sm:$0xff]  ;;  %2166 = vmatpush.msrb.mxu0 %v462_v15  ;;  %v138_v15 = vld [vmem:[%s5625_s0 + $0x30] sm:$0xff] }
  0x6f   :  { %v590_v17 = vld [vmem:[#allocation2 + $0xd60] sm:$0xff]  ;;  %2186 = vmatpush.msrb.mxu1 %v526_v16 }
  0x70   :  { %v658_v18 = vld [vmem:[#allocation2 + $0xf80] sm:$0xff]  ;;  %2206 = vmatpush.msrb.mxu2 %v590_v17 }
  0x71   :  { %v458_v19 = vld [vmem:[#allocation2 + $0x940] sm:$0xff]  ;;  %2225 = vmatpush.msrb.mxu3 %v658_v18 }
  0x72   :  { %v522_v20 = vld [vmem:[#allocation2 + $0xb40] sm:$0xff]  ;;  %2167 = vmatpush.msrb.mxu0 %v458_v19 }
  0x73   :  { %v586_v21 = vld [vmem:[#allocation2 + $0xd40] sm:$0xff]  ;;  %2187 = vmatpush.msrb.mxu1 %v522_v20 }
  0x74   :  { %v654_v22 = vld [vmem:[#allocation2 + $0xf60] sm:$0xff]  ;;  %2207 = vmatpush.msrb.mxu2 %v586_v21  ;;  %v139_v21 = vld [vmem:[%s5625_s0 + $0x38] sm:$0xff] }
  0x75   :  { %v454_v23 = vld [vmem:[#allocation2 + $0x920] sm:$0xff]  ;;  %2226 = vmatpush.msrb.mxu3 %v654_v22 }
  0x76   :  { %v518_v24 = vld [vmem:[#allocation2 + $0xb20] sm:$0xff]  ;;  %2168 = vmatpush.msrb.mxu0 %v454_v23 }
  0x77   :  { %v582_v25 = vld [vmem:[#allocation2 + $0xd20] sm:$0xff]  ;;  %2188 = vmatpush.msrb.mxu1 %v518_v24 }
  0x78   :  { %v650_v26 = vld [vmem:[#allocation2 + $0xf40] sm:$0xff]  ;;  %2208 = vmatpush.msrb.mxu2 %v582_v25 }
  0x79   :  { %v450_v27 = vld [vmem:[#allocation2 + $0x900] sm:$0xff]  ;;  %2227 = vmatpush.msrb.mxu3 %v650_v26  ;;  %v137_v26 = vld [vmem:[%s5625_s0 + $0x28] sm:$0xff] }
  0x7a   :  { %v514_v28 = vld [vmem:[#allocation2 + $0xb00] sm:$0xff]  ;;  %2169 = vmatpush.msrb.mxu0 %v450_v27 }
  0x7b   :  { %v578_v29 = vld [vmem:[#allocation2 + $0xd00] sm:$0xff]  ;;  %2189 = vmatpush.msrb.mxu1 %v514_v28 }
  0x7c   :  { %v646_v30 = vld [vmem:[#allocation2 + $0xf20] sm:$0xff]  ;;  %2209 = vmatpush.msrb.mxu2 %v578_v29 }
  0x7d   :  { %v446_v31 = vld [vmem:[#allocation2 + $0x8e0] sm:$0xff]  ;;  %2228 = vmatpush.msrb.mxu3 %v646_v30 }
  0x7e   :  { %v510_v32 = vld [vmem:[#allocation2 + $0xae0] sm:$0xff]  ;;  %2170 = vmatpush.msrb.mxu0 %v446_v31 }
  0x7f   :  { %v574_v33 = vld [vmem:[#allocation2 + $0xce0] sm:$0xff]  ;;  %2190 = vmatpush.msrb.mxu1 %v510_v32 }
  0x80   :  { %v642_v34 = vld [vmem:[#allocation2 + $0xf00] sm:$0xff]  ;;  %2210 = vmatpush.msrb.mxu2 %v574_v33 }
  0x81   :  { %v442_v35 = vld [vmem:[#allocation2 + $0x8c0] sm:$0xff]  ;;  %2229 = vmatpush.msrb.mxu3 %v642_v34 }
  0x82   :  { %v506_v36 = vld [vmem:[#allocation2 + $0xac0] sm:$0xff]  ;;  %2171 = vmatpush.msrb.mxu0 %v442_v35 }
  0x83   :  { %v570_v37 = vld [vmem:[#allocation2 + $0xcc0] sm:$0xff]  ;;  %2191 = vmatpush.msrb.mxu1 %v506_v36 }
  0x84   :  { %v638_v38 = vld [vmem:[#allocation2 + $0xee0] sm:$0xff]  ;;  %2211 = vmatpush.msrb.mxu2 %v570_v37 }
  0x85   :  { %v438_v39 = vld [vmem:[#allocation2 + $0x8a0] sm:$0xff]  ;;  %2230 = vmatpush.msrb.mxu3 %v638_v38 }
  0x86   :  { %v502_v40 = vld [vmem:[#allocation2 + $0xaa0] sm:$0xff]  ;;  %2172 = vmatpush.msrb.mxu0 %v438_v39 }
  0x87   :  { %v566_v41 = vld [vmem:[#allocation2 + $0xca0] sm:$0xff]  ;;  %2192 = vmatpush.msrb.mxu1 %v502_v40 }
  0x88   :  { %v634_v42 = vld [vmem:[#allocation2 + $0xec0] sm:$0xff]  ;;  %2212 = vmatpush.msrb.mxu2 %v566_v41 }
  0x89   :  { %v434_v43 = vld [vmem:[#allocation2 + $0x880] sm:$0xff]  ;;  %2231 = vmatpush.msrb.mxu3 %v634_v42 }
  0x8a   :  { %v498_v44 = vld [vmem:[#allocation2 + $0xa80] sm:$0xff]  ;;  %2173 = vmatpush.msrb.mxu0 %v434_v43 }
  0x8b   :  { %v562_v45 = vld [vmem:[#allocation2 + $0xc80] sm:$0xff]  ;;  %2193 = vmatpush.msrb.mxu1 %v498_v44 }
  0x8c   :  { %v630_v46 = vld [vmem:[#allocation2 + $0xea0] sm:$0xff]  ;;  %2213 = vmatpush.msrb.mxu2 %v562_v45 }
  0x8d   :  { %v430_v47 = vld [vmem:[#allocation2 + $0x860] sm:$0xff]  ;;  %2232 = vmatpush.msrb.mxu3 %v630_v46 }
  0x8e   :  { %v494_v48 = vld [vmem:[#allocation2 + $0xa60] sm:$0xff]  ;;  %2174 = vmatpush.msrb.mxu0 %v430_v47 }
  0x8f   :  { %v558_v49 = vld [vmem:[#allocation2 + $0xc60] sm:$0xff]  ;;  %2194 = vmatpush.msrb.mxu1 %v494_v48 }
  0x90   :  { %v626_v50 = vld [vmem:[#allocation2 + $0xe80] sm:$0xff]  ;;  %2214 = vmatpush.msrb.mxu2 %v558_v49 }
  0x91   :  { %v426_v51 = vld [vmem:[#allocation2 + $0x840] sm:$0xff]  ;;  %2233 = vmatpush.msrb.mxu3 %v626_v50 }
  0x92   :  { %v490_v52 = vld [vmem:[#allocation2 + $0xa40] sm:$0xff]  ;;  %2175 = vmatpush.msrb.mxu0 %v426_v51 }
  0x93   :  { %v554_v53 = vld [vmem:[#allocation2 + $0xc40] sm:$0xff]  ;;  %2195 = vmatpush.msrb.mxu1 %v490_v52 }
  0x94   :  { %v622_v54 = vld [vmem:[#allocation2 + $0xe60] sm:$0xff]  ;;  %2215 = vmatpush.msrb.mxu2 %v554_v53 }
  0x95   :  { %v422_v55 = vld [vmem:[#allocation2 + $0x820] sm:$0xff]  ;;  %2234 = vmatpush.msrb.mxu3 %v622_v54 }
  0x96   :  { %v486_v56 = vld [vmem:[#allocation2 + $0xa20] sm:$0xff]  ;;  %2176 = vmatpush.msrb.mxu0 %v422_v55 }
  0x97   :  { %v550_v57 = vld [vmem:[#allocation2 + $0xc20] sm:$0xff]  ;;  %2196 = vmatpush.msrb.mxu1 %v486_v56 }
  0x98   :  { %v618_v58 = vld [vmem:[#allocation2 + $0xe40] sm:$0xff]  ;;  %2216 = vmatpush.msrb.mxu2 %v550_v57 }
  0x99   :  { %v418_v60 = vld [vmem:[#allocation2 + $0x800] sm:$0xff]  ;;  %2235 = vmatpush.msrb.mxu3 %v618_v58 }
  0x9a   :  { %v482_v61 = vld [vmem:[#allocation2 + $0xa00] sm:$0xff]  ;;  %2177 = vmatpush.msrb.mxu0 %v418_v60 }
  0x9b   :  { %v546_v62 = vld [vmem:[#allocation2 + $0xc00] sm:$0xff]  ;;  %2197 = vmatpush.msrb.mxu1 %v482_v61 }
  0x9c   :  { %v614_v63 = vld [vmem:[#allocation2 + $0xe20] sm:$0xff]  ;;  %2217 = vmatpush.msrb.mxu2 %v546_v62  ;;  %2198 = vmatmul.f32.vlgmr.msrb.gmra.mxu1 %v137_v26 }
  0x9d   :  { %v132_v0 = vld [vmem:[%s5625_s0] sm:$0xff]  ;;  %2236 = vmatpush.msrb.mxu3 %v614_v63  ;;  %2218 = vmatmul.f32.vlgmr.msrb.gmra.mxu2 %v138_v15 }
  0x9e   :  { %v734_v3 = vld [vmem:[#allocation2 + $0x11e0] sm:$0xff]  ;;  %2098 = vmatmul.f32.vlgmr.msra.gmra.mxu0 %v132_v0 }
  0x9f   :  { %v798_v4 = vld [vmem:[#allocation2 + $0x13e0] sm:$0xff]  ;;  %2242 = vmatpush.msra.mxu0 %v734_v3 }
  0xa0   :  { %v862_v5 = vld [vmem:[#allocation2 + $0x15e0] sm:$0xff]  ;;  %2262 = vmatpush.msra.mxu1 %v798_v4 }
  0xa1   :  { %v610_v6 = vld [vmem:[#allocation2 + $0xe00] sm:$0xff]  ;;  %2282 = vmatpush.msra.mxu2 %v862_v5 }
  0xa2   :  { %v730_v7 = vld [vmem:[#allocation2 + $0x11c0] sm:$0xff]  ;;  %2237 = vmatpush.msrb.mxu3 %v610_v6 }
  0xa3   :  { %v794_v8 = vld [vmem:[#allocation2 + $0x13c0] sm:$0xff]  ;;  %2243 = vmatpush.msra.mxu0 %v730_v7  ;;  %2238 = vmatmul.f32.vlgmr.msrb.gmra.mxu3 %v139_v21 }
  0xa4   :  { %v858_v9 = vld [vmem:[#allocation2 + $0x15c0] sm:$0xff]  ;;  %2263 = vmatpush.msra.mxu1 %v794_v8  ;;  %v142_v8 = vld [vmem:[%s5625_s0 + $0x50] sm:$0xff] }
  0xa5   :  { %v926_v10 = vld [vmem:[#allocation2 + $0x17e0] sm:$0xff]  ;;  %2283 = vmatpush.msra.mxu2 %v858_v9 }
  0xa6   :  { %v726_v11 = vld [vmem:[#allocation2 + $0x11a0] sm:$0xff]  ;;  %2302 = vmatpush.msra.mxu3 %v926_v10 }
  0xa7   :  { %v790_v12 = vld [vmem:[#allocation2 + $0x13a0] sm:$0xff]  ;;  %2244 = vmatpush.msra.mxu0 %v726_v11 }
  0xa8   :  { %v854_v13 = vld [vmem:[#allocation2 + $0x15a0] sm:$0xff]  ;;  %2264 = vmatpush.msra.mxu1 %v790_v12 }
  0xa9   :  { %v922_v14 = vld [vmem:[#allocation2 + $0x17c0] sm:$0xff]  ;;  %2284 = vmatpush.msra.mxu2 %v854_v13  ;;  %v141_v13 = vld [vmem:[%s5625_s0 + $0x48] sm:$0xff] }
  0xaa   :  { %v722_v16 = vld [vmem:[#allocation2 + $0x1180] sm:$0xff]  ;;  %2303 = vmatpush.msra.mxu3 %v922_v14  ;;  %v143_v14 = vld [vmem:[%s5625_s0 + $0x58] sm:$0xff] }
  0xab   :  { %v786_v17 = vld [vmem:[#allocation2 + $0x1380] sm:$0xff]  ;;  %2245 = vmatpush.msra.mxu0 %v722_v16 }
  0xac   :  { %v850_v18 = vld [vmem:[#allocation2 + $0x1580] sm:$0xff]  ;;  %2265 = vmatpush.msra.mxu1 %v786_v17 }
  0xad   :  { %v918_v19 = vld [vmem:[#allocation2 + $0x17a0] sm:$0xff]  ;;  %2285 = vmatpush.msra.mxu2 %v850_v18 }
  0xae   :  { %v136_v20 = vld [vmem:[%s5625_s0 + $0x20] sm:$0xff]  ;;  %2304 = vmatpush.msra.mxu3 %v918_v19 }
  0xaf   :  { %v718_v22 = vld [vmem:[#allocation2 + $0x1160] sm:$0xff]  ;;  %2178 = vmatmul.f32.vlgmr.msrb.gmra.mxu0 %v136_v20 }
  0xb0   :  { %v782_v23 = vld [vmem:[#allocation2 + $0x1360] sm:$0xff]  ;;  %2246 = vmatpush.msra.mxu0 %v718_v22 }
  0xb1   :  { %v846_v24 = vld [vmem:[#allocation2 + $0x1560] sm:$0xff]  ;;  %2266 = vmatpush.msra.mxu1 %v782_v23 }
  0xb2   :  { %v914_v25 = vld [vmem:[#allocation2 + $0x1780] sm:$0xff]  ;;  %2286 = vmatpush.msra.mxu2 %v846_v24 }
  0xb3   :  { %v714_v27 = vld [vmem:[#allocation2 + $0x1140] sm:$0xff]  ;;  %2305 = vmatpush.msra.mxu3 %v914_v25 }
  0xb4   :  { %v778_v28 = vld [vmem:[#allocation2 + $0x1340] sm:$0xff]  ;;  %2247 = vmatpush.msra.mxu0 %v714_v27 }
  0xb5   :  { %v842_v29 = vld [vmem:[#allocation2 + $0x1540] sm:$0xff]  ;;  %2267 = vmatpush.msra.mxu1 %v778_v28 }
  0xb6   :  { %v910_v30 = vld [vmem:[#allocation2 + $0x1760] sm:$0xff]  ;;  %2287 = vmatpush.msra.mxu2 %v842_v29 }
  0xb7   :  { %v710_v31 = vld [vmem:[#allocation2 + $0x1120] sm:$0xff]  ;;  %2306 = vmatpush.msra.mxu3 %v910_v30 }
  0xb8   :  { %v774_v32 = vld [vmem:[#allocation2 + $0x1320] sm:$0xff]  ;;  %2248 = vmatpush.msra.mxu0 %v710_v31 }
  0xb9   :  { %v838_v33 = vld [vmem:[#allocation2 + $0x1520] sm:$0xff]  ;;  %2268 = vmatpush.msra.mxu1 %v774_v32 }
  0xba   :  { %v906_v34 = vld [vmem:[#allocation2 + $0x1740] sm:$0xff]  ;;  %2288 = vmatpush.msra.mxu2 %v838_v33 }
  0xbb   :  { %v706_v35 = vld [vmem:[#allocation2 + $0x1100] sm:$0xff]  ;;  %2307 = vmatpush.msra.mxu3 %v906_v34 }
  0xbc   :  { %v770_v36 = vld [vmem:[#allocation2 + $0x1300] sm:$0xff]  ;;  %2249 = vmatpush.msra.mxu0 %v706_v35 }
  0xbd   :  { %v834_v37 = vld [vmem:[#allocation2 + $0x1500] sm:$0xff]  ;;  %2269 = vmatpush.msra.mxu1 %v770_v36 }
  0xbe   :  { %v902_v38 = vld [vmem:[#allocation2 + $0x1720] sm:$0xff]  ;;  %2289 = vmatpush.msra.mxu2 %v834_v37 }
  0xbf   :  { %v702_v39 = vld [vmem:[#allocation2 + $0x10e0] sm:$0xff]  ;;  %2308 = vmatpush.msra.mxu3 %v902_v38 }
  0xc0   :  { %v766_v40 = vld [vmem:[#allocation2 + $0x12e0] sm:$0xff]  ;;  %2250 = vmatpush.msra.mxu0 %v702_v39 }
  0xc1   :  { %v830_v41 = vld [vmem:[#allocation2 + $0x14e0] sm:$0xff]  ;;  %2270 = vmatpush.msra.mxu1 %v766_v40 }
  0xc2   :  { %v898_v42 = vld [vmem:[#allocation2 + $0x1700] sm:$0xff]  ;;  %2290 = vmatpush.msra.mxu2 %v830_v41 }
  0xc3   :  { %v698_v43 = vld [vmem:[#allocation2 + $0x10c0] sm:$0xff]  ;;  %2309 = vmatpush.msra.mxu3 %v898_v42 }
  0xc4   :  { %v762_v44 = vld [vmem:[#allocation2 + $0x12c0] sm:$0xff]  ;;  %2251 = vmatpush.msra.mxu0 %v698_v43 }
  0xc5   :  { %v826_v45 = vld [vmem:[#allocation2 + $0x14c0] sm:$0xff]  ;;  %2271 = vmatpush.msra.mxu1 %v762_v44 }
  0xc6   :  { %v894_v46 = vld [vmem:[#allocation2 + $0x16e0] sm:$0xff]  ;;  %2291 = vmatpush.msra.mxu2 %v826_v45 }
  0xc7   :  { %v694_v47 = vld [vmem:[#allocation2 + $0x10a0] sm:$0xff]  ;;  %2310 = vmatpush.msra.mxu3 %v894_v46 }
  0xc8   :  { %v758_v48 = vld [vmem:[#allocation2 + $0x12a0] sm:$0xff]  ;;  %2252 = vmatpush.msra.mxu0 %v694_v47 }
  0xc9   :  { %v822_v49 = vld [vmem:[#allocation2 + $0x14a0] sm:$0xff]  ;;  %2272 = vmatpush.msra.mxu1 %v758_v48 }
  0xca   :  { %v890_v50 = vld [vmem:[#allocation2 + $0x16c0] sm:$0xff]  ;;  %2292 = vmatpush.msra.mxu2 %v822_v49 }
  0xcb   :  { %v690_v51 = vld [vmem:[#allocation2 + $0x1080] sm:$0xff]  ;;  %2311 = vmatpush.msra.mxu3 %v890_v50 }
  0xcc   :  { %v754_v52 = vld [vmem:[#allocation2 + $0x1280] sm:$0xff]  ;;  %2253 = vmatpush.msra.mxu0 %v690_v51 }
  0xcd   :  { %v818_v53 = vld [vmem:[#allocation2 + $0x1480] sm:$0xff]  ;;  %2273 = vmatpush.msra.mxu1 %v754_v52 }
  0xce   :  { %v886_v54 = vld [vmem:[#allocation2 + $0x16a0] sm:$0xff]  ;;  %2293 = vmatpush.msra.mxu2 %v818_v53 }
  0xcf   :  { %v686_v55 = vld [vmem:[#allocation2 + $0x1060] sm:$0xff]  ;;  %2312 = vmatpush.msra.mxu3 %v886_v54 }
  0xd0   :  { %v750_v56 = vld [vmem:[#allocation2 + $0x1260] sm:$0xff]  ;;  %2254 = vmatpush.msra.mxu0 %v686_v55 }
  0xd1   :  { %v814_v57 = vld [vmem:[#allocation2 + $0x1460] sm:$0xff]  ;;  %2274 = vmatpush.msra.mxu1 %v750_v56 }
  0xd2   :  { %v882_v58 = vld [vmem:[#allocation2 + $0x1680] sm:$0xff]  ;;  %2294 = vmatpush.msra.mxu2 %v814_v57 }
  0xd3   :  { %v682_v59 = vld [vmem:[#allocation2 + $0x1040] sm:$0xff]  ;;  %2313 = vmatpush.msra.mxu3 %v882_v58 }
  0xd4   :  { %v746_v60 = vld [vmem:[#allocation2 + $0x1240] sm:$0xff]  ;;  %2255 = vmatpush.msra.mxu0 %v682_v59 }
  0xd5   :  { %v810_v61 = vld [vmem:[#allocation2 + $0x1440] sm:$0xff]  ;;  %2275 = vmatpush.msra.mxu1 %v746_v60 }
  0xd6   :  { %v878_v62 = vld [vmem:[#allocation2 + $0x1660] sm:$0xff]  ;;  %2295 = vmatpush.msra.mxu2 %v810_v61 }
  0xd7   :  { %v678_v63 = vld [vmem:[#allocation2 + $0x1020] sm:$0xff]  ;;  %2314 = vmatpush.msra.mxu3 %v878_v62 }
  0xd8   :  { %v742_v0 = vld [vmem:[#allocation2 + $0x1220] sm:$0xff]  ;;  %2256 = vmatpush.msra.mxu0 %v678_v63 }
  0xd9   :  { %v806_v1 = vld [vmem:[#allocation2 + $0x1420] sm:$0xff]  ;;  %2276 = vmatpush.msra.mxu1 %v742_v0 }
  0xda   :  { %v874_v2 = vld [vmem:[#allocation2 + $0x1640] sm:$0xff]  ;;  %2296 = vmatpush.msra.mxu2 %v806_v1 }
  0xdb   :  { %v674_v3 = vld [vmem:[#allocation2 + $0x1000] sm:$0xff]  ;;  %2315 = vmatpush.msra.mxu3 %v874_v2 }
  0xdc   :  { %v738_v4 = vld [vmem:[#allocation2 + $0x1200] sm:$0xff]  ;;  %2257 = vmatpush.msra.mxu0 %v674_v3 }
  0xdd   :  { %v802_v5 = vld [vmem:[#allocation2 + $0x1400] sm:$0xff]  ;;  %2277 = vmatpush.msra.mxu1 %v738_v4 }
  0xde   :  { %v870_v6 = vld [vmem:[#allocation2 + $0x1620] sm:$0xff]  ;;  %2297 = vmatpush.msra.mxu2 %v802_v5  ;;  %2278 = vmatmul.f32.vlgmr.msra.gmra.mxu1 %v141_v13 }
  0xdf   :  { %v140_v7 = vld [vmem:[%s5625_s0 + $0x40] sm:$0xff]  ;;  %2316 = vmatpush.msra.mxu3 %v870_v6  ;;  %2298 = vmatmul.f32.vlgmr.msra.gmra.mxu2 %v142_v8 }
  0xe0   :  { %v990_v9 = vld [vmem:[#allocation2 + $0x19e0] sm:$0xff]  ;;  %2258 = vmatmul.f32.vlgmr.msra.gmra.mxu0 %v140_v7 }
  0xe1   :  { %v1054_v10 = vld [vmem:[#allocation2 + $0x1be0] sm:$0xff]  ;;  %2322 = vmatpush.msrb.mxu0 %v990_v9 }
  0xe2   :  { %v1118_v11 = vld [vmem:[#allocation2 + $0x1de0] sm:$0xff]  ;;  %2342 = vmatpush.msrb.mxu1 %v1054_v10 }
  0xe3   :  { %v866_v12 = vld [vmem:[#allocation2 + $0x1600] sm:$0xff]  ;;  %2362 = vmatpush.msrb.mxu2 %v1118_v11 }
  0xe4   :  { %v986_v15 = vld [vmem:[#allocation2 + $0x19c0] sm:$0xff]  ;;  %2317 = vmatpush.msra.mxu3 %v866_v12  ;;  %v146_v12 = vld [vmem:[%s5625_s0 + $0x70] sm:$0xff] }
  0xe5   :  { %v1050_v16 = vld [vmem:[#allocation2 + $0x1bc0] sm:$0xff]  ;;  %2318 = vmatmul.f32.vlgmr.msra.gmra.mxu3 %v143_v14  ;;  %2323 = vmatpush.msrb.mxu0 %v986_v15 }
  0xe6   :  { %v1114_v17 = vld [vmem:[#allocation2 + $0x1dc0] sm:$0xff]  ;;  %2343 = vmatpush.msrb.mxu1 %v1050_v16 }
  0xe7   :  { %v1182_v18 = vld [vmem:[#allocation2 + $0x1fe0] sm:$0xff]  ;;  %2363 = vmatpush.msrb.mxu2 %v1114_v17  ;;  %v145_v17 = vld [vmem:[%s5625_s0 + $0x68] sm:$0xff] }
  0xe8   :  { %v982_v19 = vld [vmem:[#allocation2 + $0x19a0] sm:$0xff]  ;;  %2382 = vmatpush.msrb.mxu3 %v1182_v18  ;;  %v147_v18 = vld [vmem:[%s5625_s0 + $0x78] sm:$0xff] }
  0xe9   :  { %v1046_v20 = vld [vmem:[#allocation2 + $0x1ba0] sm:$0xff]  ;;  %2324 = vmatpush.msrb.mxu0 %v982_v19 }
  0xea   :  { %v1110_v21 = vld [vmem:[#allocation2 + $0x1da0] sm:$0xff]  ;;  %2344 = vmatpush.msrb.mxu1 %v1046_v20 }
  0xeb   :  { %v1178_v22 = vld [vmem:[#allocation2 + $0x1fc0] sm:$0xff]  ;;  %2364 = vmatpush.msrb.mxu2 %v1110_v21 }
  0xec   :  { %v978_v23 = vld [vmem:[#allocation2 + $0x1980] sm:$0xff]  ;;  %2383 = vmatpush.msrb.mxu3 %v1178_v22 }
  0xed   :  { %v1042_v24 = vld [vmem:[#allocation2 + $0x1b80] sm:$0xff]  ;;  %2325 = vmatpush.msrb.mxu0 %v978_v23 }
  0xee   :  { %v1106_v25 = vld [vmem:[#allocation2 + $0x1d80] sm:$0xff]  ;;  %2345 = vmatpush.msrb.mxu1 %v1042_v24 }
  0xef   :  { %v1174_v26 = vld [vmem:[#allocation2 + $0x1fa0] sm:$0xff]  ;;  %2365 = vmatpush.msrb.mxu2 %v1106_v25 }
  0xf0   :  { %v974_v27 = vld [vmem:[#allocation2 + $0x1960] sm:$0xff]  ;;  %2384 = vmatpush.msrb.mxu3 %v1174_v26 }
  0xf1   :  { %v1038_v28 = vld [vmem:[#allocation2 + $0x1b60] sm:$0xff]  ;;  %2326 = vmatpush.msrb.mxu0 %v974_v27 }
  0xf2   :  { %v1102_v29 = vld [vmem:[#allocation2 + $0x1d60] sm:$0xff]  ;;  %2346 = vmatpush.msrb.mxu1 %v1038_v28 }
  0xf3   :  { %v1170_v30 = vld [vmem:[#allocation2 + $0x1f80] sm:$0xff]  ;;  %2366 = vmatpush.msrb.mxu2 %v1102_v29 }
  0xf4   :  { %v970_v31 = vld [vmem:[#allocation2 + $0x1940] sm:$0xff]  ;;  %2385 = vmatpush.msrb.mxu3 %v1170_v30 }
  0xf5   :  { %v1034_v32 = vld [vmem:[#allocation2 + $0x1b40] sm:$0xff]  ;;  %2327 = vmatpush.msrb.mxu0 %v970_v31 }
  0xf6   :  { %v1098_v33 = vld [vmem:[#allocation2 + $0x1d40] sm:$0xff]  ;;  %2347 = vmatpush.msrb.mxu1 %v1034_v32 }
  0xf7   :  { %v1166_v34 = vld [vmem:[#allocation2 + $0x1f60] sm:$0xff]  ;;  %2367 = vmatpush.msrb.mxu2 %v1098_v33 }
  0xf8   :  { %v966_v35 = vld [vmem:[#allocation2 + $0x1920] sm:$0xff]  ;;  %2386 = vmatpush.msrb.mxu3 %v1166_v34 }
  0xf9   :  { %v1030_v36 = vld [vmem:[#allocation2 + $0x1b20] sm:$0xff]  ;;  %2328 = vmatpush.msrb.mxu0 %v966_v35 }
  0xfa   :  { %v1094_v37 = vld [vmem:[#allocation2 + $0x1d20] sm:$0xff]  ;;  %2348 = vmatpush.msrb.mxu1 %v1030_v36 }
  0xfb   :  { %v1162_v38 = vld [vmem:[#allocation2 + $0x1f40] sm:$0xff]  ;;  %2368 = vmatpush.msrb.mxu2 %v1094_v37 }
  0xfc   :  { %v962_v39 = vld [vmem:[#allocation2 + $0x1900] sm:$0xff]  ;;  %2387 = vmatpush.msrb.mxu3 %v1162_v38 }
  0xfd   :  { %v1026_v40 = vld [vmem:[#allocation2 + $0x1b00] sm:$0xff]  ;;  %2329 = vmatpush.msrb.mxu0 %v962_v39 }
  0xfe   :  { %v1090_v41 = vld [vmem:[#allocation2 + $0x1d00] sm:$0xff]  ;;  %2349 = vmatpush.msrb.mxu1 %v1026_v40 }
  0xff   :  { %v1158_v42 = vld [vmem:[#allocation2 + $0x1f20] sm:$0xff]  ;;  %2369 = vmatpush.msrb.mxu2 %v1090_v41 }
 0x100   :  { %v958_v43 = vld [vmem:[#allocation2 + $0x18e0] sm:$0xff]  ;;  %2388 = vmatpush.msrb.mxu3 %v1158_v42 }
 0x101   :  { %v1022_v44 = vld [vmem:[#allocation2 + $0x1ae0] sm:$0xff]  ;;  %2330 = vmatpush.msrb.mxu0 %v958_v43 }
 0x102   :  { %v1086_v45 = vld [vmem:[#allocation2 + $0x1ce0] sm:$0xff]  ;;  %2350 = vmatpush.msrb.mxu1 %v1022_v44 }
 0x103   :  { %v1154_v46 = vld [vmem:[#allocation2 + $0x1f00] sm:$0xff]  ;;  %2370 = vmatpush.msrb.mxu2 %v1086_v45 }
 0x104   :  { %v954_v47 = vld [vmem:[#allocation2 + $0x18c0] sm:$0xff]  ;;  %2389 = vmatpush.msrb.mxu3 %v1154_v46 }
 0x105   :  { %v1018_v48 = vld [vmem:[#allocation2 + $0x1ac0] sm:$0xff]  ;;  %2331 = vmatpush.msrb.mxu0 %v954_v47 }
 0x106   :  { %v1082_v49 = vld [vmem:[#allocation2 + $0x1cc0] sm:$0xff]  ;;  %2351 = vmatpush.msrb.mxu1 %v1018_v48 }
 0x107   :  { %v1150_v50 = vld [vmem:[#allocation2 + $0x1ee0] sm:$0xff]  ;;  %2371 = vmatpush.msrb.mxu2 %v1082_v49 }
 0x108   :  { %v950_v51 = vld [vmem:[#allocation2 + $0x18a0] sm:$0xff]  ;;  %2390 = vmatpush.msrb.mxu3 %v1150_v50 }
 0x109   :  { %v1014_v52 = vld [vmem:[#allocation2 + $0x1aa0] sm:$0xff]  ;;  %2332 = vmatpush.msrb.mxu0 %v950_v51 }
 0x10a   :  { %v1078_v53 = vld [vmem:[#allocation2 + $0x1ca0] sm:$0xff]  ;;  %2352 = vmatpush.msrb.mxu1 %v1014_v52 }
 0x10b   :  { %v1146_v54 = vld [vmem:[#allocation2 + $0x1ec0] sm:$0xff]  ;;  %2372 = vmatpush.msrb.mxu2 %v1078_v53 }
 0x10c   :  { %v946_v55 = vld [vmem:[#allocation2 + $0x1880] sm:$0xff]  ;;  %2391 = vmatpush.msrb.mxu3 %v1146_v54 }
 0x10d   :  { %v1010_v56 = vld [vmem:[#allocation2 + $0x1a80] sm:$0xff]  ;;  %2333 = vmatpush.msrb.mxu0 %v946_v55 }
 0x10e   :  { %v1074_v57 = vld [vmem:[#allocation2 + $0x1c80] sm:$0xff]  ;;  %2353 = vmatpush.msrb.mxu1 %v1010_v56 }
 0x10f   :  { %v1142_v58 = vld [vmem:[#allocation2 + $0x1ea0] sm:$0xff]  ;;  %2373 = vmatpush.msrb.mxu2 %v1074_v57 }
 0x110   :  { %v942_v59 = vld [vmem:[#allocation2 + $0x1860] sm:$0xff]  ;;  %2392 = vmatpush.msrb.mxu3 %v1142_v58 }
 0x111   :  { %v1006_v60 = vld [vmem:[#allocation2 + $0x1a60] sm:$0xff]  ;;  %2334 = vmatpush.msrb.mxu0 %v942_v59 }
 0x112   :  { %v1070_v61 = vld [vmem:[#allocation2 + $0x1c60] sm:$0xff]  ;;  %2354 = vmatpush.msrb.mxu1 %v1006_v60 }
 0x113   :  { %v1138_v62 = vld [vmem:[#allocation2 + $0x1e80] sm:$0xff]  ;;  %2374 = vmatpush.msrb.mxu2 %v1070_v61 }
 0x114   :  { %v938_v63 = vld [vmem:[#allocation2 + $0x1840] sm:$0xff]  ;;  %2393 = vmatpush.msrb.mxu3 %v1138_v62 }
 0x115   :  { %v1002_v0 = vld [vmem:[#allocation2 + $0x1a40] sm:$0xff]  ;;  %2335 = vmatpush.msrb.mxu0 %v938_v63 }
 0x116   :  { %v1066_v1 = vld [vmem:[#allocation2 + $0x1c40] sm:$0xff]  ;;  %2355 = vmatpush.msrb.mxu1 %v1002_v0 }
 0x117   :  { %v1134_v2 = vld [vmem:[#allocation2 + $0x1e60] sm:$0xff]  ;;  %2375 = vmatpush.msrb.mxu2 %v1066_v1 }
 0x118   :  { %v934_v3 = vld [vmem:[#allocation2 + $0x1820] sm:$0xff]  ;;  %2394 = vmatpush.msrb.mxu3 %v1134_v2 }
 0x119   :  { %v998_v4 = vld [vmem:[#allocation2 + $0x1a20] sm:$0xff]  ;;  %2336 = vmatpush.msrb.mxu0 %v934_v3 }
 0x11a   :  { %v1062_v5 = vld [vmem:[#allocation2 + $0x1c20] sm:$0xff]  ;;  %2356 = vmatpush.msrb.mxu1 %v998_v4 }
 0x11b   :  { %v1130_v6 = vld [vmem:[#allocation2 + $0x1e40] sm:$0xff]  ;;  %2376 = vmatpush.msrb.mxu2 %v1062_v5 }
 0x11c   :  { %v930_v7 = vld [vmem:[#allocation2 + $0x1800] sm:$0xff]  ;;  %2395 = vmatpush.msrb.mxu3 %v1130_v6 }
 0x11d   :  { %v994_v8 = vld [vmem:[#allocation2 + $0x1a00] sm:$0xff]  ;;  %2337 = vmatpush.msrb.mxu0 %v930_v7 }
 0x11e   :  { %v1058_v9 = vld [vmem:[#allocation2 + $0x1c00] sm:$0xff]  ;;  %2357 = vmatpush.msrb.mxu1 %v994_v8 }
 0x11f   :  { %v1126_v10 = vld [vmem:[#allocation2 + $0x1e20] sm:$0xff]  ;;  %2377 = vmatpush.msrb.mxu2 %v1058_v9  ;;  %2358 = vmatmul.f32.vlgmr.msrb.gmra.mxu1 %v145_v17 }
 0x120   :  { %v144_v11 = vld [vmem:[%s5625_s0 + $0x60] sm:$0xff]  ;;  %2396 = vmatpush.msrb.mxu3 %v1126_v10  ;;  %2378 = vmatmul.f32.vlgmr.msrb.gmra.mxu2 %v146_v12 }
 0x121   :  { %v1246_v13 = vld [vmem:[#allocation2 + $0x21e0] sm:$0xff]  ;;  %2338 = vmatmul.f32.vlgmr.msrb.gmra.mxu0 %v144_v11 }
 0x122   :  { %v1310_v14 = vld [vmem:[#allocation2 + $0x23e0] sm:$0xff]  ;;  %2402 = vmatpush.msra.mxu0 %v1246_v13 }
 0x123   :  { %v1374_v15 = vld [vmem:[#allocation2 + $0x25e0] sm:$0xff]  ;;  %2422 = vmatpush.msra.mxu1 %v1310_v14 }
 0x124   :  { %v1122_v16 = vld [vmem:[#allocation2 + $0x1e00] sm:$0xff]  ;;  %2442 = vmatpush.msra.mxu2 %v1374_v15 }
 0x125   :  { %v1242_v19 = vld [vmem:[#allocation2 + $0x21c0] sm:$0xff]  ;;  %2397 = vmatpush.msrb.mxu3 %v1122_v16  ;;  %v150_v16 = vld [vmem:[%s5625_s0 + $0x90] sm:$0xff] }
 0x126   :  { %v1306_v20 = vld [vmem:[#allocation2 + $0x23c0] sm:$0xff]  ;;  %2398 = vmatmul.f32.vlgmr.msrb.gmra.mxu3 %v147_v18  ;;  %2403 = vmatpush.msra.mxu0 %v1242_v19 }
 0x127   :  { %v1370_v21 = vld [vmem:[#allocation2 + $0x25c0] sm:$0xff]  ;;  %2423 = vmatpush.msra.mxu1 %v1306_v20 }
 0x128   :  { %v1438_v22 = vld [vmem:[#allocation2 + $0x27e0] sm:$0xff]  ;;  %2443 = vmatpush.msra.mxu2 %v1370_v21  ;;  %v149_v21 = vld [vmem:[%s5625_s0 + $0x88] sm:$0xff] }
 0x129   :  { %v1238_v23 = vld [vmem:[#allocation2 + $0x21a0] sm:$0xff]  ;;  %2462 = vmatpush.msra.mxu3 %v1438_v22  ;;  %v151_v22 = vld [vmem:[%s5625_s0 + $0x98] sm:$0xff] }
 0x12a   :  { %v1302_v24 = vld [vmem:[#allocation2 + $0x23a0] sm:$0xff]  ;;  %2404 = vmatpush.msra.mxu0 %v1238_v23 }
 0x12b   :  { %v1366_v25 = vld [vmem:[#allocation2 + $0x25a0] sm:$0xff]  ;;  %2424 = vmatpush.msra.mxu1 %v1302_v24 }
 0x12c   :  { %v1434_v26 = vld [vmem:[#allocation2 + $0x27c0] sm:$0xff]  ;;  %2444 = vmatpush.msra.mxu2 %v1366_v25 }
 0x12d   :  { %v1234_v27 = vld [vmem:[#allocation2 + $0x2180] sm:$0xff]  ;;  %2463 = vmatpush.msra.mxu3 %v1434_v26 }
 0x12e   :  { %v1298_v28 = vld [vmem:[#allocation2 + $0x2380] sm:$0xff]  ;;  %2405 = vmatpush.msra.mxu0 %v1234_v27 }
 0x12f   :  { %v1362_v29 = vld [vmem:[#allocation2 + $0x2580] sm:$0xff]  ;;  %2425 = vmatpush.msra.mxu1 %v1298_v28 }
 0x130   :  { %v1430_v30 = vld [vmem:[#allocation2 + $0x27a0] sm:$0xff]  ;;  %2445 = vmatpush.msra.mxu2 %v1362_v29 }
 0x131   :  { %v1230_v31 = vld [vmem:[#allocation2 + $0x2160] sm:$0xff]  ;;  %2464 = vmatpush.msra.mxu3 %v1430_v30 }
 0x132   :  { %v1294_v32 = vld [vmem:[#allocation2 + $0x2360] sm:$0xff]  ;;  %2406 = vmatpush.msra.mxu0 %v1230_v31 }
 0x133   :  { %v1358_v33 = vld [vmem:[#allocation2 + $0x2560] sm:$0xff]  ;;  %2426 = vmatpush.msra.mxu1 %v1294_v32 }
 0x134   :  { %v1426_v34 = vld [vmem:[#allocation2 + $0x2780] sm:$0xff]  ;;  %2446 = vmatpush.msra.mxu2 %v1358_v33 }
 0x135   :  { %v1226_v35 = vld [vmem:[#allocation2 + $0x2140] sm:$0xff]  ;;  %2465 = vmatpush.msra.mxu3 %v1426_v34 }
 0x136   :  { %v1290_v36 = vld [vmem:[#allocation2 + $0x2340] sm:$0xff]  ;;  %2407 = vmatpush.msra.mxu0 %v1226_v35 }
 0x137   :  { %v1354_v37 = vld [vmem:[#allocation2 + $0x2540] sm:$0xff]  ;;  %2427 = vmatpush.msra.mxu1 %v1290_v36 }
 0x138   :  { %v1422_v38 = vld [vmem:[#allocation2 + $0x2760] sm:$0xff]  ;;  %2447 = vmatpush.msra.mxu2 %v1354_v37 }
 0x139   :  { %v1222_v39 = vld [vmem:[#allocation2 + $0x2120] sm:$0xff]  ;;  %2466 = vmatpush.msra.mxu3 %v1422_v38 }
 0x13a   :  { %v1286_v40 = vld [vmem:[#allocation2 + $0x2320] sm:$0xff]  ;;  %2408 = vmatpush.msra.mxu0 %v1222_v39 }
 0x13b   :  { %v1350_v41 = vld [vmem:[#allocation2 + $0x2520] sm:$0xff]  ;;  %2428 = vmatpush.msra.mxu1 %v1286_v40 }
 0x13c   :  { %v1418_v42 = vld [vmem:[#allocation2 + $0x2740] sm:$0xff]  ;;  %2448 = vmatpush.msra.mxu2 %v1350_v41 }
 0x13d   :  { %v1218_v43 = vld [vmem:[#allocation2 + $0x2100] sm:$0xff]  ;;  %2467 = vmatpush.msra.mxu3 %v1418_v42 }
 0x13e   :  { %v1282_v44 = vld [vmem:[#allocation2 + $0x2300] sm:$0xff]  ;;  %2409 = vmatpush.msra.mxu0 %v1218_v43 }
 0x13f   :  { %v1346_v45 = vld [vmem:[#allocation2 + $0x2500] sm:$0xff]  ;;  %2429 = vmatpush.msra.mxu1 %v1282_v44 }
 0x140   :  { %v1414_v46 = vld [vmem:[#allocation2 + $0x2720] sm:$0xff]  ;;  %2449 = vmatpush.msra.mxu2 %v1346_v45 }
 0x141   :  { %v1214_v47 = vld [vmem:[#allocation2 + $0x20e0] sm:$0xff]  ;;  %2468 = vmatpush.msra.mxu3 %v1414_v46 }
 0x142   :  { %v1278_v48 = vld [vmem:[#allocation2 + $0x22e0] sm:$0xff]  ;;  %2410 = vmatpush.msra.mxu0 %v1214_v47 }
 0x143   :  { %v1342_v49 = vld [vmem:[#allocation2 + $0x24e0] sm:$0xff]  ;;  %2430 = vmatpush.msra.mxu1 %v1278_v48 }
 0x144   :  { %v1410_v50 = vld [vmem:[#allocation2 + $0x2700] sm:$0xff]  ;;  %2450 = vmatpush.msra.mxu2 %v1342_v49 }
 0x145   :  { %v1210_v51 = vld [vmem:[#allocation2 + $0x20c0] sm:$0xff]  ;;  %2469 = vmatpush.msra.mxu3 %v1410_v50 }
 0x146   :  { %v1274_v52 = vld [vmem:[#allocation2 + $0x22c0] sm:$0xff]  ;;  %2411 = vmatpush.msra.mxu0 %v1210_v51 }
 0x147   :  { %v1338_v53 = vld [vmem:[#allocation2 + $0x24c0] sm:$0xff]  ;;  %2431 = vmatpush.msra.mxu1 %v1274_v52 }
 0x148   :  { %v1406_v54 = vld [vmem:[#allocation2 + $0x26e0] sm:$0xff]  ;;  %2451 = vmatpush.msra.mxu2 %v1338_v53 }
 0x149   :  { %v1206_v55 = vld [vmem:[#allocation2 + $0x20a0] sm:$0xff]  ;;  %2470 = vmatpush.msra.mxu3 %v1406_v54 }
 0x14a   :  { %v1270_v56 = vld [vmem:[#allocation2 + $0x22a0] sm:$0xff]  ;;  %2412 = vmatpush.msra.mxu0 %v1206_v55 }
 0x14b   :  { %v1334_v57 = vld [vmem:[#allocation2 + $0x24a0] sm:$0xff]  ;;  %2432 = vmatpush.msra.mxu1 %v1270_v56 }
 0x14c   :  { %v1402_v58 = vld [vmem:[#allocation2 + $0x26c0] sm:$0xff]  ;;  %2452 = vmatpush.msra.mxu2 %v1334_v57 }
 0x14d   :  { %v1202_v59 = vld [vmem:[#allocation2 + $0x2080] sm:$0xff]  ;;  %2471 = vmatpush.msra.mxu3 %v1402_v58 }
 0x14e   :  { %v1266_v60 = vld [vmem:[#allocation2 + $0x2280] sm:$0xff]  ;;  %2413 = vmatpush.msra.mxu0 %v1202_v59 }
 0x14f   :  { %v1330_v61 = vld [vmem:[#allocation2 + $0x2480] sm:$0xff]  ;;  %2433 = vmatpush.msra.mxu1 %v1266_v60 }
 0x150   :  { %v1398_v62 = vld [vmem:[#allocation2 + $0x26a0] sm:$0xff]  ;;  %2453 = vmatpush.msra.mxu2 %v1330_v61 }
 0x151   :  { %v1198_v63 = vld [vmem:[#allocation2 + $0x2060] sm:$0xff]  ;;  %2472 = vmatpush.msra.mxu3 %v1398_v62 }
 0x152   :  { %v1262_v0 = vld [vmem:[#allocation2 + $0x2260] sm:$0xff]  ;;  %2414 = vmatpush.msra.mxu0 %v1198_v63 }
 0x153   :  { %v1326_v1 = vld [vmem:[#allocation2 + $0x2460] sm:$0xff]  ;;  %2434 = vmatpush.msra.mxu1 %v1262_v0 }
 0x154   :  { %v1394_v2 = vld [vmem:[#allocation2 + $0x2680] sm:$0xff]  ;;  %2454 = vmatpush.msra.mxu2 %v1326_v1 }
 0x155   :  { %v1194_v3 = vld [vmem:[#allocation2 + $0x2040] sm:$0xff]  ;;  %2473 = vmatpush.msra.mxu3 %v1394_v2 }
 0x156   :  { %v1258_v4 = vld [vmem:[#allocation2 + $0x2240] sm:$0xff]  ;;  %2415 = vmatpush.msra.mxu0 %v1194_v3 }
 0x157   :  { %v1322_v5 = vld [vmem:[#allocation2 + $0x2440] sm:$0xff]  ;;  %2435 = vmatpush.msra.mxu1 %v1258_v4 }
 0x158   :  { %v1390_v6 = vld [vmem:[#allocation2 + $0x2660] sm:$0xff]  ;;  %2455 = vmatpush.msra.mxu2 %v1322_v5 }
 0x159   :  { %v1190_v7 = vld [vmem:[#allocation2 + $0x2020] sm:$0xff]  ;;  %2474 = vmatpush.msra.mxu3 %v1390_v6 }
 0x15a   :  { %v1254_v8 = vld [vmem:[#allocation2 + $0x2220] sm:$0xff]  ;;  %2416 = vmatpush.msra.mxu0 %v1190_v7 }
 0x15b   :  { %v1318_v9 = vld [vmem:[#allocation2 + $0x2420] sm:$0xff]  ;;  %2436 = vmatpush.msra.mxu1 %v1254_v8 }
 0x15c   :  { %v1386_v10 = vld [vmem:[#allocation2 + $0x2640] sm:$0xff]  ;;  %2456 = vmatpush.msra.mxu2 %v1318_v9 }
 0x15d   :  { %v1186_v11 = vld [vmem:[#allocation2 + $0x2000] sm:$0xff]  ;;  %2475 = vmatpush.msra.mxu3 %v1386_v10 }
 0x15e   :  { %v1250_v12 = vld [vmem:[#allocation2 + $0x2200] sm:$0xff]  ;;  %2417 = vmatpush.msra.mxu0 %v1186_v11 }
 0x15f   :  { %v1314_v13 = vld [vmem:[#allocation2 + $0x2400] sm:$0xff]  ;;  %2437 = vmatpush.msra.mxu1 %v1250_v12 }
 0x160   :  { %v1382_v14 = vld [vmem:[#allocation2 + $0x2620] sm:$0xff]  ;;  %2457 = vmatpush.msra.mxu2 %v1314_v13  ;;  %2438 = vmatmul.f32.vlgmr.msra.gmra.mxu1 %v149_v21 }
 0x161   :  { %v148_v15 = vld [vmem:[%s5625_s0 + $0x80] sm:$0xff]  ;;  %2476 = vmatpush.msra.mxu3 %v1382_v14  ;;  %2458 = vmatmul.f32.vlgmr.msra.gmra.mxu2 %v150_v16 }
 0x162   :  { %v1502_v17 = vld [vmem:[#allocation2 + $0x29e0] sm:$0xff]  ;;  %2418 = vmatmul.f32.vlgmr.msra.gmra.mxu0 %v148_v15 }
 0x163   :  { %v1566_v18 = vld [vmem:[#allocation2 + $0x2be0] sm:$0xff]  ;;  %2482 = vmatpush.msrb.mxu0 %v1502_v17 }
 0x164   :  { %v1630_v19 = vld [vmem:[#allocation2 + $0x2de0] sm:$0xff]  ;;  %2502 = vmatpush.msrb.mxu1 %v1566_v18 }
 0x165   :  { %v1378_v20 = vld [vmem:[#allocation2 + $0x2600] sm:$0xff]  ;;  %2522 = vmatpush.msrb.mxu2 %v1630_v19 }
 0x166   :  { %v1498_v23 = vld [vmem:[#allocation2 + $0x29c0] sm:$0xff]  ;;  %2477 = vmatpush.msra.mxu3 %v1378_v20  ;;  %v154_v20 = vld [vmem:[%s5625_s0 + $0xb0] sm:$0xff] }
 0x167   :  { %v1562_v24 = vld [vmem:[#allocation2 + $0x2bc0] sm:$0xff]  ;;  %2478 = vmatmul.f32.vlgmr.msra.gmra.mxu3 %v151_v22  ;;  %2483 = vmatpush.msrb.mxu0 %v1498_v23 }
 0x168   :  { %v1626_v25 = vld [vmem:[#allocation2 + $0x2dc0] sm:$0xff]  ;;  %2503 = vmatpush.msrb.mxu1 %v1562_v24 }
 0x169   :  { %v1694_v26 = vld [vmem:[#allocation2 + $0x2fe0] sm:$0xff]  ;;  %2523 = vmatpush.msrb.mxu2 %v1626_v25  ;;  %v153_v25 = vld [vmem:[%s5625_s0 + $0xa8] sm:$0xff] }
 0x16a   :  { %v1494_v27 = vld [vmem:[#allocation2 + $0x29a0] sm:$0xff]  ;;  %2542 = vmatpush.msrb.mxu3 %v1694_v26  ;;  %v155_v26 = vld [vmem:[%s5625_s0 + $0xb8] sm:$0xff] }
 0x16b   :  { %v1558_v28 = vld [vmem:[#allocation2 + $0x2ba0] sm:$0xff]  ;;  %2484 = vmatpush.msrb.mxu0 %v1494_v27 }
 0x16c   :  { %v1622_v29 = vld [vmem:[#allocation2 + $0x2da0] sm:$0xff]  ;;  %2504 = vmatpush.msrb.mxu1 %v1558_v28 }
 0x16d   :  { %v1690_v30 = vld [vmem:[#allocation2 + $0x2fc0] sm:$0xff]  ;;  %2524 = vmatpush.msrb.mxu2 %v1622_v29 }
 0x16e   :  { %v1490_v31 = vld [vmem:[#allocation2 + $0x2980] sm:$0xff]  ;;  %2543 = vmatpush.msrb.mxu3 %v1690_v30 }
 0x16f   :  { %v1554_v32 = vld [vmem:[#allocation2 + $0x2b80] sm:$0xff]  ;;  %2485 = vmatpush.msrb.mxu0 %v1490_v31 }
 0x170   :  { %v1618_v33 = vld [vmem:[#allocation2 + $0x2d80] sm:$0xff]  ;;  %2505 = vmatpush.msrb.mxu1 %v1554_v32 }
 0x171   :  { %v1686_v34 = vld [vmem:[#allocation2 + $0x2fa0] sm:$0xff]  ;;  %2525 = vmatpush.msrb.mxu2 %v1618_v33 }
 0x172   :  { %v1486_v35 = vld [vmem:[#allocation2 + $0x2960] sm:$0xff]  ;;  %2544 = vmatpush.msrb.mxu3 %v1686_v34 }
 0x173   :  { %v1550_v36 = vld [vmem:[#allocation2 + $0x2b60] sm:$0xff]  ;;  %2486 = vmatpush.msrb.mxu0 %v1486_v35 }
 0x174   :  { %v1614_v37 = vld [vmem:[#allocation2 + $0x2d60] sm:$0xff]  ;;  %2506 = vmatpush.msrb.mxu1 %v1550_v36 }
 0x175   :  { %v1682_v38 = vld [vmem:[#allocation2 + $0x2f80] sm:$0xff]  ;;  %2526 = vmatpush.msrb.mxu2 %v1614_v37 }
 0x176   :  { %v1482_v39 = vld [vmem:[#allocation2 + $0x2940] sm:$0xff]  ;;  %2545 = vmatpush.msrb.mxu3 %v1682_v38 }
 0x177   :  { %v1546_v40 = vld [vmem:[#allocation2 + $0x2b40] sm:$0xff]  ;;  %2487 = vmatpush.msrb.mxu0 %v1482_v39 }
 0x178   :  { %v1610_v41 = vld [vmem:[#allocation2 + $0x2d40] sm:$0xff]  ;;  %2507 = vmatpush.msrb.mxu1 %v1546_v40 }
 0x179   :  { %v1678_v42 = vld [vmem:[#allocation2 + $0x2f60] sm:$0xff]  ;;  %2527 = vmatpush.msrb.mxu2 %v1610_v41 }
 0x17a   :  { %v1478_v43 = vld [vmem:[#allocation2 + $0x2920] sm:$0xff]  ;;  %2546 = vmatpush.msrb.mxu3 %v1678_v42 }
 0x17b   :  { %v1542_v44 = vld [vmem:[#allocation2 + $0x2b20] sm:$0xff]  ;;  %2488 = vmatpush.msrb.mxu0 %v1478_v43 }
 0x17c   :  { %v1606_v45 = vld [vmem:[#allocation2 + $0x2d20] sm:$0xff]  ;;  %2508 = vmatpush.msrb.mxu1 %v1542_v44 }
 0x17d   :  { %v1674_v46 = vld [vmem:[#allocation2 + $0x2f40] sm:$0xff]  ;;  %2528 = vmatpush.msrb.mxu2 %v1606_v45 }
 0x17e   :  { %v1474_v47 = vld [vmem:[#allocation2 + $0x2900] sm:$0xff]  ;;  %2547 = vmatpush.msrb.mxu3 %v1674_v46 }
 0x17f   :  { %v1538_v48 = vld [vmem:[#allocation2 + $0x2b00] sm:$0xff]  ;;  %2489 = vmatpush.msrb.mxu0 %v1474_v47 }
 0x180   :  { %v1602_v49 = vld [vmem:[#allocation2 + $0x2d00] sm:$0xff]  ;;  %2509 = vmatpush.msrb.mxu1 %v1538_v48 }
 0x181   :  { %v1670_v50 = vld [vmem:[#allocation2 + $0x2f20] sm:$0xff]  ;;  %2529 = vmatpush.msrb.mxu2 %v1602_v49 }
 0x182   :  { %v1470_v51 = vld [vmem:[#allocation2 + $0x28e0] sm:$0xff]  ;;  %2548 = vmatpush.msrb.mxu3 %v1670_v50 }
 0x183   :  { %v1534_v52 = vld [vmem:[#allocation2 + $0x2ae0] sm:$0xff]  ;;  %2490 = vmatpush.msrb.mxu0 %v1470_v51 }
 0x184   :  { %v1598_v53 = vld [vmem:[#allocation2 + $0x2ce0] sm:$0xff]  ;;  %2510 = vmatpush.msrb.mxu1 %v1534_v52 }
 0x185   :  { %v1666_v54 = vld [vmem:[#allocation2 + $0x2f00] sm:$0xff]  ;;  %2530 = vmatpush.msrb.mxu2 %v1598_v53 }
 0x186   :  { %v1466_v55 = vld [vmem:[#allocation2 + $0x28c0] sm:$0xff]  ;;  %2549 = vmatpush.msrb.mxu3 %v1666_v54 }
 0x187   :  { %v1530_v56 = vld [vmem:[#allocation2 + $0x2ac0] sm:$0xff]  ;;  %2491 = vmatpush.msrb.mxu0 %v1466_v55 }
 0x188   :  { %v1594_v57 = vld [vmem:[#allocation2 + $0x2cc0] sm:$0xff]  ;;  %2511 = vmatpush.msrb.mxu1 %v1530_v56 }
 0x189   :  { %v1662_v58 = vld [vmem:[#allocation2 + $0x2ee0] sm:$0xff]  ;;  %2531 = vmatpush.msrb.mxu2 %v1594_v57 }
 0x18a   :  { %v1462_v59 = vld [vmem:[#allocation2 + $0x28a0] sm:$0xff]  ;;  %2550 = vmatpush.msrb.mxu3 %v1662_v58 }
 0x18b   :  { %v1526_v60 = vld [vmem:[#allocation2 + $0x2aa0] sm:$0xff]  ;;  %2492 = vmatpush.msrb.mxu0 %v1462_v59 }
 0x18c   :  { %v1590_v61 = vld [vmem:[#allocation2 + $0x2ca0] sm:$0xff]  ;;  %2512 = vmatpush.msrb.mxu1 %v1526_v60 }
 0x18d   :  { %v1658_v62 = vld [vmem:[#allocation2 + $0x2ec0] sm:$0xff]  ;;  %2532 = vmatpush.msrb.mxu2 %v1590_v61 }
 0x18e   :  { %v1458_v63 = vld [vmem:[#allocation2 + $0x2880] sm:$0xff]  ;;  %2551 = vmatpush.msrb.mxu3 %v1658_v62 }
 0x18f   :  { %v1522_v0 = vld [vmem:[#allocation2 + $0x2a80] sm:$0xff]  ;;  %2493 = vmatpush.msrb.mxu0 %v1458_v63 }
 0x190   :  { %v1586_v1 = vld [vmem:[#allocation2 + $0x2c80] sm:$0xff]  ;;  %2513 = vmatpush.msrb.mxu1 %v1522_v0 }
 0x191   :  { %v1654_v2 = vld [vmem:[#allocation2 + $0x2ea0] sm:$0xff]  ;;  %2533 = vmatpush.msrb.mxu2 %v1586_v1 }
 0x192   :  { %v1454_v3 = vld [vmem:[#allocation2 + $0x2860] sm:$0xff]  ;;  %2552 = vmatpush.msrb.mxu3 %v1654_v2 }
 0x193   :  { %v1518_v4 = vld [vmem:[#allocation2 + $0x2a60] sm:$0xff]  ;;  %2494 = vmatpush.msrb.mxu0 %v1454_v3 }
 0x194   :  { %v1582_v5 = vld [vmem:[#allocation2 + $0x2c60] sm:$0xff]  ;;  %2514 = vmatpush.msrb.mxu1 %v1518_v4 }
 0x195   :  { %v1650_v6 = vld [vmem:[#allocation2 + $0x2e80] sm:$0xff]  ;;  %2534 = vmatpush.msrb.mxu2 %v1582_v5 }
 0x196   :  { %v1450_v7 = vld [vmem:[#allocation2 + $0x2840] sm:$0xff]  ;;  %2553 = vmatpush.msrb.mxu3 %v1650_v6 }
 0x197   :  { %v1514_v8 = vld [vmem:[#allocation2 + $0x2a40] sm:$0xff]  ;;  %2495 = vmatpush.msrb.mxu0 %v1450_v7 }
 0x198   :  { %v1578_v9 = vld [vmem:[#allocation2 + $0x2c40] sm:$0xff]  ;;  %2515 = vmatpush.msrb.mxu1 %v1514_v8 }
 0x199   :  { %v1646_v10 = vld [vmem:[#allocation2 + $0x2e60] sm:$0xff]  ;;  %2535 = vmatpush.msrb.mxu2 %v1578_v9 }
 0x19a   :  { %v1446_v11 = vld [vmem:[#allocation2 + $0x2820] sm:$0xff]  ;;  %2554 = vmatpush.msrb.mxu3 %v1646_v10 }
 0x19b   :  { %v1510_v12 = vld [vmem:[#allocation2 + $0x2a20] sm:$0xff]  ;;  %2496 = vmatpush.msrb.mxu0 %v1446_v11 }
 0x19c   :  { %v1574_v13 = vld [vmem:[#allocation2 + $0x2c20] sm:$0xff]  ;;  %2516 = vmatpush.msrb.mxu1 %v1510_v12 }
 0x19d   :  { %v1642_v14 = vld [vmem:[#allocation2 + $0x2e40] sm:$0xff]  ;;  %2536 = vmatpush.msrb.mxu2 %v1574_v13 }
 0x19e   :  { %v1442_v15 = vld [vmem:[#allocation2 + $0x2800] sm:$0xff]  ;;  %2555 = vmatpush.msrb.mxu3 %v1642_v14 }
 0x19f   :  { %v1506_v16 = vld [vmem:[#allocation2 + $0x2a00] sm:$0xff]  ;;  %2497 = vmatpush.msrb.mxu0 %v1442_v15 }
 0x1a0   :  { %v1570_v17 = vld [vmem:[#allocation2 + $0x2c00] sm:$0xff]  ;;  %2517 = vmatpush.msrb.mxu1 %v1506_v16 }
 0x1a1   :  { %v1638_v18 = vld [vmem:[#allocation2 + $0x2e20] sm:$0xff]  ;;  %2537 = vmatpush.msrb.mxu2 %v1570_v17  ;;  %2518 = vmatmul.f32.vlgmr.msrb.gmra.mxu1 %v153_v25 }
 0x1a2   :  { %v152_v19 = vld [vmem:[%s5625_s0 + $0xa0] sm:$0xff]  ;;  %2556 = vmatpush.msrb.mxu3 %v1638_v18  ;;  %2538 = vmatmul.f32.vlgmr.msrb.gmra.mxu2 %v154_v20 }
 0x1a3   :  { %v1758_v21 = vld [vmem:[#allocation2 + $0x31e0] sm:$0xff]  ;;  %2498 = vmatmul.f32.vlgmr.msrb.gmra.mxu0 %v152_v19 }
 0x1a4   :  { %v1822_v22 = vld [vmem:[#allocation2 + $0x33e0] sm:$0xff]  ;;  %2562 = vmatpush.msra.mxu0 %v1758_v21 }
 0x1a5   :  { %v1886_v23 = vld [vmem:[#allocation2 + $0x35e0] sm:$0xff]  ;;  %2582 = vmatpush.msra.mxu1 %v1822_v22 }
 0x1a6   :  { %v1634_v24 = vld [vmem:[#allocation2 + $0x2e00] sm:$0xff]  ;;  %2602 = vmatpush.msra.mxu2 %v1886_v23 }
 0x1a7   :  { %v1754_v27 = vld [vmem:[#allocation2 + $0x31c0] sm:$0xff]  ;;  %2557 = vmatpush.msrb.mxu3 %v1634_v24  ;;  %v158_v24 = vld [vmem:[%s5625_s0 + $0xd0] sm:$0xff] }
 0x1a8   :  { %v1818_v28 = vld [vmem:[#allocation2 + $0x33c0] sm:$0xff]  ;;  %2558 = vmatmul.f32.vlgmr.msrb.gmra.mxu3 %v155_v26  ;;  %2563 = vmatpush.msra.mxu0 %v1754_v27  ;;  %v223_v27 = vld [vmem:[#allocation2 + $0x1e8] sm:$0xff] }
 0x1a9   :  { %v1882_v29 = vld [vmem:[#allocation2 + $0x35c0] sm:$0xff]  ;;  %2583 = vmatpush.msra.mxu1 %v1818_v28 }
 0x1aa   :  { %v1950_v30 = vld [vmem:[#allocation2 + $0x37e0] sm:$0xff]  ;;  %2603 = vmatpush.msra.mxu2 %v1882_v29  ;;  %v157_v29 = vld [vmem:[%s5625_s0 + $0xc8] sm:$0xff] }
 0x1ab   :  { %v1750_v31 = vld [vmem:[#allocation2 + $0x31a0] sm:$0xff]  ;;  %2622 = vmatpush.msra.mxu3 %v1950_v30  ;;  %v159_v30 = vld [vmem:[%s5625_s0 + $0xd8] sm:$0xff] }
 0x1ac   :  { %v1814_v32 = vld [vmem:[#allocation2 + $0x33a0] sm:$0xff]  ;;  %2564 = vmatpush.msra.mxu0 %v1750_v31 }
 0x1ad   :  { %v1878_v33 = vld [vmem:[#allocation2 + $0x35a0] sm:$0xff]  ;;  %2584 = vmatpush.msra.mxu1 %v1814_v32 }
 0x1ae   :  { %v1946_v34 = vld [vmem:[#allocation2 + $0x37c0] sm:$0xff]  ;;  %2604 = vmatpush.msra.mxu2 %v1878_v33  ;;  %v219_v33 = vld [vmem:[#allocation2 + $0x1c8] sm:$0xff] }
 0x1af   :  { %v1746_v35 = vld [vmem:[#allocation2 + $0x3180] sm:$0xff]  ;;  %2623 = vmatpush.msra.mxu3 %v1946_v34  ;;  %v287_v34 = vld [vmem:[#allocation2 + $0x3e8] sm:$0xff] }
 0x1b0   :  { %v1810_v36 = vld [vmem:[#allocation2 + $0x3380] sm:$0xff]  ;;  %2565 = vmatpush.msra.mxu0 %v1746_v35 }
 0x1b1   :  { %v1874_v37 = vld [vmem:[#allocation2 + $0x3580] sm:$0xff]  ;;  %2585 = vmatpush.msra.mxu1 %v1810_v36 }
 0x1b2   :  { %v1942_v38 = vld [vmem:[#allocation2 + $0x37a0] sm:$0xff]  ;;  %2605 = vmatpush.msra.mxu2 %v1874_v37  ;;  %v215_v37 = vld [vmem:[#allocation2 + $0x1a8] sm:$0xff] }
 0x1b3   :  { %v1742_v39 = vld [vmem:[#allocation2 + $0x3160] sm:$0xff]  ;;  %2624 = vmatpush.msra.mxu3 %v1942_v38  ;;  %v283_v38 = vld [vmem:[#allocation2 + $0x3c8] sm:$0xff] }
 0x1b4   :  { %v1806_v40 = vld [vmem:[#allocation2 + $0x3360] sm:$0xff]  ;;  %2566 = vmatpush.msra.mxu0 %v1742_v39 }
 0x1b5   :  { %v1870_v41 = vld [vmem:[#allocation2 + $0x3560] sm:$0xff]  ;;  %2586 = vmatpush.msra.mxu1 %v1806_v40 }
 0x1b6   :  { %v1938_v42 = vld [vmem:[#allocation2 + $0x3780] sm:$0xff]  ;;  %2606 = vmatpush.msra.mxu2 %v1870_v41  ;;  %v211_v41 = vld [vmem:[#allocation2 + $0x188] sm:$0xff] }
 0x1b7   :  { %v1738_v43 = vld [vmem:[#allocation2 + $0x3140] sm:$0xff]  ;;  %2625 = vmatpush.msra.mxu3 %v1938_v42  ;;  %v279_v42 = vld [vmem:[#allocation2 + $0x3a8] sm:$0xff] }
 0x1b8   :  { %v1802_v44 = vld [vmem:[#allocation2 + $0x3340] sm:$0xff]  ;;  %2567 = vmatpush.msra.mxu0 %v1738_v43 }
 0x1b9   :  { %v1866_v45 = vld [vmem:[#allocation2 + $0x3540] sm:$0xff]  ;;  %2587 = vmatpush.msra.mxu1 %v1802_v44 }
 0x1ba   :  { %v1934_v46 = vld [vmem:[#allocation2 + $0x3760] sm:$0xff]  ;;  %2607 = vmatpush.msra.mxu2 %v1866_v45  ;;  %v207_v45 = vld [vmem:[#allocation2 + $0x168] sm:$0xff] }
 0x1bb   :  { %v1734_v47 = vld [vmem:[#allocation2 + $0x3120] sm:$0xff]  ;;  %2626 = vmatpush.msra.mxu3 %v1934_v46  ;;  %v275_v46 = vld [vmem:[#allocation2 + $0x388] sm:$0xff] }
 0x1bc   :  { %v1798_v48 = vld [vmem:[#allocation2 + $0x3320] sm:$0xff]  ;;  %2568 = vmatpush.msra.mxu0 %v1734_v47 }
 0x1bd   :  { %v1862_v49 = vld [vmem:[#allocation2 + $0x3520] sm:$0xff]  ;;  %2588 = vmatpush.msra.mxu1 %v1798_v48 }
 0x1be   :  { %v1930_v50 = vld [vmem:[#allocation2 + $0x3740] sm:$0xff]  ;;  %2608 = vmatpush.msra.mxu2 %v1862_v49  ;;  %v203_v49 = vld [vmem:[#allocation2 + $0x148] sm:$0xff] }
 0x1bf   :  { %v1730_v51 = vld [vmem:[#allocation2 + $0x3100] sm:$0xff]  ;;  %2627 = vmatpush.msra.mxu3 %v1930_v50  ;;  %v271_v50 = vld [vmem:[#allocation2 + $0x368] sm:$0xff] }
 0x1c0   :  { %v1794_v52 = vld [vmem:[#allocation2 + $0x3300] sm:$0xff]  ;;  %2569 = vmatpush.msra.mxu0 %v1730_v51 }
 0x1c1   :  { %v1858_v53 = vld [vmem:[#allocation2 + $0x3500] sm:$0xff]  ;;  %2589 = vmatpush.msra.mxu1 %v1794_v52 }
 0x1c2   :  { %v1926_v54 = vld [vmem:[#allocation2 + $0x3720] sm:$0xff]  ;;  %2609 = vmatpush.msra.mxu2 %v1858_v53  ;;  %v199_v53 = vld [vmem:[#allocation2 + $0x128] sm:$0xff] }
 0x1c3   :  { %v1726_v55 = vld [vmem:[#allocation2 + $0x30e0] sm:$0xff]  ;;  %2628 = vmatpush.msra.mxu3 %v1926_v54  ;;  %v267_v54 = vld [vmem:[#allocation2 + $0x348] sm:$0xff] }
 0x1c4   :  { %v1790_v56 = vld [vmem:[#allocation2 + $0x32e0] sm:$0xff]  ;;  %2570 = vmatpush.msra.mxu0 %v1726_v55 }
 0x1c5   :  { %v1854_v57 = vld [vmem:[#allocation2 + $0x34e0] sm:$0xff]  ;;  %2590 = vmatpush.msra.mxu1 %v1790_v56 }
 0x1c6   :  { %v1922_v58 = vld [vmem:[#allocation2 + $0x3700] sm:$0xff]  ;;  %2610 = vmatpush.msra.mxu2 %v1854_v57  ;;  %v195_v57 = vld [vmem:[#allocation2 + $0x108] sm:$0xff] }
 0x1c7   :  { %v1722_v59 = vld [vmem:[#allocation2 + $0x30c0] sm:$0xff]  ;;  %2629 = vmatpush.msra.mxu3 %v1922_v58  ;;  %v263_v58 = vld [vmem:[#allocation2 + $0x328] sm:$0xff] }
 0x1c8   :  { %v1786_v60 = vld [vmem:[#allocation2 + $0x32c0] sm:$0xff]  ;;  %2571 = vmatpush.msra.mxu0 %v1722_v59 }
 0x1c9   :  { %v1850_v61 = vld [vmem:[#allocation2 + $0x34c0] sm:$0xff]  ;;  %2591 = vmatpush.msra.mxu1 %v1786_v60 }
 0x1ca   :  { %v1918_v62 = vld [vmem:[#allocation2 + $0x36e0] sm:$0xff]  ;;  %2611 = vmatpush.msra.mxu2 %v1850_v61  ;;  %v191_v61 = vld [vmem:[#allocation2 + $0xe8] sm:$0xff] }
 0x1cb   :  { %v1718_v63 = vld [vmem:[#allocation2 + $0x30a0] sm:$0xff]  ;;  %2630 = vmatpush.msra.mxu3 %v1918_v62  ;;  %v259_v62 = vld [vmem:[#allocation2 + $0x308] sm:$0xff] }
 0x1cc   :  { %v1782_v0 = vld [vmem:[#allocation2 + $0x32a0] sm:$0xff]  ;;  %2572 = vmatpush.msra.mxu0 %v1718_v63 }
 0x1cd   :  { %v1846_v1 = vld [vmem:[#allocation2 + $0x34a0] sm:$0xff]  ;;  %2592 = vmatpush.msra.mxu1 %v1782_v0 }
 0x1ce   :  { %v1914_v2 = vld [vmem:[#allocation2 + $0x36c0] sm:$0xff]  ;;  %2612 = vmatpush.msra.mxu2 %v1846_v1  ;;  %v187_v1 = vld [vmem:[#allocation2 + $0xc8] sm:$0xff] }
 0x1cf   :  { %v1714_v3 = vld [vmem:[#allocation2 + $0x3080] sm:$0xff]  ;;  %2631 = vmatpush.msra.mxu3 %v1914_v2  ;;  %v255_v2 = vld [vmem:[#allocation2 + $0x2e8] sm:$0xff] }
 0x1d0   :  { %v1778_v4 = vld [vmem:[#allocation2 + $0x3280] sm:$0xff]  ;;  %2573 = vmatpush.msra.mxu0 %v1714_v3 }
 0x1d1   :  { %v1842_v5 = vld [vmem:[#allocation2 + $0x3480] sm:$0xff]  ;;  %2593 = vmatpush.msra.mxu1 %v1778_v4 }
 0x1d2   :  { %v1910_v6 = vld [vmem:[#allocation2 + $0x36a0] sm:$0xff]  ;;  %2613 = vmatpush.msra.mxu2 %v1842_v5  ;;  %v183_v5 = vld [vmem:[#allocation2 + $0xa8] sm:$0xff] }
 0x1d3   :  { %v1710_v7 = vld [vmem:[#allocation2 + $0x3060] sm:$0xff]  ;;  %2632 = vmatpush.msra.mxu3 %v1910_v6  ;;  %v251_v6 = vld [vmem:[#allocation2 + $0x2c8] sm:$0xff] }
 0x1d4   :  { %v1774_v8 = vld [vmem:[#allocation2 + $0x3260] sm:$0xff]  ;;  %2574 = vmatpush.msra.mxu0 %v1710_v7 }
 0x1d5   :  { %v1838_v9 = vld [vmem:[#allocation2 + $0x3460] sm:$0xff]  ;;  %2594 = vmatpush.msra.mxu1 %v1774_v8 }
 0x1d6   :  { %v1906_v10 = vld [vmem:[#allocation2 + $0x3680] sm:$0xff]  ;;  %2614 = vmatpush.msra.mxu2 %v1838_v9  ;;  %v179_v9 = vld [vmem:[#allocation2 + $0x88] sm:$0xff] }
 0x1d7   :  { %v1706_v11 = vld [vmem:[#allocation2 + $0x3040] sm:$0xff]  ;;  %2633 = vmatpush.msra.mxu3 %v1906_v10  ;;  %v247_v10 = vld [vmem:[#allocation2 + $0x2a8] sm:$0xff] }
 0x1d8   :  { %v1770_v12 = vld [vmem:[#allocation2 + $0x3240] sm:$0xff]  ;;  %2575 = vmatpush.msra.mxu0 %v1706_v11 }
 0x1d9   :  { %v1834_v13 = vld [vmem:[#allocation2 + $0x3440] sm:$0xff]  ;;  %2595 = vmatpush.msra.mxu1 %v1770_v12 }
 0x1da   :  { %v1902_v14 = vld [vmem:[#allocation2 + $0x3660] sm:$0xff]  ;;  %2615 = vmatpush.msra.mxu2 %v1834_v13  ;;  %v175_v13 = vld [vmem:[#allocation2 + $0x68] sm:$0xff] }
 0x1db   :  { %v1702_v15 = vld [vmem:[#allocation2 + $0x3020] sm:$0xff]  ;;  %2634 = vmatpush.msra.mxu3 %v1902_v14  ;;  %v243_v14 = vld [vmem:[#allocation2 + $0x288] sm:$0xff] }
 0x1dc   :  { %v1766_v16 = vld [vmem:[#allocation2 + $0x3220] sm:$0xff]  ;;  %2576 = vmatpush.msra.mxu0 %v1702_v15 }
 0x1dd   :  { %v1830_v17 = vld [vmem:[#allocation2 + $0x3420] sm:$0xff]  ;;  %2596 = vmatpush.msra.mxu1 %v1766_v16 }
 0x1de   :  { %v1898_v18 = vld [vmem:[#allocation2 + $0x3640] sm:$0xff]  ;;  %2616 = vmatpush.msra.mxu2 %v1830_v17  ;;  %v171_v17 = vld [vmem:[#allocation2 + $0x48] sm:$0xff] }
 0x1df   :  { %v1698_v19 = vld [vmem:[#allocation2 + $0x3000] sm:$0xff]  ;;  %2635 = vmatpush.msra.mxu3 %v1898_v18  ;;  %v239_v18 = vld [vmem:[#allocation2 + $0x268] sm:$0xff] }
 0x1e0   :  { %v1762_v20 = vld [vmem:[#allocation2 + $0x3200] sm:$0xff]  ;;  %2577 = vmatpush.msra.mxu0 %v1698_v19 }
 0x1e1   :  { %v1826_v21 = vld [vmem:[#allocation2 + $0x3400] sm:$0xff]  ;;  %2597 = vmatpush.msra.mxu1 %v1762_v20 }
 0x1e2   :  { %v1894_v22 = vld [vmem:[#allocation2 + $0x3620] sm:$0xff]  ;;  %2617 = vmatpush.msra.mxu2 %v1826_v21  ;;  %2598 = vmatmul.f32.vlgmr.msra.gmra.mxu1 %v157_v29  ;;  %v167_v21 = vld [vmem:[#allocation2 + $0x28] sm:$0xff] }
 0x1e3   :  { %v156_v23 = vld [vmem:[%s5625_s0 + $0xc0] sm:$0xff]  ;;  %2636 = vmatpush.msra.mxu3 %v1894_v22  ;;  %2618 = vmatmul.f32.vlgmr.msra.gmra.mxu2 %v158_v24  ;;  %v235_v22 = vld [vmem:[#allocation2 + $0x248] sm:$0xff] }
 0x1e4   :  { %v2014_v25 = vld [vmem:[#allocation2 + $0x39e0] sm:$0xff]  ;;  %2578 = vmatmul.f32.vlgmr.msra.gmra.mxu0 %v156_v23  ;;  %2682 = vmatpush.msrb.mxu2 %v223_v27  ;;  %v351_v29 = vld [vmem:[#allocation2 + $0x5e8] sm:$0xff] }
 0x1e5   :  { %v2078_v26 = vld [vmem:[#allocation2 + $0x3be0] sm:$0xff]  ;;  %2642 = vmatpush.msrb.mxu0 %v2014_v25  ;;  %v163_v25 = vld [vmem:[#allocation2 + $0x8] sm:$0xff] }
 0x1e6   :  { %v1890_v28 = vld [vmem:[#allocation2 + $0x3600] sm:$0xff]  ;;  %2662 = vmatpush.msrb.mxu1 %v2078_v26  ;;  %2683 = vmatpush.msrb.mxu2 %v219_v33  ;;  %v231_v26 = vld [vmem:[#allocation2 + $0x228] sm:$0xff] }
 0x1e7   :  { %v2010_v31 = vld [vmem:[#allocation2 + $0x39c0] sm:$0xff]  ;;  %2637 = vmatpush.msra.mxu3 %v1890_v28  ;;  %v415_v28 = vld [vmem:[#allocation2 + $0x7e8] sm:$0xff] }
 0x1e8   :  { %v2074_v32 = vld [vmem:[#allocation2 + $0x3bc0] sm:$0xff]  ;;  %2638 = vmatmul.f32.vlgmr.msra.gmra.mxu3 %v159_v30  ;;  %2643 = vmatpush.msrb.mxu0 %v2010_v31  ;;  %v479_v30 = vld [vmem:[#allocation2 + $0x9e8] sm:$0xff] }
 0x1e9   :  { %v2006_v35 = vld [vmem:[#allocation2 + $0x39a0] sm:$0xff]  ;;  %2663 = vmatpush.msrb.mxu1 %v2074_v32  ;;  %2702 = vmatpush.msrb.mxu3 %v287_v34  ;;  %v227_v31 = vld [vmem:[#allocation2 + $0x208] sm:$0xff] }
 0x1ea   :  { %v2070_v36 = vld [vmem:[#allocation2 + $0x3ba0] sm:$0xff]  ;;  %2644 = vmatpush.msrb.mxu0 %v2006_v35  ;;  %2684 = vmatpush.msrb.mxu2 %v215_v37  ;;  %v161_v32 = vld [vmem:[%s5625_s0 + $0xe8] sm:$0xff] }
 0x1eb   :  { %v2002_v39 = vld [vmem:[#allocation2 + $0x3980] sm:$0xff]  ;;  %2664 = vmatpush.msrb.mxu1 %v2070_v36  ;;  %2703 = vmatpush.msrb.mxu3 %v283_v38  ;;  %v347_v33 = vld [vmem:[#allocation2 + $0x5c8] sm:$0xff] }
 0x1ec   :  { %v2066_v40 = vld [vmem:[#allocation2 + $0x3b80] sm:$0xff]  ;;  %2645 = vmatpush.msrb.mxu0 %v2002_v39  ;;  %2685 = vmatpush.msrb.mxu2 %v211_v41  ;;  %v411_v34 = vld [vmem:[#allocation2 + $0x7c8] sm:$0xff] }
 0x1ed   :  { %v1998_v43 = vld [vmem:[#allocation2 + $0x3960] sm:$0xff]  ;;  %2665 = vmatpush.msrb.mxu1 %v2066_v40  ;;  %2704 = vmatpush.msrb.mxu3 %v279_v42  ;;  %v475_v35 = vld [vmem:[#allocation2 + $0x9c8] sm:$0xff] }
 0x1ee   :  { %v2062_v44 = vld [vmem:[#allocation2 + $0x3b60] sm:$0xff]  ;;  %2646 = vmatpush.msrb.mxu0 %v1998_v43  ;;  %2686 = vmatpush.msrb.mxu2 %v207_v45  ;;  %v543_v36 = vld [vmem:[#allocation2 + $0xbe8] sm:$0xff] }
 0x1ef   :  { %v1994_v47 = vld [vmem:[#allocation2 + $0x3940] sm:$0xff]  ;;  %2666 = vmatpush.msrb.mxu1 %v2062_v44  ;;  %2705 = vmatpush.msrb.mxu3 %v275_v46  ;;  %v343_v37 = vld [vmem:[#allocation2 + $0x5a8] sm:$0xff] }
 0x1f0   :  { %v2058_v48 = vld [vmem:[#allocation2 + $0x3b40] sm:$0xff]  ;;  %2647 = vmatpush.msrb.mxu0 %v1994_v47  ;;  %2687 = vmatpush.msrb.mxu2 %v203_v49  ;;  %v407_v38 = vld [vmem:[#allocation2 + $0x7a8] sm:$0xff] }
 0x1f1   :  { %v1990_v51 = vld [vmem:[#allocation2 + $0x3920] sm:$0xff]  ;;  %2667 = vmatpush.msrb.mxu1 %v2058_v48  ;;  %2706 = vmatpush.msrb.mxu3 %v271_v50  ;;  %v471_v39 = vld [vmem:[#allocation2 + $0x9a8] sm:$0xff] }
 0x1f2   :  { %v2054_v52 = vld [vmem:[#allocation2 + $0x3b20] sm:$0xff]  ;;  %2648 = vmatpush.msrb.mxu0 %v1990_v51  ;;  %2688 = vmatpush.msrb.mxu2 %v199_v53  ;;  %v539_v40 = vld [vmem:[#allocation2 + $0xbc8] sm:$0xff] }
 0x1f3   :  { %v1986_v55 = vld [vmem:[#allocation2 + $0x3900] sm:$0xff]  ;;  %2668 = vmatpush.msrb.mxu1 %v2054_v52  ;;  %2707 = vmatpush.msrb.mxu3 %v267_v54  ;;  %v339_v41 = vld [vmem:[#allocation2 + $0x588] sm:$0xff] }
 0x1f4   :  { %v2050_v56 = vld [vmem:[#allocation2 + $0x3b00] sm:$0xff]  ;;  %2649 = vmatpush.msrb.mxu0 %v1986_v55  ;;  %2689 = vmatpush.msrb.mxu2 %v195_v57  ;;  %v403_v42 = vld [vmem:[#allocation2 + $0x788] sm:$0xff] }
 0x1f5   :  { %v1982_v59 = vld [vmem:[#allocation2 + $0x38e0] sm:$0xff]  ;;  %2669 = vmatpush.msrb.mxu1 %v2050_v56  ;;  %2708 = vmatpush.msrb.mxu3 %v263_v58  ;;  %v467_v43 = vld [vmem:[#allocation2 + $0x988] sm:$0xff] }
 0x1f6   :  { %v2046_v60 = vld [vmem:[#allocation2 + $0x3ae0] sm:$0xff]  ;;  %2650 = vmatpush.msrb.mxu0 %v1982_v59  ;;  %2690 = vmatpush.msrb.mxu2 %v191_v61  ;;  %v535_v44 = vld [vmem:[#allocation2 + $0xba8] sm:$0xff] }
 0x1f7   :  { %v1978_v63 = vld [vmem:[#allocation2 + $0x38c0] sm:$0xff]  ;;  %2670 = vmatpush.msrb.mxu1 %v2046_v60  ;;  %2709 = vmatpush.msrb.mxu3 %v259_v62  ;;  %v335_v45 = vld [vmem:[#allocation2 + $0x568] sm:$0xff] }
 0x1f8   :  { %v2042_v0 = vld [vmem:[#allocation2 + $0x3ac0] sm:$0xff]  ;;  %2651 = vmatpush.msrb.mxu0 %v1978_v63  ;;  %2691 = vmatpush.msrb.mxu2 %v187_v1  ;;  %v399_v46 = vld [vmem:[#allocation2 + $0x768] sm:$0xff] }
 0x1f9   :  { %v1974_v3 = vld [vmem:[#allocation2 + $0x38a0] sm:$0xff]  ;;  %2671 = vmatpush.msrb.mxu1 %v2042_v0  ;;  %2710 = vmatpush.msrb.mxu3 %v255_v2  ;;  %v463_v47 = vld [vmem:[#allocation2 + $0x968] sm:$0xff] }
 0x1fa   :  { %v2038_v4 = vld [vmem:[#allocation2 + $0x3aa0] sm:$0xff]  ;;  %2652 = vmatpush.msrb.mxu0 %v1974_v3  ;;  %2692 = vmatpush.msrb.mxu2 %v183_v5  ;;  %v531_v48 = vld [vmem:[#allocation2 + $0xb88] sm:$0xff] }
 0x1fb   :  { %v1970_v7 = vld [vmem:[#allocation2 + $0x3880] sm:$0xff]  ;;  %2672 = vmatpush.msrb.mxu1 %v2038_v4  ;;  %2711 = vmatpush.msrb.mxu3 %v251_v6  ;;  %v331_v49 = vld [vmem:[#allocation2 + $0x548] sm:$0xff] }
 0x1fc   :  { %v2034_v8 = vld [vmem:[#allocation2 + $0x3a80] sm:$0xff]  ;;  %2653 = vmatpush.msrb.mxu0 %v1970_v7  ;;  %2693 = vmatpush.msrb.mxu2 %v179_v9  ;;  %v395_v50 = vld [vmem:[#allocation2 + $0x748] sm:$0xff] }
 0x1fd   :  { %v1966_v11 = vld [vmem:[#allocation2 + $0x3860] sm:$0xff]  ;;  %2673 = vmatpush.msrb.mxu1 %v2034_v8  ;;  %2712 = vmatpush.msrb.mxu3 %v247_v10  ;;  %v459_v51 = vld [vmem:[#allocation2 + $0x948] sm:$0xff] }
 0x1fe   :  { %v2030_v12 = vld [vmem:[#allocation2 + $0x3a60] sm:$0xff]  ;;  %2654 = vmatpush.msrb.mxu0 %v1966_v11  ;;  %2694 = vmatpush.msrb.mxu2 %v175_v13  ;;  %v527_v52 = vld [vmem:[#allocation2 + $0xb68] sm:$0xff] }
 0x1ff   :  { %v1962_v15 = vld [vmem:[#allocation2 + $0x3840] sm:$0xff]  ;;  %2674 = vmatpush.msrb.mxu1 %v2030_v12  ;;  %2713 = vmatpush.msrb.mxu3 %v243_v14  ;;  %v327_v53 = vld [vmem:[#allocation2 + $0x528] sm:$0xff] }
 0x200   :  { %v2026_v16 = vld [vmem:[#allocation2 + $0x3a40] sm:$0xff]  ;;  %2655 = vmatpush.msrb.mxu0 %v1962_v15  ;;  %2695 = vmatpush.msrb.mxu2 %v171_v17  ;;  %v391_v54 = vld [vmem:[#allocation2 + $0x728] sm:$0xff] }
 0x201   :  { %v1958_v19 = vld [vmem:[#allocation2 + $0x3820] sm:$0xff]  ;;  %2675 = vmatpush.msrb.mxu1 %v2026_v16  ;;  %2714 = vmatpush.msrb.mxu3 %v239_v18  ;;  %v455_v55 = vld [vmem:[#allocation2 + $0x928] sm:$0xff] }
 0x202   :  { %v2022_v20 = vld [vmem:[#allocation2 + $0x3a20] sm:$0xff]  ;;  %2656 = vmatpush.msrb.mxu0 %v1958_v19  ;;  %2696 = vmatpush.msrb.mxu2 %v167_v21  ;;  %v523_v56 = vld [vmem:[#allocation2 + $0xb48] sm:$0xff] }
 0x203   :  { %v1954_v23 = vld [vmem:[#allocation2 + $0x3800] sm:$0xff]  ;;  %2676 = vmatpush.msrb.mxu1 %v2022_v20  ;;  %2715 = vmatpush.msrb.mxu3 %v235_v22  ;;  %v323_v57 = vld [vmem:[#allocation2 + $0x508] sm:$0xff] }
 0x204   :  { %v2018_v24 = vld [vmem:[#allocation2 + $0x3a00] sm:$0xff]  ;;  %2657 = vmatpush.msrb.mxu0 %v1954_v23  ;;  %2697 = vmatpush.msrb.mxu2 %v163_v25  ;;  %v387_v58 = vld [vmem:[#allocation2 + $0x708] sm:$0xff] }
 0x205   :  { %v160_v27 = vld [vmem:[%s5625_s0 + $0xe0] sm:$0xff]  ;;  %2677 = vmatpush.msrb.mxu1 %v2018_v24  ;;  %2716 = vmatpush.msrb.mxu3 %v231_v26  ;;  %v451_v59 = vld [vmem:[#allocation2 + $0x908] sm:$0xff] }
 0x206   :  { %2658 = vmatmul.f32.vlgmr.msrb.gmra.mxu0 %v160_v27  ;;  %2762 = vmatpush.msra.mxu2 %v479_v30  ;;  %v519_v60 = vld [vmem:[#allocation2 + $0xb28] sm:$0xff]  ;;  %v4739_v30 = vld [vmem:[%s5625_s0] sm:$0xff] }
 0x207   :  { %2742 = vmatpush.msra.mxu1 %v415_v28  ;;  %2722 = vmatpush.msra.mxu0 %v351_v29  ;;  %v319_v61 = vld [vmem:[#allocation2 + $0x4e8] sm:$0xff] }
 0x208   :  { %2717 = vmatpush.msrb.mxu3 %v227_v31  ;;  %2678 = vmatmul.f32.vlgmr.msrb.gmra.mxu1 %v161_v32  ;;  %v383_v62 = vld [vmem:[#allocation2 + $0x6e8] sm:$0xff] }
 0x209   :  { %2723 = vmatpush.msra.mxu0 %v347_v33  ;;  %2743 = vmatpush.msra.mxu1 %v411_v34  ;;  %v447_v63 = vld [vmem:[#allocation2 + $0x8e8] sm:$0xff] }
 0x20a   :  { %2763 = vmatpush.msra.mxu2 %v475_v35  ;;  %2782 = vmatpush.msra.mxu3 %v543_v36  ;;  %v515_v0 = vld [vmem:[#allocation2 + $0xb08] sm:$0xff] }
 0x20b   :  { %2724 = vmatpush.msra.mxu0 %v343_v37  ;;  %2744 = vmatpush.msra.mxu1 %v407_v38  ;;  %v315_v1 = vld [vmem:[#allocation2 + $0x4c8] sm:$0xff] }
 0x20c   :  { %2764 = vmatpush.msra.mxu2 %v471_v39  ;;  %2783 = vmatpush.msra.mxu3 %v539_v40  ;;  %v379_v2 = vld [vmem:[#allocation2 + $0x6c8] sm:$0xff] }
 0x20d   :  { %2725 = vmatpush.msra.mxu0 %v339_v41  ;;  %2745 = vmatpush.msra.mxu1 %v403_v42  ;;  %v443_v3 = vld [vmem:[#allocation2 + $0x8c8] sm:$0xff] }
 0x20e   :  { %2765 = vmatpush.msra.mxu2 %v467_v43  ;;  %2784 = vmatpush.msra.mxu3 %v535_v44  ;;  %v511_v4 = vld [vmem:[#allocation2 + $0xae8] sm:$0xff] }
 0x20f   :  { %2726 = vmatpush.msra.mxu0 %v335_v45  ;;  %2746 = vmatpush.msra.mxu1 %v399_v46  ;;  %v311_v5 = vld [vmem:[#allocation2 + $0x4a8] sm:$0xff] }
 0x210   :  { %2766 = vmatpush.msra.mxu2 %v463_v47  ;;  %2785 = vmatpush.msra.mxu3 %v531_v48  ;;  %v375_v6 = vld [vmem:[#allocation2 + $0x6a8] sm:$0xff]  ;;  %v4741_v47 = vld [vmem:[%s5625_s0 + $0x20] sm:$0xff] }
 0x211   :  { %2727 = vmatpush.msra.mxu0 %v331_v49  ;;  %2747 = vmatpush.msra.mxu1 %v395_v50  ;;  %v439_v7 = vld [vmem:[#allocation2 + $0x8a8] sm:$0xff] }
 0x212   :  { %2767 = vmatpush.msra.mxu2 %v459_v51  ;;  %2786 = vmatpush.msra.mxu3 %v527_v52  ;;  %v507_v8 = vld [vmem:[#allocation2 + $0xac8] sm:$0xff]  ;;  %v4742_v51 = vld [vmem:[%s5625_s0 + $0x10] sm:$0xff] }
 0x213   :  { %2728 = vmatpush.msra.mxu0 %v327_v53  ;;  %2748 = vmatpush.msra.mxu1 %v391_v54  ;;  %v307_v9 = vld [vmem:[#allocation2 + $0x488] sm:$0xff] }
 0x214   :  { %2768 = vmatpush.msra.mxu2 %v455_v55  ;;  %2787 = vmatpush.msra.mxu3 %v523_v56  ;;  %v371_v10 = vld [vmem:[#allocation2 + $0x688] sm:$0xff] }
 0x215   :  { %2729 = vmatpush.msra.mxu0 %v323_v57  ;;  %2749 = vmatpush.msra.mxu1 %v387_v58  ;;  %v435_v11 = vld [vmem:[#allocation2 + $0x888] sm:$0xff]  ;;  %v4744_v58 = vld [vmem:[%s5625_s0 + $0x18] sm:$0xff] }
 0x216   :  { %2769 = vmatpush.msra.mxu2 %v451_v59  ;;  %2788 = vmatpush.msra.mxu3 %v519_v60  ;;  %v503_v12 = vld [vmem:[#allocation2 + $0xaa8] sm:$0xff] }
 0x217   :  { %2730 = vmatpush.msra.mxu0 %v319_v61  ;;  %2750 = vmatpush.msra.mxu1 %v383_v62  ;;  %v303_v13 = vld [vmem:[#allocation2 + $0x468] sm:$0xff] }
 0x218   :  { %2770 = vmatpush.msra.mxu2 %v447_v63  ;;  %2789 = vmatpush.msra.mxu3 %v515_v0  ;;  %v367_v14 = vld [vmem:[#allocation2 + $0x668] sm:$0xff] }
 0x219   :  { %2731 = vmatpush.msra.mxu0 %v315_v1  ;;  %2751 = vmatpush.msra.mxu1 %v379_v2  ;;  %v431_v15 = vld [vmem:[#allocation2 + $0x868] sm:$0xff] }
 0x21a   :  { %2771 = vmatpush.msra.mxu2 %v443_v3  ;;  %2790 = vmatpush.msra.mxu3 %v511_v4  ;;  %v499_v16 = vld [vmem:[#allocation2 + $0xa88] sm:$0xff] }
 0x21b   :  { %2732 = vmatpush.msra.mxu0 %v311_v5  ;;  %2752 = vmatpush.msra.mxu1 %v375_v6  ;;  %v299_v17 = vld [vmem:[#allocation2 + $0x448] sm:$0xff] }
 0x21c   :  { %2772 = vmatpush.msra.mxu2 %v439_v7  ;;  %2791 = vmatpush.msra.mxu3 %v507_v8  ;;  %v363_v18 = vld [vmem:[#allocation2 + $0x648] sm:$0xff] }
 0x21d   :  { %2733 = vmatpush.msra.mxu0 %v307_v9  ;;  %2753 = vmatpush.msra.mxu1 %v371_v10  ;;  %v427_v19 = vld [vmem:[#allocation2 + $0x848] sm:$0xff] }
 0x21e   :  { %2773 = vmatpush.msra.mxu2 %v435_v11  ;;  %2792 = vmatpush.msra.mxu3 %v503_v12  ;;  %v495_v20 = vld [vmem:[#allocation2 + $0xa68] sm:$0xff] }
 0x21f   :  { %2734 = vmatpush.msra.mxu0 %v303_v13  ;;  %2754 = vmatpush.msra.mxu1 %v367_v14  ;;  %v295_v21 = vld [vmem:[#allocation2 + $0x428] sm:$0xff] }
 0x220   :  { %2774 = vmatpush.msra.mxu2 %v431_v15  ;;  %2793 = vmatpush.msra.mxu3 %v499_v16  ;;  %v359_v22 = vld [vmem:[#allocation2 + $0x628] sm:$0xff] }
 0x221   :  { %2735 = vmatpush.msra.mxu0 %v299_v17  ;;  %2755 = vmatpush.msra.mxu1 %v363_v18  ;;  %v423_v23 = vld [vmem:[#allocation2 + $0x828] sm:$0xff] }
 0x222   :  { %v491_v24 = vld [vmem:[#allocation2 + $0xa48] sm:$0xff]  ;;  %2775 = vmatpush.msra.mxu2 %v427_v19  ;;  %2794 = vmatpush.msra.mxu3 %v495_v20 }
 0x223   :  { %v291_v25 = vld [vmem:[#allocation2 + $0x408] sm:$0xff]  ;;  %2736 = vmatpush.msra.mxu0 %v295_v21  ;;  %2756 = vmatpush.msra.mxu1 %v359_v22 }
 0x224   :  { %v355_v26 = vld [vmem:[#allocation2 + $0x608] sm:$0xff]  ;;  %2776 = vmatpush.msra.mxu2 %v423_v23  ;;  %2795 = vmatpush.msra.mxu3 %v491_v24 }
 0x225   :  { %v419_v27 = vld [vmem:[#allocation2 + $0x808] sm:$0xff]  ;;  %2698 = vmatmul.f32.vlgmr.msrb.gmra.mxu2 %v4739_v30  ;;  %2737 = vmatpush.msra.mxu0 %v291_v25 }
 0x226   :  { %v487_v28 = vld [vmem:[#allocation2 + $0xa28] sm:$0xff]  ;;  %2757 = vmatpush.msra.mxu1 %v355_v26  ;;  %2777 = vmatpush.msra.mxu2 %v419_v27 }
 0x227   :  { %v607_v29 = vld [vmem:[#allocation2 + $0xde8] sm:$0xff]  ;;  %2796 = vmatpush.msra.mxu3 %v487_v28  ;;  %2738 = vmatmul.f32.vlgmr.msra.gmra.mxu0 %v4742_v51 }
 0x228   :  { %v671_v31 = vld [vmem:[#allocation2 + $0xfe8] sm:$0xff]  ;;  %2802 = vmatpush.msrb.mxu0 %v607_v29  ;;  %2758 = vmatmul.f32.vlgmr.msra.gmra.mxu1 %v4744_v58 }
 0x229   :  { %v735_v32 = vld [vmem:[#allocation2 + $0x11e8] sm:$0xff]  ;;  %2822 = vmatpush.msrb.mxu1 %v671_v31 }
 0x22a   :  { %v483_v33 = vld [vmem:[#allocation2 + $0xa08] sm:$0xff]  ;;  %2842 = vmatpush.msrb.mxu2 %v735_v32 }
 0x22b   :  { %v603_v34 = vld [vmem:[#allocation2 + $0xdc8] sm:$0xff]  ;;  %2797 = vmatpush.msra.mxu3 %v483_v33 }
 0x22c   :  { %v667_v35 = vld [vmem:[#allocation2 + $0xfc8] sm:$0xff]  ;;  %2803 = vmatpush.msrb.mxu0 %v603_v34 }
 0x22d   :  { %v4740_v36 = vld [vmem:[%s5625_s0 + $0x8] sm:$0xff]  ;;  %2823 = vmatpush.msrb.mxu1 %v667_v35  ;;  %2778 = vmatmul.f32.vlgmr.msra.gmra.mxu2 %v4741_v47 }
 0x22e   :  { %2718 = vmatmul.f32.vlgmr.msrb.gmra.mxu3 %v4740_v36  ;;  %v731_v37 = vld [vmem:[#allocation2 + $0x11c8] sm:$0xff] }
 0x22f   :  { %v799_v38 = vld [vmem:[#allocation2 + $0x13e8] sm:$0xff]  ;;  %2843 = vmatpush.msrb.mxu2 %v731_v37 }
 0x230   :  { %v599_v39 = vld [vmem:[#allocation2 + $0xda8] sm:$0xff]  ;;  %2862 = vmatpush.msrb.mxu3 %v799_v38 }
 0x231   :  { %v663_v40 = vld [vmem:[#allocation2 + $0xfa8] sm:$0xff]  ;;  %2804 = vmatpush.msrb.mxu0 %v599_v39  ;;  %v4745_v39 = vld [vmem:[%s5625_s0 + $0x30] sm:$0xff] }
 0x232   :  { %v727_v41 = vld [vmem:[#allocation2 + $0x11a8] sm:$0xff]  ;;  %2824 = vmatpush.msrb.mxu1 %v663_v40  ;;  %v4746_v40 = vld [vmem:[%s5625_s0 + $0x40] sm:$0xff] }
 0x233   :  { %v795_v42 = vld [vmem:[#allocation2 + $0x13c8] sm:$0xff]  ;;  %2844 = vmatpush.msrb.mxu2 %v727_v41 }
 0x234   :  { %v595_v43 = vld [vmem:[#allocation2 + $0xd88] sm:$0xff]  ;;  %2863 = vmatpush.msrb.mxu3 %v795_v42 }
 0x235   :  { %v659_v44 = vld [vmem:[#allocation2 + $0xf88] sm:$0xff]  ;;  %2805 = vmatpush.msrb.mxu0 %v595_v43 }
 0x236   :  { %v723_v45 = vld [vmem:[#allocation2 + $0x1188] sm:$0xff]  ;;  %2825 = vmatpush.msrb.mxu1 %v659_v44 }
 0x237   :  { %v791_v46 = vld [vmem:[#allocation2 + $0x13a8] sm:$0xff]  ;;  %2845 = vmatpush.msrb.mxu2 %v723_v45  ;;  %v4747_v45 = vld [vmem:[%s5625_s0 + $0x38] sm:$0xff] }
 0x238   :  { %v591_v48 = vld [vmem:[#allocation2 + $0xd68] sm:$0xff]  ;;  %2864 = vmatpush.msrb.mxu3 %v791_v46 }
 0x239   :  { %v655_v49 = vld [vmem:[#allocation2 + $0xf68] sm:$0xff]  ;;  %2806 = vmatpush.msrb.mxu0 %v591_v48 }
 0x23a   :  { %v719_v50 = vld [vmem:[#allocation2 + $0x1168] sm:$0xff]  ;;  %2826 = vmatpush.msrb.mxu1 %v655_v49 }
 0x23b   :  { %v787_v52 = vld [vmem:[#allocation2 + $0x1388] sm:$0xff]  ;;  %2846 = vmatpush.msrb.mxu2 %v719_v50 }
 0x23c   :  { %v4743_v53 = vld [vmem:[%s5625_s0 + $0x28] sm:$0xff]  ;;  %2865 = vmatpush.msrb.mxu3 %v787_v52 }
 0x23d   :  { %2798 = vmatmul.f32.vlgmr.msra.gmra.mxu3 %v4743_v53  ;;  %v587_v54 = vld [vmem:[#allocation2 + $0xd48] sm:$0xff] }
 0x23e   :  { %v651_v55 = vld [vmem:[#allocation2 + $0xf48] sm:$0xff]  ;;  %2807 = vmatpush.msrb.mxu0 %v587_v54 }
 0x23f   :  { %v715_v56 = vld [vmem:[#allocation2 + $0x1148] sm:$0xff]  ;;  %2827 = vmatpush.msrb.mxu1 %v651_v55 }
 0x240   :  { %v783_v57 = vld [vmem:[#allocation2 + $0x1368] sm:$0xff]  ;;  %2847 = vmatpush.msrb.mxu2 %v715_v56 }
 0x241   :  { %v583_v59 = vld [vmem:[#allocation2 + $0xd28] sm:$0xff]  ;;  %2866 = vmatpush.msrb.mxu3 %v783_v57 }
 0x242   :  { %v647_v60 = vld [vmem:[#allocation2 + $0xf28] sm:$0xff]  ;;  %2808 = vmatpush.msrb.mxu0 %v583_v59 }
 0x243   :  { %v711_v61 = vld [vmem:[#allocation2 + $0x1128] sm:$0xff]  ;;  %2828 = vmatpush.msrb.mxu1 %v647_v60 }
 0x244   :  { %v779_v62 = vld [vmem:[#allocation2 + $0x1348] sm:$0xff]  ;;  %2848 = vmatpush.msrb.mxu2 %v711_v61 }
 0x245   :  { %v579_v63 = vld [vmem:[#allocation2 + $0xd08] sm:$0xff]  ;;  %2867 = vmatpush.msrb.mxu3 %v779_v62 }
 0x246   :  { %v643_v0 = vld [vmem:[#allocation2 + $0xf08] sm:$0xff]  ;;  %2809 = vmatpush.msrb.mxu0 %v579_v63 }
 0x247   :  { %v707_v1 = vld [vmem:[#allocation2 + $0x1108] sm:$0xff]  ;;  %2829 = vmatpush.msrb.mxu1 %v643_v0 }
 0x248   :  { %v775_v2 = vld [vmem:[#allocation2 + $0x1328] sm:$0xff]  ;;  %2849 = vmatpush.msrb.mxu2 %v707_v1 }
 0x249   :  { %v575_v3 = vld [vmem:[#allocation2 + $0xce8] sm:$0xff]  ;;  %2868 = vmatpush.msrb.mxu3 %v775_v2 }
 0x24a   :  { %v639_v4 = vld [vmem:[#allocation2 + $0xee8] sm:$0xff]  ;;  %2810 = vmatpush.msrb.mxu0 %v575_v3 }
 0x24b   :  { %v703_v5 = vld [vmem:[#allocation2 + $0x10e8] sm:$0xff]  ;;  %2830 = vmatpush.msrb.mxu1 %v639_v4 }
 0x24c   :  { %v771_v6 = vld [vmem:[#allocation2 + $0x1308] sm:$0xff]  ;;  %2850 = vmatpush.msrb.mxu2 %v703_v5 }
 0x24d   :  { %v571_v7 = vld [vmem:[#allocation2 + $0xcc8] sm:$0xff]  ;;  %2869 = vmatpush.msrb.mxu3 %v771_v6 }
 0x24e   :  { %v635_v8 = vld [vmem:[#allocation2 + $0xec8] sm:$0xff]  ;;  %2811 = vmatpush.msrb.mxu0 %v571_v7 }
 0x24f   :  { %v699_v9 = vld [vmem:[#allocation2 + $0x10c8] sm:$0xff]  ;;  %2831 = vmatpush.msrb.mxu1 %v635_v8 }
 0x250   :  { %v767_v10 = vld [vmem:[#allocation2 + $0x12e8] sm:$0xff]  ;;  %2851 = vmatpush.msrb.mxu2 %v699_v9 }
 0x251   :  { %v567_v11 = vld [vmem:[#allocation2 + $0xca8] sm:$0xff]  ;;  %2870 = vmatpush.msrb.mxu3 %v767_v10 }
 0x252   :  { %v631_v12 = vld [vmem:[#allocation2 + $0xea8] sm:$0xff]  ;;  %2812 = vmatpush.msrb.mxu0 %v567_v11 }
 0x253   :  { %v695_v13 = vld [vmem:[#allocation2 + $0x10a8] sm:$0xff]  ;;  %2832 = vmatpush.msrb.mxu1 %v631_v12 }
 0x254   :  { %v763_v14 = vld [vmem:[#allocation2 + $0x12c8] sm:$0xff]  ;;  %2852 = vmatpush.msrb.mxu2 %v695_v13 }
 0x255   :  { %v563_v15 = vld [vmem:[#allocation2 + $0xc88] sm:$0xff]  ;;  %2871 = vmatpush.msrb.mxu3 %v763_v14 }
 0x256   :  { %v627_v16 = vld [vmem:[#allocation2 + $0xe88] sm:$0xff]  ;;  %2813 = vmatpush.msrb.mxu0 %v563_v15 }
 0x257   :  { %v691_v17 = vld [vmem:[#allocation2 + $0x1088] sm:$0xff]  ;;  %2833 = vmatpush.msrb.mxu1 %v627_v16 }
 0x258   :  { %v759_v18 = vld [vmem:[#allocation2 + $0x12a8] sm:$0xff]  ;;  %2853 = vmatpush.msrb.mxu2 %v691_v17 }
 0x259   :  { %v559_v19 = vld [vmem:[#allocation2 + $0xc68] sm:$0xff]  ;;  %2872 = vmatpush.msrb.mxu3 %v759_v18 }
 0x25a   :  { %v623_v20 = vld [vmem:[#allocation2 + $0xe68] sm:$0xff]  ;;  %2814 = vmatpush.msrb.mxu0 %v559_v19 }
 0x25b   :  { %v687_v21 = vld [vmem:[#allocation2 + $0x1068] sm:$0xff]  ;;  %2834 = vmatpush.msrb.mxu1 %v623_v20 }
 0x25c   :  { %v755_v22 = vld [vmem:[#allocation2 + $0x1288] sm:$0xff]  ;;  %2854 = vmatpush.msrb.mxu2 %v687_v21 }
 0x25d   :  { %v555_v23 = vld [vmem:[#allocation2 + $0xc48] sm:$0xff]  ;;  %2873 = vmatpush.msrb.mxu3 %v755_v22 }
 0x25e   :  { %v619_v24 = vld [vmem:[#allocation2 + $0xe48] sm:$0xff]  ;;  %2815 = vmatpush.msrb.mxu0 %v555_v23 }
 0x25f   :  { %v683_v25 = vld [vmem:[#allocation2 + $0x1048] sm:$0xff]  ;;  %2835 = vmatpush.msrb.mxu1 %v619_v24 }
 0x260   :  { %v751_v26 = vld [vmem:[#allocation2 + $0x1268] sm:$0xff]  ;;  %2855 = vmatpush.msrb.mxu2 %v683_v25 }
 0x261   :  { %v551_v27 = vld [vmem:[#allocation2 + $0xc28] sm:$0xff]  ;;  %2874 = vmatpush.msrb.mxu3 %v751_v26 }
 0x262   :  { %v615_v28 = vld [vmem:[#allocation2 + $0xe28] sm:$0xff]  ;;  %2816 = vmatpush.msrb.mxu0 %v551_v27 }
 0x263   :  { %v679_v29 = vld [vmem:[#allocation2 + $0x1028] sm:$0xff]  ;;  %2836 = vmatpush.msrb.mxu1 %v615_v28 }
 0x264   :  { %v747_v30 = vld [vmem:[#allocation2 + $0x1248] sm:$0xff]  ;;  %2856 = vmatpush.msrb.mxu2 %v679_v29 }
 0x265   :  { %v547_v31 = vld [vmem:[#allocation2 + $0xc08] sm:$0xff]  ;;  %2875 = vmatpush.msrb.mxu3 %v747_v30 }
 0x266   :  { %v611_v32 = vld [vmem:[#allocation2 + $0xe08] sm:$0xff]  ;;  %2817 = vmatpush.msrb.mxu0 %v547_v31 }
 0x267   :  { %v675_v33 = vld [vmem:[#allocation2 + $0x1008] sm:$0xff]  ;;  %2837 = vmatpush.msrb.mxu1 %v611_v32  ;;  %2818 = vmatmul.f32.vlgmr.msrb.gmra.mxu0 %v4745_v39 }
 0x268   :  { %v743_v34 = vld [vmem:[#allocation2 + $0x1228] sm:$0xff]  ;;  %2857 = vmatpush.msrb.mxu2 %v675_v33  ;;  %2838 = vmatmul.f32.vlgmr.msrb.gmra.mxu1 %v4747_v45 }
 0x269   :  { %v863_v35 = vld [vmem:[#allocation2 + $0x15e8] sm:$0xff]  ;;  %2876 = vmatpush.msrb.mxu3 %v743_v34  ;;  %2858 = vmatmul.f32.vlgmr.msrb.gmra.mxu2 %v4746_v40 }
 0x26a   :  { %v927_v36 = vld [vmem:[#allocation2 + $0x17e8] sm:$0xff]  ;;  %2882 = vmatpush.msra.mxu0 %v863_v35 }
 0x26b   :  { %v991_v37 = vld [vmem:[#allocation2 + $0x19e8] sm:$0xff]  ;;  %2902 = vmatpush.msra.mxu1 %v927_v36 }
 0x26c   :  { %v739_v38 = vld [vmem:[#allocation2 + $0x1208] sm:$0xff]  ;;  %2922 = vmatpush.msra.mxu2 %v991_v37 }
 0x26d   :  { %v859_v41 = vld [vmem:[#allocation2 + $0x15c8] sm:$0xff]  ;;  %2877 = vmatpush.msrb.mxu3 %v739_v38 }
 0x26e   :  { %v923_v42 = vld [vmem:[#allocation2 + $0x17c8] sm:$0xff]  ;;  %2883 = vmatpush.msra.mxu0 %v859_v41 }
 0x26f   :  { %v987_v43 = vld [vmem:[#allocation2 + $0x19c8] sm:$0xff]  ;;  %2903 = vmatpush.msra.mxu1 %v923_v42 }
 0x270   :  { %v1055_v44 = vld [vmem:[#allocation2 + $0x1be8] sm:$0xff]  ;;  %2923 = vmatpush.msra.mxu2 %v987_v43  ;;  %v4749_v43 = vld [vmem:[%s5625_s0 + $0x50] sm:$0xff] }
 0x271   :  { %v4748_v46 = vld [vmem:[%s5625_s0 + $0x48] sm:$0xff]  ;;  %2942 = vmatpush.msra.mxu3 %v1055_v44  ;;  %v4750_v44 = vld [vmem:[%s5625_s0 + $0x60] sm:$0xff] }
 0x272   :  { %2878 = vmatmul.f32.vlgmr.msrb.gmra.mxu3 %v4748_v46  ;;  %v855_v47 = vld [vmem:[#allocation2 + $0x15a8] sm:$0xff] }
 0x273   :  { %v919_v48 = vld [vmem:[#allocation2 + $0x17a8] sm:$0xff]  ;;  %2884 = vmatpush.msra.mxu0 %v855_v47 }
 0x274   :  { %v983_v49 = vld [vmem:[#allocation2 + $0x19a8] sm:$0xff]  ;;  %2904 = vmatpush.msra.mxu1 %v919_v48 }
 0x275   :  { %v1051_v50 = vld [vmem:[#allocation2 + $0x1bc8] sm:$0xff]  ;;  %2924 = vmatpush.msra.mxu2 %v983_v49  ;;  %v4751_v49 = vld [vmem:[%s5625_s0 + $0x58] sm:$0xff] }
 0x276   :  { %v851_v51 = vld [vmem:[#allocation2 + $0x1588] sm:$0xff]  ;;  %2943 = vmatpush.msra.mxu3 %v1051_v50 }
 0x277   :  { %v915_v52 = vld [vmem:[#allocation2 + $0x1788] sm:$0xff]  ;;  %2885 = vmatpush.msra.mxu0 %v851_v51 }
 0x278   :  { %v979_v53 = vld [vmem:[#allocation2 + $0x1988] sm:$0xff]  ;;  %2905 = vmatpush.msra.mxu1 %v915_v52 }
 0x279   :  { %v1047_v54 = vld [vmem:[#allocation2 + $0x1ba8] sm:$0xff]  ;;  %2925 = vmatpush.msra.mxu2 %v979_v53 }
 0x27a   :  { %v847_v55 = vld [vmem:[#allocation2 + $0x1568] sm:$0xff]  ;;  %2944 = vmatpush.msra.mxu3 %v1047_v54 }
 0x27b   :  { %v911_v56 = vld [vmem:[#allocation2 + $0x1768] sm:$0xff]  ;;  %2886 = vmatpush.msra.mxu0 %v847_v55 }
 0x27c   :  { %v975_v57 = vld [vmem:[#allocation2 + $0x1968] sm:$0xff]  ;;  %2906 = vmatpush.msra.mxu1 %v911_v56 }
 0x27d   :  { %v1043_v58 = vld [vmem:[#allocation2 + $0x1b88] sm:$0xff]  ;;  %2926 = vmatpush.msra.mxu2 %v975_v57 }
 0x27e   :  { %v843_v59 = vld [vmem:[#allocation2 + $0x1548] sm:$0xff]  ;;  %2945 = vmatpush.msra.mxu3 %v1043_v58 }
 0x27f   :  { %v907_v60 = vld [vmem:[#allocation2 + $0x1748] sm:$0xff]  ;;  %2887 = vmatpush.msra.mxu0 %v843_v59 }
 0x280   :  { %v971_v61 = vld [vmem:[#allocation2 + $0x1948] sm:$0xff]  ;;  %2907 = vmatpush.msra.mxu1 %v907_v60 }
 0x281   :  { %v1039_v62 = vld [vmem:[#allocation2 + $0x1b68] sm:$0xff]  ;;  %2927 = vmatpush.msra.mxu2 %v971_v61 }
 0x282   :  { %v839_v63 = vld [vmem:[#allocation2 + $0x1528] sm:$0xff]  ;;  %2946 = vmatpush.msra.mxu3 %v1039_v62 }
 0x283   :  { %v903_v0 = vld [vmem:[#allocation2 + $0x1728] sm:$0xff]  ;;  %2888 = vmatpush.msra.mxu0 %v839_v63 }
 0x284   :  { %v967_v1 = vld [vmem:[#allocation2 + $0x1928] sm:$0xff]  ;;  %2908 = vmatpush.msra.mxu1 %v903_v0 }
 0x285   :  { %v1035_v2 = vld [vmem:[#allocation2 + $0x1b48] sm:$0xff]  ;;  %2928 = vmatpush.msra.mxu2 %v967_v1 }
 0x286   :  { %v835_v3 = vld [vmem:[#allocation2 + $0x1508] sm:$0xff]  ;;  %2947 = vmatpush.msra.mxu3 %v1035_v2 }
 0x287   :  { %v899_v4 = vld [vmem:[#allocation2 + $0x1708] sm:$0xff]  ;;  %2889 = vmatpush.msra.mxu0 %v835_v3 }
 0x288   :  { %v963_v5 = vld [vmem:[#allocation2 + $0x1908] sm:$0xff]  ;;  %2909 = vmatpush.msra.mxu1 %v899_v4 }
 0x289   :  { %v1031_v6 = vld [vmem:[#allocation2 + $0x1b28] sm:$0xff]  ;;  %2929 = vmatpush.msra.mxu2 %v963_v5 }
 0x28a   :  { %v831_v7 = vld [vmem:[#allocation2 + $0x14e8] sm:$0xff]  ;;  %2948 = vmatpush.msra.mxu3 %v1031_v6 }
 0x28b   :  { %v895_v8 = vld [vmem:[#allocation2 + $0x16e8] sm:$0xff]  ;;  %2890 = vmatpush.msra.mxu0 %v831_v7 }
 0x28c   :  { %v959_v9 = vld [vmem:[#allocation2 + $0x18e8] sm:$0xff]  ;;  %2910 = vmatpush.msra.mxu1 %v895_v8 }
 0x28d   :  { %v1027_v10 = vld [vmem:[#allocation2 + $0x1b08] sm:$0xff]  ;;  %2930 = vmatpush.msra.mxu2 %v959_v9 }
 0x28e   :  { %v827_v11 = vld [vmem:[#allocation2 + $0x14c8] sm:$0xff]  ;;  %2949 = vmatpush.msra.mxu3 %v1027_v10 }
 0x28f   :  { %v891_v12 = vld [vmem:[#allocation2 + $0x16c8] sm:$0xff]  ;;  %2891 = vmatpush.msra.mxu0 %v827_v11 }
 0x290   :  { %v955_v13 = vld [vmem:[#allocation2 + $0x18c8] sm:$0xff]  ;;  %2911 = vmatpush.msra.mxu1 %v891_v12 }
 0x291   :  { %v1023_v14 = vld [vmem:[#allocation2 + $0x1ae8] sm:$0xff]  ;;  %2931 = vmatpush.msra.mxu2 %v955_v13 }
 0x292   :  { %v823_v15 = vld [vmem:[#allocation2 + $0x14a8] sm:$0xff]  ;;  %2950 = vmatpush.msra.mxu3 %v1023_v14 }
 0x293   :  { %v887_v16 = vld [vmem:[#allocation2 + $0x16a8] sm:$0xff]  ;;  %2892 = vmatpush.msra.mxu0 %v823_v15 }
 0x294   :  { %v951_v17 = vld [vmem:[#allocation2 + $0x18a8] sm:$0xff]  ;;  %2912 = vmatpush.msra.mxu1 %v887_v16 }
 0x295   :  { %v1019_v18 = vld [vmem:[#allocation2 + $0x1ac8] sm:$0xff]  ;;  %2932 = vmatpush.msra.mxu2 %v951_v17 }
 0x296   :  { %v819_v19 = vld [vmem:[#allocation2 + $0x1488] sm:$0xff]  ;;  %2951 = vmatpush.msra.mxu3 %v1019_v18 }
 0x297   :  { %v883_v20 = vld [vmem:[#allocation2 + $0x1688] sm:$0xff]  ;;  %2893 = vmatpush.msra.mxu0 %v819_v19 }
 0x298   :  { %v947_v21 = vld [vmem:[#allocation2 + $0x1888] sm:$0xff]  ;;  %2913 = vmatpush.msra.mxu1 %v883_v20 }
 0x299   :  { %v1015_v22 = vld [vmem:[#allocation2 + $0x1aa8] sm:$0xff]  ;;  %2933 = vmatpush.msra.mxu2 %v947_v21 }
 0x29a   :  { %v815_v23 = vld [vmem:[#allocation2 + $0x1468] sm:$0xff]  ;;  %2952 = vmatpush.msra.mxu3 %v1015_v22 }
 0x29b   :  { %v879_v24 = vld [vmem:[#allocation2 + $0x1668] sm:$0xff]  ;;  %2894 = vmatpush.msra.mxu0 %v815_v23 }
 0x29c   :  { %v943_v25 = vld [vmem:[#allocation2 + $0x1868] sm:$0xff]  ;;  %2914 = vmatpush.msra.mxu1 %v879_v24 }
 0x29d   :  { %v1011_v26 = vld [vmem:[#allocation2 + $0x1a88] sm:$0xff]  ;;  %2934 = vmatpush.msra.mxu2 %v943_v25 }
 0x29e   :  { %v811_v27 = vld [vmem:[#allocation2 + $0x1448] sm:$0xff]  ;;  %2953 = vmatpush.msra.mxu3 %v1011_v26 }
 0x29f   :  { %v875_v28 = vld [vmem:[#allocation2 + $0x1648] sm:$0xff]  ;;  %2895 = vmatpush.msra.mxu0 %v811_v27 }
 0x2a0   :  { %v939_v29 = vld [vmem:[#allocation2 + $0x1848] sm:$0xff]  ;;  %2915 = vmatpush.msra.mxu1 %v875_v28 }
 0x2a1   :  { %v1007_v30 = vld [vmem:[#allocation2 + $0x1a68] sm:$0xff]  ;;  %2935 = vmatpush.msra.mxu2 %v939_v29 }
 0x2a2   :  { %v807_v31 = vld [vmem:[#allocation2 + $0x1428] sm:$0xff]  ;;  %2954 = vmatpush.msra.mxu3 %v1007_v30 }
 0x2a3   :  { %v871_v32 = vld [vmem:[#allocation2 + $0x1628] sm:$0xff]  ;;  %2896 = vmatpush.msra.mxu0 %v807_v31 }
 0x2a4   :  { %v935_v33 = vld [vmem:[#allocation2 + $0x1828] sm:$0xff]  ;;  %2916 = vmatpush.msra.mxu1 %v871_v32 }
 0x2a5   :  { %v1003_v34 = vld [vmem:[#allocation2 + $0x1a48] sm:$0xff]  ;;  %2936 = vmatpush.msra.mxu2 %v935_v33 }
 0x2a6   :  { %v803_v35 = vld [vmem:[#allocation2 + $0x1408] sm:$0xff]  ;;  %2955 = vmatpush.msra.mxu3 %v1003_v34 }
 0x2a7   :  { %v867_v36 = vld [vmem:[#allocation2 + $0x1608] sm:$0xff]  ;;  %2897 = vmatpush.msra.mxu0 %v803_v35 }
 0x2a8   :  { %v931_v37 = vld [vmem:[#allocation2 + $0x1808] sm:$0xff]  ;;  %2917 = vmatpush.msra.mxu1 %v867_v36  ;;  %2898 = vmatmul.f32.vlgmr.msra.gmra.mxu0 %v4749_v43 }
 0x2a9   :  { %v999_v38 = vld [vmem:[#allocation2 + $0x1a28] sm:$0xff]  ;;  %2937 = vmatpush.msra.mxu2 %v931_v37  ;;  %2918 = vmatmul.f32.vlgmr.msra.gmra.mxu1 %v4751_v49 }
 0x2aa   :  { %v1119_v39 = vld [vmem:[#allocation2 + $0x1de8] sm:$0xff]  ;;  %2956 = vmatpush.msra.mxu3 %v999_v38  ;;  %2938 = vmatmul.f32.vlgmr.msra.gmra.mxu2 %v4750_v44 }
 0x2ab   :  { %v1183_v40 = vld [vmem:[#allocation2 + $0x1fe8] sm:$0xff]  ;;  %2962 = vmatpush.msrb.mxu0 %v1119_v39 }
 0x2ac   :  { %v1247_v41 = vld [vmem:[#allocation2 + $0x21e8] sm:$0xff]  ;;  %2982 = vmatpush.msrb.mxu1 %v1183_v40 }
 0x2ad   :  { %v995_v42 = vld [vmem:[#allocation2 + $0x1a08] sm:$0xff]  ;;  %3002 = vmatpush.msrb.mxu2 %v1247_v41 }
 0x2ae   :  { %v1115_v45 = vld [vmem:[#allocation2 + $0x1dc8] sm:$0xff]  ;;  %2957 = vmatpush.msra.mxu3 %v995_v42 }
 0x2af   :  { %v1179_v46 = vld [vmem:[#allocation2 + $0x1fc8] sm:$0xff]  ;;  %2963 = vmatpush.msrb.mxu0 %v1115_v45 }
 0x2b0   :  { %v1243_v47 = vld [vmem:[#allocation2 + $0x21c8] sm:$0xff]  ;;  %2983 = vmatpush.msrb.mxu1 %v1179_v46 }
 0x2b1   :  { %v1311_v48 = vld [vmem:[#allocation2 + $0x23e8] sm:$0xff]  ;;  %3003 = vmatpush.msrb.mxu2 %v1243_v47  ;;  %v4753_v47 = vld [vmem:[%s5625_s0 + $0x70] sm:$0xff] }
 0x2b2   :  { %v4752_v50 = vld [vmem:[%s5625_s0 + $0x68] sm:$0xff]  ;;  %3022 = vmatpush.msrb.mxu3 %v1311_v48  ;;  %v4754_v48 = vld [vmem:[%s5625_s0 + $0x80] sm:$0xff] }
 0x2b3   :  { %2958 = vmatmul.f32.vlgmr.msra.gmra.mxu3 %v4752_v50  ;;  %v1111_v51 = vld [vmem:[#allocation2 + $0x1da8] sm:$0xff] }
 0x2b4   :  { %v1175_v52 = vld [vmem:[#allocation2 + $0x1fa8] sm:$0xff]  ;;  %2964 = vmatpush.msrb.mxu0 %v1111_v51 }
 0x2b5   :  { %v1239_v53 = vld [vmem:[#allocation2 + $0x21a8] sm:$0xff]  ;;  %2984 = vmatpush.msrb.mxu1 %v1175_v52 }
 0x2b6   :  { %v1307_v54 = vld [vmem:[#allocation2 + $0x23c8] sm:$0xff]  ;;  %3004 = vmatpush.msrb.mxu2 %v1239_v53  ;;  %v4755_v53 = vld [vmem:[%s5625_s0 + $0x78] sm:$0xff] }
 0x2b7   :  { %v1107_v55 = vld [vmem:[#allocation2 + $0x1d88] sm:$0xff]  ;;  %3023 = vmatpush.msrb.mxu3 %v1307_v54 }
 0x2b8   :  { %v1171_v56 = vld [vmem:[#allocation2 + $0x1f88] sm:$0xff]  ;;  %2965 = vmatpush.msrb.mxu0 %v1107_v55 }
 0x2b9   :  { %v1235_v57 = vld [vmem:[#allocation2 + $0x2188] sm:$0xff]  ;;  %2985 = vmatpush.msrb.mxu1 %v1171_v56 }
 0x2ba   :  { %v1303_v58 = vld [vmem:[#allocation2 + $0x23a8] sm:$0xff]  ;;  %3005 = vmatpush.msrb.mxu2 %v1235_v57 }
 0x2bb   :  { %v1103_v59 = vld [vmem:[#allocation2 + $0x1d68] sm:$0xff]  ;;  %3024 = vmatpush.msrb.mxu3 %v1303_v58 }
 0x2bc   :  { %v1167_v60 = vld [vmem:[#allocation2 + $0x1f68] sm:$0xff]  ;;  %2966 = vmatpush.msrb.mxu0 %v1103_v59 }
 0x2bd   :  { %v1231_v61 = vld [vmem:[#allocation2 + $0x2168] sm:$0xff]  ;;  %2986 = vmatpush.msrb.mxu1 %v1167_v60 }
 0x2be   :  { %v1299_v62 = vld [vmem:[#allocation2 + $0x2388] sm:$0xff]  ;;  %3006 = vmatpush.msrb.mxu2 %v1231_v61 }
 0x2bf   :  { %v1099_v63 = vld [vmem:[#allocation2 + $0x1d48] sm:$0xff]  ;;  %3025 = vmatpush.msrb.mxu3 %v1299_v62 }
 0x2c0   :  { %v1163_v0 = vld [vmem:[#allocation2 + $0x1f48] sm:$0xff]  ;;  %2967 = vmatpush.msrb.mxu0 %v1099_v63 }
 0x2c1   :  { %v1227_v1 = vld [vmem:[#allocation2 + $0x2148] sm:$0xff]  ;;  %2987 = vmatpush.msrb.mxu1 %v1163_v0 }
 0x2c2   :  { %v1295_v2 = vld [vmem:[#allocation2 + $0x2368] sm:$0xff]  ;;  %3007 = vmatpush.msrb.mxu2 %v1227_v1 }
 0x2c3   :  { %v1095_v3 = vld [vmem:[#allocation2 + $0x1d28] sm:$0xff]  ;;  %3026 = vmatpush.msrb.mxu3 %v1295_v2 }
 0x2c4   :  { %v1159_v4 = vld [vmem:[#allocation2 + $0x1f28] sm:$0xff]  ;;  %2968 = vmatpush.msrb.mxu0 %v1095_v3 }
 0x2c5   :  { %v1223_v5 = vld [vmem:[#allocation2 + $0x2128] sm:$0xff]  ;;  %2988 = vmatpush.msrb.mxu1 %v1159_v4 }
 0x2c6   :  { %v1291_v6 = vld [vmem:[#allocation2 + $0x2348] sm:$0xff]  ;;  %3008 = vmatpush.msrb.mxu2 %v1223_v5 }
 0x2c7   :  { %v1091_v7 = vld [vmem:[#allocation2 + $0x1d08] sm:$0xff]  ;;  %3027 = vmatpush.msrb.mxu3 %v1291_v6 }
 0x2c8   :  { %v1155_v8 = vld [vmem:[#allocation2 + $0x1f08] sm:$0xff]  ;;  %2969 = vmatpush.msrb.mxu0 %v1091_v7 }
 0x2c9   :  { %v1219_v9 = vld [vmem:[#allocation2 + $0x2108] sm:$0xff]  ;;  %2989 = vmatpush.msrb.mxu1 %v1155_v8 }
 0x2ca   :  { %v1287_v10 = vld [vmem:[#allocation2 + $0x2328] sm:$0xff]  ;;  %3009 = vmatpush.msrb.mxu2 %v1219_v9 }
 0x2cb   :  { %v1087_v11 = vld [vmem:[#allocation2 + $0x1ce8] sm:$0xff]  ;;  %3028 = vmatpush.msrb.mxu3 %v1287_v10 }
 0x2cc   :  { %v1151_v12 = vld [vmem:[#allocation2 + $0x1ee8] sm:$0xff]  ;;  %2970 = vmatpush.msrb.mxu0 %v1087_v11 }
 0x2cd   :  { %v1215_v13 = vld [vmem:[#allocation2 + $0x20e8] sm:$0xff]  ;;  %2990 = vmatpush.msrb.mxu1 %v1151_v12 }
 0x2ce   :  { %v1283_v14 = vld [vmem:[#allocation2 + $0x2308] sm:$0xff]  ;;  %3010 = vmatpush.msrb.mxu2 %v1215_v13 }
 0x2cf   :  { %v1083_v15 = vld [vmem:[#allocation2 + $0x1cc8] sm:$0xff]  ;;  %3029 = vmatpush.msrb.mxu3 %v1283_v14 }
 0x2d0   :  { %v1147_v16 = vld [vmem:[#allocation2 + $0x1ec8] sm:$0xff]  ;;  %2971 = vmatpush.msrb.mxu0 %v1083_v15 }
 0x2d1   :  { %v1211_v17 = vld [vmem:[#allocation2 + $0x20c8] sm:$0xff]  ;;  %2991 = vmatpush.msrb.mxu1 %v1147_v16 }
 0x2d2   :  { %v1279_v18 = vld [vmem:[#allocation2 + $0x22e8] sm:$0xff]  ;;  %3011 = vmatpush.msrb.mxu2 %v1211_v17 }
 0x2d3   :  { %v1079_v19 = vld [vmem:[#allocation2 + $0x1ca8] sm:$0xff]  ;;  %3030 = vmatpush.msrb.mxu3 %v1279_v18 }
 0x2d4   :  { %v1143_v20 = vld [vmem:[#allocation2 + $0x1ea8] sm:$0xff]  ;;  %2972 = vmatpush.msrb.mxu0 %v1079_v19 }
 0x2d5   :  { %v1207_v21 = vld [vmem:[#allocation2 + $0x20a8] sm:$0xff]  ;;  %2992 = vmatpush.msrb.mxu1 %v1143_v20 }
 0x2d6   :  { %v1275_v22 = vld [vmem:[#allocation2 + $0x22c8] sm:$0xff]  ;;  %3012 = vmatpush.msrb.mxu2 %v1207_v21 }
 0x2d7   :  { %v1075_v23 = vld [vmem:[#allocation2 + $0x1c88] sm:$0xff]  ;;  %3031 = vmatpush.msrb.mxu3 %v1275_v22 }
 0x2d8   :  { %v1139_v24 = vld [vmem:[#allocation2 + $0x1e88] sm:$0xff]  ;;  %2973 = vmatpush.msrb.mxu0 %v1075_v23 }
 0x2d9   :  { %v1203_v25 = vld [vmem:[#allocation2 + $0x2088] sm:$0xff]  ;;  %2993 = vmatpush.msrb.mxu1 %v1139_v24 }
 0x2da   :  { %v1271_v26 = vld [vmem:[#allocation2 + $0x22a8] sm:$0xff]  ;;  %3013 = vmatpush.msrb.mxu2 %v1203_v25 }
 0x2db   :  { %v1071_v27 = vld [vmem:[#allocation2 + $0x1c68] sm:$0xff]  ;;  %3032 = vmatpush.msrb.mxu3 %v1271_v26 }
 0x2dc   :  { %v1135_v28 = vld [vmem:[#allocation2 + $0x1e68] sm:$0xff]  ;;  %2974 = vmatpush.msrb.mxu0 %v1071_v27 }
 0x2dd   :  { %v1199_v29 = vld [vmem:[#allocation2 + $0x2068] sm:$0xff]  ;;  %2994 = vmatpush.msrb.mxu1 %v1135_v28 }
 0x2de   :  { %v1267_v30 = vld [vmem:[#allocation2 + $0x2288] sm:$0xff]  ;;  %3014 = vmatpush.msrb.mxu2 %v1199_v29 }
 0x2df   :  { %v1067_v31 = vld [vmem:[#allocation2 + $0x1c48] sm:$0xff]  ;;  %3033 = vmatpush.msrb.mxu3 %v1267_v30 }
 0x2e0   :  { %v1131_v32 = vld [vmem:[#allocation2 + $0x1e48] sm:$0xff]  ;;  %2975 = vmatpush.msrb.mxu0 %v1067_v31 }
 0x2e1   :  { %v1195_v33 = vld [vmem:[#allocation2 + $0x2048] sm:$0xff]  ;;  %2995 = vmatpush.msrb.mxu1 %v1131_v32 }
 0x2e2   :  { %v1263_v34 = vld [vmem:[#allocation2 + $0x2268] sm:$0xff]  ;;  %3015 = vmatpush.msrb.mxu2 %v1195_v33 }
 0x2e3   :  { %v1063_v35 = vld [vmem:[#allocation2 + $0x1c28] sm:$0xff]  ;;  %3034 = vmatpush.msrb.mxu3 %v1263_v34 }
 0x2e4   :  { %v1127_v36 = vld [vmem:[#allocation2 + $0x1e28] sm:$0xff]  ;;  %2976 = vmatpush.msrb.mxu0 %v1063_v35 }
 0x2e5   :  { %v1191_v37 = vld [vmem:[#allocation2 + $0x2028] sm:$0xff]  ;;  %2996 = vmatpush.msrb.mxu1 %v1127_v36 }
 0x2e6   :  { %v1259_v38 = vld [vmem:[#allocation2 + $0x2248] sm:$0xff]  ;;  %3016 = vmatpush.msrb.mxu2 %v1191_v37 }
 0x2e7   :  { %v1059_v39 = vld [vmem:[#allocation2 + $0x1c08] sm:$0xff]  ;;  %3035 = vmatpush.msrb.mxu3 %v1259_v38 }
 0x2e8   :  { %v1123_v40 = vld [vmem:[#allocation2 + $0x1e08] sm:$0xff]  ;;  %2977 = vmatpush.msrb.mxu0 %v1059_v39 }
 0x2e9   :  { %v1187_v41 = vld [vmem:[#allocation2 + $0x2008] sm:$0xff]  ;;  %2997 = vmatpush.msrb.mxu1 %v1123_v40  ;;  %2978 = vmatmul.f32.vlgmr.msrb.gmra.mxu0 %v4753_v47 }
 0x2ea   :  { %v1255_v42 = vld [vmem:[#allocation2 + $0x2228] sm:$0xff]  ;;  %3017 = vmatpush.msrb.mxu2 %v1187_v41  ;;  %2998 = vmatmul.f32.vlgmr.msrb.gmra.mxu1 %v4755_v53 }
 0x2eb   :  { %v1375_v43 = vld [vmem:[#allocation2 + $0x25e8] sm:$0xff]  ;;  %3036 = vmatpush.msrb.mxu3 %v1255_v42  ;;  %3018 = vmatmul.f32.vlgmr.msrb.gmra.mxu2 %v4754_v48 }
 0x2ec   :  { %v1439_v44 = vld [vmem:[#allocation2 + $0x27e8] sm:$0xff]  ;;  %3042 = vmatpush.msra.mxu0 %v1375_v43 }
 0x2ed   :  { %v1503_v45 = vld [vmem:[#allocation2 + $0x29e8] sm:$0xff]  ;;  %3062 = vmatpush.msra.mxu1 %v1439_v44 }
 0x2ee   :  { %v1251_v46 = vld [vmem:[#allocation2 + $0x2208] sm:$0xff]  ;;  %3082 = vmatpush.msra.mxu2 %v1503_v45 }
 0x2ef   :  { %v1371_v49 = vld [vmem:[#allocation2 + $0x25c8] sm:$0xff]  ;;  %3037 = vmatpush.msrb.mxu3 %v1251_v46 }
 0x2f0   :  { %v1435_v50 = vld [vmem:[#allocation2 + $0x27c8] sm:$0xff]  ;;  %3043 = vmatpush.msra.mxu0 %v1371_v49 }
 0x2f1   :  { %v1499_v51 = vld [vmem:[#allocation2 + $0x29c8] sm:$0xff]  ;;  %3063 = vmatpush.msra.mxu1 %v1435_v50 }
 0x2f2   :  { %v1567_v52 = vld [vmem:[#allocation2 + $0x2be8] sm:$0xff]  ;;  %3083 = vmatpush.msra.mxu2 %v1499_v51  ;;  %v4757_v51 = vld [vmem:[%s5625_s0 + $0x90] sm:$0xff] }
 0x2f3   :  { %v4756_v54 = vld [vmem:[%s5625_s0 + $0x88] sm:$0xff]  ;;  %3102 = vmatpush.msra.mxu3 %v1567_v52  ;;  %v4758_v52 = vld [vmem:[%s5625_s0 + $0xa0] sm:$0xff] }
 0x2f4   :  { %3038 = vmatmul.f32.vlgmr.msrb.gmra.mxu3 %v4756_v54  ;;  %v1367_v55 = vld [vmem:[#allocation2 + $0x25a8] sm:$0xff] }
 0x2f5   :  { %v1431_v56 = vld [vmem:[#allocation2 + $0x27a8] sm:$0xff]  ;;  %3044 = vmatpush.msra.mxu0 %v1367_v55 }
 0x2f6   :  { %v1495_v57 = vld [vmem:[#allocation2 + $0x29a8] sm:$0xff]  ;;  %3064 = vmatpush.msra.mxu1 %v1431_v56 }
 0x2f7   :  { %v1563_v58 = vld [vmem:[#allocation2 + $0x2bc8] sm:$0xff]  ;;  %3084 = vmatpush.msra.mxu2 %v1495_v57  ;;  %v4759_v57 = vld [vmem:[%s5625_s0 + $0x98] sm:$0xff] }
 0x2f8   :  { %v1363_v59 = vld [vmem:[#allocation2 + $0x2588] sm:$0xff]  ;;  %3103 = vmatpush.msra.mxu3 %v1563_v58 }
 0x2f9   :  { %v1427_v60 = vld [vmem:[#allocation2 + $0x2788] sm:$0xff]  ;;  %3045 = vmatpush.msra.mxu0 %v1363_v59 }
 0x2fa   :  { %v1491_v61 = vld [vmem:[#allocation2 + $0x2988] sm:$0xff]  ;;  %3065 = vmatpush.msra.mxu1 %v1427_v60 }
 0x2fb   :  { %v1559_v62 = vld [vmem:[#allocation2 + $0x2ba8] sm:$0xff]  ;;  %3085 = vmatpush.msra.mxu2 %v1491_v61 }
 0x2fc   :  { %v1359_v63 = vld [vmem:[#allocation2 + $0x2568] sm:$0xff]  ;;  %3104 = vmatpush.msra.mxu3 %v1559_v62 }
 0x2fd   :  { %v1423_v0 = vld [vmem:[#allocation2 + $0x2768] sm:$0xff]  ;;  %3046 = vmatpush.msra.mxu0 %v1359_v63 }
 0x2fe   :  { %v1487_v1 = vld [vmem:[#allocation2 + $0x2968] sm:$0xff]  ;;  %3066 = vmatpush.msra.mxu1 %v1423_v0 }
 0x2ff   :  { %v1555_v2 = vld [vmem:[#allocation2 + $0x2b88] sm:$0xff]  ;;  %3086 = vmatpush.msra.mxu2 %v1487_v1 }
 0x300   :  { %v1355_v3 = vld [vmem:[#allocation2 + $0x2548] sm:$0xff]  ;;  %3105 = vmatpush.msra.mxu3 %v1555_v2 }
 0x301   :  { %v1419_v4 = vld [vmem:[#allocation2 + $0x2748] sm:$0xff]  ;;  %3047 = vmatpush.msra.mxu0 %v1355_v3 }
 0x302   :  { %v1483_v5 = vld [vmem:[#allocation2 + $0x2948] sm:$0xff]  ;;  %3067 = vmatpush.msra.mxu1 %v1419_v4 }
 0x303   :  { %v1551_v6 = vld [vmem:[#allocation2 + $0x2b68] sm:$0xff]  ;;  %3087 = vmatpush.msra.mxu2 %v1483_v5 }
 0x304   :  { %v1351_v7 = vld [vmem:[#allocation2 + $0x2528] sm:$0xff]  ;;  %3106 = vmatpush.msra.mxu3 %v1551_v6 }
 0x305   :  { %v1415_v8 = vld [vmem:[#allocation2 + $0x2728] sm:$0xff]  ;;  %3048 = vmatpush.msra.mxu0 %v1351_v7 }
 0x306   :  { %v1479_v9 = vld [vmem:[#allocation2 + $0x2928] sm:$0xff]  ;;  %3068 = vmatpush.msra.mxu1 %v1415_v8 }
 0x307   :  { %v1547_v10 = vld [vmem:[#allocation2 + $0x2b48] sm:$0xff]  ;;  %3088 = vmatpush.msra.mxu2 %v1479_v9 }
 0x308   :  { %v1347_v11 = vld [vmem:[#allocation2 + $0x2508] sm:$0xff]  ;;  %3107 = vmatpush.msra.mxu3 %v1547_v10 }
 0x309   :  { %v1411_v12 = vld [vmem:[#allocation2 + $0x2708] sm:$0xff]  ;;  %3049 = vmatpush.msra.mxu0 %v1347_v11 }
 0x30a   :  { %v1475_v13 = vld [vmem:[#allocation2 + $0x2908] sm:$0xff]  ;;  %3069 = vmatpush.msra.mxu1 %v1411_v12 }
 0x30b   :  { %v1543_v14 = vld [vmem:[#allocation2 + $0x2b28] sm:$0xff]  ;;  %3089 = vmatpush.msra.mxu2 %v1475_v13 }
 0x30c   :  { %v1343_v15 = vld [vmem:[#allocation2 + $0x24e8] sm:$0xff]  ;;  %3108 = vmatpush.msra.mxu3 %v1543_v14 }
 0x30d   :  { %v1407_v16 = vld [vmem:[#allocation2 + $0x26e8] sm:$0xff]  ;;  %3050 = vmatpush.msra.mxu0 %v1343_v15 }
 0x30e   :  { %v1471_v17 = vld [vmem:[#allocation2 + $0x28e8] sm:$0xff]  ;;  %3070 = vmatpush.msra.mxu1 %v1407_v16 }
 0x30f   :  { %v1539_v18 = vld [vmem:[#allocation2 + $0x2b08] sm:$0xff]  ;;  %3090 = vmatpush.msra.mxu2 %v1471_v17 }
 0x310   :  { %v1339_v19 = vld [vmem:[#allocation2 + $0x24c8] sm:$0xff]  ;;  %3109 = vmatpush.msra.mxu3 %v1539_v18 }
 0x311   :  { %v1403_v20 = vld [vmem:[#allocation2 + $0x26c8] sm:$0xff]  ;;  %3051 = vmatpush.msra.mxu0 %v1339_v19 }
 0x312   :  { %v1467_v21 = vld [vmem:[#allocation2 + $0x28c8] sm:$0xff]  ;;  %3071 = vmatpush.msra.mxu1 %v1403_v20 }
 0x313   :  { %v1535_v22 = vld [vmem:[#allocation2 + $0x2ae8] sm:$0xff]  ;;  %3091 = vmatpush.msra.mxu2 %v1467_v21 }
 0x314   :  { %v1335_v23 = vld [vmem:[#allocation2 + $0x24a8] sm:$0xff]  ;;  %3110 = vmatpush.msra.mxu3 %v1535_v22 }
 0x315   :  { %v1399_v24 = vld [vmem:[#allocation2 + $0x26a8] sm:$0xff]  ;;  %3052 = vmatpush.msra.mxu0 %v1335_v23 }
 0x316   :  { %v1463_v25 = vld [vmem:[#allocation2 + $0x28a8] sm:$0xff]  ;;  %3072 = vmatpush.msra.mxu1 %v1399_v24 }
 0x317   :  { %v1531_v26 = vld [vmem:[#allocation2 + $0x2ac8] sm:$0xff]  ;;  %3092 = vmatpush.msra.mxu2 %v1463_v25 }
 0x318   :  { %v1331_v27 = vld [vmem:[#allocation2 + $0x2488] sm:$0xff]  ;;  %3111 = vmatpush.msra.mxu3 %v1531_v26 }
 0x319   :  { %v1395_v28 = vld [vmem:[#allocation2 + $0x2688] sm:$0xff]  ;;  %3053 = vmatpush.msra.mxu0 %v1331_v27 }
 0x31a   :  { %v1459_v29 = vld [vmem:[#allocation2 + $0x2888] sm:$0xff]  ;;  %3073 = vmatpush.msra.mxu1 %v1395_v28 }
 0x31b   :  { %v1527_v30 = vld [vmem:[#allocation2 + $0x2aa8] sm:$0xff]  ;;  %3093 = vmatpush.msra.mxu2 %v1459_v29 }
 0x31c   :  { %v1327_v31 = vld [vmem:[#allocation2 + $0x2468] sm:$0xff]  ;;  %3112 = vmatpush.msra.mxu3 %v1527_v30 }
 0x31d   :  { %v1391_v32 = vld [vmem:[#allocation2 + $0x2668] sm:$0xff]  ;;  %3054 = vmatpush.msra.mxu0 %v1327_v31 }
 0x31e   :  { %v1455_v33 = vld [vmem:[#allocation2 + $0x2868] sm:$0xff]  ;;  %3074 = vmatpush.msra.mxu1 %v1391_v32 }
 0x31f   :  { %v1523_v34 = vld [vmem:[#allocation2 + $0x2a88] sm:$0xff]  ;;  %3094 = vmatpush.msra.mxu2 %v1455_v33 }
 0x320   :  { %v1323_v35 = vld [vmem:[#allocation2 + $0x2448] sm:$0xff]  ;;  %3113 = vmatpush.msra.mxu3 %v1523_v34 }
 0x321   :  { %v1387_v36 = vld [vmem:[#allocation2 + $0x2648] sm:$0xff]  ;;  %3055 = vmatpush.msra.mxu0 %v1323_v35 }
 0x322   :  { %v1451_v37 = vld [vmem:[#allocation2 + $0x2848] sm:$0xff]  ;;  %3075 = vmatpush.msra.mxu1 %v1387_v36 }
 0x323   :  { %v1519_v38 = vld [vmem:[#allocation2 + $0x2a68] sm:$0xff]  ;;  %3095 = vmatpush.msra.mxu2 %v1451_v37 }
 0x324   :  { %v1319_v39 = vld [vmem:[#allocation2 + $0x2428] sm:$0xff]  ;;  %3114 = vmatpush.msra.mxu3 %v1519_v38 }
 0x325   :  { %v1383_v40 = vld [vmem:[#allocation2 + $0x2628] sm:$0xff]  ;;  %3056 = vmatpush.msra.mxu0 %v1319_v39 }
 0x326   :  { %v1447_v41 = vld [vmem:[#allocation2 + $0x2828] sm:$0xff]  ;;  %3076 = vmatpush.msra.mxu1 %v1383_v40 }
 0x327   :  { %v1515_v42 = vld [vmem:[#allocation2 + $0x2a48] sm:$0xff]  ;;  %3096 = vmatpush.msra.mxu2 %v1447_v41 }
 0x328   :  { %v1315_v43 = vld [vmem:[#allocation2 + $0x2408] sm:$0xff]  ;;  %3115 = vmatpush.msra.mxu3 %v1515_v42 }
 0x329   :  { %v1379_v44 = vld [vmem:[#allocation2 + $0x2608] sm:$0xff]  ;;  %3057 = vmatpush.msra.mxu0 %v1315_v43 }
 0x32a   :  { %v1443_v45 = vld [vmem:[#allocation2 + $0x2808] sm:$0xff]  ;;  %3077 = vmatpush.msra.mxu1 %v1379_v44  ;;  %3058 = vmatmul.f32.vlgmr.msra.gmra.mxu0 %v4757_v51 }
 0x32b   :  { %v1511_v46 = vld [vmem:[#allocation2 + $0x2a28] sm:$0xff]  ;;  %3097 = vmatpush.msra.mxu2 %v1443_v45  ;;  %3078 = vmatmul.f32.vlgmr.msra.gmra.mxu1 %v4759_v57 }
 0x32c   :  { %v1631_v47 = vld [vmem:[#allocation2 + $0x2de8] sm:$0xff]  ;;  %3116 = vmatpush.msra.mxu3 %v1511_v46  ;;  %3098 = vmatmul.f32.vlgmr.msra.gmra.mxu2 %v4758_v52 }
 0x32d   :  { %v1695_v48 = vld [vmem:[#allocation2 + $0x2fe8] sm:$0xff]  ;;  %3122 = vmatpush.msrb.mxu0 %v1631_v47 }
 0x32e   :  { %v1759_v49 = vld [vmem:[#allocation2 + $0x31e8] sm:$0xff]  ;;  %3142 = vmatpush.msrb.mxu1 %v1695_v48 }
 0x32f   :  { %v1507_v50 = vld [vmem:[#allocation2 + $0x2a08] sm:$0xff]  ;;  %3162 = vmatpush.msrb.mxu2 %v1759_v49 }
 0x330   :  { %v1627_v53 = vld [vmem:[#allocation2 + $0x2dc8] sm:$0xff]  ;;  %3117 = vmatpush.msra.mxu3 %v1507_v50 }
 0x331   :  { %v1691_v54 = vld [vmem:[#allocation2 + $0x2fc8] sm:$0xff]  ;;  %3123 = vmatpush.msrb.mxu0 %v1627_v53 }
 0x332   :  { %v1755_v55 = vld [vmem:[#allocation2 + $0x31c8] sm:$0xff]  ;;  %3143 = vmatpush.msrb.mxu1 %v1691_v54 }
 0x333   :  { %v1823_v56 = vld [vmem:[#allocation2 + $0x33e8] sm:$0xff]  ;;  %3163 = vmatpush.msrb.mxu2 %v1755_v55  ;;  %v4761_v55 = vld [vmem:[%s5625_s0 + $0xb0] sm:$0xff] }
 0x334   :  { %v4760_v58 = vld [vmem:[%s5625_s0 + $0xa8] sm:$0xff]  ;;  %3182 = vmatpush.msrb.mxu3 %v1823_v56  ;;  %v4762_v56 = vld [vmem:[%s5625_s0 + $0xc0] sm:$0xff] }
 0x335   :  { %3118 = vmatmul.f32.vlgmr.msra.gmra.mxu3 %v4760_v58  ;;  %v1623_v59 = vld [vmem:[#allocation2 + $0x2da8] sm:$0xff] }
 0x336   :  { %v1687_v60 = vld [vmem:[#allocation2 + $0x2fa8] sm:$0xff]  ;;  %3124 = vmatpush.msrb.mxu0 %v1623_v59 }
 0x337   :  { %v1751_v61 = vld [vmem:[#allocation2 + $0x31a8] sm:$0xff]  ;;  %3144 = vmatpush.msrb.mxu1 %v1687_v60 }
 0x338   :  { %v1819_v62 = vld [vmem:[#allocation2 + $0x33c8] sm:$0xff]  ;;  %3164 = vmatpush.msrb.mxu2 %v1751_v61  ;;  %v4763_v61 = vld [vmem:[%s5625_s0 + $0xb8] sm:$0xff] }
 0x339   :  { %v1619_v63 = vld [vmem:[#allocation2 + $0x2d88] sm:$0xff]  ;;  %3183 = vmatpush.msrb.mxu3 %v1819_v62 }
 0x33a   :  { %v1683_v0 = vld [vmem:[#allocation2 + $0x2f88] sm:$0xff]  ;;  %3125 = vmatpush.msrb.mxu0 %v1619_v63 }
 0x33b   :  { %v1747_v1 = vld [vmem:[#allocation2 + $0x3188] sm:$0xff]  ;;  %3145 = vmatpush.msrb.mxu1 %v1683_v0 }
 0x33c   :  { %v1815_v2 = vld [vmem:[#allocation2 + $0x33a8] sm:$0xff]  ;;  %3165 = vmatpush.msrb.mxu2 %v1747_v1 }
 0x33d   :  { %v1615_v3 = vld [vmem:[#allocation2 + $0x2d68] sm:$0xff]  ;;  %3184 = vmatpush.msrb.mxu3 %v1815_v2 }
 0x33e   :  { %v1679_v4 = vld [vmem:[#allocation2 + $0x2f68] sm:$0xff]  ;;  %3126 = vmatpush.msrb.mxu0 %v1615_v3 }
 0x33f   :  { %v1743_v5 = vld [vmem:[#allocation2 + $0x3168] sm:$0xff]  ;;  %3146 = vmatpush.msrb.mxu1 %v1679_v4 }
 0x340   :  { %v1811_v6 = vld [vmem:[#allocation2 + $0x3388] sm:$0xff]  ;;  %3166 = vmatpush.msrb.mxu2 %v1743_v5 }
 0x341   :  { %v1611_v7 = vld [vmem:[#allocation2 + $0x2d48] sm:$0xff]  ;;  %3185 = vmatpush.msrb.mxu3 %v1811_v6 }
 0x342   :  { %v1675_v8 = vld [vmem:[#allocation2 + $0x2f48] sm:$0xff]  ;;  %3127 = vmatpush.msrb.mxu0 %v1611_v7 }
 0x343   :  { %v1739_v9 = vld [vmem:[#allocation2 + $0x3148] sm:$0xff]  ;;  %3147 = vmatpush.msrb.mxu1 %v1675_v8 }
 0x344   :  { %v1807_v10 = vld [vmem:[#allocation2 + $0x3368] sm:$0xff]  ;;  %3167 = vmatpush.msrb.mxu2 %v1739_v9 }
 0x345   :  { %v1607_v11 = vld [vmem:[#allocation2 + $0x2d28] sm:$0xff]  ;;  %3186 = vmatpush.msrb.mxu3 %v1807_v10 }
 0x346   :  { %v1671_v12 = vld [vmem:[#allocation2 + $0x2f28] sm:$0xff]  ;;  %3128 = vmatpush.msrb.mxu0 %v1607_v11 }
 0x347   :  { %v1735_v13 = vld [vmem:[#allocation2 + $0x3128] sm:$0xff]  ;;  %3148 = vmatpush.msrb.mxu1 %v1671_v12 }
 0x348   :  { %v1803_v14 = vld [vmem:[#allocation2 + $0x3348] sm:$0xff]  ;;  %3168 = vmatpush.msrb.mxu2 %v1735_v13 }
 0x349   :  { %v1603_v15 = vld [vmem:[#allocation2 + $0x2d08] sm:$0xff]  ;;  %3187 = vmatpush.msrb.mxu3 %v1803_v14 }
 0x34a   :  { %v1667_v16 = vld [vmem:[#allocation2 + $0x2f08] sm:$0xff]  ;;  %3129 = vmatpush.msrb.mxu0 %v1603_v15 }
 0x34b   :  { %v1731_v17 = vld [vmem:[#allocation2 + $0x3108] sm:$0xff]  ;;  %3149 = vmatpush.msrb.mxu1 %v1667_v16 }
 0x34c   :  { %v1799_v18 = vld [vmem:[#allocation2 + $0x3328] sm:$0xff]  ;;  %3169 = vmatpush.msrb.mxu2 %v1731_v17 }
 0x34d   :  { %v1599_v19 = vld [vmem:[#allocation2 + $0x2ce8] sm:$0xff]  ;;  %3188 = vmatpush.msrb.mxu3 %v1799_v18 }
 0x34e   :  { %v1663_v20 = vld [vmem:[#allocation2 + $0x2ee8] sm:$0xff]  ;;  %3130 = vmatpush.msrb.mxu0 %v1599_v19 }
 0x34f   :  { %v1727_v21 = vld [vmem:[#allocation2 + $0x30e8] sm:$0xff]  ;;  %3150 = vmatpush.msrb.mxu1 %v1663_v20 }
 0x350   :  { %v1795_v22 = vld [vmem:[#allocation2 + $0x3308] sm:$0xff]  ;;  %3170 = vmatpush.msrb.mxu2 %v1727_v21 }
 0x351   :  { %v1595_v23 = vld [vmem:[#allocation2 + $0x2cc8] sm:$0xff]  ;;  %3189 = vmatpush.msrb.mxu3 %v1795_v22 }
 0x352   :  { %v1659_v24 = vld [vmem:[#allocation2 + $0x2ec8] sm:$0xff]  ;;  %3131 = vmatpush.msrb.mxu0 %v1595_v23 }
 0x353   :  { %v1723_v25 = vld [vmem:[#allocation2 + $0x30c8] sm:$0xff]  ;;  %3151 = vmatpush.msrb.mxu1 %v1659_v24 }
 0x354   :  { %v1791_v26 = vld [vmem:[#allocation2 + $0x32e8] sm:$0xff]  ;;  %3171 = vmatpush.msrb.mxu2 %v1723_v25 }
 0x355   :  { %v1591_v27 = vld [vmem:[#allocation2 + $0x2ca8] sm:$0xff]  ;;  %3190 = vmatpush.msrb.mxu3 %v1791_v26 }
 0x356   :  { %v1655_v28 = vld [vmem:[#allocation2 + $0x2ea8] sm:$0xff]  ;;  %3132 = vmatpush.msrb.mxu0 %v1591_v27 }
 0x357   :  { %v1719_v29 = vld [vmem:[#allocation2 + $0x30a8] sm:$0xff]  ;;  %3152 = vmatpush.msrb.mxu1 %v1655_v28 }
 0x358   :  { %v1787_v30 = vld [vmem:[#allocation2 + $0x32c8] sm:$0xff]  ;;  %3172 = vmatpush.msrb.mxu2 %v1719_v29 }
 0x359   :  { %v1587_v31 = vld [vmem:[#allocation2 + $0x2c88] sm:$0xff]  ;;  %3191 = vmatpush.msrb.mxu3 %v1787_v30 }
 0x35a   :  { %v1651_v32 = vld [vmem:[#allocation2 + $0x2e88] sm:$0xff]  ;;  %3133 = vmatpush.msrb.mxu0 %v1587_v31 }
 0x35b   :  { %v1715_v33 = vld [vmem:[#allocation2 + $0x3088] sm:$0xff]  ;;  %3153 = vmatpush.msrb.mxu1 %v1651_v32 }
 0x35c   :  { %v1783_v34 = vld [vmem:[#allocation2 + $0x32a8] sm:$0xff]  ;;  %3173 = vmatpush.msrb.mxu2 %v1715_v33 }
 0x35d   :  { %v1583_v35 = vld [vmem:[#allocation2 + $0x2c68] sm:$0xff]  ;;  %3192 = vmatpush.msrb.mxu3 %v1783_v34 }
 0x35e   :  { %v1647_v36 = vld [vmem:[#allocation2 + $0x2e68] sm:$0xff]  ;;  %3134 = vmatpush.msrb.mxu0 %v1583_v35 }
 0x35f   :  { %v1711_v37 = vld [vmem:[#allocation2 + $0x3068] sm:$0xff]  ;;  %3154 = vmatpush.msrb.mxu1 %v1647_v36 }
 0x360   :  { %v1779_v38 = vld [vmem:[#allocation2 + $0x3288] sm:$0xff]  ;;  %3174 = vmatpush.msrb.mxu2 %v1711_v37 }
 0x361   :  { %v1579_v39 = vld [vmem:[#allocation2 + $0x2c48] sm:$0xff]  ;;  %3193 = vmatpush.msrb.mxu3 %v1779_v38 }
 0x362   :  { %v1643_v40 = vld [vmem:[#allocation2 + $0x2e48] sm:$0xff]  ;;  %3135 = vmatpush.msrb.mxu0 %v1579_v39 }
 0x363   :  { %v1707_v41 = vld [vmem:[#allocation2 + $0x3048] sm:$0xff]  ;;  %3155 = vmatpush.msrb.mxu1 %v1643_v40 }
 0x364   :  { %v1775_v42 = vld [vmem:[#allocation2 + $0x3268] sm:$0xff]  ;;  %3175 = vmatpush.msrb.mxu2 %v1707_v41 }
 0x365   :  { %v1575_v43 = vld [vmem:[#allocation2 + $0x2c28] sm:$0xff]  ;;  %3194 = vmatpush.msrb.mxu3 %v1775_v42 }
 0x366   :  { %v1639_v44 = vld [vmem:[#allocation2 + $0x2e28] sm:$0xff]  ;;  %3136 = vmatpush.msrb.mxu0 %v1575_v43 }
 0x367   :  { %v1703_v45 = vld [vmem:[#allocation2 + $0x3028] sm:$0xff]  ;;  %3156 = vmatpush.msrb.mxu1 %v1639_v44 }
 0x368   :  { %v1771_v46 = vld [vmem:[#allocation2 + $0x3248] sm:$0xff]  ;;  %3176 = vmatpush.msrb.mxu2 %v1703_v45 }
 0x369   :  { %v1571_v47 = vld [vmem:[#allocation2 + $0x2c08] sm:$0xff]  ;;  %3195 = vmatpush.msrb.mxu3 %v1771_v46 }
 0x36a   :  { %v1635_v48 = vld [vmem:[#allocation2 + $0x2e08] sm:$0xff]  ;;  %3137 = vmatpush.msrb.mxu0 %v1571_v47 }
 0x36b   :  { %v1699_v49 = vld [vmem:[#allocation2 + $0x3008] sm:$0xff]  ;;  %3157 = vmatpush.msrb.mxu1 %v1635_v48  ;;  %3138 = vmatmul.f32.vlgmr.msrb.gmra.mxu0 %v4761_v55  ;;  %v224_v55 = vld [vmem:[#allocation2 + $0x1f0] sm:$0xff] }
 0x36c   :  { %v1767_v50 = vld [vmem:[#allocation2 + $0x3228] sm:$0xff]  ;;  %3177 = vmatpush.msrb.mxu2 %v1699_v49  ;;  %3158 = vmatmul.f32.vlgmr.msrb.gmra.mxu1 %v4763_v61  ;;  %v220_v61 = vld [vmem:[#allocation2 + $0x1d0] sm:$0xff] }
 0x36d   :  { %v1887_v51 = vld [vmem:[#allocation2 + $0x35e8] sm:$0xff]  ;;  %3196 = vmatpush.msrb.mxu3 %v1767_v50  ;;  %3178 = vmatmul.f32.vlgmr.msrb.gmra.mxu2 %v4762_v56  ;;  %v288_v56 = vld [vmem:[#allocation2 + $0x3f0] sm:$0xff] }
 0x36e   :  { %v1951_v52 = vld [vmem:[#allocation2 + $0x37e8] sm:$0xff]  ;;  %3202 = vmatpush.msra.mxu0 %v1887_v51 }
 0x36f   :  { %v2015_v53 = vld [vmem:[#allocation2 + $0x39e8] sm:$0xff]  ;;  %3222 = vmatpush.msra.mxu1 %v1951_v52 }
 0x370   :  { %v1763_v54 = vld [vmem:[#allocation2 + $0x3208] sm:$0xff]  ;;  %3242 = vmatpush.msra.mxu2 %v2015_v53 }
 0x371   :  { %v1883_v57 = vld [vmem:[#allocation2 + $0x35c8] sm:$0xff]  ;;  %3197 = vmatpush.msrb.mxu3 %v1763_v54 }
 0x372   :  { %v1947_v58 = vld [vmem:[#allocation2 + $0x37c8] sm:$0xff]  ;;  %3203 = vmatpush.msra.mxu0 %v1883_v57  ;;  %v352_v57 = vld [vmem:[#allocation2 + $0x5f0] sm:$0xff] }
 0x373   :  { %v2011_v59 = vld [vmem:[#allocation2 + $0x39c8] sm:$0xff]  ;;  %3223 = vmatpush.msra.mxu1 %v1947_v58 }
 0x374   :  { %v2079_v60 = vld [vmem:[#allocation2 + $0x3be8] sm:$0xff]  ;;  %3243 = vmatpush.msra.mxu2 %v2011_v59  ;;  %v4765_v59 = vld [vmem:[%s5625_s0 + $0xd0] sm:$0xff] }
 0x375   :  { %v4764_v62 = vld [vmem:[%s5625_s0 + $0xc8] sm:$0xff]  ;;  %3262 = vmatpush.msra.mxu3 %v2079_v60  ;;  %v4766_v60 = vld [vmem:[%s5625_s0 + $0xe0] sm:$0xff] }
 0x376   :  { %3198 = vmatmul.f32.vlgmr.msrb.gmra.mxu3 %v4764_v62  ;;  %v1879_v63 = vld [vmem:[#allocation2 + $0x35a8] sm:$0xff]  ;;  %v284_v62 = vld [vmem:[#allocation2 + $0x3d0] sm:$0xff] }
 0x377   :  { %v1943_v0 = vld [vmem:[#allocation2 + $0x37a8] sm:$0xff]  ;;  %3204 = vmatpush.msra.mxu0 %v1879_v63  ;;  %v348_v63 = vld [vmem:[#allocation2 + $0x5d0] sm:$0xff] }
 0x378   :  { %v2007_v1 = vld [vmem:[#allocation2 + $0x39a8] sm:$0xff]  ;;  %3224 = vmatpush.msra.mxu1 %v1943_v0  ;;  %v416_v0 = vld [vmem:[#allocation2 + $0x7f0] sm:$0xff] }
 0x379   :  { %v2075_v2 = vld [vmem:[#allocation2 + $0x3bc8] sm:$0xff]  ;;  %3244 = vmatpush.msra.mxu2 %v2007_v1  ;;  %v4767_v1 = vld [vmem:[%s5625_s0 + $0xd8] sm:$0xff] }
 0x37a   :  { %v1875_v3 = vld [vmem:[#allocation2 + $0x3588] sm:$0xff]  ;;  %3263 = vmatpush.msra.mxu3 %v2075_v2 }
 0x37b   :  { %v1939_v4 = vld [vmem:[#allocation2 + $0x3788] sm:$0xff]  ;;  %3205 = vmatpush.msra.mxu0 %v1875_v3  ;;  %v216_v3 = vld [vmem:[#allocation2 + $0x1b0] sm:$0xff] }
 0x37c   :  { %v2003_v5 = vld [vmem:[#allocation2 + $0x3988] sm:$0xff]  ;;  %3225 = vmatpush.msra.mxu1 %v1939_v4  ;;  %v280_v4 = vld [vmem:[#allocation2 + $0x3b0] sm:$0xff] }
 0x37d   :  { %v2071_v6 = vld [vmem:[#allocation2 + $0x3ba8] sm:$0xff]  ;;  %3245 = vmatpush.msra.mxu2 %v2003_v5  ;;  %v344_v5 = vld [vmem:[#allocation2 + $0x5b0] sm:$0xff] }
 0x37e   :  { %v1871_v7 = vld [vmem:[#allocation2 + $0x3568] sm:$0xff]  ;;  %3264 = vmatpush.msra.mxu3 %v2071_v6  ;;  %v412_v6 = vld [vmem:[#allocation2 + $0x7d0] sm:$0xff] }
 0x37f   :  { %v1935_v8 = vld [vmem:[#allocation2 + $0x3768] sm:$0xff]  ;;  %3206 = vmatpush.msra.mxu0 %v1871_v7  ;;  %v212_v7 = vld [vmem:[#allocation2 + $0x190] sm:$0xff] }
 0x380   :  { %v1999_v9 = vld [vmem:[#allocation2 + $0x3968] sm:$0xff]  ;;  %3226 = vmatpush.msra.mxu1 %v1935_v8  ;;  %v276_v8 = vld [vmem:[#allocation2 + $0x390] sm:$0xff] }
 0x381   :  { %v2067_v10 = vld [vmem:[#allocation2 + $0x3b88] sm:$0xff]  ;;  %3246 = vmatpush.msra.mxu2 %v1999_v9  ;;  %v340_v9 = vld [vmem:[#allocation2 + $0x590] sm:$0xff] }
 0x382   :  { %v1867_v11 = vld [vmem:[#allocation2 + $0x3548] sm:$0xff]  ;;  %3265 = vmatpush.msra.mxu3 %v2067_v10  ;;  %v408_v10 = vld [vmem:[#allocation2 + $0x7b0] sm:$0xff] }
 0x383   :  { %v1931_v12 = vld [vmem:[#allocation2 + $0x3748] sm:$0xff]  ;;  %3207 = vmatpush.msra.mxu0 %v1867_v11  ;;  %v208_v11 = vld [vmem:[#allocation2 + $0x170] sm:$0xff] }
 0x384   :  { %v1995_v13 = vld [vmem:[#allocation2 + $0x3948] sm:$0xff]  ;;  %3227 = vmatpush.msra.mxu1 %v1931_v12  ;;  %v272_v12 = vld [vmem:[#allocation2 + $0x370] sm:$0xff] }
 0x385   :  { %v2063_v14 = vld [vmem:[#allocation2 + $0x3b68] sm:$0xff]  ;;  %3247 = vmatpush.msra.mxu2 %v1995_v13  ;;  %v336_v13 = vld [vmem:[#allocation2 + $0x570] sm:$0xff] }
 0x386   :  { %v1863_v15 = vld [vmem:[#allocation2 + $0x3528] sm:$0xff]  ;;  %3266 = vmatpush.msra.mxu3 %v2063_v14  ;;  %v404_v14 = vld [vmem:[#allocation2 + $0x790] sm:$0xff] }
 0x387   :  { %v1927_v16 = vld [vmem:[#allocation2 + $0x3728] sm:$0xff]  ;;  %3208 = vmatpush.msra.mxu0 %v1863_v15  ;;  %v204_v15 = vld [vmem:[#allocation2 + $0x150] sm:$0xff] }
 0x388   :  { %v1991_v17 = vld [vmem:[#allocation2 + $0x3928] sm:$0xff]  ;;  %3228 = vmatpush.msra.mxu1 %v1927_v16  ;;  %v268_v16 = vld [vmem:[#allocation2 + $0x350] sm:$0xff] }
 0x389   :  { %v2059_v18 = vld [vmem:[#allocation2 + $0x3b48] sm:$0xff]  ;;  %3248 = vmatpush.msra.mxu2 %v1991_v17  ;;  %v332_v17 = vld [vmem:[#allocation2 + $0x550] sm:$0xff] }
 0x38a   :  { %v1859_v19 = vld [vmem:[#allocation2 + $0x3508] sm:$0xff]  ;;  %3267 = vmatpush.msra.mxu3 %v2059_v18  ;;  %v400_v18 = vld [vmem:[#allocation2 + $0x770] sm:$0xff] }
 0x38b   :  { %v1923_v20 = vld [vmem:[#allocation2 + $0x3708] sm:$0xff]  ;;  %3209 = vmatpush.msra.mxu0 %v1859_v19  ;;  %v200_v19 = vld [vmem:[#allocation2 + $0x130] sm:$0xff] }
 0x38c   :  { %v1987_v21 = vld [vmem:[#allocation2 + $0x3908] sm:$0xff]  ;;  %3229 = vmatpush.msra.mxu1 %v1923_v20  ;;  %v264_v20 = vld [vmem:[#allocation2 + $0x330] sm:$0xff] }
 0x38d   :  { %v2055_v22 = vld [vmem:[#allocation2 + $0x3b28] sm:$0xff]  ;;  %3249 = vmatpush.msra.mxu2 %v1987_v21  ;;  %v328_v21 = vld [vmem:[#allocation2 + $0x530] sm:$0xff] }
 0x38e   :  { %v1855_v23 = vld [vmem:[#allocation2 + $0x34e8] sm:$0xff]  ;;  %3268 = vmatpush.msra.mxu3 %v2055_v22  ;;  %v396_v22 = vld [vmem:[#allocation2 + $0x750] sm:$0xff] }
 0x38f   :  { %v1919_v24 = vld [vmem:[#allocation2 + $0x36e8] sm:$0xff]  ;;  %3210 = vmatpush.msra.mxu0 %v1855_v23  ;;  %v196_v23 = vld [vmem:[#allocation2 + $0x110] sm:$0xff] }
 0x390   :  { %v1983_v25 = vld [vmem:[#allocation2 + $0x38e8] sm:$0xff]  ;;  %3230 = vmatpush.msra.mxu1 %v1919_v24  ;;  %v260_v24 = vld [vmem:[#allocation2 + $0x310] sm:$0xff] }
 0x391   :  { %v2051_v26 = vld [vmem:[#allocation2 + $0x3b08] sm:$0xff]  ;;  %3250 = vmatpush.msra.mxu2 %v1983_v25  ;;  %v324_v25 = vld [vmem:[#allocation2 + $0x510] sm:$0xff] }
 0x392   :  { %v1851_v27 = vld [vmem:[#allocation2 + $0x34c8] sm:$0xff]  ;;  %3269 = vmatpush.msra.mxu3 %v2051_v26  ;;  %v392_v26 = vld [vmem:[#allocation2 + $0x730] sm:$0xff] }
 0x393   :  { %v1915_v28 = vld [vmem:[#allocation2 + $0x36c8] sm:$0xff]  ;;  %3211 = vmatpush.msra.mxu0 %v1851_v27  ;;  %v192_v27 = vld [vmem:[#allocation2 + $0xf0] sm:$0xff] }
 0x394   :  { %v1979_v29 = vld [vmem:[#allocation2 + $0x38c8] sm:$0xff]  ;;  %3231 = vmatpush.msra.mxu1 %v1915_v28  ;;  %v256_v28 = vld [vmem:[#allocation2 + $0x2f0] sm:$0xff] }
 0x395   :  { %v2047_v30 = vld [vmem:[#allocation2 + $0x3ae8] sm:$0xff]  ;;  %3251 = vmatpush.msra.mxu2 %v1979_v29  ;;  %v320_v29 = vld [vmem:[#allocation2 + $0x4f0] sm:$0xff] }
 0x396   :  { %v1847_v31 = vld [vmem:[#allocation2 + $0x34a8] sm:$0xff]  ;;  %3270 = vmatpush.msra.mxu3 %v2047_v30  ;;  %v388_v30 = vld [vmem:[#allocation2 + $0x710] sm:$0xff] }
 0x397   :  { %v1911_v32 = vld [vmem:[#allocation2 + $0x36a8] sm:$0xff]  ;;  %3212 = vmatpush.msra.mxu0 %v1847_v31  ;;  %v188_v31 = vld [vmem:[#allocation2 + $0xd0] sm:$0xff] }
 0x398   :  { %v1975_v33 = vld [vmem:[#allocation2 + $0x38a8] sm:$0xff]  ;;  %3232 = vmatpush.msra.mxu1 %v1911_v32  ;;  %v252_v32 = vld [vmem:[#allocation2 + $0x2d0] sm:$0xff] }
 0x399   :  { %v2043_v34 = vld [vmem:[#allocation2 + $0x3ac8] sm:$0xff]  ;;  %3252 = vmatpush.msra.mxu2 %v1975_v33  ;;  %v316_v33 = vld [vmem:[#allocation2 + $0x4d0] sm:$0xff] }
 0x39a   :  { %v1843_v35 = vld [vmem:[#allocation2 + $0x3488] sm:$0xff]  ;;  %3271 = vmatpush.msra.mxu3 %v2043_v34  ;;  %v384_v34 = vld [vmem:[#allocation2 + $0x6f0] sm:$0xff] }
 0x39b   :  { %v1907_v36 = vld [vmem:[#allocation2 + $0x3688] sm:$0xff]  ;;  %3213 = vmatpush.msra.mxu0 %v1843_v35  ;;  %v184_v35 = vld [vmem:[#allocation2 + $0xb0] sm:$0xff] }
 0x39c   :  { %v1971_v37 = vld [vmem:[#allocation2 + $0x3888] sm:$0xff]  ;;  %3233 = vmatpush.msra.mxu1 %v1907_v36  ;;  %v248_v36 = vld [vmem:[#allocation2 + $0x2b0] sm:$0xff] }
 0x39d   :  { %v2039_v38 = vld [vmem:[#allocation2 + $0x3aa8] sm:$0xff]  ;;  %3253 = vmatpush.msra.mxu2 %v1971_v37  ;;  %v312_v37 = vld [vmem:[#allocation2 + $0x4b0] sm:$0xff] }
 0x39e   :  { %v1839_v39 = vld [vmem:[#allocation2 + $0x3468] sm:$0xff]  ;;  %3272 = vmatpush.msra.mxu3 %v2039_v38  ;;  %v380_v38 = vld [vmem:[#allocation2 + $0x6d0] sm:$0xff] }
 0x39f   :  { %v1903_v40 = vld [vmem:[#allocation2 + $0x3668] sm:$0xff]  ;;  %3214 = vmatpush.msra.mxu0 %v1839_v39  ;;  %v180_v39 = vld [vmem:[#allocation2 + $0x90] sm:$0xff] }
 0x3a0   :  { %v1967_v41 = vld [vmem:[#allocation2 + $0x3868] sm:$0xff]  ;;  %3234 = vmatpush.msra.mxu1 %v1903_v40  ;;  %v244_v40 = vld [vmem:[#allocation2 + $0x290] sm:$0xff] }
 0x3a1   :  { %v2035_v42 = vld [vmem:[#allocation2 + $0x3a88] sm:$0xff]  ;;  %3254 = vmatpush.msra.mxu2 %v1967_v41  ;;  %v308_v41 = vld [vmem:[#allocation2 + $0x490] sm:$0xff] }
 0x3a2   :  { %v1835_v43 = vld [vmem:[#allocation2 + $0x3448] sm:$0xff]  ;;  %3273 = vmatpush.msra.mxu3 %v2035_v42  ;;  %v376_v42 = vld [vmem:[#allocation2 + $0x6b0] sm:$0xff] }
 0x3a3   :  { %v1899_v44 = vld [vmem:[#allocation2 + $0x3648] sm:$0xff]  ;;  %3215 = vmatpush.msra.mxu0 %v1835_v43  ;;  %v176_v43 = vld [vmem:[#allocation2 + $0x70] sm:$0xff] }
 0x3a4   :  { %v1963_v45 = vld [vmem:[#allocation2 + $0x3848] sm:$0xff]  ;;  %3235 = vmatpush.msra.mxu1 %v1899_v44  ;;  %v240_v44 = vld [vmem:[#allocation2 + $0x270] sm:$0xff] }
 0x3a5   :  { %v2031_v46 = vld [vmem:[#allocation2 + $0x3a68] sm:$0xff]  ;;  %3255 = vmatpush.msra.mxu2 %v1963_v45  ;;  %v304_v45 = vld [vmem:[#allocation2 + $0x470] sm:$0xff] }
 0x3a6   :  { %v1831_v47 = vld [vmem:[#allocation2 + $0x3428] sm:$0xff]  ;;  %3274 = vmatpush.msra.mxu3 %v2031_v46  ;;  %v372_v46 = vld [vmem:[#allocation2 + $0x690] sm:$0xff] }
 0x3a7   :  { %v1895_v48 = vld [vmem:[#allocation2 + $0x3628] sm:$0xff]  ;;  %3216 = vmatpush.msra.mxu0 %v1831_v47  ;;  %v172_v47 = vld [vmem:[#allocation2 + $0x50] sm:$0xff] }
 0x3a8   :  { %v1959_v49 = vld [vmem:[#allocation2 + $0x3828] sm:$0xff]  ;;  %3236 = vmatpush.msra.mxu1 %v1895_v48  ;;  %v236_v48 = vld [vmem:[#allocation2 + $0x250] sm:$0xff] }
 0x3a9   :  { %v2027_v50 = vld [vmem:[#allocation2 + $0x3a48] sm:$0xff]  ;;  %3256 = vmatpush.msra.mxu2 %v1959_v49  ;;  %v300_v49 = vld [vmem:[#allocation2 + $0x450] sm:$0xff] }
 0x3aa   :  { %v1827_v51 = vld [vmem:[#allocation2 + $0x3408] sm:$0xff]  ;;  %3275 = vmatpush.msra.mxu3 %v2027_v50  ;;  %v368_v50 = vld [vmem:[#allocation2 + $0x670] sm:$0xff] }
 0x3ab   :  { %v1891_v52 = vld [vmem:[#allocation2 + $0x3608] sm:$0xff]  ;;  %3217 = vmatpush.msra.mxu0 %v1827_v51  ;;  %v168_v51 = vld [vmem:[#allocation2 + $0x30] sm:$0xff] }
 0x3ac   :  { %v1955_v53 = vld [vmem:[#allocation2 + $0x3808] sm:$0xff]  ;;  %3237 = vmatpush.msra.mxu1 %v1891_v52  ;;  %3218 = vmatmul.f32.vlgmr.msra.gmra.mxu0 %v4765_v59  ;;  %v232_v52 = vld [vmem:[#allocation2 + $0x230] sm:$0xff] }
 0x3ad   :  { %v2023_v54 = vld [vmem:[#allocation2 + $0x3a28] sm:$0xff]  ;;  %3257 = vmatpush.msra.mxu2 %v1955_v53  ;;  %3282 = vmatpush.msrb.mxu0 %v224_v55  ;;  %v296_v53 = vld [vmem:[#allocation2 + $0x430] sm:$0xff] }
 0x3ae   :  { %3276 = vmatpush.msra.mxu3 %v2023_v54  ;;  %v2019_v58 = vld [vmem:[#allocation2 + $0x3a08] sm:$0xff]  ;;  %3258 = vmatmul.f32.vlgmr.msra.gmra.mxu2 %v4766_v60  ;;  %v364_v54 = vld [vmem:[#allocation2 + $0x650] sm:$0xff] }
 0x3af   :  { %3302 = vmatpush.msrb.mxu1 %v288_v56  ;;  %3322 = vmatpush.msrb.mxu2 %v352_v57  ;;  %v4768_v2 = vld [vmem:[%s5625_s0 + $0xe8] sm:$0xff]  ;;  %v164_v55 = vld [vmem:[#allocation2 + $0x10] sm:$0xff] }
 0x3b0   :  { %3277 = vmatpush.msra.mxu3 %v2019_v58  ;;  %3238 = vmatmul.f32.vlgmr.msra.gmra.mxu1 %v4767_v1  ;;  %v228_v56 = vld [vmem:[#allocation2 + $0x210] sm:$0xff] }
 0x3b1   :  { %3278 = vmatmul.f32.vlgmr.msra.gmra.mxu3 %v4768_v2  ;;  %3283 = vmatpush.msrb.mxu0 %v220_v61  ;;  %v292_v57 = vld [vmem:[#allocation2 + $0x410] sm:$0xff] }
 0x3b2   :  { %3303 = vmatpush.msrb.mxu1 %v284_v62  ;;  %3323 = vmatpush.msrb.mxu2 %v348_v63  ;;  %v360_v58 = vld [vmem:[#allocation2 + $0x630] sm:$0xff] }
 0x3b3   :  { %3342 = vmatpush.msrb.mxu3 %v416_v0  ;;  %3284 = vmatpush.msrb.mxu0 %v216_v3  ;;  %v480_v59 = vld [vmem:[#allocation2 + $0x9f0] sm:$0xff] }
 0x3b4   :  { %3304 = vmatpush.msrb.mxu1 %v280_v4  ;;  %3324 = vmatpush.msrb.mxu2 %v344_v5  ;;  %v544_v60 = vld [vmem:[#allocation2 + $0xbf0] sm:$0xff] }
 0x3b5   :  { %3343 = vmatpush.msrb.mxu3 %v412_v6  ;;  %3285 = vmatpush.msrb.mxu0 %v212_v7  ;;  %v608_v61 = vld [vmem:[#allocation2 + $0xdf0] sm:$0xff] }
 0x3b6   :  { %3305 = vmatpush.msrb.mxu1 %v276_v8  ;;  %3325 = vmatpush.msrb.mxu2 %v340_v9  ;;  %v356_v62 = vld [vmem:[#allocation2 + $0x610] sm:$0xff] }
 0x3b7   :  { %3344 = vmatpush.msrb.mxu3 %v408_v10  ;;  %3286 = vmatpush.msrb.mxu0 %v208_v11  ;;  %v476_v63 = vld [vmem:[#allocation2 + $0x9d0] sm:$0xff] }
 0x3b8   :  { %3306 = vmatpush.msrb.mxu1 %v272_v12  ;;  %3326 = vmatpush.msrb.mxu2 %v336_v13  ;;  %v540_v0 = vld [vmem:[#allocation2 + $0xbd0] sm:$0xff] }
 0x3b9   :  { %3345 = vmatpush.msrb.mxu3 %v404_v14  ;;  %3287 = vmatpush.msrb.mxu0 %v204_v15  ;;  %v604_v1 = vld [vmem:[#allocation2 + $0xdd0] sm:$0xff] }
 0x3ba   :  { %3307 = vmatpush.msrb.mxu1 %v268_v16  ;;  %3327 = vmatpush.msrb.mxu2 %v332_v17  ;;  %v672_v2 = vld [vmem:[#allocation2 + $0xff0] sm:$0xff] }
 0x3bb   :  { %3346 = vmatpush.msrb.mxu3 %v400_v18  ;;  %3288 = vmatpush.msrb.mxu0 %v200_v19  ;;  %v472_v3 = vld [vmem:[#allocation2 + $0x9b0] sm:$0xff] }
 0x3bc   :  { %3308 = vmatpush.msrb.mxu1 %v264_v20  ;;  %3328 = vmatpush.msrb.mxu2 %v328_v21  ;;  %v536_v4 = vld [vmem:[#allocation2 + $0xbb0] sm:$0xff] }
 0x3bd   :  { %3347 = vmatpush.msrb.mxu3 %v396_v22  ;;  %3289 = vmatpush.msrb.mxu0 %v196_v23  ;;  %v600_v5 = vld [vmem:[#allocation2 + $0xdb0] sm:$0xff] }
 0x3be   :  { %3309 = vmatpush.msrb.mxu1 %v260_v24  ;;  %3329 = vmatpush.msrb.mxu2 %v324_v25  ;;  %v668_v6 = vld [vmem:[#allocation2 + $0xfd0] sm:$0xff] }
 0x3bf   :  { %3348 = vmatpush.msrb.mxu3 %v392_v26  ;;  %3290 = vmatpush.msrb.mxu0 %v192_v27  ;;  %v468_v7 = vld [vmem:[#allocation2 + $0x990] sm:$0xff] }
 0x3c0   :  { %3310 = vmatpush.msrb.mxu1 %v256_v28  ;;  %3330 = vmatpush.msrb.mxu2 %v320_v29  ;;  %v532_v8 = vld [vmem:[#allocation2 + $0xb90] sm:$0xff] }
 0x3c1   :  { %3349 = vmatpush.msrb.mxu3 %v388_v30  ;;  %3291 = vmatpush.msrb.mxu0 %v188_v31  ;;  %v596_v9 = vld [vmem:[#allocation2 + $0xd90] sm:$0xff] }
 0x3c2   :  { %3311 = vmatpush.msrb.mxu1 %v252_v32  ;;  %3331 = vmatpush.msrb.mxu2 %v316_v33  ;;  %v664_v10 = vld [vmem:[#allocation2 + $0xfb0] sm:$0xff] }
 0x3c3   :  { %3350 = vmatpush.msrb.mxu3 %v384_v34  ;;  %3292 = vmatpush.msrb.mxu0 %v184_v35  ;;  %v464_v11 = vld [vmem:[#allocation2 + $0x970] sm:$0xff] }
 0x3c4   :  { %3312 = vmatpush.msrb.mxu1 %v248_v36  ;;  %3332 = vmatpush.msrb.mxu2 %v312_v37  ;;  %v528_v12 = vld [vmem:[#allocation2 + $0xb70] sm:$0xff] }
 0x3c5   :  { %3351 = vmatpush.msrb.mxu3 %v380_v38  ;;  %3293 = vmatpush.msrb.mxu0 %v180_v39  ;;  %v592_v13 = vld [vmem:[#allocation2 + $0xd70] sm:$0xff] }
 0x3c6   :  { %3313 = vmatpush.msrb.mxu1 %v244_v40  ;;  %3333 = vmatpush.msrb.mxu2 %v308_v41  ;;  %v660_v14 = vld [vmem:[#allocation2 + $0xf90] sm:$0xff] }
 0x3c7   :  { %3352 = vmatpush.msrb.mxu3 %v376_v42  ;;  %3294 = vmatpush.msrb.mxu0 %v176_v43  ;;  %v460_v15 = vld [vmem:[#allocation2 + $0x950] sm:$0xff] }
 0x3c8   :  { %3314 = vmatpush.msrb.mxu1 %v240_v44  ;;  %3334 = vmatpush.msrb.mxu2 %v304_v45  ;;  %v524_v16 = vld [vmem:[#allocation2 + $0xb50] sm:$0xff] }
 0x3c9   :  { %3353 = vmatpush.msrb.mxu3 %v372_v46  ;;  %3295 = vmatpush.msrb.mxu0 %v172_v47  ;;  %v588_v17 = vld [vmem:[#allocation2 + $0xd50] sm:$0xff] }
 0x3ca   :  { %3315 = vmatpush.msrb.mxu1 %v236_v48  ;;  %3335 = vmatpush.msrb.mxu2 %v300_v49  ;;  %v656_v18 = vld [vmem:[#allocation2 + $0xf70] sm:$0xff] }
 0x3cb   :  { %3354 = vmatpush.msrb.mxu3 %v368_v50  ;;  %3296 = vmatpush.msrb.mxu0 %v168_v51  ;;  %v456_v19 = vld [vmem:[#allocation2 + $0x930] sm:$0xff] }
 0x3cc   :  { %3316 = vmatpush.msrb.mxu1 %v232_v52  ;;  %3336 = vmatpush.msrb.mxu2 %v296_v53  ;;  %v520_v20 = vld [vmem:[#allocation2 + $0xb30] sm:$0xff] }
 0x3cd   :  { %3355 = vmatpush.msrb.mxu3 %v364_v54  ;;  %3297 = vmatpush.msrb.mxu0 %v164_v55  ;;  %v584_v21 = vld [vmem:[#allocation2 + $0xd30] sm:$0xff] }
 0x3ce   :  { %3317 = vmatpush.msrb.mxu1 %v228_v56  ;;  %3337 = vmatpush.msrb.mxu2 %v292_v57  ;;  %v652_v22 = vld [vmem:[#allocation2 + $0xf50] sm:$0xff] }
 0x3cf   :  { %3356 = vmatpush.msrb.mxu3 %v360_v58  ;;  %3362 = vmatpush.msra.mxu0 %v480_v59  ;;  %v452_v23 = vld [vmem:[#allocation2 + $0x910] sm:$0xff] }
 0x3d0   :  { %3382 = vmatpush.msra.mxu1 %v544_v60  ;;  %3402 = vmatpush.msra.mxu2 %v608_v61  ;;  %v516_v24 = vld [vmem:[#allocation2 + $0xb10] sm:$0xff] }
 0x3d1   :  { %3357 = vmatpush.msrb.mxu3 %v356_v62  ;;  %3363 = vmatpush.msra.mxu0 %v476_v63  ;;  %v580_v25 = vld [vmem:[#allocation2 + $0xd10] sm:$0xff]  ;;  %v4770_v62 = vld [vmem:[%s5625_s0] sm:$0xff] }
 0x3d2   :  { %3383 = vmatpush.msra.mxu1 %v540_v0  ;;  %3403 = vmatpush.msra.mxu2 %v604_v1  ;;  %v648_v26 = vld [vmem:[#allocation2 + $0xf30] sm:$0xff]  ;;  %v4771_v1 = vld [vmem:[%s5625_s0 + $0x8] sm:$0xff] }
 0x3d3   :  { %3422 = vmatpush.msra.mxu3 %v672_v2  ;;  %3364 = vmatpush.msra.mxu0 %v472_v3  ;;  %v448_v27 = vld [vmem:[#allocation2 + $0x8f0] sm:$0xff]  ;;  %v4772_v2 = vld [vmem:[%s5625_s0 + $0x18] sm:$0xff] }
 0x3d4   :  { %3384 = vmatpush.msra.mxu1 %v536_v4  ;;  %3404 = vmatpush.msra.mxu2 %v600_v5  ;;  %v512_v28 = vld [vmem:[#allocation2 + $0xaf0] sm:$0xff] }
 0x3d5   :  { %3423 = vmatpush.msra.mxu3 %v668_v6  ;;  %3365 = vmatpush.msra.mxu0 %v468_v7  ;;  %v576_v29 = vld [vmem:[#allocation2 + $0xcf0] sm:$0xff] }
 0x3d6   :  { %3385 = vmatpush.msra.mxu1 %v532_v8  ;;  %3405 = vmatpush.msra.mxu2 %v596_v9  ;;  %v644_v30 = vld [vmem:[#allocation2 + $0xf10] sm:$0xff] }
 0x3d7   :  { %3424 = vmatpush.msra.mxu3 %v664_v10  ;;  %3366 = vmatpush.msra.mxu0 %v464_v11  ;;  %v444_v31 = vld [vmem:[#allocation2 + $0x8d0] sm:$0xff] }
 0x3d8   :  { %3386 = vmatpush.msra.mxu1 %v528_v12  ;;  %3406 = vmatpush.msra.mxu2 %v592_v13  ;;  %v508_v32 = vld [vmem:[#allocation2 + $0xad0] sm:$0xff] }
 0x3d9   :  { %3425 = vmatpush.msra.mxu3 %v660_v14  ;;  %3367 = vmatpush.msra.mxu0 %v460_v15  ;;  %v572_v33 = vld [vmem:[#allocation2 + $0xcd0] sm:$0xff] }
 0x3da   :  { %3387 = vmatpush.msra.mxu1 %v524_v16  ;;  %3407 = vmatpush.msra.mxu2 %v588_v17  ;;  %v640_v34 = vld [vmem:[#allocation2 + $0xef0] sm:$0xff] }
 0x3db   :  { %3426 = vmatpush.msra.mxu3 %v656_v18  ;;  %3368 = vmatpush.msra.mxu0 %v456_v19  ;;  %v440_v35 = vld [vmem:[#allocation2 + $0x8b0] sm:$0xff]  ;;  %v4774_v19 = vld [vmem:[%s5625_s0 + $0x20] sm:$0xff] }
 0x3dc   :  { %3388 = vmatpush.msra.mxu1 %v520_v20  ;;  %3408 = vmatpush.msra.mxu2 %v584_v21  ;;  %v504_v36 = vld [vmem:[#allocation2 + $0xab0] sm:$0xff]  ;;  %v4775_v21 = vld [vmem:[%s5625_s0 + $0x38] sm:$0xff] }
 0x3dd   :  { %3427 = vmatpush.msra.mxu3 %v652_v22  ;;  %3369 = vmatpush.msra.mxu0 %v452_v23  ;;  %v568_v37 = vld [vmem:[#allocation2 + $0xcb0] sm:$0xff] }
 0x3de   :  { %3389 = vmatpush.msra.mxu1 %v516_v24  ;;  %3409 = vmatpush.msra.mxu2 %v580_v25  ;;  %v636_v38 = vld [vmem:[#allocation2 + $0xed0] sm:$0xff] }
 0x3df   :  { %3428 = vmatpush.msra.mxu3 %v648_v26  ;;  %3370 = vmatpush.msra.mxu0 %v448_v27  ;;  %v436_v39 = vld [vmem:[#allocation2 + $0x890] sm:$0xff]  ;;  %v4776_v26 = vld [vmem:[%s5625_s0 + $0x28] sm:$0xff] }
 0x3e0   :  { %3390 = vmatpush.msra.mxu1 %v512_v28  ;;  %3410 = vmatpush.msra.mxu2 %v576_v29  ;;  %v500_v40 = vld [vmem:[#allocation2 + $0xa90] sm:$0xff] }
 0x3e1   :  { %3429 = vmatpush.msra.mxu3 %v644_v30  ;;  %3371 = vmatpush.msra.mxu0 %v444_v31  ;;  %v564_v41 = vld [vmem:[#allocation2 + $0xc90] sm:$0xff] }
 0x3e2   :  { %3391 = vmatpush.msra.mxu1 %v508_v32  ;;  %3411 = vmatpush.msra.mxu2 %v572_v33  ;;  %v632_v42 = vld [vmem:[#allocation2 + $0xeb0] sm:$0xff] }
 0x3e3   :  { %3430 = vmatpush.msra.mxu3 %v640_v34  ;;  %3372 = vmatpush.msra.mxu0 %v440_v35  ;;  %v432_v43 = vld [vmem:[#allocation2 + $0x870] sm:$0xff] }
 0x3e4   :  { %3392 = vmatpush.msra.mxu1 %v504_v36  ;;  %3412 = vmatpush.msra.mxu2 %v568_v37  ;;  %v496_v44 = vld [vmem:[#allocation2 + $0xa70] sm:$0xff] }
 0x3e5   :  { %3431 = vmatpush.msra.mxu3 %v636_v38  ;;  %3373 = vmatpush.msra.mxu0 %v436_v39  ;;  %v560_v45 = vld [vmem:[#allocation2 + $0xc70] sm:$0xff] }
 0x3e6   :  { %3393 = vmatpush.msra.mxu1 %v500_v40  ;;  %v628_v46 = vld [vmem:[#allocation2 + $0xe90] sm:$0xff]  ;;  %3413 = vmatpush.msra.mxu2 %v564_v41 }
 0x3e7   :  { %3432 = vmatpush.msra.mxu3 %v632_v42  ;;  %v428_v47 = vld [vmem:[#allocation2 + $0x850] sm:$0xff]  ;;  %3374 = vmatpush.msra.mxu0 %v432_v43 }
 0x3e8   :  { %v492_v48 = vld [vmem:[#allocation2 + $0xa50] sm:$0xff]  ;;  %3394 = vmatpush.msra.mxu1 %v496_v44  ;;  %3414 = vmatpush.msra.mxu2 %v560_v45 }
 0x3e9   :  { %v556_v49 = vld [vmem:[#allocation2 + $0xc50] sm:$0xff]  ;;  %3433 = vmatpush.msra.mxu3 %v628_v46  ;;  %3375 = vmatpush.msra.mxu0 %v428_v47 }
 0x3ea   :  { %v624_v50 = vld [vmem:[#allocation2 + $0xe70] sm:$0xff]  ;;  %3395 = vmatpush.msra.mxu1 %v492_v48  ;;  %3415 = vmatpush.msra.mxu2 %v556_v49 }
 0x3eb   :  { %v424_v51 = vld [vmem:[#allocation2 + $0x830] sm:$0xff]  ;;  %3434 = vmatpush.msra.mxu3 %v624_v50  ;;  %3298 = vmatmul.f32.vlgmr.msrb.gmra.mxu0 %v4770_v62 }
 0x3ec   :  { %v488_v52 = vld [vmem:[#allocation2 + $0xa30] sm:$0xff]  ;;  %3376 = vmatpush.msra.mxu0 %v424_v51  ;;  %3318 = vmatmul.f32.vlgmr.msrb.gmra.mxu1 %v4771_v1 }
 0x3ed   :  { %v552_v53 = vld [vmem:[#allocation2 + $0xc30] sm:$0xff]  ;;  %3396 = vmatpush.msra.mxu1 %v488_v52  ;;  %3358 = vmatmul.f32.vlgmr.msrb.gmra.mxu3 %v4772_v2 }
 0x3ee   :  { %v620_v54 = vld [vmem:[#allocation2 + $0xe50] sm:$0xff]  ;;  %3416 = vmatpush.msra.mxu2 %v552_v53 }
 0x3ef   :  { %v420_v55 = vld [vmem:[#allocation2 + $0x810] sm:$0xff]  ;;  %3435 = vmatpush.msra.mxu3 %v620_v54 }
 0x3f0   :  { %v484_v56 = vld [vmem:[#allocation2 + $0xa10] sm:$0xff]  ;;  %3377 = vmatpush.msra.mxu0 %v420_v55 }
 0x3f1   :  { %v548_v57 = vld [vmem:[#allocation2 + $0xc10] sm:$0xff]  ;;  %3397 = vmatpush.msra.mxu1 %v484_v56 }
 0x3f2   :  { %v616_v58 = vld [vmem:[#allocation2 + $0xe30] sm:$0xff]  ;;  %3417 = vmatpush.msra.mxu2 %v548_v57 }
 0x3f3   :  { %v4769_v59 = vld [vmem:[%s5625_s0 + $0x10] sm:$0xff]  ;;  %3436 = vmatpush.msra.mxu3 %v616_v58  ;;  %3378 = vmatmul.f32.vlgmr.msra.gmra.mxu0 %v4774_v19 }
 0x3f4   :  { %3338 = vmatmul.f32.vlgmr.msrb.gmra.mxu2 %v4769_v59  ;;  %v736_v60 = vld [vmem:[#allocation2 + $0x11f0] sm:$0xff]  ;;  %3398 = vmatmul.f32.vlgmr.msra.gmra.mxu1 %v4776_v26 }
 0x3f5   :  { %v800_v61 = vld [vmem:[#allocation2 + $0x13f0] sm:$0xff]  ;;  %3442 = vmatpush.msrb.mxu0 %v736_v60 }
 0x3f6   :  { %v864_v63 = vld [vmem:[#allocation2 + $0x15f0] sm:$0xff]  ;;  %3462 = vmatpush.msrb.mxu1 %v800_v61 }
 0x3f7   :  { %v612_v0 = vld [vmem:[#allocation2 + $0xe10] sm:$0xff]  ;;  %3482 = vmatpush.msrb.mxu2 %v864_v63 }
 0x3f8   :  { %v732_v3 = vld [vmem:[#allocation2 + $0x11d0] sm:$0xff]  ;;  %3437 = vmatpush.msra.mxu3 %v612_v0 }
 0x3f9   :  { %v796_v4 = vld [vmem:[#allocation2 + $0x13d0] sm:$0xff]  ;;  %3443 = vmatpush.msrb.mxu0 %v732_v3  ;;  %3438 = vmatmul.f32.vlgmr.msra.gmra.mxu3 %v4775_v21 }
 0x3fa   :  { %v860_v5 = vld [vmem:[#allocation2 + $0x15d0] sm:$0xff]  ;;  %3463 = vmatpush.msrb.mxu1 %v796_v4 }
 0x3fb   :  { %v928_v6 = vld [vmem:[#allocation2 + $0x17f0] sm:$0xff]  ;;  %3483 = vmatpush.msrb.mxu2 %v860_v5 }
 0x3fc   :  { %v728_v7 = vld [vmem:[#allocation2 + $0x11b0] sm:$0xff]  ;;  %3502 = vmatpush.msrb.mxu3 %v928_v6 }
 0x3fd   :  { %v792_v8 = vld [vmem:[#allocation2 + $0x13b0] sm:$0xff]  ;;  %3444 = vmatpush.msrb.mxu0 %v728_v7  ;;  %v4777_v7 = vld [vmem:[%s5625_s0 + $0x40] sm:$0xff] }
 0x3fe   :  { %v856_v9 = vld [vmem:[#allocation2 + $0x15b0] sm:$0xff]  ;;  %3464 = vmatpush.msrb.mxu1 %v792_v8 }
 0x3ff   :  { %v924_v10 = vld [vmem:[#allocation2 + $0x17d0] sm:$0xff]  ;;  %3484 = vmatpush.msrb.mxu2 %v856_v9 }
 0x400   :  { %v724_v11 = vld [vmem:[#allocation2 + $0x1190] sm:$0xff]  ;;  %3503 = vmatpush.msrb.mxu3 %v924_v10 }
 0x401   :  { %v788_v12 = vld [vmem:[#allocation2 + $0x1390] sm:$0xff]  ;;  %3445 = vmatpush.msrb.mxu0 %v724_v11 }
 0x402   :  { %v852_v13 = vld [vmem:[#allocation2 + $0x1590] sm:$0xff]  ;;  %3465 = vmatpush.msrb.mxu1 %v788_v12 }
 0x403   :  { %v920_v14 = vld [vmem:[#allocation2 + $0x17b0] sm:$0xff]  ;;  %3485 = vmatpush.msrb.mxu2 %v852_v13  ;;  %v4779_v13 = vld [vmem:[%s5625_s0 + $0x48] sm:$0xff] }
 0x404   :  { %v4773_v15 = vld [vmem:[%s5625_s0 + $0x30] sm:$0xff]  ;;  %3504 = vmatpush.msrb.mxu3 %v920_v14  ;;  %v4780_v14 = vld [vmem:[%s5625_s0 + $0x58] sm:$0xff] }
 0x405   :  { %3418 = vmatmul.f32.vlgmr.msra.gmra.mxu2 %v4773_v15  ;;  %v720_v16 = vld [vmem:[#allocation2 + $0x1170] sm:$0xff] }
 0x406   :  { %v784_v17 = vld [vmem:[#allocation2 + $0x1370] sm:$0xff]  ;;  %3446 = vmatpush.msrb.mxu0 %v720_v16 }
 0x407   :  { %v848_v18 = vld [vmem:[#allocation2 + $0x1570] sm:$0xff]  ;;  %3466 = vmatpush.msrb.mxu1 %v784_v17 }
 0x408   :  { %v916_v20 = vld [vmem:[#allocation2 + $0x1790] sm:$0xff]  ;;  %3486 = vmatpush.msrb.mxu2 %v848_v18 }
 0x409   :  { %v716_v22 = vld [vmem:[#allocation2 + $0x1150] sm:$0xff]  ;;  %3505 = vmatpush.msrb.mxu3 %v916_v20 }
 0x40a   :  { %v780_v23 = vld [vmem:[#allocation2 + $0x1350] sm:$0xff]  ;;  %3447 = vmatpush.msrb.mxu0 %v716_v22 }
 0x40b   :  { %v844_v24 = vld [vmem:[#allocation2 + $0x1550] sm:$0xff]  ;;  %3467 = vmatpush.msrb.mxu1 %v780_v23 }
 0x40c   :  { %v912_v25 = vld [vmem:[#allocation2 + $0x1770] sm:$0xff]  ;;  %3487 = vmatpush.msrb.mxu2 %v844_v24 }
 0x40d   :  { %v712_v27 = vld [vmem:[#allocation2 + $0x1130] sm:$0xff]  ;;  %3506 = vmatpush.msrb.mxu3 %v912_v25 }
 0x40e   :  { %v776_v28 = vld [vmem:[#allocation2 + $0x1330] sm:$0xff]  ;;  %3448 = vmatpush.msrb.mxu0 %v712_v27 }
 0x40f   :  { %v840_v29 = vld [vmem:[#allocation2 + $0x1530] sm:$0xff]  ;;  %3468 = vmatpush.msrb.mxu1 %v776_v28 }
 0x410   :  { %v908_v30 = vld [vmem:[#allocation2 + $0x1750] sm:$0xff]  ;;  %3488 = vmatpush.msrb.mxu2 %v840_v29 }
 0x411   :  { %v708_v31 = vld [vmem:[#allocation2 + $0x1110] sm:$0xff]  ;;  %3507 = vmatpush.msrb.mxu3 %v908_v30 }
 0x412   :  { %v772_v32 = vld [vmem:[#allocation2 + $0x1310] sm:$0xff]  ;;  %3449 = vmatpush.msrb.mxu0 %v708_v31 }
 0x413   :  { %v836_v33 = vld [vmem:[#allocation2 + $0x1510] sm:$0xff]  ;;  %3469 = vmatpush.msrb.mxu1 %v772_v32 }
 0x414   :  { %v904_v34 = vld [vmem:[#allocation2 + $0x1730] sm:$0xff]  ;;  %3489 = vmatpush.msrb.mxu2 %v836_v33 }
 0x415   :  { %v704_v35 = vld [vmem:[#allocation2 + $0x10f0] sm:$0xff]  ;;  %3508 = vmatpush.msrb.mxu3 %v904_v34 }
 0x416   :  { %v768_v36 = vld [vmem:[#allocation2 + $0x12f0] sm:$0xff]  ;;  %3450 = vmatpush.msrb.mxu0 %v704_v35 }
 0x417   :  { %v832_v37 = vld [vmem:[#allocation2 + $0x14f0] sm:$0xff]  ;;  %3470 = vmatpush.msrb.mxu1 %v768_v36 }
 0x418   :  { %v900_v38 = vld [vmem:[#allocation2 + $0x1710] sm:$0xff]  ;;  %3490 = vmatpush.msrb.mxu2 %v832_v37 }
 0x419   :  { %v700_v39 = vld [vmem:[#allocation2 + $0x10d0] sm:$0xff]  ;;  %3509 = vmatpush.msrb.mxu3 %v900_v38 }
 0x41a   :  { %v764_v40 = vld [vmem:[#allocation2 + $0x12d0] sm:$0xff]  ;;  %3451 = vmatpush.msrb.mxu0 %v700_v39 }
 0x41b   :  { %v828_v41 = vld [vmem:[#allocation2 + $0x14d0] sm:$0xff]  ;;  %3471 = vmatpush.msrb.mxu1 %v764_v40 }
 0x41c   :  { %v896_v42 = vld [vmem:[#allocation2 + $0x16f0] sm:$0xff]  ;;  %3491 = vmatpush.msrb.mxu2 %v828_v41 }
 0x41d   :  { %v696_v43 = vld [vmem:[#allocation2 + $0x10b0] sm:$0xff]  ;;  %3510 = vmatpush.msrb.mxu3 %v896_v42 }
 0x41e   :  { %v760_v44 = vld [vmem:[#allocation2 + $0x12b0] sm:$0xff]  ;;  %3452 = vmatpush.msrb.mxu0 %v696_v43 }
 0x41f   :  { %v824_v45 = vld [vmem:[#allocation2 + $0x14b0] sm:$0xff]  ;;  %3472 = vmatpush.msrb.mxu1 %v760_v44 }
 0x420   :  { %v892_v46 = vld [vmem:[#allocation2 + $0x16d0] sm:$0xff]  ;;  %3492 = vmatpush.msrb.mxu2 %v824_v45 }
 0x421   :  { %v692_v47 = vld [vmem:[#allocation2 + $0x1090] sm:$0xff]  ;;  %3511 = vmatpush.msrb.mxu3 %v892_v46 }
 0x422   :  { %v756_v48 = vld [vmem:[#allocation2 + $0x1290] sm:$0xff]  ;;  %3453 = vmatpush.msrb.mxu0 %v692_v47 }
 0x423   :  { %v820_v49 = vld [vmem:[#allocation2 + $0x1490] sm:$0xff]  ;;  %3473 = vmatpush.msrb.mxu1 %v756_v48 }
 0x424   :  { %v888_v50 = vld [vmem:[#allocation2 + $0x16b0] sm:$0xff]  ;;  %3493 = vmatpush.msrb.mxu2 %v820_v49 }
 0x425   :  { %v688_v51 = vld [vmem:[#allocation2 + $0x1070] sm:$0xff]  ;;  %3512 = vmatpush.msrb.mxu3 %v888_v50 }
 0x426   :  { %v752_v52 = vld [vmem:[#allocation2 + $0x1270] sm:$0xff]  ;;  %3454 = vmatpush.msrb.mxu0 %v688_v51 }
 0x427   :  { %v816_v53 = vld [vmem:[#allocation2 + $0x1470] sm:$0xff]  ;;  %3474 = vmatpush.msrb.mxu1 %v752_v52 }
 0x428   :  { %v884_v54 = vld [vmem:[#allocation2 + $0x1690] sm:$0xff]  ;;  %3494 = vmatpush.msrb.mxu2 %v816_v53 }
 0x429   :  { %v684_v55 = vld [vmem:[#allocation2 + $0x1050] sm:$0xff]  ;;  %3513 = vmatpush.msrb.mxu3 %v884_v54 }
 0x42a   :  { %v748_v56 = vld [vmem:[#allocation2 + $0x1250] sm:$0xff]  ;;  %3455 = vmatpush.msrb.mxu0 %v684_v55 }
 0x42b   :  { %v812_v57 = vld [vmem:[#allocation2 + $0x1450] sm:$0xff]  ;;  %3475 = vmatpush.msrb.mxu1 %v748_v56 }
 0x42c   :  { %v880_v58 = vld [vmem:[#allocation2 + $0x1670] sm:$0xff]  ;;  %3495 = vmatpush.msrb.mxu2 %v812_v57 }
 0x42d   :  { %v680_v59 = vld [vmem:[#allocation2 + $0x1030] sm:$0xff]  ;;  %3514 = vmatpush.msrb.mxu3 %v880_v58 }
 0x42e   :  { %v744_v60 = vld [vmem:[#allocation2 + $0x1230] sm:$0xff]  ;;  %3456 = vmatpush.msrb.mxu0 %v680_v59 }
 0x42f   :  { %v808_v61 = vld [vmem:[#allocation2 + $0x1430] sm:$0xff]  ;;  %3476 = vmatpush.msrb.mxu1 %v744_v60 }
 0x430   :  { %v876_v62 = vld [vmem:[#allocation2 + $0x1650] sm:$0xff]  ;;  %3496 = vmatpush.msrb.mxu2 %v808_v61 }
 0x431   :  { %v676_v63 = vld [vmem:[#allocation2 + $0x1010] sm:$0xff]  ;;  %3515 = vmatpush.msrb.mxu3 %v876_v62 }
 0x432   :  { %v740_v0 = vld [vmem:[#allocation2 + $0x1210] sm:$0xff]  ;;  %3457 = vmatpush.msrb.mxu0 %v676_v63 }
 0x433   :  { %v804_v1 = vld [vmem:[#allocation2 + $0x1410] sm:$0xff]  ;;  %3477 = vmatpush.msrb.mxu1 %v740_v0  ;;  %3458 = vmatmul.f32.vlgmr.msrb.gmra.mxu0 %v4777_v7 }
 0x434   :  { %v872_v2 = vld [vmem:[#allocation2 + $0x1630] sm:$0xff]  ;;  %3497 = vmatpush.msrb.mxu2 %v804_v1  ;;  %3478 = vmatmul.f32.vlgmr.msrb.gmra.mxu1 %v4779_v13 }
 0x435   :  { %v992_v3 = vld [vmem:[#allocation2 + $0x19f0] sm:$0xff]  ;;  %3516 = vmatpush.msrb.mxu3 %v872_v2 }
 0x436   :  { %v1056_v4 = vld [vmem:[#allocation2 + $0x1bf0] sm:$0xff]  ;;  %3522 = vmatpush.msra.mxu0 %v992_v3 }
 0x437   :  { %v1120_v5 = vld [vmem:[#allocation2 + $0x1df0] sm:$0xff]  ;;  %3542 = vmatpush.msra.mxu1 %v1056_v4 }
 0x438   :  { %v868_v6 = vld [vmem:[#allocation2 + $0x1610] sm:$0xff]  ;;  %3562 = vmatpush.msra.mxu2 %v1120_v5 }
 0x439   :  { %v4778_v8 = vld [vmem:[%s5625_s0 + $0x50] sm:$0xff]  ;;  %3517 = vmatpush.msrb.mxu3 %v868_v6 }
 0x43a   :  { %3498 = vmatmul.f32.vlgmr.msrb.gmra.mxu2 %v4778_v8  ;;  %v988_v9 = vld [vmem:[#allocation2 + $0x19d0] sm:$0xff]  ;;  %3518 = vmatmul.f32.vlgmr.msrb.gmra.mxu3 %v4780_v14 }
 0x43b   :  { %v1052_v10 = vld [vmem:[#allocation2 + $0x1bd0] sm:$0xff]  ;;  %3523 = vmatpush.msra.mxu0 %v988_v9 }
 0x43c   :  { %v1116_v11 = vld [vmem:[#allocation2 + $0x1dd0] sm:$0xff]  ;;  %3543 = vmatpush.msra.mxu1 %v1052_v10 }
 0x43d   :  { %v1184_v12 = vld [vmem:[#allocation2 + $0x1ff0] sm:$0xff]  ;;  %3563 = vmatpush.msra.mxu2 %v1116_v11  ;;  %v4781_v11 = vld [vmem:[%s5625_s0 + $0x60] sm:$0xff] }
 0x43e   :  { %v984_v15 = vld [vmem:[#allocation2 + $0x19b0] sm:$0xff]  ;;  %3582 = vmatpush.msra.mxu3 %v1184_v12 }
 0x43f   :  { %v1048_v16 = vld [vmem:[#allocation2 + $0x1bb0] sm:$0xff]  ;;  %3524 = vmatpush.msra.mxu0 %v984_v15 }
 0x440   :  { %v1112_v17 = vld [vmem:[#allocation2 + $0x1db0] sm:$0xff]  ;;  %3544 = vmatpush.msra.mxu1 %v1048_v16 }
 0x441   :  { %v1180_v18 = vld [vmem:[#allocation2 + $0x1fd0] sm:$0xff]  ;;  %3564 = vmatpush.msra.mxu2 %v1112_v17  ;;  %v4783_v17 = vld [vmem:[%s5625_s0 + $0x68] sm:$0xff] }
 0x442   :  { %v980_v19 = vld [vmem:[#allocation2 + $0x1990] sm:$0xff]  ;;  %3583 = vmatpush.msra.mxu3 %v1180_v18  ;;  %v4784_v18 = vld [vmem:[%s5625_s0 + $0x78] sm:$0xff] }
 0x443   :  { %v1044_v20 = vld [vmem:[#allocation2 + $0x1b90] sm:$0xff]  ;;  %3525 = vmatpush.msra.mxu0 %v980_v19 }
 0x444   :  { %v1108_v21 = vld [vmem:[#allocation2 + $0x1d90] sm:$0xff]  ;;  %3545 = vmatpush.msra.mxu1 %v1044_v20 }
 0x445   :  { %v1176_v22 = vld [vmem:[#allocation2 + $0x1fb0] sm:$0xff]  ;;  %3565 = vmatpush.msra.mxu2 %v1108_v21 }
 0x446   :  { %v976_v23 = vld [vmem:[#allocation2 + $0x1970] sm:$0xff]  ;;  %3584 = vmatpush.msra.mxu3 %v1176_v22 }
 0x447   :  { %v1040_v24 = vld [vmem:[#allocation2 + $0x1b70] sm:$0xff]  ;;  %3526 = vmatpush.msra.mxu0 %v976_v23 }
 0x448   :  { %v1104_v25 = vld [vmem:[#allocation2 + $0x1d70] sm:$0xff]  ;;  %3546 = vmatpush.msra.mxu1 %v1040_v24 }
 0x449   :  { %v1172_v26 = vld [vmem:[#allocation2 + $0x1f90] sm:$0xff]  ;;  %3566 = vmatpush.msra.mxu2 %v1104_v25 }
 0x44a   :  { %v972_v27 = vld [vmem:[#allocation2 + $0x1950] sm:$0xff]  ;;  %3585 = vmatpush.msra.mxu3 %v1172_v26 }
 0x44b   :  { %v1036_v28 = vld [vmem:[#allocation2 + $0x1b50] sm:$0xff]  ;;  %3527 = vmatpush.msra.mxu0 %v972_v27 }
 0x44c   :  { %v1100_v29 = vld [vmem:[#allocation2 + $0x1d50] sm:$0xff]  ;;  %3547 = vmatpush.msra.mxu1 %v1036_v28 }
 0x44d   :  { %v1168_v30 = vld [vmem:[#allocation2 + $0x1f70] sm:$0xff]  ;;  %3567 = vmatpush.msra.mxu2 %v1100_v29 }
 0x44e   :  { %v968_v31 = vld [vmem:[#allocation2 + $0x1930] sm:$0xff]  ;;  %3586 = vmatpush.msra.mxu3 %v1168_v30 }
 0x44f   :  { %v1032_v32 = vld [vmem:[#allocation2 + $0x1b30] sm:$0xff]  ;;  %3528 = vmatpush.msra.mxu0 %v968_v31 }
 0x450   :  { %v1096_v33 = vld [vmem:[#allocation2 + $0x1d30] sm:$0xff]  ;;  %3548 = vmatpush.msra.mxu1 %v1032_v32 }
 0x451   :  { %v1164_v34 = vld [vmem:[#allocation2 + $0x1f50] sm:$0xff]  ;;  %3568 = vmatpush.msra.mxu2 %v1096_v33 }
 0x452   :  { %v964_v35 = vld [vmem:[#allocation2 + $0x1910] sm:$0xff]  ;;  %3587 = vmatpush.msra.mxu3 %v1164_v34 }
 0x453   :  { %v1028_v36 = vld [vmem:[#allocation2 + $0x1b10] sm:$0xff]  ;;  %3529 = vmatpush.msra.mxu0 %v964_v35 }
 0x454   :  { %v1092_v37 = vld [vmem:[#allocation2 + $0x1d10] sm:$0xff]  ;;  %3549 = vmatpush.msra.mxu1 %v1028_v36 }
 0x455   :  { %v1160_v38 = vld [vmem:[#allocation2 + $0x1f30] sm:$0xff]  ;;  %3569 = vmatpush.msra.mxu2 %v1092_v37 }
 0x456   :  { %v960_v39 = vld [vmem:[#allocation2 + $0x18f0] sm:$0xff]  ;;  %3588 = vmatpush.msra.mxu3 %v1160_v38 }
 0x457   :  { %v1024_v40 = vld [vmem:[#allocation2 + $0x1af0] sm:$0xff]  ;;  %3530 = vmatpush.msra.mxu0 %v960_v39 }
 0x458   :  { %v1088_v41 = vld [vmem:[#allocation2 + $0x1cf0] sm:$0xff]  ;;  %3550 = vmatpush.msra.mxu1 %v1024_v40 }
 0x459   :  { %v1156_v42 = vld [vmem:[#allocation2 + $0x1f10] sm:$0xff]  ;;  %3570 = vmatpush.msra.mxu2 %v1088_v41 }
 0x45a   :  { %v956_v43 = vld [vmem:[#allocation2 + $0x18d0] sm:$0xff]  ;;  %3589 = vmatpush.msra.mxu3 %v1156_v42 }
 0x45b   :  { %v1020_v44 = vld [vmem:[#allocation2 + $0x1ad0] sm:$0xff]  ;;  %3531 = vmatpush.msra.mxu0 %v956_v43 }
 0x45c   :  { %v1084_v45 = vld [vmem:[#allocation2 + $0x1cd0] sm:$0xff]  ;;  %3551 = vmatpush.msra.mxu1 %v1020_v44 }
 0x45d   :  { %v1152_v46 = vld [vmem:[#allocation2 + $0x1ef0] sm:$0xff]  ;;  %3571 = vmatpush.msra.mxu2 %v1084_v45 }
 0x45e   :  { %v952_v47 = vld [vmem:[#allocation2 + $0x18b0] sm:$0xff]  ;;  %3590 = vmatpush.msra.mxu3 %v1152_v46 }
 0x45f   :  { %v1016_v48 = vld [vmem:[#allocation2 + $0x1ab0] sm:$0xff]  ;;  %3532 = vmatpush.msra.mxu0 %v952_v47 }
 0x460   :  { %v1080_v49 = vld [vmem:[#allocation2 + $0x1cb0] sm:$0xff]  ;;  %3552 = vmatpush.msra.mxu1 %v1016_v48 }
 0x461   :  { %v1148_v50 = vld [vmem:[#allocation2 + $0x1ed0] sm:$0xff]  ;;  %3572 = vmatpush.msra.mxu2 %v1080_v49 }
 0x462   :  { %v948_v51 = vld [vmem:[#allocation2 + $0x1890] sm:$0xff]  ;;  %3591 = vmatpush.msra.mxu3 %v1148_v50 }
 0x463   :  { %v1012_v52 = vld [vmem:[#allocation2 + $0x1a90] sm:$0xff]  ;;  %3533 = vmatpush.msra.mxu0 %v948_v51 }
 0x464   :  { %v1076_v53 = vld [vmem:[#allocation2 + $0x1c90] sm:$0xff]  ;;  %3553 = vmatpush.msra.mxu1 %v1012_v52 }
 0x465   :  { %v1144_v54 = vld [vmem:[#allocation2 + $0x1eb0] sm:$0xff]  ;;  %3573 = vmatpush.msra.mxu2 %v1076_v53 }
 0x466   :  { %v944_v55 = vld [vmem:[#allocation2 + $0x1870] sm:$0xff]  ;;  %3592 = vmatpush.msra.mxu3 %v1144_v54 }
 0x467   :  { %v1008_v56 = vld [vmem:[#allocation2 + $0x1a70] sm:$0xff]  ;;  %3534 = vmatpush.msra.mxu0 %v944_v55 }
 0x468   :  { %v1072_v57 = vld [vmem:[#allocation2 + $0x1c70] sm:$0xff]  ;;  %3554 = vmatpush.msra.mxu1 %v1008_v56 }
 0x469   :  { %v1140_v58 = vld [vmem:[#allocation2 + $0x1e90] sm:$0xff]  ;;  %3574 = vmatpush.msra.mxu2 %v1072_v57 }
 0x46a   :  { %v940_v59 = vld [vmem:[#allocation2 + $0x1850] sm:$0xff]  ;;  %3593 = vmatpush.msra.mxu3 %v1140_v58 }
 0x46b   :  { %v1004_v60 = vld [vmem:[#allocation2 + $0x1a50] sm:$0xff]  ;;  %3535 = vmatpush.msra.mxu0 %v940_v59 }
 0x46c   :  { %v1068_v61 = vld [vmem:[#allocation2 + $0x1c50] sm:$0xff]  ;;  %3555 = vmatpush.msra.mxu1 %v1004_v60 }
 0x46d   :  { %v1136_v62 = vld [vmem:[#allocation2 + $0x1e70] sm:$0xff]  ;;  %3575 = vmatpush.msra.mxu2 %v1068_v61 }
 0x46e   :  { %v936_v63 = vld [vmem:[#allocation2 + $0x1830] sm:$0xff]  ;;  %3594 = vmatpush.msra.mxu3 %v1136_v62 }
 0x46f   :  { %v1000_v0 = vld [vmem:[#allocation2 + $0x1a30] sm:$0xff]  ;;  %3536 = vmatpush.msra.mxu0 %v936_v63 }
 0x470   :  { %v1064_v1 = vld [vmem:[#allocation2 + $0x1c30] sm:$0xff]  ;;  %3556 = vmatpush.msra.mxu1 %v1000_v0 }
 0x471   :  { %v1132_v2 = vld [vmem:[#allocation2 + $0x1e50] sm:$0xff]  ;;  %3576 = vmatpush.msra.mxu2 %v1064_v1 }
 0x472   :  { %v932_v3 = vld [vmem:[#allocation2 + $0x1810] sm:$0xff]  ;;  %3595 = vmatpush.msra.mxu3 %v1132_v2 }
 0x473   :  { %v996_v4 = vld [vmem:[#allocation2 + $0x1a10] sm:$0xff]  ;;  %3537 = vmatpush.msra.mxu0 %v932_v3 }
 0x474   :  { %v1060_v5 = vld [vmem:[#allocation2 + $0x1c10] sm:$0xff]  ;;  %3557 = vmatpush.msra.mxu1 %v996_v4  ;;  %3538 = vmatmul.f32.vlgmr.msra.gmra.mxu0 %v4781_v11 }
 0x475   :  { %v1128_v6 = vld [vmem:[#allocation2 + $0x1e30] sm:$0xff]  ;;  %3577 = vmatpush.msra.mxu2 %v1060_v5  ;;  %3558 = vmatmul.f32.vlgmr.msra.gmra.mxu1 %v4783_v17 }
 0x476   :  { %v1248_v7 = vld [vmem:[#allocation2 + $0x21f0] sm:$0xff]  ;;  %3596 = vmatpush.msra.mxu3 %v1128_v6 }
 0x477   :  { %v1312_v8 = vld [vmem:[#allocation2 + $0x23f0] sm:$0xff]  ;;  %3602 = vmatpush.msrb.mxu0 %v1248_v7 }
 0x478   :  { %v1376_v9 = vld [vmem:[#allocation2 + $0x25f0] sm:$0xff]  ;;  %3622 = vmatpush.msrb.mxu1 %v1312_v8 }
 0x479   :  { %v1124_v10 = vld [vmem:[#allocation2 + $0x1e10] sm:$0xff]  ;;  %3642 = vmatpush.msrb.mxu2 %v1376_v9 }
 0x47a   :  { %v4782_v12 = vld [vmem:[%s5625_s0 + $0x70] sm:$0xff]  ;;  %3597 = vmatpush.msra.mxu3 %v1124_v10 }
 0x47b   :  { %3578 = vmatmul.f32.vlgmr.msra.gmra.mxu2 %v4782_v12  ;;  %v1244_v13 = vld [vmem:[#allocation2 + $0x21d0] sm:$0xff]  ;;  %3598 = vmatmul.f32.vlgmr.msra.gmra.mxu3 %v4784_v18 }
 0x47c   :  { %v1308_v14 = vld [vmem:[#allocation2 + $0x23d0] sm:$0xff]  ;;  %3603 = vmatpush.msrb.mxu0 %v1244_v13 }
 0x47d   :  { %v1372_v15 = vld [vmem:[#allocation2 + $0x25d0] sm:$0xff]  ;;  %3623 = vmatpush.msrb.mxu1 %v1308_v14 }
 0x47e   :  { %v1440_v16 = vld [vmem:[#allocation2 + $0x27f0] sm:$0xff]  ;;  %3643 = vmatpush.msrb.mxu2 %v1372_v15  ;;  %v4785_v15 = vld [vmem:[%s5625_s0 + $0x80] sm:$0xff] }
 0x47f   :  { %v1240_v19 = vld [vmem:[#allocation2 + $0x21b0] sm:$0xff]  ;;  %3662 = vmatpush.msrb.mxu3 %v1440_v16 }
 0x480   :  { %v1304_v20 = vld [vmem:[#allocation2 + $0x23b0] sm:$0xff]  ;;  %3604 = vmatpush.msrb.mxu0 %v1240_v19 }
 0x481   :  { %v1368_v21 = vld [vmem:[#allocation2 + $0x25b0] sm:$0xff]  ;;  %3624 = vmatpush.msrb.mxu1 %v1304_v20 }
 0x482   :  { %v1436_v22 = vld [vmem:[#allocation2 + $0x27d0] sm:$0xff]  ;;  %3644 = vmatpush.msrb.mxu2 %v1368_v21  ;;  %v4787_v21 = vld [vmem:[%s5625_s0 + $0x88] sm:$0xff] }
 0x483   :  { %v1236_v23 = vld [vmem:[#allocation2 + $0x2190] sm:$0xff]  ;;  %3663 = vmatpush.msrb.mxu3 %v1436_v22  ;;  %v4788_v22 = vld [vmem:[%s5625_s0 + $0x98] sm:$0xff] }
 0x484   :  { %v1300_v24 = vld [vmem:[#allocation2 + $0x2390] sm:$0xff]  ;;  %3605 = vmatpush.msrb.mxu0 %v1236_v23 }
 0x485   :  { %v1364_v25 = vld [vmem:[#allocation2 + $0x2590] sm:$0xff]  ;;  %3625 = vmatpush.msrb.mxu1 %v1300_v24 }
 0x486   :  { %v1432_v26 = vld [vmem:[#allocation2 + $0x27b0] sm:$0xff]  ;;  %3645 = vmatpush.msrb.mxu2 %v1364_v25 }
 0x487   :  { %v1232_v27 = vld [vmem:[#allocation2 + $0x2170] sm:$0xff]  ;;  %3664 = vmatpush.msrb.mxu3 %v1432_v26 }
 0x488   :  { %v1296_v28 = vld [vmem:[#allocation2 + $0x2370] sm:$0xff]  ;;  %3606 = vmatpush.msrb.mxu0 %v1232_v27 }
 0x489   :  { %v1360_v29 = vld [vmem:[#allocation2 + $0x2570] sm:$0xff]  ;;  %3626 = vmatpush.msrb.mxu1 %v1296_v28 }
 0x48a   :  { %v1428_v30 = vld [vmem:[#allocation2 + $0x2790] sm:$0xff]  ;;  %3646 = vmatpush.msrb.mxu2 %v1360_v29 }
 0x48b   :  { %v1228_v31 = vld [vmem:[#allocation2 + $0x2150] sm:$0xff]  ;;  %3665 = vmatpush.msrb.mxu3 %v1428_v30 }
 0x48c   :  { %v1292_v32 = vld [vmem:[#allocation2 + $0x2350] sm:$0xff]  ;;  %3607 = vmatpush.msrb.mxu0 %v1228_v31 }
 0x48d   :  { %v1356_v33 = vld [vmem:[#allocation2 + $0x2550] sm:$0xff]  ;;  %3627 = vmatpush.msrb.mxu1 %v1292_v32 }
 0x48e   :  { %v1424_v34 = vld [vmem:[#allocation2 + $0x2770] sm:$0xff]  ;;  %3647 = vmatpush.msrb.mxu2 %v1356_v33 }
 0x48f   :  { %v1224_v35 = vld [vmem:[#allocation2 + $0x2130] sm:$0xff]  ;;  %3666 = vmatpush.msrb.mxu3 %v1424_v34 }
 0x490   :  { %v1288_v36 = vld [vmem:[#allocation2 + $0x2330] sm:$0xff]  ;;  %3608 = vmatpush.msrb.mxu0 %v1224_v35 }
 0x491   :  { %v1352_v37 = vld [vmem:[#allocation2 + $0x2530] sm:$0xff]  ;;  %3628 = vmatpush.msrb.mxu1 %v1288_v36 }
 0x492   :  { %v1420_v38 = vld [vmem:[#allocation2 + $0x2750] sm:$0xff]  ;;  %3648 = vmatpush.msrb.mxu2 %v1352_v37 }
 0x493   :  { %v1220_v39 = vld [vmem:[#allocation2 + $0x2110] sm:$0xff]  ;;  %3667 = vmatpush.msrb.mxu3 %v1420_v38 }
 0x494   :  { %v1284_v40 = vld [vmem:[#allocation2 + $0x2310] sm:$0xff]  ;;  %3609 = vmatpush.msrb.mxu0 %v1220_v39 }
 0x495   :  { %v1348_v41 = vld [vmem:[#allocation2 + $0x2510] sm:$0xff]  ;;  %3629 = vmatpush.msrb.mxu1 %v1284_v40 }
 0x496   :  { %v1416_v42 = vld [vmem:[#allocation2 + $0x2730] sm:$0xff]  ;;  %3649 = vmatpush.msrb.mxu2 %v1348_v41 }
 0x497   :  { %v1216_v43 = vld [vmem:[#allocation2 + $0x20f0] sm:$0xff]  ;;  %3668 = vmatpush.msrb.mxu3 %v1416_v42 }
 0x498   :  { %v1280_v44 = vld [vmem:[#allocation2 + $0x22f0] sm:$0xff]  ;;  %3610 = vmatpush.msrb.mxu0 %v1216_v43 }
 0x499   :  { %v1344_v45 = vld [vmem:[#allocation2 + $0x24f0] sm:$0xff]  ;;  %3630 = vmatpush.msrb.mxu1 %v1280_v44 }
 0x49a   :  { %v1412_v46 = vld [vmem:[#allocation2 + $0x2710] sm:$0xff]  ;;  %3650 = vmatpush.msrb.mxu2 %v1344_v45 }
 0x49b   :  { %v1212_v47 = vld [vmem:[#allocation2 + $0x20d0] sm:$0xff]  ;;  %3669 = vmatpush.msrb.mxu3 %v1412_v46 }
 0x49c   :  { %v1276_v48 = vld [vmem:[#allocation2 + $0x22d0] sm:$0xff]  ;;  %3611 = vmatpush.msrb.mxu0 %v1212_v47 }
 0x49d   :  { %v1340_v49 = vld [vmem:[#allocation2 + $0x24d0] sm:$0xff]  ;;  %3631 = vmatpush.msrb.mxu1 %v1276_v48 }
 0x49e   :  { %v1408_v50 = vld [vmem:[#allocation2 + $0x26f0] sm:$0xff]  ;;  %3651 = vmatpush.msrb.mxu2 %v1340_v49 }
 0x49f   :  { %v1208_v51 = vld [vmem:[#allocation2 + $0x20b0] sm:$0xff]  ;;  %3670 = vmatpush.msrb.mxu3 %v1408_v50 }
 0x4a0   :  { %v1272_v52 = vld [vmem:[#allocation2 + $0x22b0] sm:$0xff]  ;;  %3612 = vmatpush.msrb.mxu0 %v1208_v51 }
 0x4a1   :  { %v1336_v53 = vld [vmem:[#allocation2 + $0x24b0] sm:$0xff]  ;;  %3632 = vmatpush.msrb.mxu1 %v1272_v52 }
 0x4a2   :  { %v1404_v54 = vld [vmem:[#allocation2 + $0x26d0] sm:$0xff]  ;;  %3652 = vmatpush.msrb.mxu2 %v1336_v53 }
 0x4a3   :  { %v1204_v55 = vld [vmem:[#allocation2 + $0x2090] sm:$0xff]  ;;  %3671 = vmatpush.msrb.mxu3 %v1404_v54 }
 0x4a4   :  { %v1268_v56 = vld [vmem:[#allocation2 + $0x2290] sm:$0xff]  ;;  %3613 = vmatpush.msrb.mxu0 %v1204_v55 }
 0x4a5   :  { %v1332_v57 = vld [vmem:[#allocation2 + $0x2490] sm:$0xff]  ;;  %3633 = vmatpush.msrb.mxu1 %v1268_v56 }
 0x4a6   :  { %v1400_v58 = vld [vmem:[#allocation2 + $0x26b0] sm:$0xff]  ;;  %3653 = vmatpush.msrb.mxu2 %v1332_v57 }
 0x4a7   :  { %v1200_v59 = vld [vmem:[#allocation2 + $0x2070] sm:$0xff]  ;;  %3672 = vmatpush.msrb.mxu3 %v1400_v58 }
 0x4a8   :  { %v1264_v60 = vld [vmem:[#allocation2 + $0x2270] sm:$0xff]  ;;  %3614 = vmatpush.msrb.mxu0 %v1200_v59 }
 0x4a9   :  { %v1328_v61 = vld [vmem:[#allocation2 + $0x2470] sm:$0xff]  ;;  %3634 = vmatpush.msrb.mxu1 %v1264_v60 }
 0x4aa   :  { %v1396_v62 = vld [vmem:[#allocation2 + $0x2690] sm:$0xff]  ;;  %3654 = vmatpush.msrb.mxu2 %v1328_v61 }
 0x4ab   :  { %v1196_v63 = vld [vmem:[#allocation2 + $0x2050] sm:$0xff]  ;;  %3673 = vmatpush.msrb.mxu3 %v1396_v62 }
 0x4ac   :  { %v1260_v0 = vld [vmem:[#allocation2 + $0x2250] sm:$0xff]  ;;  %3615 = vmatpush.msrb.mxu0 %v1196_v63 }
 0x4ad   :  { %v1324_v1 = vld [vmem:[#allocation2 + $0x2450] sm:$0xff]  ;;  %3635 = vmatpush.msrb.mxu1 %v1260_v0 }
 0x4ae   :  { %v1392_v2 = vld [vmem:[#allocation2 + $0x2670] sm:$0xff]  ;;  %3655 = vmatpush.msrb.mxu2 %v1324_v1 }
 0x4af   :  { %v1192_v3 = vld [vmem:[#allocation2 + $0x2030] sm:$0xff]  ;;  %3674 = vmatpush.msrb.mxu3 %v1392_v2 }
 0x4b0   :  { %v1256_v4 = vld [vmem:[#allocation2 + $0x2230] sm:$0xff]  ;;  %3616 = vmatpush.msrb.mxu0 %v1192_v3 }
 0x4b1   :  { %v1320_v5 = vld [vmem:[#allocation2 + $0x2430] sm:$0xff]  ;;  %3636 = vmatpush.msrb.mxu1 %v1256_v4 }
 0x4b2   :  { %v1388_v6 = vld [vmem:[#allocation2 + $0x2650] sm:$0xff]  ;;  %3656 = vmatpush.msrb.mxu2 %v1320_v5 }
 0x4b3   :  { %v1188_v7 = vld [vmem:[#allocation2 + $0x2010] sm:$0xff]  ;;  %3675 = vmatpush.msrb.mxu3 %v1388_v6 }
 0x4b4   :  { %v1252_v8 = vld [vmem:[#allocation2 + $0x2210] sm:$0xff]  ;;  %3617 = vmatpush.msrb.mxu0 %v1188_v7 }
 0x4b5   :  { %v1316_v9 = vld [vmem:[#allocation2 + $0x2410] sm:$0xff]  ;;  %3637 = vmatpush.msrb.mxu1 %v1252_v8  ;;  %3618 = vmatmul.f32.vlgmr.msrb.gmra.mxu0 %v4785_v15 }
 0x4b6   :  { %v1384_v10 = vld [vmem:[#allocation2 + $0x2630] sm:$0xff]  ;;  %3657 = vmatpush.msrb.mxu2 %v1316_v9  ;;  %3638 = vmatmul.f32.vlgmr.msrb.gmra.mxu1 %v4787_v21 }
 0x4b7   :  { %v1504_v11 = vld [vmem:[#allocation2 + $0x29f0] sm:$0xff]  ;;  %3676 = vmatpush.msrb.mxu3 %v1384_v10 }
 0x4b8   :  { %v1568_v12 = vld [vmem:[#allocation2 + $0x2bf0] sm:$0xff]  ;;  %3682 = vmatpush.msra.mxu0 %v1504_v11 }
 0x4b9   :  { %v1632_v13 = vld [vmem:[#allocation2 + $0x2df0] sm:$0xff]  ;;  %3702 = vmatpush.msra.mxu1 %v1568_v12 }
 0x4ba   :  { %v1380_v14 = vld [vmem:[#allocation2 + $0x2610] sm:$0xff]  ;;  %3722 = vmatpush.msra.mxu2 %v1632_v13 }
 0x4bb   :  { %v4786_v16 = vld [vmem:[%s5625_s0 + $0x90] sm:$0xff]  ;;  %3677 = vmatpush.msrb.mxu3 %v1380_v14 }
 0x4bc   :  { %3658 = vmatmul.f32.vlgmr.msrb.gmra.mxu2 %v4786_v16  ;;  %v1500_v17 = vld [vmem:[#allocation2 + $0x29d0] sm:$0xff]  ;;  %3678 = vmatmul.f32.vlgmr.msrb.gmra.mxu3 %v4788_v22 }
 0x4bd   :  { %v1564_v18 = vld [vmem:[#allocation2 + $0x2bd0] sm:$0xff]  ;;  %3683 = vmatpush.msra.mxu0 %v1500_v17 }
 0x4be   :  { %v1628_v19 = vld [vmem:[#allocation2 + $0x2dd0] sm:$0xff]  ;;  %3703 = vmatpush.msra.mxu1 %v1564_v18 }
 0x4bf   :  { %v1696_v20 = vld [vmem:[#allocation2 + $0x2ff0] sm:$0xff]  ;;  %3723 = vmatpush.msra.mxu2 %v1628_v19  ;;  %v4789_v19 = vld [vmem:[%s5625_s0 + $0xa0] sm:$0xff] }
 0x4c0   :  { %v1496_v23 = vld [vmem:[#allocation2 + $0x29b0] sm:$0xff]  ;;  %3742 = vmatpush.msra.mxu3 %v1696_v20 }
 0x4c1   :  { %v1560_v24 = vld [vmem:[#allocation2 + $0x2bb0] sm:$0xff]  ;;  %3684 = vmatpush.msra.mxu0 %v1496_v23 }
 0x4c2   :  { %v1624_v25 = vld [vmem:[#allocation2 + $0x2db0] sm:$0xff]  ;;  %3704 = vmatpush.msra.mxu1 %v1560_v24 }
 0x4c3   :  { %v1692_v26 = vld [vmem:[#allocation2 + $0x2fd0] sm:$0xff]  ;;  %3724 = vmatpush.msra.mxu2 %v1624_v25  ;;  %v4791_v25 = vld [vmem:[%s5625_s0 + $0xa8] sm:$0xff] }
 0x4c4   :  { %v1492_v27 = vld [vmem:[#allocation2 + $0x2990] sm:$0xff]  ;;  %3743 = vmatpush.msra.mxu3 %v1692_v26  ;;  %v4792_v26 = vld [vmem:[%s5625_s0 + $0xb8] sm:$0xff] }
 0x4c5   :  { %v1556_v28 = vld [vmem:[#allocation2 + $0x2b90] sm:$0xff]  ;;  %3685 = vmatpush.msra.mxu0 %v1492_v27 }
 0x4c6   :  { %v1620_v29 = vld [vmem:[#allocation2 + $0x2d90] sm:$0xff]  ;;  %3705 = vmatpush.msra.mxu1 %v1556_v28 }
 0x4c7   :  { %v1688_v30 = vld [vmem:[#allocation2 + $0x2fb0] sm:$0xff]  ;;  %3725 = vmatpush.msra.mxu2 %v1620_v29 }
 0x4c8   :  { %v1488_v31 = vld [vmem:[#allocation2 + $0x2970] sm:$0xff]  ;;  %3744 = vmatpush.msra.mxu3 %v1688_v30 }
 0x4c9   :  { %v1552_v32 = vld [vmem:[#allocation2 + $0x2b70] sm:$0xff]  ;;  %3686 = vmatpush.msra.mxu0 %v1488_v31 }
 0x4ca   :  { %v1616_v33 = vld [vmem:[#allocation2 + $0x2d70] sm:$0xff]  ;;  %3706 = vmatpush.msra.mxu1 %v1552_v32 }
 0x4cb   :  { %v1684_v34 = vld [vmem:[#allocation2 + $0x2f90] sm:$0xff]  ;;  %3726 = vmatpush.msra.mxu2 %v1616_v33 }
 0x4cc   :  { %v1484_v35 = vld [vmem:[#allocation2 + $0x2950] sm:$0xff]  ;;  %3745 = vmatpush.msra.mxu3 %v1684_v34 }
 0x4cd   :  { %v1548_v36 = vld [vmem:[#allocation2 + $0x2b50] sm:$0xff]  ;;  %3687 = vmatpush.msra.mxu0 %v1484_v35 }
 0x4ce   :  { %v1612_v37 = vld [vmem:[#allocation2 + $0x2d50] sm:$0xff]  ;;  %3707 = vmatpush.msra.mxu1 %v1548_v36 }
 0x4cf   :  { %v1680_v38 = vld [vmem:[#allocation2 + $0x2f70] sm:$0xff]  ;;  %3727 = vmatpush.msra.mxu2 %v1612_v37 }
 0x4d0   :  { %v1480_v39 = vld [vmem:[#allocation2 + $0x2930] sm:$0xff]  ;;  %3746 = vmatpush.msra.mxu3 %v1680_v38 }
 0x4d1   :  { %v1544_v40 = vld [vmem:[#allocation2 + $0x2b30] sm:$0xff]  ;;  %3688 = vmatpush.msra.mxu0 %v1480_v39 }
 0x4d2   :  { %v1608_v41 = vld [vmem:[#allocation2 + $0x2d30] sm:$0xff]  ;;  %3708 = vmatpush.msra.mxu1 %v1544_v40 }
 0x4d3   :  { %v1676_v42 = vld [vmem:[#allocation2 + $0x2f50] sm:$0xff]  ;;  %3728 = vmatpush.msra.mxu2 %v1608_v41 }
 0x4d4   :  { %v1476_v43 = vld [vmem:[#allocation2 + $0x2910] sm:$0xff]  ;;  %3747 = vmatpush.msra.mxu3 %v1676_v42 }
 0x4d5   :  { %v1540_v44 = vld [vmem:[#allocation2 + $0x2b10] sm:$0xff]  ;;  %3689 = vmatpush.msra.mxu0 %v1476_v43 }
 0x4d6   :  { %v1604_v45 = vld [vmem:[#allocation2 + $0x2d10] sm:$0xff]  ;;  %3709 = vmatpush.msra.mxu1 %v1540_v44 }
 0x4d7   :  { %v1672_v46 = vld [vmem:[#allocation2 + $0x2f30] sm:$0xff]  ;;  %3729 = vmatpush.msra.mxu2 %v1604_v45 }
 0x4d8   :  { %v1472_v47 = vld [vmem:[#allocation2 + $0x28f0] sm:$0xff]  ;;  %3748 = vmatpush.msra.mxu3 %v1672_v46 }
 0x4d9   :  { %v1536_v48 = vld [vmem:[#allocation2 + $0x2af0] sm:$0xff]  ;;  %3690 = vmatpush.msra.mxu0 %v1472_v47 }
 0x4da   :  { %v1600_v49 = vld [vmem:[#allocation2 + $0x2cf0] sm:$0xff]  ;;  %3710 = vmatpush.msra.mxu1 %v1536_v48 }
 0x4db   :  { %v1668_v50 = vld [vmem:[#allocation2 + $0x2f10] sm:$0xff]  ;;  %3730 = vmatpush.msra.mxu2 %v1600_v49 }
 0x4dc   :  { %v1468_v51 = vld [vmem:[#allocation2 + $0x28d0] sm:$0xff]  ;;  %3749 = vmatpush.msra.mxu3 %v1668_v50 }
 0x4dd   :  { %v1532_v52 = vld [vmem:[#allocation2 + $0x2ad0] sm:$0xff]  ;;  %3691 = vmatpush.msra.mxu0 %v1468_v51 }
 0x4de   :  { %v1596_v53 = vld [vmem:[#allocation2 + $0x2cd0] sm:$0xff]  ;;  %3711 = vmatpush.msra.mxu1 %v1532_v52 }
 0x4df   :  { %v1664_v54 = vld [vmem:[#allocation2 + $0x2ef0] sm:$0xff]  ;;  %3731 = vmatpush.msra.mxu2 %v1596_v53 }
 0x4e0   :  { %v1464_v55 = vld [vmem:[#allocation2 + $0x28b0] sm:$0xff]  ;;  %3750 = vmatpush.msra.mxu3 %v1664_v54 }
 0x4e1   :  { %v1528_v56 = vld [vmem:[#allocation2 + $0x2ab0] sm:$0xff]  ;;  %3692 = vmatpush.msra.mxu0 %v1464_v55 }
 0x4e2   :  { %v1592_v57 = vld [vmem:[#allocation2 + $0x2cb0] sm:$0xff]  ;;  %3712 = vmatpush.msra.mxu1 %v1528_v56 }
 0x4e3   :  { %v1660_v58 = vld [vmem:[#allocation2 + $0x2ed0] sm:$0xff]  ;;  %3732 = vmatpush.msra.mxu2 %v1592_v57 }
 0x4e4   :  { %v1460_v59 = vld [vmem:[#allocation2 + $0x2890] sm:$0xff]  ;;  %3751 = vmatpush.msra.mxu3 %v1660_v58 }
 0x4e5   :  { %v1524_v60 = vld [vmem:[#allocation2 + $0x2a90] sm:$0xff]  ;;  %3693 = vmatpush.msra.mxu0 %v1460_v59 }
 0x4e6   :  { %v1588_v61 = vld [vmem:[#allocation2 + $0x2c90] sm:$0xff]  ;;  %3713 = vmatpush.msra.mxu1 %v1524_v60 }
 0x4e7   :  { %v1656_v62 = vld [vmem:[#allocation2 + $0x2eb0] sm:$0xff]  ;;  %3733 = vmatpush.msra.mxu2 %v1588_v61 }
 0x4e8   :  { %v1456_v63 = vld [vmem:[#allocation2 + $0x2870] sm:$0xff]  ;;  %3752 = vmatpush.msra.mxu3 %v1656_v62 }
 0x4e9   :  { %v1520_v0 = vld [vmem:[#allocation2 + $0x2a70] sm:$0xff]  ;;  %3694 = vmatpush.msra.mxu0 %v1456_v63 }
 0x4ea   :  { %v1584_v1 = vld [vmem:[#allocation2 + $0x2c70] sm:$0xff]  ;;  %3714 = vmatpush.msra.mxu1 %v1520_v0 }
 0x4eb   :  { %v1652_v2 = vld [vmem:[#allocation2 + $0x2e90] sm:$0xff]  ;;  %3734 = vmatpush.msra.mxu2 %v1584_v1 }
 0x4ec   :  { %v1452_v3 = vld [vmem:[#allocation2 + $0x2850] sm:$0xff]  ;;  %3753 = vmatpush.msra.mxu3 %v1652_v2 }
 0x4ed   :  { %v1516_v4 = vld [vmem:[#allocation2 + $0x2a50] sm:$0xff]  ;;  %3695 = vmatpush.msra.mxu0 %v1452_v3 }
 0x4ee   :  { %v1580_v5 = vld [vmem:[#allocation2 + $0x2c50] sm:$0xff]  ;;  %3715 = vmatpush.msra.mxu1 %v1516_v4 }
 0x4ef   :  { %v1648_v6 = vld [vmem:[#allocation2 + $0x2e70] sm:$0xff]  ;;  %3735 = vmatpush.msra.mxu2 %v1580_v5 }
 0x4f0   :  { %v1448_v7 = vld [vmem:[#allocation2 + $0x2830] sm:$0xff]  ;;  %3754 = vmatpush.msra.mxu3 %v1648_v6 }
 0x4f1   :  { %v1512_v8 = vld [vmem:[#allocation2 + $0x2a30] sm:$0xff]  ;;  %3696 = vmatpush.msra.mxu0 %v1448_v7 }
 0x4f2   :  { %v1576_v9 = vld [vmem:[#allocation2 + $0x2c30] sm:$0xff]  ;;  %3716 = vmatpush.msra.mxu1 %v1512_v8 }
 0x4f3   :  { %v1644_v10 = vld [vmem:[#allocation2 + $0x2e50] sm:$0xff]  ;;  %3736 = vmatpush.msra.mxu2 %v1576_v9 }
 0x4f4   :  { %v1444_v11 = vld [vmem:[#allocation2 + $0x2810] sm:$0xff]  ;;  %3755 = vmatpush.msra.mxu3 %v1644_v10 }
 0x4f5   :  { %v1508_v12 = vld [vmem:[#allocation2 + $0x2a10] sm:$0xff]  ;;  %3697 = vmatpush.msra.mxu0 %v1444_v11 }
 0x4f6   :  { %v1572_v13 = vld [vmem:[#allocation2 + $0x2c10] sm:$0xff]  ;;  %3717 = vmatpush.msra.mxu1 %v1508_v12  ;;  %3698 = vmatmul.f32.vlgmr.msra.gmra.mxu0 %v4789_v19 }
 0x4f7   :  { %v1640_v14 = vld [vmem:[#allocation2 + $0x2e30] sm:$0xff]  ;;  %3737 = vmatpush.msra.mxu2 %v1572_v13  ;;  %3718 = vmatmul.f32.vlgmr.msra.gmra.mxu1 %v4791_v25 }
 0x4f8   :  { %v1760_v15 = vld [vmem:[#allocation2 + $0x31f0] sm:$0xff]  ;;  %3756 = vmatpush.msra.mxu3 %v1640_v14 }
 0x4f9   :  { %v1824_v16 = vld [vmem:[#allocation2 + $0x33f0] sm:$0xff]  ;;  %3762 = vmatpush.msrb.mxu0 %v1760_v15 }
 0x4fa   :  { %v1888_v17 = vld [vmem:[#allocation2 + $0x35f0] sm:$0xff]  ;;  %3782 = vmatpush.msrb.mxu1 %v1824_v16 }
 0x4fb   :  { %v1636_v18 = vld [vmem:[#allocation2 + $0x2e10] sm:$0xff]  ;;  %3802 = vmatpush.msrb.mxu2 %v1888_v17 }
 0x4fc   :  { %v4790_v20 = vld [vmem:[%s5625_s0 + $0xb0] sm:$0xff]  ;;  %3757 = vmatpush.msra.mxu3 %v1636_v18 }
 0x4fd   :  { %3738 = vmatmul.f32.vlgmr.msra.gmra.mxu2 %v4790_v20  ;;  %v1756_v21 = vld [vmem:[#allocation2 + $0x31d0] sm:$0xff]  ;;  %3758 = vmatmul.f32.vlgmr.msra.gmra.mxu3 %v4792_v26 }
 0x4fe   :  { %v1820_v22 = vld [vmem:[#allocation2 + $0x33d0] sm:$0xff]  ;;  %3763 = vmatpush.msrb.mxu0 %v1756_v21  ;;  %v225_v21 = vld [vmem:[#allocation2 + $0x1f8] sm:$0xff] }
 0x4ff   :  { %v1884_v23 = vld [vmem:[#allocation2 + $0x35d0] sm:$0xff]  ;;  %3783 = vmatpush.msrb.mxu1 %v1820_v22 }
 0x500   :  { %v1952_v24 = vld [vmem:[#allocation2 + $0x37f0] sm:$0xff]  ;;  %3803 = vmatpush.msrb.mxu2 %v1884_v23  ;;  %v4793_v23 = vld [vmem:[%s5625_s0 + $0xc0] sm:$0xff] }
 0x501   :  { %v1752_v27 = vld [vmem:[#allocation2 + $0x31b0] sm:$0xff]  ;;  %3822 = vmatpush.msrb.mxu3 %v1952_v24 }
 0x502   :  { %v1816_v28 = vld [vmem:[#allocation2 + $0x33b0] sm:$0xff]  ;;  %3764 = vmatpush.msrb.mxu0 %v1752_v27  ;;  %v221_v27 = vld [vmem:[#allocation2 + $0x1d8] sm:$0xff] }
 0x503   :  { %v1880_v29 = vld [vmem:[#allocation2 + $0x35b0] sm:$0xff]  ;;  %3784 = vmatpush.msrb.mxu1 %v1816_v28  ;;  %v289_v28 = vld [vmem:[#allocation2 + $0x3f8] sm:$0xff] }
 0x504   :  { %v1948_v30 = vld [vmem:[#allocation2 + $0x37d0] sm:$0xff]  ;;  %3804 = vmatpush.msrb.mxu2 %v1880_v29  ;;  %v4795_v29 = vld [vmem:[%s5625_s0 + $0xc8] sm:$0xff] }
 0x505   :  { %v1748_v31 = vld [vmem:[#allocation2 + $0x3190] sm:$0xff]  ;;  %3823 = vmatpush.msrb.mxu3 %v1948_v30  ;;  %v4796_v30 = vld [vmem:[%s5625_s0 + $0xd8] sm:$0xff] }
 0x506   :  { %v1812_v32 = vld [vmem:[#allocation2 + $0x3390] sm:$0xff]  ;;  %3765 = vmatpush.msrb.mxu0 %v1748_v31 }
 0x507   :  { %v1876_v33 = vld [vmem:[#allocation2 + $0x3590] sm:$0xff]  ;;  %3785 = vmatpush.msrb.mxu1 %v1812_v32 }
 0x508   :  { %v1944_v34 = vld [vmem:[#allocation2 + $0x37b0] sm:$0xff]  ;;  %3805 = vmatpush.msrb.mxu2 %v1876_v33  ;;  %v217_v33 = vld [vmem:[#allocation2 + $0x1b8] sm:$0xff] }
 0x509   :  { %v1744_v35 = vld [vmem:[#allocation2 + $0x3170] sm:$0xff]  ;;  %3824 = vmatpush.msrb.mxu3 %v1944_v34  ;;  %v285_v34 = vld [vmem:[#allocation2 + $0x3d8] sm:$0xff] }
 0x50a   :  { %v1808_v36 = vld [vmem:[#allocation2 + $0x3370] sm:$0xff]  ;;  %3766 = vmatpush.msrb.mxu0 %v1744_v35 }
 0x50b   :  { %v1872_v37 = vld [vmem:[#allocation2 + $0x3570] sm:$0xff]  ;;  %3786 = vmatpush.msrb.mxu1 %v1808_v36 }
 0x50c   :  { %v1940_v38 = vld [vmem:[#allocation2 + $0x3790] sm:$0xff]  ;;  %3806 = vmatpush.msrb.mxu2 %v1872_v37  ;;  %v213_v37 = vld [vmem:[#allocation2 + $0x198] sm:$0xff] }
 0x50d   :  { %v1740_v39 = vld [vmem:[#allocation2 + $0x3150] sm:$0xff]  ;;  %3825 = vmatpush.msrb.mxu3 %v1940_v38  ;;  %v281_v38 = vld [vmem:[#allocation2 + $0x3b8] sm:$0xff] }
 0x50e   :  { %v1804_v40 = vld [vmem:[#allocation2 + $0x3350] sm:$0xff]  ;;  %3767 = vmatpush.msrb.mxu0 %v1740_v39 }
 0x50f   :  { %v1868_v41 = vld [vmem:[#allocation2 + $0x3550] sm:$0xff]  ;;  %3787 = vmatpush.msrb.mxu1 %v1804_v40 }
 0x510   :  { %v1936_v42 = vld [vmem:[#allocation2 + $0x3770] sm:$0xff]  ;;  %3807 = vmatpush.msrb.mxu2 %v1868_v41  ;;  %v209_v41 = vld [vmem:[#allocation2 + $0x178] sm:$0xff] }
 0x511   :  { %v1736_v43 = vld [vmem:[#allocation2 + $0x3130] sm:$0xff]  ;;  %3826 = vmatpush.msrb.mxu3 %v1936_v42  ;;  %v277_v42 = vld [vmem:[#allocation2 + $0x398] sm:$0xff] }
 0x512   :  { %v1800_v44 = vld [vmem:[#allocation2 + $0x3330] sm:$0xff]  ;;  %3768 = vmatpush.msrb.mxu0 %v1736_v43 }
 0x513   :  { %v1864_v45 = vld [vmem:[#allocation2 + $0x3530] sm:$0xff]  ;;  %3788 = vmatpush.msrb.mxu1 %v1800_v44 }
 0x514   :  { %v1932_v46 = vld [vmem:[#allocation2 + $0x3750] sm:$0xff]  ;;  %3808 = vmatpush.msrb.mxu2 %v1864_v45  ;;  %v205_v45 = vld [vmem:[#allocation2 + $0x158] sm:$0xff] }
 0x515   :  { %v1732_v47 = vld [vmem:[#allocation2 + $0x3110] sm:$0xff]  ;;  %3827 = vmatpush.msrb.mxu3 %v1932_v46  ;;  %v273_v46 = vld [vmem:[#allocation2 + $0x378] sm:$0xff] }
 0x516   :  { %v1796_v48 = vld [vmem:[#allocation2 + $0x3310] sm:$0xff]  ;;  %3769 = vmatpush.msrb.mxu0 %v1732_v47 }
 0x517   :  { %v1860_v49 = vld [vmem:[#allocation2 + $0x3510] sm:$0xff]  ;;  %3789 = vmatpush.msrb.mxu1 %v1796_v48 }
 0x518   :  { %v1928_v50 = vld [vmem:[#allocation2 + $0x3730] sm:$0xff]  ;;  %3809 = vmatpush.msrb.mxu2 %v1860_v49  ;;  %v201_v49 = vld [vmem:[#allocation2 + $0x138] sm:$0xff] }
 0x519   :  { %v1728_v51 = vld [vmem:[#allocation2 + $0x30f0] sm:$0xff]  ;;  %3828 = vmatpush.msrb.mxu3 %v1928_v50  ;;  %v269_v50 = vld [vmem:[#allocation2 + $0x358] sm:$0xff] }
 0x51a   :  { %v1792_v52 = vld [vmem:[#allocation2 + $0x32f0] sm:$0xff]  ;;  %3770 = vmatpush.msrb.mxu0 %v1728_v51 }
 0x51b   :  { %v1856_v53 = vld [vmem:[#allocation2 + $0x34f0] sm:$0xff]  ;;  %3790 = vmatpush.msrb.mxu1 %v1792_v52 }
 0x51c   :  { %v1924_v54 = vld [vmem:[#allocation2 + $0x3710] sm:$0xff]  ;;  %3810 = vmatpush.msrb.mxu2 %v1856_v53  ;;  %v197_v53 = vld [vmem:[#allocation2 + $0x118] sm:$0xff] }
 0x51d   :  { %v1724_v55 = vld [vmem:[#allocation2 + $0x30d0] sm:$0xff]  ;;  %3829 = vmatpush.msrb.mxu3 %v1924_v54  ;;  %v265_v54 = vld [vmem:[#allocation2 + $0x338] sm:$0xff] }
 0x51e   :  { %v1788_v56 = vld [vmem:[#allocation2 + $0x32d0] sm:$0xff]  ;;  %3771 = vmatpush.msrb.mxu0 %v1724_v55 }
 0x51f   :  { %v1852_v57 = vld [vmem:[#allocation2 + $0x34d0] sm:$0xff]  ;;  %3791 = vmatpush.msrb.mxu1 %v1788_v56 }
 0x520   :  { %v1920_v58 = vld [vmem:[#allocation2 + $0x36f0] sm:$0xff]  ;;  %3811 = vmatpush.msrb.mxu2 %v1852_v57  ;;  %v193_v57 = vld [vmem:[#allocation2 + $0xf8] sm:$0xff] }
 0x521   :  { %v1720_v59 = vld [vmem:[#allocation2 + $0x30b0] sm:$0xff]  ;;  %3830 = vmatpush.msrb.mxu3 %v1920_v58  ;;  %v261_v58 = vld [vmem:[#allocation2 + $0x318] sm:$0xff] }
 0x522   :  { %v1784_v60 = vld [vmem:[#allocation2 + $0x32b0] sm:$0xff]  ;;  %3772 = vmatpush.msrb.mxu0 %v1720_v59 }
 0x523   :  { %v1848_v61 = vld [vmem:[#allocation2 + $0x34b0] sm:$0xff]  ;;  %3792 = vmatpush.msrb.mxu1 %v1784_v60 }
 0x524   :  { %v1916_v62 = vld [vmem:[#allocation2 + $0x36d0] sm:$0xff]  ;;  %3812 = vmatpush.msrb.mxu2 %v1848_v61  ;;  %v189_v61 = vld [vmem:[#allocation2 + $0xd8] sm:$0xff] }
 0x525   :  { %v1716_v63 = vld [vmem:[#allocation2 + $0x3090] sm:$0xff]  ;;  %3831 = vmatpush.msrb.mxu3 %v1916_v62  ;;  %v257_v62 = vld [vmem:[#allocation2 + $0x2f8] sm:$0xff] }
 0x526   :  { %v1780_v0 = vld [vmem:[#allocation2 + $0x3290] sm:$0xff]  ;;  %3773 = vmatpush.msrb.mxu0 %v1716_v63 }
 0x527   :  { %v1844_v1 = vld [vmem:[#allocation2 + $0x3490] sm:$0xff]  ;;  %3793 = vmatpush.msrb.mxu1 %v1780_v0 }
 0x528   :  { %v1912_v2 = vld [vmem:[#allocation2 + $0x36b0] sm:$0xff]  ;;  %3813 = vmatpush.msrb.mxu2 %v1844_v1  ;;  %v185_v1 = vld [vmem:[#allocation2 + $0xb8] sm:$0xff] }
 0x529   :  { %v1712_v3 = vld [vmem:[#allocation2 + $0x3070] sm:$0xff]  ;;  %3832 = vmatpush.msrb.mxu3 %v1912_v2  ;;  %v253_v2 = vld [vmem:[#allocation2 + $0x2d8] sm:$0xff] }
 0x52a   :  { %v1776_v4 = vld [vmem:[#allocation2 + $0x3270] sm:$0xff]  ;;  %3774 = vmatpush.msrb.mxu0 %v1712_v3 }
 0x52b   :  { %v1840_v5 = vld [vmem:[#allocation2 + $0x3470] sm:$0xff]  ;;  %3794 = vmatpush.msrb.mxu1 %v1776_v4 }
 0x52c   :  { %v1908_v6 = vld [vmem:[#allocation2 + $0x3690] sm:$0xff]  ;;  %3814 = vmatpush.msrb.mxu2 %v1840_v5  ;;  %v181_v5 = vld [vmem:[#allocation2 + $0x98] sm:$0xff] }
 0x52d   :  { %v1708_v7 = vld [vmem:[#allocation2 + $0x3050] sm:$0xff]  ;;  %3833 = vmatpush.msrb.mxu3 %v1908_v6  ;;  %v249_v6 = vld [vmem:[#allocation2 + $0x2b8] sm:$0xff] }
 0x52e   :  { %v1772_v8 = vld [vmem:[#allocation2 + $0x3250] sm:$0xff]  ;;  %3775 = vmatpush.msrb.mxu0 %v1708_v7 }
 0x52f   :  { %v1836_v9 = vld [vmem:[#allocation2 + $0x3450] sm:$0xff]  ;;  %3795 = vmatpush.msrb.mxu1 %v1772_v8 }
 0x530   :  { %v1904_v10 = vld [vmem:[#allocation2 + $0x3670] sm:$0xff]  ;;  %3815 = vmatpush.msrb.mxu2 %v1836_v9  ;;  %v177_v9 = vld [vmem:[#allocation2 + $0x78] sm:$0xff] }
 0x531   :  { %v1704_v11 = vld [vmem:[#allocation2 + $0x3030] sm:$0xff]  ;;  %3834 = vmatpush.msrb.mxu3 %v1904_v10  ;;  %v245_v10 = vld [vmem:[#allocation2 + $0x298] sm:$0xff] }
 0x532   :  { %v1768_v12 = vld [vmem:[#allocation2 + $0x3230] sm:$0xff]  ;;  %3776 = vmatpush.msrb.mxu0 %v1704_v11 }
 0x533   :  { %v1832_v13 = vld [vmem:[#allocation2 + $0x3430] sm:$0xff]  ;;  %3796 = vmatpush.msrb.mxu1 %v1768_v12 }
 0x534   :  { %v1900_v14 = vld [vmem:[#allocation2 + $0x3650] sm:$0xff]  ;;  %3816 = vmatpush.msrb.mxu2 %v1832_v13  ;;  %v173_v13 = vld [vmem:[#allocation2 + $0x58] sm:$0xff] }
 0x535   :  { %v1700_v15 = vld [vmem:[#allocation2 + $0x3010] sm:$0xff]  ;;  %3835 = vmatpush.msrb.mxu3 %v1900_v14  ;;  %v241_v14 = vld [vmem:[#allocation2 + $0x278] sm:$0xff] }
 0x536   :  { %v1764_v16 = vld [vmem:[#allocation2 + $0x3210] sm:$0xff]  ;;  %3777 = vmatpush.msrb.mxu0 %v1700_v15 }
 0x537   :  { %v1828_v17 = vld [vmem:[#allocation2 + $0x3410] sm:$0xff]  ;;  %3797 = vmatpush.msrb.mxu1 %v1764_v16  ;;  %3778 = vmatmul.f32.vlgmr.msrb.gmra.mxu0 %v4793_v23  ;;  %v417_v23 = vld [vmem:[#allocation2 + $0x7f8] sm:$0xff] }
 0x538   :  { %v1896_v18 = vld [vmem:[#allocation2 + $0x3630] sm:$0xff]  ;;  %3817 = vmatpush.msrb.mxu2 %v1828_v17  ;;  %3798 = vmatmul.f32.vlgmr.msrb.gmra.mxu1 %v4795_v29  ;;  %v169_v17 = vld [vmem:[#allocation2 + $0x38] sm:$0xff] }
 0x539   :  { %v2016_v19 = vld [vmem:[#allocation2 + $0x39f0] sm:$0xff]  ;;  %3836 = vmatpush.msrb.mxu3 %v1896_v18  ;;  %v237_v18 = vld [vmem:[#allocation2 + $0x258] sm:$0xff] }
 0x53a   :  { %v2080_v20 = vld [vmem:[#allocation2 + $0x3bf0] sm:$0xff]  ;;  %3842 = vmatpush.msra.mxu0 %v2016_v19  ;;  %3882 = vmatpush.msra.mxu2 %v225_v21  ;;  %v165_v21 = vld [vmem:[#allocation2 + $0x18] sm:$0xff] }
 0x53b   :  { %v1892_v22 = vld [vmem:[#allocation2 + $0x3610] sm:$0xff]  ;;  %3862 = vmatpush.msra.mxu1 %v2080_v20  ;;  %v413_v29 = vld [vmem:[#allocation2 + $0x7d8] sm:$0xff] }
 0x53c   :  { %v4794_v24 = vld [vmem:[%s5625_s0 + $0xd0] sm:$0xff]  ;;  %3837 = vmatpush.msrb.mxu3 %v1892_v22  ;;  %3883 = vmatpush.msra.mxu2 %v221_v27  ;;  %v233_v22 = vld [vmem:[#allocation2 + $0x238] sm:$0xff]  ;;  %v4797_v27 = vld [vmem:[%s5625_s0 + $0xe0] sm:$0xff] }
 0x53d   :  { %3818 = vmatmul.f32.vlgmr.msrb.gmra.mxu2 %v4794_v24  ;;  %v2012_v25 = vld [vmem:[#allocation2 + $0x39d0] sm:$0xff]  ;;  %3838 = vmatmul.f32.vlgmr.msrb.gmra.mxu3 %v4796_v30  ;;  %v353_v24 = vld [vmem:[#allocation2 + $0x5f8] sm:$0xff] }
 0x53e   :  { %v2076_v26 = vld [vmem:[#allocation2 + $0x3bd0] sm:$0xff]  ;;  %3843 = vmatpush.msra.mxu0 %v2012_v25  ;;  %3902 = vmatpush.msra.mxu3 %v289_v28  ;;  %v481_v25 = vld [vmem:[#allocation2 + $0x9f8] sm:$0xff] }
 0x53f   :  { %v2008_v31 = vld [vmem:[#allocation2 + $0x39b0] sm:$0xff]  ;;  %3863 = vmatpush.msra.mxu1 %v2076_v26  ;;  %3884 = vmatpush.msra.mxu2 %v217_v33  ;;  %v229_v26 = vld [vmem:[#allocation2 + $0x218] sm:$0xff] }
 0x540   :  { %v2072_v32 = vld [vmem:[#allocation2 + $0x3bb0] sm:$0xff]  ;;  %3844 = vmatpush.msra.mxu0 %v2008_v31  ;;  %3903 = vmatpush.msra.mxu3 %v285_v34  ;;  %v349_v28 = vld [vmem:[#allocation2 + $0x5d8] sm:$0xff] }
 0x541   :  { %v2004_v35 = vld [vmem:[#allocation2 + $0x3990] sm:$0xff]  ;;  %3864 = vmatpush.msra.mxu1 %v2072_v32  ;;  %3885 = vmatpush.msra.mxu2 %v213_v37  ;;  %v477_v30 = vld [vmem:[#allocation2 + $0x9d8] sm:$0xff]  ;;  %v4798_v32 = vld [vmem:[%s5625_s0 + $0xe8] sm:$0xff] }
 0x542   :  { %v2068_v36 = vld [vmem:[#allocation2 + $0x3b90] sm:$0xff]  ;;  %3845 = vmatpush.msra.mxu0 %v2004_v35  ;;  %3904 = vmatpush.msra.mxu3 %v281_v38  ;;  %v545_v31 = vld [vmem:[#allocation2 + $0xbf8] sm:$0xff] }
 0x543   :  { %v2000_v39 = vld [vmem:[#allocation2 + $0x3970] sm:$0xff]  ;;  %3865 = vmatpush.msra.mxu1 %v2068_v36  ;;  %3886 = vmatpush.msra.mxu2 %v209_v41  ;;  %v345_v33 = vld [vmem:[#allocation2 + $0x5b8] sm:$0xff] }
 0x544   :  { %v2064_v40 = vld [vmem:[#allocation2 + $0x3b70] sm:$0xff]  ;;  %3846 = vmatpush.msra.mxu0 %v2000_v39  ;;  %3905 = vmatpush.msra.mxu3 %v277_v42  ;;  %v409_v34 = vld [vmem:[#allocation2 + $0x7b8] sm:$0xff] }
 0x545   :  { %v1996_v43 = vld [vmem:[#allocation2 + $0x3950] sm:$0xff]  ;;  %3866 = vmatpush.msra.mxu1 %v2064_v40  ;;  %3887 = vmatpush.msra.mxu2 %v205_v45  ;;  %v473_v35 = vld [vmem:[#allocation2 + $0x9b8] sm:$0xff] }
 0x546   :  { %v2060_v44 = vld [vmem:[#allocation2 + $0x3b50] sm:$0xff]  ;;  %3847 = vmatpush.msra.mxu0 %v1996_v43  ;;  %3906 = vmatpush.msra.mxu3 %v273_v46  ;;  %v541_v36 = vld [vmem:[#allocation2 + $0xbd8] sm:$0xff] }
 0x547   :  { %v1992_v47 = vld [vmem:[#allocation2 + $0x3930] sm:$0xff]  ;;  %3867 = vmatpush.msra.mxu1 %v2060_v44  ;;  %3888 = vmatpush.msra.mxu2 %v201_v49  ;;  %v341_v37 = vld [vmem:[#allocation2 + $0x598] sm:$0xff] }
 0x548   :  { %v2056_v48 = vld [vmem:[#allocation2 + $0x3b30] sm:$0xff]  ;;  %3848 = vmatpush.msra.mxu0 %v1992_v47  ;;  %3907 = vmatpush.msra.mxu3 %v269_v50  ;;  %v405_v38 = vld [vmem:[#allocation2 + $0x798] sm:$0xff] }
 0x549   :  { %v1988_v51 = vld [vmem:[#allocation2 + $0x3910] sm:$0xff]  ;;  %3868 = vmatpush.msra.mxu1 %v2056_v48  ;;  %3889 = vmatpush.msra.mxu2 %v197_v53  ;;  %v469_v39 = vld [vmem:[#allocation2 + $0x998] sm:$0xff] }
 0x54a   :  { %v2052_v52 = vld [vmem:[#allocation2 + $0x3b10] sm:$0xff]  ;;  %3849 = vmatpush.msra.mxu0 %v1988_v51  ;;  %3908 = vmatpush.msra.mxu3 %v265_v54  ;;  %v537_v40 = vld [vmem:[#allocation2 + $0xbb8] sm:$0xff] }
 0x54b   :  { %v1984_v55 = vld [vmem:[#allocation2 + $0x38f0] sm:$0xff]  ;;  %3869 = vmatpush.msra.mxu1 %v2052_v52  ;;  %3890 = vmatpush.msra.mxu2 %v193_v57  ;;  %v337_v41 = vld [vmem:[#allocation2 + $0x578] sm:$0xff] }
 0x54c   :  { %v2048_v56 = vld [vmem:[#allocation2 + $0x3af0] sm:$0xff]  ;;  %3850 = vmatpush.msra.mxu0 %v1984_v55  ;;  %3909 = vmatpush.msra.mxu3 %v261_v58  ;;  %v401_v42 = vld [vmem:[#allocation2 + $0x778] sm:$0xff] }
 0x54d   :  { %v1980_v59 = vld [vmem:[#allocation2 + $0x38d0] sm:$0xff]  ;;  %3870 = vmatpush.msra.mxu1 %v2048_v56  ;;  %3891 = vmatpush.msra.mxu2 %v189_v61  ;;  %v465_v43 = vld [vmem:[#allocation2 + $0x978] sm:$0xff] }
 0x54e   :  { %v2044_v60 = vld [vmem:[#allocation2 + $0x3ad0] sm:$0xff]  ;;  %3851 = vmatpush.msra.mxu0 %v1980_v59  ;;  %3910 = vmatpush.msra.mxu3 %v257_v62  ;;  %v533_v44 = vld [vmem:[#allocation2 + $0xb98] sm:$0xff] }
 0x54f   :  { %v1976_v63 = vld [vmem:[#allocation2 + $0x38b0] sm:$0xff]  ;;  %3871 = vmatpush.msra.mxu1 %v2044_v60  ;;  %3892 = vmatpush.msra.mxu2 %v185_v1  ;;  %v333_v45 = vld [vmem:[#allocation2 + $0x558] sm:$0xff] }
 0x550   :  { %v2040_v0 = vld [vmem:[#allocation2 + $0x3ab0] sm:$0xff]  ;;  %3852 = vmatpush.msra.mxu0 %v1976_v63  ;;  %3911 = vmatpush.msra.mxu3 %v253_v2  ;;  %v397_v46 = vld [vmem:[#allocation2 + $0x758] sm:$0xff] }
 0x551   :  { %v1972_v3 = vld [vmem:[#allocation2 + $0x3890] sm:$0xff]  ;;  %3872 = vmatpush.msra.mxu1 %v2040_v0  ;;  %3893 = vmatpush.msra.mxu2 %v181_v5  ;;  %v461_v47 = vld [vmem:[#allocation2 + $0x958] sm:$0xff] }
 0x552   :  { %v2036_v4 = vld [vmem:[#allocation2 + $0x3a90] sm:$0xff]  ;;  %3853 = vmatpush.msra.mxu0 %v1972_v3  ;;  %3912 = vmatpush.msra.mxu3 %v249_v6  ;;  %v529_v48 = vld [vmem:[#allocation2 + $0xb78] sm:$0xff] }
 0x553   :  { %v1968_v7 = vld [vmem:[#allocation2 + $0x3870] sm:$0xff]  ;;  %3873 = vmatpush.msra.mxu1 %v2036_v4  ;;  %3894 = vmatpush.msra.mxu2 %v177_v9  ;;  %v329_v49 = vld [vmem:[#allocation2 + $0x538] sm:$0xff] }
 0x554   :  { %v2032_v8 = vld [vmem:[#allocation2 + $0x3a70] sm:$0xff]  ;;  %3854 = vmatpush.msra.mxu0 %v1968_v7  ;;  %3913 = vmatpush.msra.mxu3 %v245_v10  ;;  %v393_v50 = vld [vmem:[#allocation2 + $0x738] sm:$0xff] }
 0x555   :  { %v1964_v11 = vld [vmem:[#allocation2 + $0x3850] sm:$0xff]  ;;  %3874 = vmatpush.msra.mxu1 %v2032_v8  ;;  %3895 = vmatpush.msra.mxu2 %v173_v13  ;;  %v457_v51 = vld [vmem:[#allocation2 + $0x938] sm:$0xff] }
 0x556   :  { %v2028_v12 = vld [vmem:[#allocation2 + $0x3a50] sm:$0xff]  ;;  %3855 = vmatpush.msra.mxu0 %v1964_v11  ;;  %3914 = vmatpush.msra.mxu3 %v241_v14  ;;  %v525_v52 = vld [vmem:[#allocation2 + $0xb58] sm:$0xff] }
 0x557   :  { %v1960_v15 = vld [vmem:[#allocation2 + $0x3830] sm:$0xff]  ;;  %3875 = vmatpush.msra.mxu1 %v2028_v12  ;;  %3896 = vmatpush.msra.mxu2 %v169_v17  ;;  %v325_v53 = vld [vmem:[#allocation2 + $0x518] sm:$0xff] }
 0x558   :  { %v2024_v16 = vld [vmem:[#allocation2 + $0x3a30] sm:$0xff]  ;;  %3856 = vmatpush.msra.mxu0 %v1960_v15  ;;  %3915 = vmatpush.msra.mxu3 %v237_v18  ;;  %v389_v54 = vld [vmem:[#allocation2 + $0x718] sm:$0xff] }
 0x559   :  { %v1956_v19 = vld [vmem:[#allocation2 + $0x3810] sm:$0xff]  ;;  %3876 = vmatpush.msra.mxu1 %v2024_v16  ;;  %3897 = vmatpush.msra.mxu2 %v165_v21  ;;  %v453_v55 = vld [vmem:[#allocation2 + $0x918] sm:$0xff] }
 0x55a   :  { %v2020_v20 = vld [vmem:[#allocation2 + $0x3a10] sm:$0xff]  ;;  %3857 = vmatpush.msra.mxu0 %v1956_v19  ;;  %3916 = vmatpush.msra.mxu3 %v233_v22  ;;  %v521_v56 = vld [vmem:[#allocation2 + $0xb38] sm:$0xff] }
 0x55b   :  { %3877 = vmatpush.msra.mxu1 %v2020_v20  ;;  %3858 = vmatmul.f32.vlgmr.msra.gmra.mxu0 %v4797_v27  ;;  %v321_v57 = vld [vmem:[#allocation2 + $0x4f8] sm:$0xff] }
 0x55c   :  { %3922 = vmatpush.msrb.mxu0 %v353_v24  ;;  %3962 = vmatpush.msrb.mxu2 %v481_v25  ;;  %v385_v58 = vld [vmem:[#allocation2 + $0x6f8] sm:$0xff] }
 0x55d   :  { %3942 = vmatpush.msrb.mxu1 %v417_v23  ;;  %3917 = vmatpush.msra.mxu3 %v229_v26  ;;  %v449_v59 = vld [vmem:[#allocation2 + $0x8f8] sm:$0xff]  ;;  %v4799_v26 = vld [vmem:[%s5625_s0] sm:$0xff] }
 0x55e   :  { %3878 = vmatmul.f32.vlgmr.msra.gmra.mxu1 %v4798_v32  ;;  %3923 = vmatpush.msrb.mxu0 %v349_v28  ;;  %v517_v60 = vld [vmem:[#allocation2 + $0xb18] sm:$0xff]  ;;  %v4800_v32 = vld [vmem:[%s5625_s0 + $0x8] sm:$0xff] }
 0x55f   :  { %3943 = vmatpush.msrb.mxu1 %v413_v29  ;;  %3963 = vmatpush.msrb.mxu2 %v477_v30  ;;  %v317_v61 = vld [vmem:[#allocation2 + $0x4d8] sm:$0xff] }
 0x560   :  { %3982 = vmatpush.msrb.mxu3 %v545_v31  ;;  %3924 = vmatpush.msrb.mxu0 %v345_v33  ;;  %v381_v62 = vld [vmem:[#allocation2 + $0x6d8] sm:$0xff] }
 0x561   :  { %3944 = vmatpush.msrb.mxu1 %v409_v34  ;;  %3964 = vmatpush.msrb.mxu2 %v473_v35  ;;  %v445_v63 = vld [vmem:[#allocation2 + $0x8d8] sm:$0xff] }
 0x562   :  { %3983 = vmatpush.msrb.mxu3 %v541_v36  ;;  %3925 = vmatpush.msrb.mxu0 %v341_v37  ;;  %v513_v0 = vld [vmem:[#allocation2 + $0xaf8] sm:$0xff] }
 0x563   :  { %3945 = vmatpush.msrb.mxu1 %v405_v38  ;;  %3965 = vmatpush.msrb.mxu2 %v469_v39  ;;  %v313_v1 = vld [vmem:[#allocation2 + $0x4b8] sm:$0xff] }
 0x564   :  { %3984 = vmatpush.msrb.mxu3 %v537_v40  ;;  %3926 = vmatpush.msrb.mxu0 %v337_v41  ;;  %v377_v2 = vld [vmem:[#allocation2 + $0x6b8] sm:$0xff] }
 0x565   :  { %3946 = vmatpush.msrb.mxu1 %v401_v42  ;;  %3966 = vmatpush.msrb.mxu2 %v465_v43  ;;  %v441_v3 = vld [vmem:[#allocation2 + $0x8b8] sm:$0xff]  ;;  %v4801_v43 = vld [vmem:[%s5625_s0 + $0x20] sm:$0xff] }
 0x566   :  { %3985 = vmatpush.msrb.mxu3 %v533_v44  ;;  %3927 = vmatpush.msrb.mxu0 %v333_v45  ;;  %v509_v4 = vld [vmem:[#allocation2 + $0xad8] sm:$0xff] }
 0x567   :  { %3947 = vmatpush.msrb.mxu1 %v397_v46  ;;  %3967 = vmatpush.msrb.mxu2 %v461_v47  ;;  %v309_v5 = vld [vmem:[#allocation2 + $0x498] sm:$0xff]  ;;  %v4802_v47 = vld [vmem:[%s5625_s0 + $0x10] sm:$0xff] }
 0x568   :  { %3986 = vmatpush.msrb.mxu3 %v529_v48  ;;  %3928 = vmatpush.msrb.mxu0 %v329_v49  ;;  %v373_v6 = vld [vmem:[#allocation2 + $0x698] sm:$0xff]  ;;  %v4803_v49 = vld [vmem:[%s5625_s0 + $0x28] sm:$0xff] }
 0x569   :  { %3948 = vmatpush.msrb.mxu1 %v393_v50  ;;  %3968 = vmatpush.msrb.mxu2 %v457_v51  ;;  %v437_v7 = vld [vmem:[#allocation2 + $0x898] sm:$0xff] }
 0x56a   :  { %3987 = vmatpush.msrb.mxu3 %v525_v52  ;;  %3929 = vmatpush.msrb.mxu0 %v325_v53  ;;  %v505_v8 = vld [vmem:[#allocation2 + $0xab8] sm:$0xff] }
 0x56b   :  { %3949 = vmatpush.msrb.mxu1 %v389_v54  ;;  %3969 = vmatpush.msrb.mxu2 %v453_v55  ;;  %v305_v9 = vld [vmem:[#allocation2 + $0x478] sm:$0xff] }
 0x56c   :  { %3988 = vmatpush.msrb.mxu3 %v521_v56  ;;  %3930 = vmatpush.msrb.mxu0 %v321_v57  ;;  %v369_v10 = vld [vmem:[#allocation2 + $0x678] sm:$0xff] }
 0x56d   :  { %3950 = vmatpush.msrb.mxu1 %v385_v58  ;;  %3970 = vmatpush.msrb.mxu2 %v449_v59  ;;  %v433_v11 = vld [vmem:[#allocation2 + $0x878] sm:$0xff] }
 0x56e   :  { %3989 = vmatpush.msrb.mxu3 %v517_v60  ;;  %3931 = vmatpush.msrb.mxu0 %v317_v61  ;;  %v501_v12 = vld [vmem:[#allocation2 + $0xa98] sm:$0xff] }
 0x56f   :  { %3951 = vmatpush.msrb.mxu1 %v381_v62  ;;  %3971 = vmatpush.msrb.mxu2 %v445_v63  ;;  %v301_v13 = vld [vmem:[#allocation2 + $0x458] sm:$0xff] }
 0x570   :  { %3990 = vmatpush.msrb.mxu3 %v513_v0  ;;  %3932 = vmatpush.msrb.mxu0 %v313_v1  ;;  %v365_v14 = vld [vmem:[#allocation2 + $0x658] sm:$0xff] }
 0x571   :  { %3952 = vmatpush.msrb.mxu1 %v377_v2  ;;  %3972 = vmatpush.msrb.mxu2 %v441_v3  ;;  %v429_v15 = vld [vmem:[#allocation2 + $0x858] sm:$0xff]  ;;  %v5370_v3 = vpop.f32.mrf.mxu1 }
 0x572   :  { %3991 = vmatpush.msrb.mxu3 %v509_v4  ;;  %3933 = vmatpush.msrb.mxu0 %v309_v5  ;;  %v497_v16 = vld [vmem:[#allocation2 + $0xa78] sm:$0xff] }
 0x573   :  { %3953 = vmatpush.msrb.mxu1 %v373_v6  ;;  %3973 = vmatpush.msrb.mxu2 %v437_v7  ;;  %v297_v17 = vld [vmem:[#allocation2 + $0x438] sm:$0xff] }
 0x574   :  { %3992 = vmatpush.msrb.mxu3 %v505_v8  ;;  %3934 = vmatpush.msrb.mxu0 %v305_v9  ;;  %v361_v18 = vld [vmem:[#allocation2 + $0x638] sm:$0xff]  ;;  %v5372_v8 = vpop.f32.mrf.mxu0  ;;  %v5374_v9 = vpop.f32.mrf.mxu2 }
 0x575   :  { %3954 = vmatpush.msrb.mxu1 %v369_v10  ;;  %3974 = vmatpush.msrb.mxu2 %v433_v11  ;;  %v425_v19 = vld [vmem:[#allocation2 + $0x838] sm:$0xff] }
 0x576   :  { %3993 = vmatpush.msrb.mxu3 %v501_v12  ;;  %3935 = vmatpush.msrb.mxu0 %v301_v13  ;;  %v493_v20 = vld [vmem:[#allocation2 + $0xa58] sm:$0xff] }
 0x577   :  { %3955 = vmatpush.msrb.mxu1 %v365_v14  ;;  %3975 = vmatpush.msrb.mxu2 %v429_v15  ;;  %v293_v21 = vld [vmem:[#allocation2 + $0x418] sm:$0xff] }
 0x578   :  { %3994 = vmatpush.msrb.mxu3 %v497_v16  ;;  %3936 = vmatpush.msrb.mxu0 %v297_v17  ;;  %v357_v22 = vld [vmem:[#allocation2 + $0x618] sm:$0xff] }
 0x579   :  { %3956 = vmatpush.msrb.mxu1 %v361_v18  ;;  %v421_v23 = vld [vmem:[#allocation2 + $0x818] sm:$0xff]  ;;  %3976 = vmatpush.msrb.mxu2 %v425_v19  ;;  %v5376_v18 = vpop.f32.mrf.mxu3 }
 0x57a   :  { %3995 = vmatpush.msrb.mxu3 %v493_v20  ;;  %v489_v24 = vld [vmem:[#allocation2 + $0xa38] sm:$0xff]  ;;  %3898 = vmatmul.f32.vlgmr.msra.gmra.mxu2 %v4799_v26 }
 0x57b   :  { %v609_v25 = vld [vmem:[#allocation2 + $0xdf8] sm:$0xff]  ;;  %3937 = vmatpush.msrb.mxu0 %v293_v21  ;;  %3957 = vmatpush.msrb.mxu1 %v357_v22 }
 0x57c   :  { %v673_v27 = vld [vmem:[#allocation2 + $0xff8] sm:$0xff]  ;;  %3977 = vmatpush.msrb.mxu2 %v421_v23  ;;  %3996 = vmatpush.msrb.mxu3 %v489_v24 }
 0x57d   :  { %v737_v28 = vld [vmem:[#allocation2 + $0x11f8] sm:$0xff]  ;;  %4002 = vmatpush.msra.mxu0 %v609_v25  ;;  %3918 = vmatmul.f32.vlgmr.msra.gmra.mxu3 %v4800_v32  ;;  %v5380_v32 = vpop.f32.mrf.mxu0 }
 0x57e   :  { %v485_v29 = vld [vmem:[#allocation2 + $0xa18] sm:$0xff]  ;;  %4022 = vmatpush.msra.mxu1 %v673_v27  ;;  %4042 = vmatpush.msra.mxu2 %v737_v28  ;;  %v5378_v27 = vpop.f32.mrf.mxu1 }
 0x57f   :  { %v605_v30 = vld [vmem:[#allocation2 + $0xdd8] sm:$0xff]  ;;  %3997 = vmatpush.msrb.mxu3 %v485_v29  ;;  %3938 = vmatmul.f32.vlgmr.msrb.gmra.mxu0 %v4802_v47 }
 0x580   :  { %v669_v31 = vld [vmem:[#allocation2 + $0xfd8] sm:$0xff]  ;;  %4003 = vmatpush.msra.mxu0 %v605_v30 }
 0x581   :  { %v733_v33 = vld [vmem:[#allocation2 + $0x11d8] sm:$0xff]  ;;  %4023 = vmatpush.msra.mxu1 %v669_v31 }
 0x582   :  { %v801_v34 = vld [vmem:[#allocation2 + $0x13f8] sm:$0xff]  ;;  %4043 = vmatpush.msra.mxu2 %v733_v33  ;;  %v5382_v33 = vpop.f32.mrf.mxu2 }
 0x583   :  { %v601_v35 = vld [vmem:[#allocation2 + $0xdb8] sm:$0xff]  ;;  %4062 = vmatpush.msra.mxu3 %v801_v34  ;;  %3978 = vmatmul.f32.vlgmr.msrb.gmra.mxu2 %v4801_v43  ;;  %v4805_v43 = vld [vmem:[%s5625_s0 + $0x30] sm:$0xff] }
 0x584   :  { %v665_v36 = vld [vmem:[#allocation2 + $0xfb8] sm:$0xff]  ;;  %4004 = vmatpush.msra.mxu0 %v601_v35 }
 0x585   :  { %v729_v37 = vld [vmem:[#allocation2 + $0x11b8] sm:$0xff]  ;;  %4024 = vmatpush.msra.mxu1 %v665_v36  ;;  %3998 = vmatmul.f32.vlgmr.msrb.gmra.mxu3 %v4803_v49 }
 0x586   :  { %v797_v38 = vld [vmem:[#allocation2 + $0x13d8] sm:$0xff]  ;;  %4044 = vmatpush.msra.mxu2 %v729_v37 }
 0x587   :  { %v597_v39 = vld [vmem:[#allocation2 + $0xd98] sm:$0xff]  ;;  %4063 = vmatpush.msra.mxu3 %v797_v38 }
 0x588   :  { %v661_v40 = vld [vmem:[#allocation2 + $0xf98] sm:$0xff]  ;;  %4005 = vmatpush.msra.mxu0 %v597_v39 }
 0x589   :  { %v725_v41 = vld [vmem:[#allocation2 + $0x1198] sm:$0xff]  ;;  %4025 = vmatpush.msra.mxu1 %v661_v40  ;;  %v5384_v40 = vpop.f32.mrf.mxu3 }
 0x58a   :  { %v793_v42 = vld [vmem:[#allocation2 + $0x13b8] sm:$0xff]  ;;  %4045 = vmatpush.msra.mxu2 %v725_v41 }
 0x58b   :  { %v593_v44 = vld [vmem:[#allocation2 + $0xd78] sm:$0xff]  ;;  %4064 = vmatpush.msra.mxu3 %v793_v42 }
 0x58c   :  { %v657_v45 = vld [vmem:[#allocation2 + $0xf78] sm:$0xff]  ;;  %4006 = vmatpush.msra.mxu0 %v593_v44  ;;  %v4806_v44 = vld [vmem:[%s5625_s0 + $0x40] sm:$0xff] }
 0x58d   :  { %v721_v46 = vld [vmem:[#allocation2 + $0x1178] sm:$0xff]  ;;  %4026 = vmatpush.msra.mxu1 %v657_v45  ;;  %v5392_v45 = vpop.f32.mrf.mxu1 }
 0x58e   :  { %v789_v48 = vld [vmem:[#allocation2 + $0x1398] sm:$0xff]  ;;  %4046 = vmatpush.msra.mxu2 %v721_v46 }
 0x58f   :  { %v589_v50 = vld [vmem:[#allocation2 + $0xd58] sm:$0xff]  ;;  %4065 = vmatpush.msra.mxu3 %v789_v48 }
 0x590   :  { %v653_v51 = vld [vmem:[#allocation2 + $0xf58] sm:$0xff]  ;;  %4007 = vmatpush.msra.mxu0 %v589_v50  ;;  %v5394_v50 = vpop.f32.mrf.mxu0 }
 0x591   :  { %v717_v52 = vld [vmem:[#allocation2 + $0x1158] sm:$0xff]  ;;  %4027 = vmatpush.msra.mxu1 %v653_v51  ;;  %v5396_v51 = vpop.f32.mrf.mxu2 }
 0x592   :  { %v785_v53 = vld [vmem:[#allocation2 + $0x1378] sm:$0xff]  ;;  %4047 = vmatpush.msra.mxu2 %v717_v52 }
 0x593   :  { %v4804_v54 = vld [vmem:[%s5625_s0 + $0x18] sm:$0xff]  ;;  %4066 = vmatpush.msra.mxu3 %v785_v53  ;;  %v4808_v53 = vld [vmem:[%s5625_s0 + $0x48] sm:$0xff] }
 0x594   :  { %3958 = vmatmul.f32.vlgmr.msrb.gmra.mxu1 %v4804_v54  ;;  %v585_v55 = vld [vmem:[#allocation2 + $0xd38] sm:$0xff] }
 0x595   :  { %v649_v56 = vld [vmem:[#allocation2 + $0xf38] sm:$0xff]  ;;  %4008 = vmatpush.msra.mxu0 %v585_v55 }
 0x596   :  { %v713_v57 = vld [vmem:[#allocation2 + $0x1138] sm:$0xff]  ;;  %4028 = vmatpush.msra.mxu1 %v649_v56 }
 0x597   :  { %v781_v58 = vld [vmem:[#allocation2 + $0x1358] sm:$0xff]  ;;  %4048 = vmatpush.msra.mxu2 %v713_v57 }
 0x598   :  { %v581_v59 = vld [vmem:[#allocation2 + $0xd18] sm:$0xff]  ;;  %4067 = vmatpush.msra.mxu3 %v781_v58 }
 0x599   :  { %v645_v60 = vld [vmem:[#allocation2 + $0xf18] sm:$0xff]  ;;  %4009 = vmatpush.msra.mxu0 %v581_v59 }
 0x59a   :  { %v709_v61 = vld [vmem:[#allocation2 + $0x1118] sm:$0xff]  ;;  %4029 = vmatpush.msra.mxu1 %v645_v60 }
 0x59b   :  { %v777_v62 = vld [vmem:[#allocation2 + $0x1338] sm:$0xff]  ;;  %4049 = vmatpush.msra.mxu2 %v709_v61 }
 0x59c   :  { %v577_v63 = vld [vmem:[#allocation2 + $0xcf8] sm:$0xff]  ;;  %4068 = vmatpush.msra.mxu3 %v777_v62  ;;  %v5404_v62 = vpop.f32.mrf.mxu3 }
 0x59d   :  { %v641_v0 = vld [vmem:[#allocation2 + $0xef8] sm:$0xff]  ;;  %4010 = vmatpush.msra.mxu0 %v577_v63 }
 0x59e   :  { %v705_v1 = vld [vmem:[#allocation2 + $0x10f8] sm:$0xff]  ;;  %4030 = vmatpush.msra.mxu1 %v641_v0 }
 0x59f   :  { %v773_v2 = vld [vmem:[#allocation2 + $0x1318] sm:$0xff]  ;;  %4050 = vmatpush.msra.mxu2 %v705_v1 }
 0x5a0   :  { %v573_v4 = vld [vmem:[#allocation2 + $0xcd8] sm:$0xff]  ;;  %4069 = vmatpush.msra.mxu3 %v773_v2 }
 0x5a1   :  { %v637_v5 = vld [vmem:[#allocation2 + $0xed8] sm:$0xff]  ;;  %4011 = vmatpush.msra.mxu0 %v573_v4  ;;  %v5406_v4 = vpop.f32.mrf.mxu1 }
 0x5a2   :  { %v701_v6 = vld [vmem:[#allocation2 + $0x10d8] sm:$0xff]  ;;  %4031 = vmatpush.msra.mxu1 %v637_v5 }
 0x5a3   :  { %v769_v7 = vld [vmem:[#allocation2 + $0x12f8] sm:$0xff]  ;;  %4051 = vmatpush.msra.mxu2 %v701_v6 }
 0x5a4   :  { %v569_v10 = vld [vmem:[#allocation2 + $0xcb8] sm:$0xff]  ;;  %4070 = vmatpush.msra.mxu3 %v769_v7 }
 0x5a5   :  { %v633_v11 = vld [vmem:[#allocation2 + $0xeb8] sm:$0xff]  ;;  %4012 = vmatpush.msra.mxu0 %v569_v10 }
 0x5a6   :  { %v697_v12 = vld [vmem:[#allocation2 + $0x10b8] sm:$0xff]  ;;  %4032 = vmatpush.msra.mxu1 %v633_v11  ;;  %v5408_v11 = vpop.f32.mrf.mxu0 }
 0x5a7   :  { %v765_v13 = vld [vmem:[#allocation2 + $0x12d8] sm:$0xff]  ;;  %4052 = vmatpush.msra.mxu2 %v697_v12  ;;  %v5410_v12 = vpop.f32.mrf.mxu2 }
 0x5a8   :  { %v565_v14 = vld [vmem:[#allocation2 + $0xc98] sm:$0xff]  ;;  %4071 = vmatpush.msra.mxu3 %v765_v13 }
 0x5a9   :  { %v629_v15 = vld [vmem:[#allocation2 + $0xe98] sm:$0xff]  ;;  %4013 = vmatpush.msra.mxu0 %v565_v14 }
 0x5aa   :  { %v693_v16 = vld [vmem:[#allocation2 + $0x1098] sm:$0xff]  ;;  %4033 = vmatpush.msra.mxu1 %v629_v15 }
 0x5ab   :  { %v761_v17 = vld [vmem:[#allocation2 + $0x12b8] sm:$0xff]  ;;  %4053 = vmatpush.msra.mxu2 %v693_v16 }
 0x5ac   :  { %v561_v19 = vld [vmem:[#allocation2 + $0xc78] sm:$0xff]  ;;  %4072 = vmatpush.msra.mxu3 %v761_v17 }
 0x5ad   :  { %v625_v20 = vld [vmem:[#allocation2 + $0xe78] sm:$0xff]  ;;  %4014 = vmatpush.msra.mxu0 %v561_v19 }
 0x5ae   :  { %v689_v21 = vld [vmem:[#allocation2 + $0x1078] sm:$0xff]  ;;  %4034 = vmatpush.msra.mxu1 %v625_v20 }
 0x5af   :  { %v757_v22 = vld [vmem:[#allocation2 + $0x1298] sm:$0xff]  ;;  %4054 = vmatpush.msra.mxu2 %v689_v21 }
 0x5b0   :  { %v557_v23 = vld [vmem:[#allocation2 + $0xc58] sm:$0xff]  ;;  %4073 = vmatpush.msra.mxu3 %v757_v22  ;;  %v5412_v22 = vpop.f32.mrf.mxu3 }
 0x5b1   :  { %v621_v24 = vld [vmem:[#allocation2 + $0xe58] sm:$0xff]  ;;  %4015 = vmatpush.msra.mxu0 %v557_v23 }
 0x5b2   :  { %v685_v25 = vld [vmem:[#allocation2 + $0x1058] sm:$0xff]  ;;  %4035 = vmatpush.msra.mxu1 %v621_v24 }
 0x5b3   :  { %v753_v26 = vld [vmem:[#allocation2 + $0x1278] sm:$0xff]  ;;  %4055 = vmatpush.msra.mxu2 %v685_v25 }
 0x5b4   :  { %v553_v28 = vld [vmem:[#allocation2 + $0xc38] sm:$0xff]  ;;  %4074 = vmatpush.msra.mxu3 %v753_v26 }
 0x5b5   :  { %v617_v29 = vld [vmem:[#allocation2 + $0xe38] sm:$0xff]  ;;  %4016 = vmatpush.msra.mxu0 %v553_v28  ;;  %v5414_v28 = vpop.f32.mrf.mxu1 }
 0x5b6   :  { %v681_v30 = vld [vmem:[#allocation2 + $0x1038] sm:$0xff]  ;;  %4036 = vmatpush.msra.mxu1 %v617_v29 }
 0x5b7   :  { %v749_v31 = vld [vmem:[#allocation2 + $0x1258] sm:$0xff]  ;;  %4056 = vmatpush.msra.mxu2 %v681_v30 }
 0x5b8   :  { %v549_v34 = vld [vmem:[#allocation2 + $0xc18] sm:$0xff]  ;;  %4075 = vmatpush.msra.mxu3 %v749_v31 }
 0x5b9   :  { %v613_v35 = vld [vmem:[#allocation2 + $0xe18] sm:$0xff]  ;;  %4017 = vmatpush.msra.mxu0 %v549_v34 }
 0x5ba   :  { %v677_v36 = vld [vmem:[#allocation2 + $0x1018] sm:$0xff]  ;;  %4037 = vmatpush.msra.mxu1 %v613_v35  ;;  %4018 = vmatmul.f32.vlgmr.msra.gmra.mxu0 %v4805_v43  ;;  %v5416_v35 = vpop.f32.mrf.mxu0 }
 0x5bb   :  { %v745_v37 = vld [vmem:[#allocation2 + $0x1238] sm:$0xff]  ;;  %4057 = vmatpush.msra.mxu2 %v677_v36  ;;  %v5418_v36 = vpop.f32.mrf.mxu2 }
 0x5bc   :  { %v865_v38 = vld [vmem:[#allocation2 + $0x15f8] sm:$0xff]  ;;  %4076 = vmatpush.msra.mxu3 %v745_v37  ;;  %4058 = vmatmul.f32.vlgmr.msra.gmra.mxu2 %v4806_v44 }
 0x5bd   :  { %v929_v39 = vld [vmem:[#allocation2 + $0x17f8] sm:$0xff]  ;;  %4082 = vmatpush.msrb.mxu0 %v865_v38 }
 0x5be   :  { %v993_v41 = vld [vmem:[#allocation2 + $0x19f8] sm:$0xff]  ;;  %4102 = vmatpush.msrb.mxu1 %v929_v39 }
 0x5bf   :  { %v741_v42 = vld [vmem:[#allocation2 + $0x1218] sm:$0xff]  ;;  %4122 = vmatpush.msrb.mxu2 %v993_v41 }
 0x5c0   :  { %v861_v46 = vld [vmem:[#allocation2 + $0x15d8] sm:$0xff]  ;;  %4077 = vmatpush.msra.mxu3 %v741_v42 }
 0x5c1   :  { %v925_v47 = vld [vmem:[#allocation2 + $0x17d8] sm:$0xff]  ;;  %4078 = vmatmul.f32.vlgmr.msra.gmra.mxu3 %v4808_v53  ;;  %4083 = vmatpush.msrb.mxu0 %v861_v46 }
 0x5c2   :  { %v989_v48 = vld [vmem:[#allocation2 + $0x19d8] sm:$0xff]  ;;  %4103 = vmatpush.msrb.mxu1 %v925_v47  ;;  %v5420_v47 = vpop.f32.mrf.mxu3 }
 0x5c3   :  { %v1057_v49 = vld [vmem:[#allocation2 + $0x1bf8] sm:$0xff]  ;;  %4123 = vmatpush.msrb.mxu2 %v989_v48 }
 0x5c4   :  { %v4807_v52 = vld [vmem:[%s5625_s0 + $0x38] sm:$0xff]  ;;  %4142 = vmatpush.msrb.mxu3 %v1057_v49 }
 0x5c5   :  { %4038 = vmatmul.f32.vlgmr.msra.gmra.mxu1 %v4807_v52  ;;  %v857_v54 = vld [vmem:[#allocation2 + $0x15b8] sm:$0xff] }
 0x5c6   :  { %v921_v55 = vld [vmem:[#allocation2 + $0x17b8] sm:$0xff]  ;;  %4084 = vmatpush.msrb.mxu0 %v857_v54  ;;  %v5422_v54 = vpop.f32.mrf.mxu1 }
 0x5c7   :  { %v985_v56 = vld [vmem:[#allocation2 + $0x19b8] sm:$0xff]  ;;  %4104 = vmatpush.msrb.mxu1 %v921_v55 }
 0x5c8   :  { %v1053_v57 = vld [vmem:[#allocation2 + $0x1bd8] sm:$0xff]  ;;  %4124 = vmatpush.msrb.mxu2 %v985_v56 }
 0x5c9   :  { %v853_v58 = vld [vmem:[#allocation2 + $0x1598] sm:$0xff]  ;;  %4143 = vmatpush.msrb.mxu3 %v1053_v57 }
 0x5ca   :  { %v917_v59 = vld [vmem:[#allocation2 + $0x1798] sm:$0xff]  ;;  %4085 = vmatpush.msrb.mxu0 %v853_v58 }
 0x5cb   :  { %v981_v60 = vld [vmem:[#allocation2 + $0x1998] sm:$0xff]  ;;  %4105 = vmatpush.msrb.mxu1 %v917_v59  ;;  %v5424_v59 = vpop.f32.mrf.mxu0 }
 0x5cc   :  { %v1049_v61 = vld [vmem:[#allocation2 + $0x1bb8] sm:$0xff]  ;;  %4125 = vmatpush.msrb.mxu2 %v981_v60  ;;  %v5426_v60 = vpop.f32.mrf.mxu2 }
 0x5cd   :  { %v849_v63 = vld [vmem:[#allocation2 + $0x1578] sm:$0xff]  ;;  %4144 = vmatpush.msrb.mxu3 %v1049_v61 }
 0x5ce   :  { %v913_v0 = vld [vmem:[#allocation2 + $0x1778] sm:$0xff]  ;;  %4086 = vmatpush.msrb.mxu0 %v849_v63 }
 0x5cf   :  { %v977_v1 = vld [vmem:[#allocation2 + $0x1978] sm:$0xff]  ;;  %4106 = vmatpush.msrb.mxu1 %v913_v0 }
 0x5d0   :  { %v1045_v2 = vld [vmem:[#allocation2 + $0x1b98] sm:$0xff]  ;;  %4126 = vmatpush.msrb.mxu2 %v977_v1 }
 0x5d1   :  { %v845_v5 = vld [vmem:[#allocation2 + $0x1558] sm:$0xff]  ;;  %4145 = vmatpush.msrb.mxu3 %v1045_v2 }
 0x5d2   :  { %v909_v6 = vld [vmem:[#allocation2 + $0x1758] sm:$0xff]  ;;  %4087 = vmatpush.msrb.mxu0 %v845_v5 }
 0x5d3   :  { %v973_v7 = vld [vmem:[#allocation2 + $0x1958] sm:$0xff]  ;;  %4107 = vmatpush.msrb.mxu1 %v909_v6 }
 0x5d4   :  { %v1041_v10 = vld [vmem:[#allocation2 + $0x1b78] sm:$0xff]  ;;  %4127 = vmatpush.msrb.mxu2 %v973_v7 }
 0x5d5   :  { %v841_v13 = vld [vmem:[#allocation2 + $0x1538] sm:$0xff]  ;;  %4146 = vmatpush.msrb.mxu3 %v1041_v10  ;;  %v5428_v10 = vpop.f32.mrf.mxu3 }
 0x5d6   :  { %v905_v14 = vld [vmem:[#allocation2 + $0x1738] sm:$0xff]  ;;  %4088 = vmatpush.msrb.mxu0 %v841_v13  ;;  %5634 = vst [vmem:[#allocation17_spill] sm:$0xff] %v5428_v10 }
 0x5d7   :  { %v969_v15 = vld [vmem:[#allocation2 + $0x1938] sm:$0xff]  ;;  %4108 = vmatpush.msrb.mxu1 %v905_v14 }
 0x5d8   :  { %v1037_v16 = vld [vmem:[#allocation2 + $0x1b58] sm:$0xff]  ;;  %4128 = vmatpush.msrb.mxu2 %v969_v15  ;;  %v5430_v15 = vpop.f32.mrf.mxu1 }
 0x5d9   :  { %v837_v17 = vld [vmem:[#allocation2 + $0x1518] sm:$0xff]  ;;  %4147 = vmatpush.msrb.mxu3 %v1037_v16  ;;  %5635 = vst [vmem:[#allocation18_spill] sm:$0xff] %v5430_v15 }
 0x5da   :  { %v901_v19 = vld [vmem:[#allocation2 + $0x1718] sm:$0xff]  ;;  %4089 = vmatpush.msrb.mxu0 %v837_v17 }
 0x5db   :  { %v965_v20 = vld [vmem:[#allocation2 + $0x1918] sm:$0xff]  ;;  %4109 = vmatpush.msrb.mxu1 %v901_v19  ;;  %v4809_v19 = vld [vmem:[%s5625_s0 + $0x50] sm:$0xff] }
 0x5dc   :  { %v1033_v21 = vld [vmem:[#allocation2 + $0x1b38] sm:$0xff]  ;;  %4129 = vmatpush.msrb.mxu2 %v965_v20  ;;  %v4810_v20 = vld [vmem:[%s5625_s0 + $0x60] sm:$0xff] }
 0x5dd   :  { %v833_v23 = vld [vmem:[#allocation2 + $0x14f8] sm:$0xff]  ;;  %4148 = vmatpush.msrb.mxu3 %v1033_v21  ;;  %v5438_v21 = vpop.f32.mrf.mxu0 }
 0x5de   :  { %v897_v24 = vld [vmem:[#allocation2 + $0x16f8] sm:$0xff]  ;;  %4090 = vmatpush.msrb.mxu0 %v833_v23  ;;  %5636 = vst [vmem:[#allocation19_spill] sm:$0xff] %v5438_v21  ;;  %v5440_v23 = vpop.f32.mrf.mxu2 }
 0x5df   :  { %v961_v25 = vld [vmem:[#allocation2 + $0x18f8] sm:$0xff]  ;;  %4110 = vmatpush.msrb.mxu1 %v897_v24  ;;  %5637 = vst [vmem:[#allocation20_spill] sm:$0xff] %v5440_v23 }
 0x5e0   :  { %v1029_v26 = vld [vmem:[#allocation2 + $0x1b18] sm:$0xff]  ;;  %4130 = vmatpush.msrb.mxu2 %v961_v25 }
 0x5e1   :  { %v829_v29 = vld [vmem:[#allocation2 + $0x14d8] sm:$0xff]  ;;  %4149 = vmatpush.msrb.mxu3 %v1029_v26 }
 0x5e2   :  { %v893_v30 = vld [vmem:[#allocation2 + $0x16d8] sm:$0xff]  ;;  %4091 = vmatpush.msrb.mxu0 %v829_v29 }
 0x5e3   :  { %v957_v31 = vld [vmem:[#allocation2 + $0x18d8] sm:$0xff]  ;;  %4111 = vmatpush.msrb.mxu1 %v893_v30 }
 0x5e4   :  { %v1025_v34 = vld [vmem:[#allocation2 + $0x1af8] sm:$0xff]  ;;  %4131 = vmatpush.msrb.mxu2 %v957_v31  ;;  %v4812_v31 = vld [vmem:[%s5625_s0 + $0x68] sm:$0xff] }
 0x5e5   :  { %v825_v37 = vld [vmem:[#allocation2 + $0x14b8] sm:$0xff]  ;;  %4150 = vmatpush.msrb.mxu3 %v1025_v34 }
 0x5e6   :  { %v889_v38 = vld [vmem:[#allocation2 + $0x16b8] sm:$0xff]  ;;  %4092 = vmatpush.msrb.mxu0 %v825_v37 }
 0x5e7   :  { %v953_v39 = vld [vmem:[#allocation2 + $0x18b8] sm:$0xff]  ;;  %4112 = vmatpush.msrb.mxu1 %v889_v38 }
 0x5e8   :  { %v1021_v41 = vld [vmem:[#allocation2 + $0x1ad8] sm:$0xff]  ;;  %4132 = vmatpush.msrb.mxu2 %v953_v39 }
 0x5e9   :  { %v821_v42 = vld [vmem:[#allocation2 + $0x1498] sm:$0xff]  ;;  %4151 = vmatpush.msrb.mxu3 %v1021_v41  ;;  %v5448_v41 = vpop.f32.mrf.mxu3 }
 0x5ea   :  { %v885_v43 = vld [vmem:[#allocation2 + $0x1698] sm:$0xff]  ;;  %4093 = vmatpush.msrb.mxu0 %v821_v42  ;;  %5638 = vst [vmem:[#allocation21_spill] sm:$0xff] %v5448_v41 }
 0x5eb   :  { %v949_v44 = vld [vmem:[#allocation2 + $0x1898] sm:$0xff]  ;;  %4113 = vmatpush.msrb.mxu1 %v885_v43 }
 0x5ec   :  { %v1017_v46 = vld [vmem:[#allocation2 + $0x1ab8] sm:$0xff]  ;;  %4133 = vmatpush.msrb.mxu2 %v949_v44 }
 0x5ed   :  { %v817_v48 = vld [vmem:[#allocation2 + $0x1478] sm:$0xff]  ;;  %4152 = vmatpush.msrb.mxu3 %v1017_v46 }
 0x5ee   :  { %v881_v49 = vld [vmem:[#allocation2 + $0x1678] sm:$0xff]  ;;  %4094 = vmatpush.msrb.mxu0 %v817_v48  ;;  %v5450_v48 = vpop.f32.mrf.mxu1 }
 0x5ef   :  { %v945_v52 = vld [vmem:[#allocation2 + $0x1878] sm:$0xff]  ;;  %4114 = vmatpush.msrb.mxu1 %v881_v49  ;;  %5639 = vst [vmem:[#allocation22_spill] sm:$0xff] %v5450_v48 }
 0x5f0   :  { %v1013_v53 = vld [vmem:[#allocation2 + $0x1a98] sm:$0xff]  ;;  %4134 = vmatpush.msrb.mxu2 %v945_v52 }
 0x5f1   :  { %v813_v55 = vld [vmem:[#allocation2 + $0x1458] sm:$0xff]  ;;  %4153 = vmatpush.msrb.mxu3 %v1013_v53 }
 0x5f2   :  { %v877_v56 = vld [vmem:[#allocation2 + $0x1658] sm:$0xff]  ;;  %4095 = vmatpush.msrb.mxu0 %v813_v55 }
 0x5f3   :  { %v941_v57 = vld [vmem:[#allocation2 + $0x1858] sm:$0xff]  ;;  %4115 = vmatpush.msrb.mxu1 %v877_v56  ;;  %v5452_v56 = vpop.f32.mrf.mxu0 }
 0x5f4   :  { %v1009_v58 = vld [vmem:[#allocation2 + $0x1a78] sm:$0xff]  ;;  %4135 = vmatpush.msrb.mxu2 %v941_v57  ;;  %5640 = vst [vmem:[#allocation23_spill] sm:$0xff] %v5452_v56  ;;  %v5454_v57 = vpop.f32.mrf.mxu2 }
 0x5f5   :  { %v809_v61 = vld [vmem:[#allocation2 + $0x1438] sm:$0xff]  ;;  %4154 = vmatpush.msrb.mxu3 %v1009_v58 }
 0x5f6   :  { %v873_v63 = vld [vmem:[#allocation2 + $0x1638] sm:$0xff]  ;;  %4096 = vmatpush.msrb.mxu0 %v809_v61 }
 0x5f7   :  { %v937_v0 = vld [vmem:[#allocation2 + $0x1838] sm:$0xff]  ;;  %4116 = vmatpush.msrb.mxu1 %v873_v63 }
 0x5f8   :  { %v1005_v1 = vld [vmem:[#allocation2 + $0x1a58] sm:$0xff]  ;;  %4136 = vmatpush.msrb.mxu2 %v937_v0 }
 0x5f9   :  { %v805_v2 = vld [vmem:[#allocation2 + $0x1418] sm:$0xff]  ;;  %4155 = vmatpush.msrb.mxu3 %v1005_v1 }
 0x5fa   :  { %v869_v5 = vld [vmem:[#allocation2 + $0x1618] sm:$0xff]  ;;  %4097 = vmatpush.msrb.mxu0 %v805_v2 }
 0x5fb   :  { %v933_v6 = vld [vmem:[#allocation2 + $0x1818] sm:$0xff]  ;;  %4117 = vmatpush.msrb.mxu1 %v869_v5  ;;  %4098 = vmatmul.f32.vlgmr.msrb.gmra.mxu0 %v4809_v19  ;;  %v5458_v19 = vpop.f32.mrf.mxu1 }
 0x5fc   :  { %v1001_v7 = vld [vmem:[#allocation2 + $0x1a38] sm:$0xff]  ;;  %4137 = vmatpush.msrb.mxu2 %v933_v6 }
 0x5fd   :  { %v1121_v13 = vld [vmem:[#allocation2 + $0x1df8] sm:$0xff]  ;;  %4156 = vmatpush.msrb.mxu3 %v1001_v7  ;;  %4138 = vmatmul.f32.vlgmr.msrb.gmra.mxu2 %v4810_v20  ;;  %v5456_v7 = vpop.f32.mrf.mxu3 }
 0x5fe   :  { %v1185_v14 = vld [vmem:[#allocation2 + $0x1ff8] sm:$0xff]  ;;  %4162 = vmatpush.msra.mxu0 %v1121_v13  ;;  %v2720_v10 = vadd.f32 %v5456_v7, %v5454_v57 }
 0x5ff   :  { %v1249_v16 = vld [vmem:[#allocation2 + $0x21f8] sm:$0xff]  ;;  %4182 = vmatpush.msra.mxu1 %v1185_v14 }
 0x600   :  { %v997_v17 = vld [vmem:[#allocation2 + $0x1a18] sm:$0xff]  ;;  %4202 = vmatpush.msra.mxu2 %v1249_v16 }
 0x601   :  { %v1117_v24 = vld [vmem:[#allocation2 + $0x1dd8] sm:$0xff]  ;;  %4157 = vmatpush.msrb.mxu3 %v997_v17 }
 0x602   :  { %v1181_v25 = vld [vmem:[#allocation2 + $0x1fd8] sm:$0xff]  ;;  %4158 = vmatmul.f32.vlgmr.msrb.gmra.mxu3 %v4812_v31  ;;  %4163 = vmatpush.msra.mxu0 %v1117_v24 }
 0x603   :  { %v1245_v26 = vld [vmem:[#allocation2 + $0x21d8] sm:$0xff]  ;;  %4183 = vmatpush.msra.mxu1 %v1181_v25 }
 0x604   :  { %v1313_v29 = vld [vmem:[#allocation2 + $0x23f8] sm:$0xff]  ;;  %4203 = vmatpush.msra.mxu2 %v1245_v26 }
 0x605   :  { %v4811_v30 = vld [vmem:[%s5625_s0 + $0x58] sm:$0xff]  ;;  %4222 = vmatpush.msra.mxu3 %v1313_v29  ;;  %v5460_v29 = vpop.f32.mrf.mxu0 }
 0x606   :  { %4118 = vmatmul.f32.vlgmr.msrb.gmra.mxu1 %v4811_v30  ;;  %v1113_v34 = vld [vmem:[#allocation2 + $0x1db8] sm:$0xff] }
 0x607   :  { %v1177_v37 = vld [vmem:[#allocation2 + $0x1fb8] sm:$0xff]  ;;  %4164 = vmatpush.msra.mxu0 %v1113_v34 }
 0x608   :  { %v1241_v38 = vld [vmem:[#allocation2 + $0x21b8] sm:$0xff]  ;;  %4184 = vmatpush.msra.mxu1 %v1177_v37 }
 0x609   :  { %v1309_v39 = vld [vmem:[#allocation2 + $0x23d8] sm:$0xff]  ;;  %4204 = vmatpush.msra.mxu2 %v1241_v38  ;;  %v5462_v38 = vpop.f32.mrf.mxu2 }
 0x60a   :  { %v1109_v42 = vld [vmem:[#allocation2 + $0x1d98] sm:$0xff]  ;;  %4223 = vmatpush.msra.mxu3 %v1309_v39 }
 0x60b   :  { %v1173_v43 = vld [vmem:[#allocation2 + $0x1f98] sm:$0xff]  ;;  %4165 = vmatpush.msra.mxu0 %v1109_v42 }
 0x60c   :  { %v1237_v44 = vld [vmem:[#allocation2 + $0x2198] sm:$0xff]  ;;  %4185 = vmatpush.msra.mxu1 %v1173_v43 }
 0x60d   :  { %v1305_v46 = vld [vmem:[#allocation2 + $0x23b8] sm:$0xff]  ;;  %4205 = vmatpush.msra.mxu2 %v1237_v44 }
 0x60e   :  { %v1105_v49 = vld [vmem:[#allocation2 + $0x1d78] sm:$0xff]  ;;  %4224 = vmatpush.msra.mxu3 %v1305_v46 }
 0x60f   :  { %v1169_v52 = vld [vmem:[#allocation2 + $0x1f78] sm:$0xff]  ;;  %4166 = vmatpush.msra.mxu0 %v1105_v49 }
 0x610   :  { %v1233_v53 = vld [vmem:[#allocation2 + $0x2178] sm:$0xff]  ;;  %4186 = vmatpush.msra.mxu1 %v1169_v52 }
 0x611   :  { %v1301_v55 = vld [vmem:[#allocation2 + $0x2398] sm:$0xff]  ;;  %4206 = vmatpush.msra.mxu2 %v1233_v53 }
 0x612   :  { %v1101_v58 = vld [vmem:[#allocation2 + $0x1d58] sm:$0xff]  ;;  %4225 = vmatpush.msra.mxu3 %v1301_v55  ;;  %v5464_v55 = vpop.f32.mrf.mxu3 }
 0x613   :  { %v1165_v61 = vld [vmem:[#allocation2 + $0x1f58] sm:$0xff]  ;;  %4167 = vmatpush.msra.mxu0 %v1101_v58  ;;  %v5466_v58 = vpop.f32.mrf.mxu1 }
 0x614   :  { %v1229_v63 = vld [vmem:[#allocation2 + $0x2158] sm:$0xff]  ;;  %4187 = vmatpush.msra.mxu1 %v1165_v61 }
 0x615   :  { %v1297_v0 = vld [vmem:[#allocation2 + $0x2378] sm:$0xff]  ;;  %4207 = vmatpush.msra.mxu2 %v1229_v63 }
 0x616   :  { %v1097_v1 = vld [vmem:[#allocation2 + $0x1d38] sm:$0xff]  ;;  %4226 = vmatpush.msra.mxu3 %v1297_v0 }
 0x617   :  { %v1161_v2 = vld [vmem:[#allocation2 + $0x1f38] sm:$0xff]  ;;  %4168 = vmatpush.msra.mxu0 %v1097_v1 }
 0x618   :  { %v1225_v5 = vld [vmem:[#allocation2 + $0x2138] sm:$0xff]  ;;  %4188 = vmatpush.msra.mxu1 %v1161_v2  ;;  %v5468_v2 = vpop.f32.mrf.mxu0 }
 0x619   :  { %v1293_v6 = vld [vmem:[#allocation2 + $0x2358] sm:$0xff]  ;;  %4208 = vmatpush.msra.mxu2 %v1225_v5 }
 0x61a   :  { %v1093_v13 = vld [vmem:[#allocation2 + $0x1d18] sm:$0xff]  ;;  %4227 = vmatpush.msra.mxu3 %v1293_v6 }
 0x61b   :  { %v1157_v14 = vld [vmem:[#allocation2 + $0x1f18] sm:$0xff]  ;;  %4169 = vmatpush.msra.mxu0 %v1093_v13 }
 0x61c   :  { %v1221_v16 = vld [vmem:[#allocation2 + $0x2118] sm:$0xff]  ;;  %4189 = vmatpush.msra.mxu1 %v1157_v14 }
 0x61d   :  { %v1289_v17 = vld [vmem:[#allocation2 + $0x2338] sm:$0xff]  ;;  %4209 = vmatpush.msra.mxu2 %v1221_v16  ;;  %v5470_v16 = vpop.f32.mrf.mxu2 }
 0x61e   :  { %v1089_v20 = vld [vmem:[#allocation2 + $0x1cf8] sm:$0xff]  ;;  %4228 = vmatpush.msra.mxu3 %v1289_v17 }
 0x61f   :  { %v1153_v24 = vld [vmem:[#allocation2 + $0x1ef8] sm:$0xff]  ;;  %4170 = vmatpush.msra.mxu0 %v1089_v20 }
 0x620   :  { %v1217_v25 = vld [vmem:[#allocation2 + $0x20f8] sm:$0xff]  ;;  %4190 = vmatpush.msra.mxu1 %v1153_v24 }
 0x621   :  { %v1285_v26 = vld [vmem:[#allocation2 + $0x2318] sm:$0xff]  ;;  %4210 = vmatpush.msra.mxu2 %v1217_v25 }
 0x622   :  { %v1085_v30 = vld [vmem:[#allocation2 + $0x1cd8] sm:$0xff]  ;;  %4229 = vmatpush.msra.mxu3 %v1285_v26 }
 0x623   :  { %v1149_v31 = vld [vmem:[#allocation2 + $0x1ed8] sm:$0xff]  ;;  %4171 = vmatpush.msra.mxu0 %v1085_v30 }
 0x624   :  { %v1213_v34 = vld [vmem:[#allocation2 + $0x20d8] sm:$0xff]  ;;  %4191 = vmatpush.msra.mxu1 %v1149_v31 }
 0x625   :  { %v1281_v37 = vld [vmem:[#allocation2 + $0x22f8] sm:$0xff]  ;;  %4211 = vmatpush.msra.mxu2 %v1213_v34 }
 0x626   :  { %v1081_v39 = vld [vmem:[#allocation2 + $0x1cb8] sm:$0xff]  ;;  %4230 = vmatpush.msra.mxu3 %v1281_v37  ;;  %v5472_v37 = vpop.f32.mrf.mxu3 }
 0x627   :  { %v1145_v42 = vld [vmem:[#allocation2 + $0x1eb8] sm:$0xff]  ;;  %4172 = vmatpush.msra.mxu0 %v1081_v39  ;;  %v5474_v39 = vpop.f32.mrf.mxu1 }
 0x628   :  { %v1209_v43 = vld [vmem:[#allocation2 + $0x20b8] sm:$0xff]  ;;  %4192 = vmatpush.msra.mxu1 %v1145_v42 }
 0x629   :  { %v1277_v44 = vld [vmem:[#allocation2 + $0x22d8] sm:$0xff]  ;;  %4212 = vmatpush.msra.mxu2 %v1209_v43 }
 0x62a   :  { %v1077_v46 = vld [vmem:[#allocation2 + $0x1c98] sm:$0xff]  ;;  %4231 = vmatpush.msra.mxu3 %v1277_v44  ;;  %v5476_v44 = vpop.f32.mrf.mxu0 }
 0x62b   :  { %v1141_v49 = vld [vmem:[#allocation2 + $0x1e98] sm:$0xff]  ;;  %4173 = vmatpush.msra.mxu0 %v1077_v46 }
 0x62c   :  { %v1205_v52 = vld [vmem:[#allocation2 + $0x2098] sm:$0xff]  ;;  %4193 = vmatpush.msra.mxu1 %v1141_v49 }
 0x62d   :  { %v1273_v53 = vld [vmem:[#allocation2 + $0x22b8] sm:$0xff]  ;;  %4213 = vmatpush.msra.mxu2 %v1205_v52  ;;  %v4813_v52 = vld [vmem:[%s5625_s0 + $0x70] sm:$0xff] }
 0x62e   :  { %v1073_v61 = vld [vmem:[#allocation2 + $0x1c78] sm:$0xff]  ;;  %4232 = vmatpush.msra.mxu3 %v1273_v53  ;;  %v4814_v53 = vld [vmem:[%s5625_s0 + $0x80] sm:$0xff] }
 0x62f   :  { %v1137_v63 = vld [vmem:[#allocation2 + $0x1e78] sm:$0xff]  ;;  %4174 = vmatpush.msra.mxu0 %v1073_v61  ;;  %v5484_v61 = vpop.f32.mrf.mxu2 }
 0x630   :  { %v1201_v0 = vld [vmem:[#allocation2 + $0x2078] sm:$0xff]  ;;  %4194 = vmatpush.msra.mxu1 %v1137_v63 }
 0x631   :  { %v1269_v1 = vld [vmem:[#allocation2 + $0x2298] sm:$0xff]  ;;  %4214 = vmatpush.msra.mxu2 %v1201_v0 }
 0x632   :  { %v1069_v5 = vld [vmem:[#allocation2 + $0x1c58] sm:$0xff]  ;;  %4233 = vmatpush.msra.mxu3 %v1269_v1 }
 0x633   :  { %v1133_v6 = vld [vmem:[#allocation2 + $0x1e58] sm:$0xff]  ;;  %4175 = vmatpush.msra.mxu0 %v1069_v5 }
 0x634   :  { %v1197_v13 = vld [vmem:[#allocation2 + $0x2058] sm:$0xff]  ;;  %4195 = vmatpush.msra.mxu1 %v1133_v6 }
 0x635   :  { %v1265_v14 = vld [vmem:[#allocation2 + $0x2278] sm:$0xff]  ;;  %4215 = vmatpush.msra.mxu2 %v1197_v13  ;;  %v4816_v13 = vld [vmem:[%s5625_s0 + $0x88] sm:$0xff] }
 0x636   :  { %v1065_v17 = vld [vmem:[#allocation2 + $0x1c38] sm:$0xff]  ;;  %4234 = vmatpush.msra.mxu3 %v1265_v14 }
 0x637   :  { %v1129_v20 = vld [vmem:[#allocation2 + $0x1e38] sm:$0xff]  ;;  %4176 = vmatpush.msra.mxu0 %v1065_v17 }
 0x638   :  { %v1193_v24 = vld [vmem:[#allocation2 + $0x2038] sm:$0xff]  ;;  %4196 = vmatpush.msra.mxu1 %v1129_v20 }
 0x639   :  { %v1261_v25 = vld [vmem:[#allocation2 + $0x2258] sm:$0xff]  ;;  %4216 = vmatpush.msra.mxu2 %v1193_v24 }
 0x63a   :  { %v1061_v26 = vld [vmem:[#allocation2 + $0x1c18] sm:$0xff]  ;;  %4235 = vmatpush.msra.mxu3 %v1261_v25  ;;  %v5492_v25 = vpop.f32.mrf.mxu3 }
 0x63b   :  { %v1125_v30 = vld [vmem:[#allocation2 + $0x1e18] sm:$0xff]  ;;  %4177 = vmatpush.msra.mxu0 %v1061_v26  ;;  %v5494_v26 = vpop.f32.mrf.mxu1 }
 0x63c   :  { %v1189_v31 = vld [vmem:[#allocation2 + $0x2018] sm:$0xff]  ;;  %4197 = vmatpush.msra.mxu1 %v1125_v30  ;;  %4178 = vmatmul.f32.vlgmr.msra.gmra.mxu0 %v4813_v52 }
 0x63d   :  { %v1257_v34 = vld [vmem:[#allocation2 + $0x2238] sm:$0xff]  ;;  %4217 = vmatpush.msra.mxu2 %v1189_v31 }
 0x63e   :  { %v1377_v42 = vld [vmem:[#allocation2 + $0x25f8] sm:$0xff]  ;;  %4236 = vmatpush.msra.mxu3 %v1257_v34  ;;  %4218 = vmatmul.f32.vlgmr.msra.gmra.mxu2 %v4814_v53 }
 0x63f   :  { %v1441_v43 = vld [vmem:[#allocation2 + $0x27f8] sm:$0xff]  ;;  %4242 = vmatpush.msrb.mxu0 %v1377_v42 }
 0x640   :  { %v1505_v46 = vld [vmem:[#allocation2 + $0x29f8] sm:$0xff]  ;;  %4262 = vmatpush.msrb.mxu1 %v1441_v43  ;;  %v5496_v43 = vpop.f32.mrf.mxu0 }
 0x641   :  { %v1253_v49 = vld [vmem:[#allocation2 + $0x2218] sm:$0xff]  ;;  %4282 = vmatpush.msrb.mxu2 %v1505_v46 }
 0x642   :  { %v1373_v63 = vld [vmem:[#allocation2 + $0x25d8] sm:$0xff]  ;;  %4237 = vmatpush.msra.mxu3 %v1253_v49 }
 0x643   :  { %v1437_v0 = vld [vmem:[#allocation2 + $0x27d8] sm:$0xff]  ;;  %4238 = vmatmul.f32.vlgmr.msra.gmra.mxu3 %v4816_v13  ;;  %4243 = vmatpush.msrb.mxu0 %v1373_v63  ;;  %v5498_v63 = vpop.f32.mrf.mxu2 }
 0x644   :  { %v1501_v1 = vld [vmem:[#allocation2 + $0x29d8] sm:$0xff]  ;;  %4263 = vmatpush.msrb.mxu1 %v1437_v0 }
 0x645   :  { %v1569_v5 = vld [vmem:[#allocation2 + $0x2bf8] sm:$0xff]  ;;  %4283 = vmatpush.msrb.mxu2 %v1501_v1 }
 0x646   :  { %v4815_v6 = vld [vmem:[%s5625_s0 + $0x78] sm:$0xff]  ;;  %4302 = vmatpush.msrb.mxu3 %v1569_v5 }
 0x647   :  { %4198 = vmatmul.f32.vlgmr.msra.gmra.mxu1 %v4815_v6  ;;  %v1369_v14 = vld [vmem:[#allocation2 + $0x25b8] sm:$0xff] }
 0x648   :  { %v1433_v17 = vld [vmem:[#allocation2 + $0x27b8] sm:$0xff]  ;;  %4244 = vmatpush.msrb.mxu0 %v1369_v14 }
 0x649   :  { %v1497_v20 = vld [vmem:[#allocation2 + $0x29b8] sm:$0xff]  ;;  %4264 = vmatpush.msrb.mxu1 %v1433_v17 }
 0x64a   :  { %v1565_v24 = vld [vmem:[#allocation2 + $0x2bd8] sm:$0xff]  ;;  %4284 = vmatpush.msrb.mxu2 %v1497_v20 }
 0x64b   :  { %v1365_v30 = vld [vmem:[#allocation2 + $0x2598] sm:$0xff]  ;;  %4303 = vmatpush.msrb.mxu3 %v1565_v24  ;;  %v5500_v24 = vpop.f32.mrf.mxu3  ;;  %v5506_v48 = vpop.f32.mrf.mxu2 }
 0x64c   :  { %v1429_v31 = vld [vmem:[#allocation2 + $0x2798] sm:$0xff]  ;;  %4245 = vmatpush.msrb.mxu0 %v1365_v30  ;;  %v5502_v30 = vpop.f32.mrf.mxu1 }
 0x64d   :  { %v1493_v34 = vld [vmem:[#allocation2 + $0x2998] sm:$0xff]  ;;  %4265 = vmatpush.msrb.mxu1 %v1429_v31 }
 0x64e   :  { %v1561_v42 = vld [vmem:[#allocation2 + $0x2bb8] sm:$0xff]  ;;  %4285 = vmatpush.msrb.mxu2 %v1493_v34 }
 0x64f   :  { %v1361_v46 = vld [vmem:[#allocation2 + $0x2578] sm:$0xff]  ;;  %4304 = vmatpush.msrb.mxu3 %v1561_v42 }
 0x650   :  { %v1425_v49 = vld [vmem:[#allocation2 + $0x2778] sm:$0xff]  ;;  %4246 = vmatpush.msrb.mxu0 %v1361_v46 }
 0x651   :  { %v1489_v52 = vld [vmem:[#allocation2 + $0x2978] sm:$0xff]  ;;  %4266 = vmatpush.msrb.mxu1 %v1425_v49  ;;  %v5504_v49 = vpop.f32.mrf.mxu0 }
 0x652   :  { %v1557_v53 = vld [vmem:[#allocation2 + $0x2b98] sm:$0xff]  ;;  %4286 = vmatpush.msrb.mxu2 %v1489_v52 }
 0x653   :  { %v1357_v0 = vld [vmem:[#allocation2 + $0x2558] sm:$0xff]  ;;  %4305 = vmatpush.msrb.mxu3 %v1557_v53  ;;  %v5508_v56 = vpop.f32.mrf.mxu3  ;;  %v5514_v15 = vpop.f32.mrf.mxu2 }
 0x654   :  { %v1421_v1 = vld [vmem:[#allocation2 + $0x2758] sm:$0xff]  ;;  %4247 = vmatpush.msrb.mxu0 %v1357_v0  ;;  %v5510_v41 = vpop.f32.mrf.mxu1  ;;  %5642 = vst [vmem:[#allocation25_spill] sm:$0xff] %v5514_v15 }
 0x655   :  { %v1485_v5 = vld [vmem:[#allocation2 + $0x2958] sm:$0xff]  ;;  %4267 = vmatpush.msrb.mxu1 %v1421_v1  ;;  %5641 = vst [vmem:[#allocation24_spill] sm:$0xff] %v5510_v41 }
 0x656   :  { %v1553_v6 = vld [vmem:[#allocation2 + $0x2b78] sm:$0xff]  ;;  %4287 = vmatpush.msrb.mxu2 %v1485_v5 }
 0x657   :  { %v1353_v13 = vld [vmem:[#allocation2 + $0x2538] sm:$0xff]  ;;  %4306 = vmatpush.msrb.mxu3 %v1553_v6 }
 0x658   :  { %v1417_v14 = vld [vmem:[#allocation2 + $0x2738] sm:$0xff]  ;;  %4248 = vmatpush.msrb.mxu0 %v1353_v13 }
 0x659   :  { %v1481_v17 = vld [vmem:[#allocation2 + $0x2938] sm:$0xff]  ;;  %4268 = vmatpush.msrb.mxu1 %v1417_v14 }
 0x65a   :  { %v1549_v20 = vld [vmem:[#allocation2 + $0x2b58] sm:$0xff]  ;;  %4288 = vmatpush.msrb.mxu2 %v1481_v17 }
 0x65b   :  { %v1349_v31 = vld [vmem:[#allocation2 + $0x2518] sm:$0xff]  ;;  %4307 = vmatpush.msrb.mxu3 %v1549_v20  ;;  %v5516_v21 = vpop.f32.mrf.mxu3 }
 0x65c   :  { %v1413_v34 = vld [vmem:[#allocation2 + $0x2718] sm:$0xff]  ;;  %4249 = vmatpush.msrb.mxu0 %v1349_v31  ;;  %5643 = vst [vmem:[#allocation26_spill] sm:$0xff] %v5516_v21  ;;  %v5518_v41 = vpop.f32.mrf.mxu1 }
 0x65d   :  { %v1477_v42 = vld [vmem:[#allocation2 + $0x2918] sm:$0xff]  ;;  %4269 = vmatpush.msrb.mxu1 %v1413_v34  ;;  %5644 = vst [vmem:[#allocation27_spill] sm:$0xff] %v5518_v41 }
 0x65e   :  { %v1545_v46 = vld [vmem:[#allocation2 + $0x2b38] sm:$0xff]  ;;  %4289 = vmatpush.msrb.mxu2 %v1477_v42 }
 0x65f   :  { %v1345_v52 = vld [vmem:[#allocation2 + $0x24f8] sm:$0xff]  ;;  %4308 = vmatpush.msrb.mxu3 %v1545_v46 }
 0x660   :  { %v1409_v53 = vld [vmem:[#allocation2 + $0x26f8] sm:$0xff]  ;;  %4250 = vmatpush.msrb.mxu0 %v1345_v52 }
 0x661   :  { %v1473_v0 = vld [vmem:[#allocation2 + $0x28f8] sm:$0xff]  ;;  %4270 = vmatpush.msrb.mxu1 %v1409_v53 }
 0x662   :  { %v1541_v1 = vld [vmem:[#allocation2 + $0x2b18] sm:$0xff]  ;;  %4290 = vmatpush.msrb.mxu2 %v1473_v0  ;;  %v5512_v0 = vpop.f32.mrf.mxu0 }
 0x663   :  { %v1341_v5 = vld [vmem:[#allocation2 + $0x24d8] sm:$0xff]  ;;  %4309 = vmatpush.msrb.mxu3 %v1541_v1 }
 0x664   :  { %v1405_v6 = vld [vmem:[#allocation2 + $0x26d8] sm:$0xff]  ;;  %4251 = vmatpush.msrb.mxu0 %v1341_v5 }
 0x665   :  { %v1469_v13 = vld [vmem:[#allocation2 + $0x28d8] sm:$0xff]  ;;  %4271 = vmatpush.msrb.mxu1 %v1405_v6 }
 0x666   :  { %v1537_v14 = vld [vmem:[#allocation2 + $0x2af8] sm:$0xff]  ;;  %4291 = vmatpush.msrb.mxu2 %v1469_v13 }
 0x667   :  { %v1337_v17 = vld [vmem:[#allocation2 + $0x24b8] sm:$0xff]  ;;  %4310 = vmatpush.msrb.mxu3 %v1537_v14 }
 0x668   :  { %v1401_v20 = vld [vmem:[#allocation2 + $0x26b8] sm:$0xff]  ;;  %4252 = vmatpush.msrb.mxu0 %v1337_v17 }
 0x669   :  { %v1465_v31 = vld [vmem:[#allocation2 + $0x28b8] sm:$0xff]  ;;  %4272 = vmatpush.msrb.mxu1 %v1401_v20 }
 0x66a   :  { %v1533_v34 = vld [vmem:[#allocation2 + $0x2ad8] sm:$0xff]  ;;  %4292 = vmatpush.msrb.mxu2 %v1465_v31 }
 0x66b   :  { %v1333_v42 = vld [vmem:[#allocation2 + $0x2498] sm:$0xff]  ;;  %4311 = vmatpush.msrb.mxu3 %v1533_v34 }
 0x66c   :  { %v1397_v46 = vld [vmem:[#allocation2 + $0x2698] sm:$0xff]  ;;  %4253 = vmatpush.msrb.mxu0 %v1333_v42 }
 0x66d   :  { %v1461_v52 = vld [vmem:[#allocation2 + $0x2898] sm:$0xff]  ;;  %4273 = vmatpush.msrb.mxu1 %v1397_v46 }
 0x66e   :  { %v1529_v53 = vld [vmem:[#allocation2 + $0x2ab8] sm:$0xff]  ;;  %4293 = vmatpush.msrb.mxu2 %v1461_v52 }
 0x66f   :  { %v1329_v1 = vld [vmem:[#allocation2 + $0x2478] sm:$0xff]  ;;  %4312 = vmatpush.msrb.mxu3 %v1529_v53 }
 0x670   :  { %v1393_v5 = vld [vmem:[#allocation2 + $0x2678] sm:$0xff]  ;;  %4254 = vmatpush.msrb.mxu0 %v1329_v1 }
 0x671   :  { %v1457_v6 = vld [vmem:[#allocation2 + $0x2878] sm:$0xff]  ;;  %4274 = vmatpush.msrb.mxu1 %v1393_v5 }
 0x672   :  { %v1525_v23 = vld [vmem:[#allocation2 + $0x2a98] sm:$0xff]  ;;  %4294 = vmatpush.msrb.mxu2 %v1457_v6  ;;  %v5520_v6 = vpop.f32.mrf.mxu0 }
 0x673   :  { %v1325_v13 = vld [vmem:[#allocation2 + $0x2458] sm:$0xff]  ;;  %4313 = vmatpush.msrb.mxu3 %v1525_v23  ;;  %5645 = vst [vmem:[#allocation28_spill] sm:$0xff] %v5520_v6 }
 0x674   :  { %v1389_v14 = vld [vmem:[#allocation2 + $0x2658] sm:$0xff]  ;;  %4255 = vmatpush.msrb.mxu0 %v1325_v13 }
 0x675   :  { %v1453_v17 = vld [vmem:[#allocation2 + $0x2858] sm:$0xff]  ;;  %4275 = vmatpush.msrb.mxu1 %v1389_v14  ;;  %v5522_v14 = vpop.f32.mrf.mxu2 }
 0x676   :  { %v1521_v20 = vld [vmem:[#allocation2 + $0x2a78] sm:$0xff]  ;;  %4295 = vmatpush.msrb.mxu2 %v1453_v17  ;;  %5646 = vst [vmem:[#allocation29_spill] sm:$0xff] %v5522_v14 }
 0x677   :  { %v1321_v31 = vld [vmem:[#allocation2 + $0x2438] sm:$0xff]  ;;  %4314 = vmatpush.msrb.mxu3 %v1521_v20 }
 0x678   :  { %v1385_v34 = vld [vmem:[#allocation2 + $0x2638] sm:$0xff]  ;;  %4256 = vmatpush.msrb.mxu0 %v1321_v31  ;;  %v4817_v31 = vld [vmem:[%s5625_s0 + $0x90] sm:$0xff] }
 0x679   :  { %v1449_v42 = vld [vmem:[#allocation2 + $0x2838] sm:$0xff]  ;;  %4276 = vmatpush.msrb.mxu1 %v1385_v34  ;;  %v4818_v34 = vld [vmem:[%s5625_s0 + $0xa0] sm:$0xff] }
 0x67a   :  { %v1517_v46 = vld [vmem:[#allocation2 + $0x2a58] sm:$0xff]  ;;  %4296 = vmatpush.msrb.mxu2 %v1449_v42  ;;  %v3299_v14 = vpop.f32.mrf.mxu0 }
 0x67b   :  { %v1317_v52 = vld [vmem:[#allocation2 + $0x2418] sm:$0xff]  ;;  %4315 = vmatpush.msrb.mxu3 %v1517_v46 }
 0x67c   :  { %v1381_v53 = vld [vmem:[#allocation2 + $0x2618] sm:$0xff]  ;;  %4257 = vmatpush.msrb.mxu0 %v1317_v52 }
 0x67d   :  { %v1445_v1 = vld [vmem:[#allocation2 + $0x2818] sm:$0xff]  ;;  %4277 = vmatpush.msrb.mxu1 %v1381_v53  ;;  %4258 = vmatmul.f32.vlgmr.msrb.gmra.mxu0 %v4817_v31 }
 0x67e   :  { %v1513_v5 = vld [vmem:[#allocation2 + $0x2a38] sm:$0xff]  ;;  %4297 = vmatpush.msrb.mxu2 %v1445_v1  ;;  %v5530_v1 = vpop.f32.mrf.mxu3 }
 0x67f   :  { %v1633_v23 = vld [vmem:[#allocation2 + $0x2df8] sm:$0xff]  ;;  %4316 = vmatpush.msrb.mxu3 %v1513_v5  ;;  %4298 = vmatmul.f32.vlgmr.msrb.gmra.mxu2 %v4818_v34  ;;  %5647 = vst [vmem:[#allocation30_spill] sm:$0xff] %v5530_v1  ;;  %v3319_v5 = vpop.f32.mrf.mxu1  ;;  %v4820_v34 = vld [vmem:[%s5625_s0 + $0xa8] sm:$0xff]  ;;  %v2120_v1 = vadd.f32 %v5370_v3, %v5372_v8 }
 0x680   :  { %v1697_v13 = vld [vmem:[#allocation2 + $0x2ff8] sm:$0xff]  ;;  %4322 = vmatpush.msra.mxu0 %v1633_v23 }
 0x681   :  { %v1761_v17 = vld [vmem:[#allocation2 + $0x31f8] sm:$0xff]  ;;  %4342 = vmatpush.msra.mxu1 %v1697_v13 }
 0x682   :  { %v1509_v20 = vld [vmem:[#allocation2 + $0x2a18] sm:$0xff]  ;;  %4362 = vmatpush.msra.mxu2 %v1761_v17 }
 0x683   :  { %v1629_v42 = vld [vmem:[#allocation2 + $0x2dd8] sm:$0xff]  ;;  %4317 = vmatpush.msrb.mxu3 %v1509_v20 }
 0x684   :  { %v1693_v46 = vld [vmem:[#allocation2 + $0x2fd8] sm:$0xff]  ;;  %4318 = vmatmul.f32.vlgmr.msrb.gmra.mxu3 %v4820_v34  ;;  %4323 = vmatpush.msra.mxu0 %v1629_v42  ;;  %v3339_v34 = vpop.f32.mrf.mxu2 }
 0x685   :  { %v1757_v52 = vld [vmem:[#allocation2 + $0x31d8] sm:$0xff]  ;;  %4343 = vmatpush.msra.mxu1 %v1693_v46 }
 0x686   :  { %v1825_v53 = vld [vmem:[#allocation2 + $0x33f8] sm:$0xff]  ;;  %4363 = vmatpush.msra.mxu2 %v1757_v52  ;;  %v2140_v52 = vadd.f32 %v5374_v9, %v2120_v1 }
 0x687   :  { %v4819_v31 = vld [vmem:[%s5625_s0 + $0x98] sm:$0xff]  ;;  %4382 = vmatpush.msra.mxu3 %v1825_v53 }
 0x688   :  { %4278 = vmatmul.f32.vlgmr.msrb.gmra.mxu1 %v4819_v31  ;;  %v1625_v23 = vld [vmem:[#allocation2 + $0x2db8] sm:$0xff]  ;;  %v3320_v31 = vadd.f32 %v3319_v5, %v3299_v14 }
 0x689   :  { %v1689_v13 = vld [vmem:[#allocation2 + $0x2fb8] sm:$0xff]  ;;  %4324 = vmatpush.msra.mxu0 %v1625_v23 }
 0x68a   :  { %v1753_v17 = vld [vmem:[#allocation2 + $0x31b8] sm:$0xff]  ;;  %4344 = vmatpush.msra.mxu1 %v1689_v13  ;;  %v3340_v5 = vadd.f32 %v3339_v34, %v3320_v31 }
 0x68b   :  { %v1821_v20 = vld [vmem:[#allocation2 + $0x33d8] sm:$0xff]  ;;  %4364 = vmatpush.msra.mxu2 %v1753_v17  ;;  %v3359_v17 = vpop.f32.mrf.mxu3 }
 0x68c   :  { %v1621_v41 = vld [vmem:[#allocation2 + $0x2d98] sm:$0xff]  ;;  %4383 = vmatpush.msra.mxu3 %v1821_v20  ;;  %v3360_v1 = vadd.f32 %v3359_v17, %v3340_v5 }
 0x68d   :  { %v1685_v6 = vld [vmem:[#allocation2 + $0x2f98] sm:$0xff]  ;;  %4325 = vmatpush.msra.mxu0 %v1621_v41  ;;  %v2740_v41 = vadd.f32 %v5460_v29, %v2720_v10 }
 0x68e   :  { %v1749_v21 = vld [vmem:[#allocation2 + $0x3198] sm:$0xff]  ;;  %4345 = vmatpush.msra.mxu1 %v1685_v6 }
 0x68f   :  { %v1817_v15 = vld [vmem:[#allocation2 + $0x33b8] sm:$0xff]  ;;  %4365 = vmatpush.msra.mxu2 %v1749_v21  ;;  %v2760_v29 = vadd.f32 %v5458_v19, %v2740_v41 }
 0x690   :  { %v1617_v42 = vld [vmem:[#allocation2 + $0x2d78] sm:$0xff]  ;;  %4384 = vmatpush.msra.mxu3 %v1817_v15  ;;  %v2160_v15 = vadd.f32 %v5376_v18, %v2140_v52 }
 0x691   :  { %v1681_v46 = vld [vmem:[#allocation2 + $0x2f78] sm:$0xff]  ;;  %4326 = vmatpush.msra.mxu0 %v1617_v42  ;;  %v3379_v42 = vpop.f32.mrf.mxu0 }
 0x692   :  { %v1745_v3 = vld [vmem:[#allocation2 + $0x3178] sm:$0xff]  ;;  %4346 = vmatpush.msra.mxu1 %v1681_v46 }
 0x693   :  { %v1813_v8 = vld [vmem:[#allocation2 + $0x3398] sm:$0xff]  ;;  %4366 = vmatpush.msra.mxu2 %v1745_v3 }
 0x694   :  { %v1613_v14 = vld [vmem:[#allocation2 + $0x2d58] sm:$0xff]  ;;  %4385 = vmatpush.msra.mxu3 %v1813_v8  ;;  %v2180_v8 = vadd.f32 %v5380_v32, %v2160_v15 }
 0x695   :  { %v1677_v53 = vld [vmem:[#allocation2 + $0x2f58] sm:$0xff]  ;;  %4327 = vmatpush.msra.mxu0 %v1613_v14 }
 0x696   :  { %v1741_v23 = vld [vmem:[#allocation2 + $0x3158] sm:$0xff]  ;;  %4347 = vmatpush.msra.mxu1 %v1677_v53  ;;  %v3380_v53 = vadd.f32 %v3379_v42, %v3360_v1  ;;  %v2200_v41 = vadd.f32 %v5378_v27, %v2180_v8  ;;  %v3419_v1 = vpop.f32.mrf.mxu2 }
 0x697   :  { %v1809_v13 = vld [vmem:[#allocation2 + $0x3378] sm:$0xff]  ;;  %4367 = vmatpush.msra.mxu2 %v1741_v23 }
 0x698   :  { %v1609_v20 = vld [vmem:[#allocation2 + $0x2d38] sm:$0xff]  ;;  %4386 = vmatpush.msra.mxu3 %v1809_v13  ;;  %v3399_v13 = vpop.f32.mrf.mxu1 }
 0x699   :  { %v1673_v57 = vld [vmem:[#allocation2 + $0x2f38] sm:$0xff]  ;;  %4328 = vmatpush.msra.mxu0 %v1609_v20  ;;  %v2780_v20 = vadd.f32 %v5462_v38, %v2760_v29  ;;  %v3400_v15 = vadd.f32 %v3399_v13, %v3380_v53  ;;  %v3459_v13 = vpop.f32.mrf.mxu0 }
 0x69a   :  { %v1737_v7 = vld [vmem:[#allocation2 + $0x3138] sm:$0xff]  ;;  %4348 = vmatpush.msra.mxu1 %v1673_v57 }
 0x69b   :  { %v1805_v9 = vld [vmem:[#allocation2 + $0x3358] sm:$0xff]  ;;  %4368 = vmatpush.msra.mxu2 %v1737_v7 }
 0x69c   :  { %v1605_v21 = vld [vmem:[#allocation2 + $0x2d18] sm:$0xff]  ;;  %4387 = vmatpush.msra.mxu3 %v1805_v9 }
 0x69d   :  { %v1669_v6 = vld [vmem:[#allocation2 + $0x2f18] sm:$0xff]  ;;  %4329 = vmatpush.msra.mxu0 %v1605_v21 }
 0x69e   :  { %v1733_v31 = vld [vmem:[#allocation2 + $0x3118] sm:$0xff]  ;;  %4349 = vmatpush.msra.mxu1 %v1669_v6 }
 0x69f   :  { %v1801_v34 = vld [vmem:[#allocation2 + $0x3338] sm:$0xff]  ;;  %4369 = vmatpush.msra.mxu2 %v1733_v31 }
 0x6a0   :  { %v1601_v46 = vld [vmem:[#allocation2 + $0x2cf8] sm:$0xff]  ;;  %4388 = vmatpush.msra.mxu3 %v1801_v34  ;;  %v2800_v34 = vadd.f32 %v5464_v55, %v2780_v20 }
 0x6a1   :  { %v1665_v10 = vld [vmem:[#allocation2 + $0x2ef8] sm:$0xff]  ;;  %4330 = vmatpush.msra.mxu0 %v1601_v46  ;;  %v2220_v46 = vadd.f32 %v5382_v33, %v2200_v41 }
 0x6a2   :  { %v1729_v3 = vld [vmem:[#allocation2 + $0x30f8] sm:$0xff]  ;;  %4350 = vmatpush.msra.mxu1 %v1665_v10 }
 0x6a3   :  { %v1797_v18 = vld [vmem:[#allocation2 + $0x3318] sm:$0xff]  ;;  %4370 = vmatpush.msra.mxu2 %v1729_v3  ;;  %v2820_v3 = vadd.f32 %v5468_v2, %v2800_v34 }
 0x6a4   :  { %v1597_v52 = vld [vmem:[#allocation2 + $0x2cd8] sm:$0xff]  ;;  %4389 = vmatpush.msra.mxu3 %v1797_v18  ;;  %v3420_v18 = vadd.f32 %v3419_v1, %v3400_v15  ;;  %v4821_v1 = vld [vmem:[%s5625_s0 + $0xb0] sm:$0xff] }
 0x6a5   :  { %v1661_v14 = vld [vmem:[#allocation2 + $0x2ed8] sm:$0xff]  ;;  %4331 = vmatpush.msra.mxu0 %v1597_v52 }
 0x6a6   :  { %v1725_v5 = vld [vmem:[#allocation2 + $0x30d8] sm:$0xff]  ;;  %4351 = vmatpush.msra.mxu1 %v1661_v14  ;;  %v3439_v14 = vpop.f32.mrf.mxu3 }
 0x6a7   :  { %v1793_v23 = vld [vmem:[#allocation2 + $0x32f8] sm:$0xff]  ;;  %4371 = vmatpush.msra.mxu2 %v1725_v5  ;;  %v3440_v20 = vadd.f32 %v3439_v14, %v3420_v18 }
 0x6a8   :  { %v1593_v17 = vld [vmem:[#allocation2 + $0x2cb8] sm:$0xff]  ;;  %4390 = vmatpush.msra.mxu3 %v1793_v23  ;;  %v2240_v23 = vadd.f32 %v5384_v40, %v2220_v46 }
 0x6a9   :  { %v1657_v19 = vld [vmem:[#allocation2 + $0x2eb8] sm:$0xff]  ;;  %4332 = vmatpush.msra.mxu0 %v1593_v17 }
 0x6aa   :  { %v1721_v57 = vld [vmem:[#allocation2 + $0x30b8] sm:$0xff]  ;;  %4352 = vmatpush.msra.mxu1 %v1657_v19  ;;  %v2840_v19 = vadd.f32 %v5466_v58, %v2820_v3  ;;  %v2260_v41 = vadd.f32 %v5394_v50, %v2240_v23  ;;  %v4822_v50 = vld [vmem:[%s5625_s0 + $0xc0] sm:$0xff] }
 0x6ab   :  { %v1789_v32 = vld [vmem:[#allocation2 + $0x32d8] sm:$0xff]  ;;  %4372 = vmatpush.msra.mxu2 %v1721_v57 }
 0x6ac   :  { %v1589_v7 = vld [vmem:[#allocation2 + $0x2c98] sm:$0xff]  ;;  %4391 = vmatpush.msra.mxu3 %v1789_v32 }
 0x6ad   :  { %v1653_v9 = vld [vmem:[#allocation2 + $0x2e98] sm:$0xff]  ;;  %4333 = vmatpush.msra.mxu0 %v1589_v7  ;;  %v2860_v7 = vadd.f32 %v5470_v16, %v2840_v19  ;;  %v2280_v16 = vadd.f32 %v5392_v45, %v2260_v41  ;;  %v4824_v45 = vld [vmem:[%s5625_s0 + $0xc8] sm:$0xff] }
 0x6ae   :  { %v1717_v21 = vld [vmem:[#allocation2 + $0x3098] sm:$0xff]  ;;  %4353 = vmatpush.msra.mxu1 %v1653_v9  ;;  %v3460_v9 = vadd.f32 %v3459_v13, %v3440_v20 }
 0x6af   :  { %v1785_v6 = vld [vmem:[#allocation2 + $0x32b8] sm:$0xff]  ;;  %4373 = vmatpush.msra.mxu2 %v1717_v21  ;;  %v3479_v21 = vpop.f32.mrf.mxu1 }
 0x6b0   :  { %v1585_v31 = vld [vmem:[#allocation2 + $0x2c78] sm:$0xff]  ;;  %4392 = vmatpush.msra.mxu3 %v1785_v6 }
 0x6b1   :  { %v1649_v38 = vld [vmem:[#allocation2 + $0x2e78] sm:$0xff]  ;;  %4334 = vmatpush.msra.mxu0 %v1585_v31  ;;  %v3499_v31 = vpop.f32.mrf.mxu2 }
 0x6b2   :  { %v1713_v42 = vld [vmem:[#allocation2 + $0x3078] sm:$0xff]  ;;  %4354 = vmatpush.msra.mxu1 %v1649_v38 }
 0x6b3   :  { %v1781_v27 = vld [vmem:[#allocation2 + $0x3298] sm:$0xff]  ;;  %4374 = vmatpush.msra.mxu2 %v1713_v42  ;;  %v2880_v42 = vadd.f32 %v5472_v37, %v2860_v7 }
 0x6b4   :  { %v1581_v10 = vld [vmem:[#allocation2 + $0x2c58] sm:$0xff]  ;;  %4393 = vmatpush.msra.mxu3 %v1781_v27  ;;  %v3480_v27 = vadd.f32 %v3479_v21, %v3460_v9 }
 0x6b5   :  { %v1645_v29 = vld [vmem:[#allocation2 + $0x2e58] sm:$0xff]  ;;  %4335 = vmatpush.msra.mxu0 %v1581_v10  ;;  %v2900_v37 = vadd.f32 %v5476_v44, %v2880_v42 }
 0x6b6   :  { %v1709_v8 = vld [vmem:[#allocation2 + $0x3058] sm:$0xff]  ;;  %4355 = vmatpush.msra.mxu1 %v1645_v29  ;;  %v2300_v29 = vadd.f32 %v5396_v51, %v2280_v16  ;;  %v3519_v51 = vpop.f32.mrf.mxu3 }
 0x6b7   :  { %v1777_v52 = vld [vmem:[#allocation2 + $0x3278] sm:$0xff]  ;;  %4375 = vmatpush.msra.mxu2 %v1709_v8  ;;  %v2920_v19 = vadd.f32 %v5474_v39, %v2900_v37 }
 0x6b8   :  { %v1577_v55 = vld [vmem:[#allocation2 + $0x2c38] sm:$0xff]  ;;  %4394 = vmatpush.msra.mxu3 %v1777_v52  ;;  %v3500_v52 = vadd.f32 %v3499_v31, %v3480_v27  ;;  %v2320_v13 = vadd.f32 %v5404_v62, %v2300_v29 }
 0x6b9   :  { %v1641_v53 = vld [vmem:[#allocation2 + $0x2e38] sm:$0xff]  ;;  %4336 = vmatpush.msra.mxu0 %v1577_v55  ;;  %v2940_v62 = vadd.f32 %v5484_v61, %v2920_v19  ;;  %v3579_v16 = vpop.f32.mrf.mxu2 }
 0x6ba   :  { %v1705_v5 = vld [vmem:[#allocation2 + $0x3038] sm:$0xff]  ;;  %4356 = vmatpush.msra.mxu1 %v1641_v53  ;;  %v3520_v20 = vadd.f32 %v3519_v51, %v3500_v52  ;;  %v2340_v41 = vadd.f32 %v5408_v11, %v2320_v13 }
 0x6bb   :  { %v1773_v33 = vld [vmem:[#allocation2 + $0x3258] sm:$0xff]  ;;  %4376 = vmatpush.msra.mxu2 %v1705_v5 }
 0x6bc   :  { %v1573_v2 = vld [vmem:[#allocation2 + $0x2c18] sm:$0xff]  ;;  %4395 = vmatpush.msra.mxu3 %v1773_v33 }
 0x6bd   :  { %v1637_v17 = vld [vmem:[#allocation2 + $0x2e18] sm:$0xff]  ;;  %4337 = vmatpush.msra.mxu0 %v1573_v2  ;;  %v3539_v2 = vpop.f32.mrf.mxu0 }
 0x6be   :  { %v1701_v57 = vld [vmem:[#allocation2 + $0x3018] sm:$0xff]  ;;  %4357 = vmatpush.msra.mxu1 %v1637_v17  ;;  %4338 = vmatmul.f32.vlgmr.msra.gmra.mxu0 %v4821_v1 }
 0x6bf   :  { %v1769_v32 = vld [vmem:[#allocation2 + $0x3238] sm:$0xff]  ;;  %4377 = vmatpush.msra.mxu2 %v1701_v57 }
 0x6c0   :  { %v1889_v40 = vld [vmem:[#allocation2 + $0x35f8] sm:$0xff]  ;;  %4396 = vmatpush.msra.mxu3 %v1769_v32  ;;  %4378 = vmatmul.f32.vlgmr.msra.gmra.mxu2 %v4822_v50  ;;  %v2360_v50 = vadd.f32 %v5406_v4, %v2340_v41 }
 0x6c1   :  { %v1953_v15 = vld [vmem:[#allocation2 + $0x37f8] sm:$0xff]  ;;  %4402 = vmatpush.msrb.mxu0 %v1889_v40  ;;  %v3540_v40 = vadd.f32 %v3539_v2, %v3520_v20 }
 0x6c2   :  { %v2017_v58 = vld [vmem:[#allocation2 + $0x39f8] sm:$0xff]  ;;  %4422 = vmatpush.msrb.mxu1 %v1953_v15 }
 0x6c3   :  { %v1765_v6 = vld [vmem:[#allocation2 + $0x3218] sm:$0xff]  ;;  %4442 = vmatpush.msrb.mxu2 %v2017_v58  ;;  %v3559_v58 = vpop.f32.mrf.mxu1 }
 0x6c4   :  { %v1885_v38 = vld [vmem:[#allocation2 + $0x35d8] sm:$0xff]  ;;  %4397 = vmatpush.msra.mxu3 %v1765_v6 }
 0x6c5   :  { %v1949_v34 = vld [vmem:[#allocation2 + $0x37d8] sm:$0xff]  ;;  %4398 = vmatmul.f32.vlgmr.msra.gmra.mxu3 %v4824_v45  ;;  %4403 = vmatpush.msrb.mxu0 %v1885_v38  ;;  %v2960_v38 = vadd.f32 %v5492_v25, %v2940_v62 }
 0x6c6   :  { %v2013_v46 = vld [vmem:[#allocation2 + $0x39d8] sm:$0xff]  ;;  %4423 = vmatpush.msrb.mxu1 %v1949_v34  ;;  %v3560_v34 = vadd.f32 %v3559_v58, %v3540_v40 }
 0x6c7   :  { %v2081_v10 = vld [vmem:[#allocation2 + $0x3bf8] sm:$0xff]  ;;  %4443 = vmatpush.msrb.mxu2 %v2013_v46  ;;  %v2380_v46 = vadd.f32 %v5410_v12, %v2360_v50  ;;  %v2980_v4 = vadd.f32 %v5496_v43, %v2960_v38 }
 0x6c8   :  { %v4823_v3 = vld [vmem:[%s5625_s0 + $0xb8] sm:$0xff]  ;;  %4462 = vmatpush.msrb.mxu3 %v2081_v10 }
 0x6c9   :  { %4358 = vmatmul.f32.vlgmr.msra.gmra.mxu1 %v4823_v3  ;;  %v1881_v18 = vld [vmem:[#allocation2 + $0x35b8] sm:$0xff]  ;;  %v3580_v3 = vadd.f32 %v3579_v16, %v3560_v34 }
 0x6ca   :  { %v1945_v8 = vld [vmem:[#allocation2 + $0x37b8] sm:$0xff]  ;;  %4404 = vmatpush.msrb.mxu0 %v1881_v18 }
 0x6cb   :  { %v2009_v14 = vld [vmem:[#allocation2 + $0x39b8] sm:$0xff]  ;;  %4424 = vmatpush.msrb.mxu1 %v1945_v8  ;;  %v3599_v8 = vpop.f32.mrf.mxu3 }
 0x6cc   :  { %v2077_v55 = vld [vmem:[#allocation2 + $0x3bd8] sm:$0xff]  ;;  %4444 = vmatpush.msrb.mxu2 %v2009_v14  ;;  %v2400_v14 = vadd.f32 %v5412_v22, %v2380_v46 }
 0x6cd   :  { %v1877_v53 = vld [vmem:[#allocation2 + $0x3598] sm:$0xff]  ;;  %4463 = vmatpush.msrb.mxu3 %v2077_v55  ;;  %v3619_v55 = vpop.f32.mrf.mxu0 }
 0x6ce   :  { %v1941_v5 = vld [vmem:[#allocation2 + $0x3798] sm:$0xff]  ;;  %4405 = vmatpush.msrb.mxu0 %v1877_v53  ;;  %v3000_v53 = vadd.f32 %v5494_v26, %v2980_v4  ;;  %v2420_v13 = vadd.f32 %v5416_v35, %v2400_v14  ;;  %v4828_v14 = vld [vmem:[%s5625_s0 + $0xe8] sm:$0xff] }
 0x6cf   :  { %v2005_v33 = vld [vmem:[#allocation2 + $0x3998] sm:$0xff]  ;;  %4425 = vmatpush.msrb.mxu1 %v1941_v5  ;;  %v3600_v5 = vadd.f32 %v3599_v8, %v3580_v3 }
 0x6d0   :  { %v2073_v23 = vld [vmem:[#allocation2 + $0x3bb8] sm:$0xff]  ;;  %4445 = vmatpush.msrb.mxu2 %v2005_v33  ;;  %v3020_v22 = vadd.f32 %v5498_v63, %v3000_v53 }
 0x6d1   :  { %v1873_v44 = vld [vmem:[#allocation2 + $0x3578] sm:$0xff]  ;;  %4464 = vmatpush.msrb.mxu3 %v2073_v23 }
 0x6d2   :  { %v1937_v17 = vld [vmem:[#allocation2 + $0x3778] sm:$0xff]  ;;  %4406 = vmatpush.msrb.mxu0 %v1873_v44  ;;  %v3040_v40 = vadd.f32 %v5500_v24, %v3020_v22 }
 0x6d3   :  { %v2001_v57 = vld [vmem:[#allocation2 + $0x3978] sm:$0xff]  ;;  %4426 = vmatpush.msrb.mxu1 %v1937_v17  ;;  %v3620_v17 = vadd.f32 %v3619_v55, %v3600_v5  ;;  %v4499_v55 = vld [vmem:[#allocation4 + $0x68] sm:$0xff] }
 0x6d4   :  { %v2069_v32 = vld [vmem:[#allocation2 + $0x3b98] sm:$0xff]  ;;  %4446 = vmatpush.msrb.mxu2 %v2001_v57  ;;  %v3639_v57 = vpop.f32.mrf.mxu1  ;;  %v4531_v5 = vld [vmem:[#allocation4 + $0x168] sm:$0xff] }
 0x6d5   :  { %v1869_v7 = vld [vmem:[#allocation2 + $0x3558] sm:$0xff]  ;;  %4465 = vmatpush.msrb.mxu3 %v2069_v32 }
 0x6d6   :  { %v1933_v9 = vld [vmem:[#allocation2 + $0x3758] sm:$0xff]  ;;  %4407 = vmatpush.msrb.mxu0 %v1869_v7  ;;  %v2440_v7 = vadd.f32 %v5414_v28, %v2420_v13  ;;  %v3060_v28 = vadd.f32 %v5504_v49, %v3040_v40  ;;  %v4511_v40 = vld [vmem:[#allocation4 + $0xc8] sm:$0xff] }
 0x6d7   :  { %v1997_v15 = vld [vmem:[#allocation2 + $0x3958] sm:$0xff]  ;;  %4427 = vmatpush.msrb.mxu1 %v1933_v9  ;;  %v3659_v9 = vpop.f32.mrf.mxu2 }
 0x6d8   :  { %v2065_v21 = vld [vmem:[#allocation2 + $0x3b78] sm:$0xff]  ;;  %4447 = vmatpush.msrb.mxu2 %v1997_v15  ;;  %v3640_v15 = vadd.f32 %v3639_v57, %v3620_v17  ;;  %v3080_v49 = vadd.f32 %v5502_v30, %v3060_v28  ;;  %v4826_v30 = vld [vmem:[%s5625_s0 + $0xe0] sm:$0xff] }
 0x6d9   :  { %v1865_v39 = vld [vmem:[#allocation2 + $0x3538] sm:$0xff]  ;;  %4466 = vmatpush.msrb.mxu3 %v2065_v21  ;;  %v4510_v28 = vld [vmem:[#allocation4 + $0xc0] sm:$0xff] }
 0x6da   :  { %v1929_v6 = vld [vmem:[#allocation2 + $0x3738] sm:$0xff]  ;;  %4408 = vmatpush.msrb.mxu0 %v1865_v39  ;;  %v2460_v39 = vadd.f32 %v5418_v36, %v2440_v7  ;;  %v4528_v7 = vld [vmem:[#allocation4 + $0x150] sm:$0xff] }
 0x6db   :  { %v1993_v1 = vld [vmem:[#allocation2 + $0x3938] sm:$0xff]  ;;  %4428 = vmatpush.msrb.mxu1 %v1929_v6 }
 0x6dc   :  { %v2061_v11 = vld [vmem:[#allocation2 + $0x3b58] sm:$0xff]  ;;  %4448 = vmatpush.msrb.mxu2 %v1993_v1  ;;  %v2480_v34 = vadd.f32 %v5420_v47, %v2460_v39  ;;  %v4825_v47 = vld [vmem:[%s5625_s0 + $0xd0] sm:$0xff]  ;;  %v3719_v8 = vpop.f32.mrf.mxu1  ;;  %v4527_v39 = vld [vmem:[#allocation4 + $0x148] sm:$0xff] }
 0x6dd   :  { %v1861_v61 = vld [vmem:[#allocation2 + $0x3518] sm:$0xff]  ;;  %4467 = vmatpush.msrb.mxu3 %v2061_v11  ;;  %v3660_v11 = vadd.f32 %v3659_v9, %v3640_v15  ;;  %v5651_v15 = vld [vmem:[#allocation25_spill] sm:$0xff] }
 0x6de   :  { %v1925_v31 = vld [vmem:[#allocation2 + $0x3718] sm:$0xff]  ;;  %4409 = vmatpush.msrb.mxu0 %v1861_v61  ;;  %v3679_v61 = vpop.f32.mrf.mxu3 }
 0x6df   :  { %v1989_v42 = vld [vmem:[#allocation2 + $0x3918] sm:$0xff]  ;;  %4429 = vmatpush.msrb.mxu1 %v1925_v31 }
 0x6e0   :  { %v2057_v27 = vld [vmem:[#allocation2 + $0x3b38] sm:$0xff]  ;;  %4449 = vmatpush.msrb.mxu2 %v1989_v42  ;;  %v3699_v42 = vpop.f32.mrf.mxu0 }
 0x6e1   :  { %v1857_v10 = vld [vmem:[#allocation2 + $0x34f8] sm:$0xff]  ;;  %4468 = vmatpush.msrb.mxu3 %v2057_v27  ;;  %v3680_v27 = vadd.f32 %v3679_v61, %v3660_v11  ;;  %v4526_v11 = vld [vmem:[#allocation4 + $0x140] sm:$0xff] }
 0x6e2   :  { %v1921_v29 = vld [vmem:[#allocation2 + $0x36f8] sm:$0xff]  ;;  %4410 = vmatpush.msrb.mxu0 %v1857_v10 }
 0x6e3   :  { %v1985_v45 = vld [vmem:[#allocation2 + $0x38f8] sm:$0xff]  ;;  %4430 = vmatpush.msrb.mxu1 %v1921_v29  ;;  %v2500_v29 = vadd.f32 %v5424_v59, %v2480_v34  ;;  %v4500_v59 = vld [vmem:[#allocation4 + $0x70] sm:$0xff] }
 0x6e4   :  { %v2053_v18 = vld [vmem:[#allocation2 + $0x3b18] sm:$0xff]  ;;  %4450 = vmatpush.msrb.mxu2 %v1985_v45  ;;  %v3100_v45 = vadd.f32 %v5506_v48, %v3080_v49 }
 0x6e5   :  { %v1853_v25 = vld [vmem:[#allocation2 + $0x34d8] sm:$0xff]  ;;  %4469 = vmatpush.msrb.mxu3 %v2053_v18  ;;  %v3700_v18 = vadd.f32 %v3699_v42, %v3680_v27  ;;  %v2520_v48 = vadd.f32 %v5422_v54, %v2500_v29 }
 0x6e6   :  { %v1917_v37 = vld [vmem:[#allocation2 + $0x36d8] sm:$0xff]  ;;  %4411 = vmatpush.msrb.mxu0 %v1853_v25  ;;  %v4516_v25 = vld [vmem:[#allocation4 + $0xf0] sm:$0xff]  ;;  %v3759_v22 = vpop.f32.mrf.mxu3 }
 0x6e7   :  { %v1981_v52 = vld [vmem:[#allocation2 + $0x38d8] sm:$0xff]  ;;  %4431 = vmatpush.msrb.mxu1 %v1917_v37  ;;  %v4532_v37 = vld [vmem:[#allocation4 + $0x170] sm:$0xff]  ;;  %v3720_v53 = vadd.f32 %v3719_v8, %v3700_v18  ;;  %v2540_v54 = vadd.f32 %v5426_v60, %v2520_v48  ;;  %v4523_v8 = vld [vmem:[#allocation4 + $0x128] sm:$0xff] }
 0x6e8   :  { %v2049_v12 = vld [vmem:[#allocation2 + $0x3af8] sm:$0xff]  ;;  %4451 = vmatpush.msrb.mxu2 %v1981_v52  ;;  %v3739_v52 = vpop.f32.mrf.mxu2  ;;  %v4496_v60 = vld [vmem:[#allocation4 + $0x50] sm:$0xff]  ;;  %v4490_v48 = vld [vmem:[#allocation4 + $0x20] sm:$0xff] }
 0x6e9   :  { %v1849_v43 = vld [vmem:[#allocation2 + $0x34b8] sm:$0xff]  ;;  %4470 = vmatpush.msrb.mxu3 %v2049_v12 }
 0x6ea   :  { %v1913_v51 = vld [vmem:[#allocation2 + $0x36b8] sm:$0xff]  ;;  %4412 = vmatpush.msrb.mxu0 %v1849_v43  ;;  %v4515_v43 = vld [vmem:[#allocation4 + $0xe8] sm:$0xff] }
 0x6eb   :  { %v1977_v33 = vld [vmem:[#allocation2 + $0x38b8] sm:$0xff]  ;;  %4432 = vmatpush.msrb.mxu1 %v1913_v51  ;;  %v3120_v51 = vadd.f32 %v5508_v56, %v3100_v45  ;;  %v4524_v45 = vld [vmem:[#allocation4 + $0x130] sm:$0xff] }
 0x6ec   :  { %v2045_v23 = vld [vmem:[#allocation2 + $0x3ad8] sm:$0xff]  ;;  %4452 = vmatpush.msrb.mxu2 %v1977_v33  ;;  %v4498_v33 = vld [vmem:[#allocation4 + $0x60] sm:$0xff] }
 0x6ed   :  { %v1845_v2 = vld [vmem:[#allocation2 + $0x3498] sm:$0xff]  ;;  %4471 = vmatpush.msrb.mxu3 %v2045_v23  ;;  %v4514_v23 = vld [vmem:[#allocation4 + $0xe0] sm:$0xff]  ;;  %v3140_v13 = vadd.f32 %v5512_v0, %v3120_v51 }
 0x6ee   :  { %v1909_v44 = vld [vmem:[#allocation2 + $0x3698] sm:$0xff]  ;;  %4413 = vmatpush.msrb.mxu0 %v1845_v2  ;;  %v3740_v2 = vadd.f32 %v3739_v52, %v3720_v53  ;;  %v3839_v18 = vpop.f32.mrf.mxu3  ;;  %v4506_v52 = vld [vmem:[#allocation4 + $0xa0] sm:$0xff] }
 0x6ef   :  { %v1973_v19 = vld [vmem:[#allocation2 + $0x3898] sm:$0xff]  ;;  %4433 = vmatpush.msrb.mxu1 %v1909_v44  ;;  %v4530_v44 = vld [vmem:[#allocation4 + $0x160] sm:$0xff] }
 0x6f0   :  { %v2041_v20 = vld [vmem:[#allocation2 + $0x3ab8] sm:$0xff]  ;;  %4453 = vmatpush.msrb.mxu2 %v1973_v19  ;;  %v3760_v0 = vadd.f32 %v3759_v22, %v3740_v2  ;;  %v3819_v61 = vpop.f32.mrf.mxu2  ;;  %v4488_v22 = vld [vmem:[#allocation4 + $0x10] sm:$0xff] }
 0x6f1   :  { %v1841_v26 = vld [vmem:[#allocation2 + $0x3478] sm:$0xff]  ;;  %4472 = vmatpush.msrb.mxu3 %v2041_v20  ;;  %v5648_v20 = vld [vmem:[#allocation17_spill] sm:$0xff] }
 0x6f2   :  { %v1905_v32 = vld [vmem:[#allocation2 + $0x3678] sm:$0xff]  ;;  %4414 = vmatpush.msrb.mxu0 %v1841_v26  ;;  %v2560_v57 = vadd.f32 %v5648_v20, %v2540_v54  ;;  %v3779_v26 = vpop.f32.mrf.mxu0 }
 0x6f3   :  { %v1969_v41 = vld [vmem:[#allocation2 + $0x3878] sm:$0xff]  ;;  %4434 = vmatpush.msrb.mxu1 %v1905_v32  ;;  %v4512_v32 = vld [vmem:[#allocation4 + $0xd0] sm:$0xff] }
 0x6f4   :  { %v2037_v35 = vld [vmem:[#allocation2 + $0x3a98] sm:$0xff]  ;;  %4454 = vmatpush.msrb.mxu2 %v1969_v41 }
 0x6f5   :  { %v1837_v63 = vld [vmem:[#allocation2 + $0x3458] sm:$0xff]  ;;  %4473 = vmatpush.msrb.mxu3 %v2037_v35 }
 0x6f6   :  { %v1901_v62 = vld [vmem:[#allocation2 + $0x3658] sm:$0xff]  ;;  %4415 = vmatpush.msrb.mxu0 %v1837_v63 }
 0x6f7   :  { %v1965_v21 = vld [vmem:[#allocation2 + $0x3858] sm:$0xff]  ;;  %4435 = vmatpush.msrb.mxu1 %v1901_v62  ;;  %v4495_v62 = vld [vmem:[#allocation4 + $0x48] sm:$0xff] }
 0x6f8   :  { %v2033_v58 = vld [vmem:[#allocation2 + $0x3a78] sm:$0xff]  ;;  %4455 = vmatpush.msrb.mxu2 %v1965_v21 }
 0x6f9   :  { %v1833_v6 = vld [vmem:[#allocation2 + $0x3438] sm:$0xff]  ;;  %4474 = vmatpush.msrb.mxu3 %v2033_v58  ;;  %v3780_v58 = vadd.f32 %v3779_v26, %v3760_v0  ;;  %v4503_v26 = vld [vmem:[#allocation4 + $0x88] sm:$0xff]  ;;  %v4486_v0 = vld [vmem:[#allocation4] sm:$0xff] }
 0x6fa   :  { %v1897_v1 = vld [vmem:[#allocation2 + $0x3638] sm:$0xff]  ;;  %4416 = vmatpush.msrb.mxu0 %v1833_v6  ;;  %v3799_v6 = vpop.f32.mrf.mxu1 }
 0x6fb   :  { %v1961_v50 = vld [vmem:[#allocation2 + $0x3838] sm:$0xff]  ;;  %4436 = vmatpush.msrb.mxu1 %v1897_v1  ;;  %v4494_v1 = vld [vmem:[#allocation4 + $0x40] sm:$0xff]  ;;  %v3800_v34 = vadd.f32 %v3799_v6, %v3780_v58 }
 0x6fc   :  { %v2029_v16 = vld [vmem:[#allocation2 + $0x3a58] sm:$0xff]  ;;  %4456 = vmatpush.msrb.mxu2 %v1961_v50  ;;  %v5652_v50 = vld [vmem:[#allocation18_spill] sm:$0xff] }
 0x6fd   :  { %v1829_v24 = vld [vmem:[#allocation2 + $0x3418] sm:$0xff]  ;;  %4475 = vmatpush.msrb.mxu3 %v2029_v16 }
 0x6fe   :  { %v1893_v31 = vld [vmem:[#allocation2 + $0x3618] sm:$0xff]  ;;  %4417 = vmatpush.msrb.mxu0 %v1829_v24 }
 0x6ff   :  { %v1957_v38 = vld [vmem:[#allocation2 + $0x3818] sm:$0xff]  ;;  %4437 = vmatpush.msrb.mxu1 %v1893_v31  ;;  %4418 = vmatmul.f32.vlgmr.msrb.gmra.mxu0 %v4825_v47  ;;  %v4491_v47 = vld [vmem:[#allocation4 + $0x28] sm:$0xff] }
 0x700   :  { %v2025_v36 = vld [vmem:[#allocation2 + $0x3a38] sm:$0xff]  ;;  %4457 = vmatpush.msrb.mxu2 %v1957_v38  ;;  %v5653_v38 = vld [vmem:[#allocation26_spill] sm:$0xff] }
 0x701   :  { %v4501_v46 = vld [vmem:[#allocation4 + $0x78] sm:$0xff]  ;;  %4476 = vmatpush.msrb.mxu3 %v2025_v36  ;;  %4458 = vmatmul.f32.vlgmr.msrb.gmra.mxu2 %v4826_v30  ;;  %v4507_v30 = vld [vmem:[#allocation4 + $0xa8] sm:$0xff] }
 0x702   :  { %v4517_v10 = vld [vmem:[#allocation4 + $0xf8] sm:$0xff]  ;;  %4554 = vmatpush.msra.mxu0 %v4501_v46  ;;  %v4492_v46 = vld [vmem:[#allocation4 + $0x30] sm:$0xff] }
 0x703   :  { %v4533_v4 = vld [vmem:[#allocation4 + $0x178] sm:$0xff]  ;;  %4574 = vmatpush.msra.mxu1 %v4517_v10  ;;  %v4508_v10 = vld [vmem:[#allocation4 + $0xb0] sm:$0xff] }
 0x704   :  { %v2021_v3 = vld [vmem:[#allocation2 + $0x3a18] sm:$0xff]  ;;  %4594 = vmatpush.msra.mxu2 %v4533_v4  ;;  %4555 = vmatpush.msra.mxu0 %v4500_v59  ;;  %v5656_v59 = vld [vmem:[#allocation21_spill] sm:$0xff] }
 0x705   :  { %4477 = vmatpush.msrb.mxu3 %v2021_v3  ;;  %v4827_v12 = vld [vmem:[%s5625_s0 + $0xd8] sm:$0xff]  ;;  %4575 = vmatpush.msra.mxu1 %v4516_v25  ;;  %v3820_v3 = vadd.f32 %v3819_v61, %v3800_v34 }
 0x706   :  { %4438 = vmatmul.f32.vlgmr.msrb.gmra.mxu1 %v4827_v12  ;;  %4478 = vmatmul.f32.vlgmr.msrb.gmra.mxu3 %v4828_v14  ;;  %v4497_v17 = vld [vmem:[#allocation4 + $0x58] sm:$0xff] }
 0x707   :  { %4595 = vmatpush.msra.mxu2 %v4532_v37  ;;  %4556 = vmatpush.msra.mxu0 %v4499_v55  ;;  %v4513_v19 = vld [vmem:[#allocation4 + $0xd8] sm:$0xff]  ;;  %v3859_v37 = vpop.f32.mrf.mxu0  ;;  %v3840_v55 = vadd.f32 %v3839_v18, %v3820_v3  ;;  %v4544_v18 = vld [vmem:[#allocation4 + $0x1d0] sm:$0xff] }
 0x708   :  { %4576 = vmatpush.msra.mxu1 %v4515_v43  ;;  %v4529_v56 = vld [vmem:[#allocation4 + $0x158] sm:$0xff]  ;;  %v4522_v43 = vld [vmem:[#allocation4 + $0x120] sm:$0xff] }
 0x709   :  { %4596 = vmatpush.msra.mxu2 %v4531_v5  ;;  %4557 = vmatpush.msra.mxu0 %v4498_v33  ;;  %v5649_v41 = vld [vmem:[#allocation24_spill] sm:$0xff]  ;;  %v5650_v9 = vld [vmem:[#allocation19_spill] sm:$0xff]  ;;  %v5659_v33 = vld [vmem:[#allocation29_spill] sm:$0xff] }
 0x70a   :  { %4577 = vmatpush.msra.mxu1 %v4514_v23  ;;  %v3160_v35 = vadd.f32 %v5649_v41, %v3140_v13  ;;  %v2580_v63 = vadd.f32 %v5650_v9, %v2560_v57  ;;  %v4493_v24 = vld [vmem:[#allocation4 + $0x38] sm:$0xff]  ;;  %v3860_v13 = vadd.f32 %v3859_v37, %v3840_v55  ;;  %v4487_v57 = vld [vmem:[#allocation4 + $0x8] sm:$0xff]  ;;  %v4518_v9 = vld [vmem:[#allocation4 + $0x100] sm:$0xff] }
 0x70b   :  { %4597 = vmatpush.msra.mxu2 %v4530_v44  ;;  %4558 = vmatpush.msra.mxu0 %v4497_v17  ;;  %v4509_v31 = vld [vmem:[#allocation4 + $0xb8] sm:$0xff]  ;;  %v3879_v44 = vpop.f32.mrf.mxu1  ;;  %v4504_v17 = vld [vmem:[#allocation4 + $0x90] sm:$0xff] }
 0x70c   :  { %4578 = vmatpush.msra.mxu1 %v4513_v19  ;;  %v3180_v21 = vadd.f32 %v5651_v15, %v3160_v35  ;;  %v2600_v16 = vadd.f32 %v5652_v50, %v2580_v63  ;;  %v4525_v42 = vld [vmem:[#allocation4 + $0x138] sm:$0xff]  ;;  %v4520_v19 = vld [vmem:[#allocation4 + $0x110] sm:$0xff]  ;;  %v3880_v41 = vadd.f32 %v3879_v44, %v3860_v13  ;;  %v4519_v35 = vld [vmem:[#allocation4 + $0x108] sm:$0xff]  ;;  %v3919_v15 = vpop.f32.mrf.mxu3 }
 0x70d   :  { %4598 = vmatpush.msra.mxu2 %v4529_v56  ;;  %4559 = vmatpush.msra.mxu0 %v4496_v60  ;;  %v5654_v49 = vld [vmem:[#allocation20_spill] sm:$0xff]  ;;  %v5657_v12 = vld [vmem:[#allocation27_spill] sm:$0xff]  ;;  %v5660_v56 = vld [vmem:[#allocation22_spill] sm:$0xff] }
 0x70e   :  { %4579 = vmatpush.msra.mxu1 %v4512_v32  ;;  %v3200_v36 = vadd.f32 %v5653_v38, %v3180_v21  ;;  %v2620_v27 = vadd.f32 %v5654_v49, %v2600_v16  ;;  %v5655_v29 = vld [vmem:[#allocation28_spill] sm:$0xff]  ;;  %v5658_v51 = vld [vmem:[#allocation23_spill] sm:$0xff]  ;;  %v5661_v60 = vld [vmem:[#allocation30_spill] sm:$0xff]  ;;  %v3899_v21 = vpop.f32.mrf.mxu2 }
 0x70f   :  { %4599 = vmatpush.msra.mxu2 %v4528_v7  ;;  %4560 = vmatpush.msra.mxu0 %v4495_v62  ;;  %v4489_v5 = vld [vmem:[#allocation4 + $0x18] sm:$0xff]  ;;  %v4502_v7 = vld [vmem:[#allocation4 + $0x80] sm:$0xff]  ;;  %v3920_v58 = vadd.f32 %v3919_v15, %v3899_v21  ;;  %v4539_v13 = vld [vmem:[#allocation4 + $0x1a8] sm:$0xff] }
 0x710   :  { %4580 = vmatpush.msra.mxu1 %v4511_v40  ;;  %v3220_v4 = vadd.f32 %v5655_v29, %v3200_v36  ;;  %v2640_v25 = vadd.f32 %v5656_v59, %v2620_v27  ;;  %v4505_v54 = vld [vmem:[#allocation4 + $0x98] sm:$0xff]  ;;  %v4484_v40 = vmax.f32 %v3880_v41, 0.0  ;;  %v4547_v27 = vld [vmem:[#allocation4 + $0x1e8] sm:$0xff]  ;;  %v4546_v29 = vld [vmem:[#allocation4 + $0x1e0] sm:$0xff] }
 0x711   :  { %4600 = vmatpush.msra.mxu2 %v4527_v39  ;;  %4561 = vmatpush.msra.mxu0 %v4494_v1  ;;  %v4521_v2 = vld [vmem:[#allocation4 + $0x118] sm:$0xff]  ;;  %v3939_v39 = vpop.f32.mrf.mxu0 }
 0x712   :  { %4581 = vmatpush.msra.mxu1 %v4510_v28  ;;  %v3240_v14 = vadd.f32 %v5657_v12, %v3220_v4  ;;  %v2660_v53 = vadd.f32 %v5658_v51, %v2640_v25  ;;  %v3940_v6 = vadd.f32 %v3939_v39, %v3920_v58  ;;  %v4549_v34 = vld [vmem:[#allocation4 + $0x1f8] sm:$0xff]  ;;  %v4542_v25 = vld [vmem:[#allocation4 + $0x1c0] sm:$0xff] }
 0x713   :  { %4601 = vmatpush.msra.mxu2 %v4526_v11  ;;  %4562 = vmatpush.msra.mxu0 %v4493_v24  ;;  %v3959_v1 = vpop.f32.mrf.mxu1  ;;  %v4545_v3 = vld [vmem:[#allocation4 + $0x1d8] sm:$0xff] }
 0x714   :  { %4582 = vmatpush.msra.mxu1 %v4509_v31  ;;  %v3260_v23 = vadd.f32 %v5659_v33, %v3240_v14  ;;  %v2680_v20 = vadd.f32 %v5660_v56, %v2660_v53  ;;  %v3960_v28 = vadd.f32 %v3959_v1, %v3940_v6  ;;  %v3999_v16 = vpop.f32.mrf.mxu3  ;;  %4614 = vmatpush.msra.mxu3 %v4549_v34  ;;  %v4647_v34 = vld [vmem:[#allocation7 + $0x60] sm:$0xff] }
 0x715   :  { %4602 = vmatpush.msra.mxu2 %v4525_v42  ;;  %4563 = vmatpush.msra.mxu0 %v4492_v46  ;;  %v4548_v42 = vld [vmem:[#allocation4 + $0x1f0] sm:$0xff] }
 0x716   :  { %4583 = vmatpush.msra.mxu1 %v4508_v10  ;;  %v3280_v32 = vadd.f32 %v5661_v60, %v3260_v23  ;;  %v4482_v63 = vmax.f32 %v2680_v20, 0.0  ;;  %v3979_v11 = vpop.f32.mrf.mxu2  ;;  %4615 = vmatpush.msra.mxu3 %v4548_v42  ;;  %v4536_v20 = vld [vmem:[#allocation4 + $0x190] sm:$0xff]  ;;  %v4534_v60 = vld [vmem:[#allocation4 + $0x180] sm:$0xff] }
 0x717   :  { %4603 = vmatpush.msra.mxu2 %v4524_v45  ;;  %4564 = vmatpush.msra.mxu0 %v4491_v47  ;;  %v3980_v50 = vadd.f32 %v3979_v11, %v3960_v28  ;;  %v4646_v42 = vld [vmem:[#allocation7 + $0x58] sm:$0xff] }
 0x718   :  { %4584 = vmatpush.msra.mxu1 %v4507_v30  ;;  %v4483_v62 = vmax.f32 %v3280_v32, 0.0  ;;  %4616 = vmatpush.msra.mxu3 %v4547_v27  ;;  %v4644_v27 = vld [vmem:[#allocation7 + $0x48] sm:$0xff] }
 0x719   :  { %4604 = vmatpush.msra.mxu2 %v4523_v8  ;;  %4565 = vmatpush.msra.mxu0 %v4490_v48  ;;  %v4019_v61 = vpop.f32.mrf.mxu0  ;;  %v4000_v24 = vadd.f32 %v3999_v16, %v3980_v50  ;;  %v4543_v8 = vld [vmem:[#allocation4 + $0x1c8] sm:$0xff]  ;;  %v4541_v48 = vld [vmem:[#allocation4 + $0x1b8] sm:$0xff] }
 0x71a   :  { %4585 = vmatpush.msra.mxu1 %v4506_v52  ;;  %4617 = vmatpush.msra.mxu3 %v4546_v29  ;;  %v4641_v29 = vld [vmem:[#allocation7 + $0x30] sm:$0xff] }
 0x71b   :  { %4605 = vmatpush.msra.mxu2 %v4522_v43  ;;  %4566 = vmatpush.msra.mxu0 %v4489_v5  ;;  %v4020_v31 = vadd.f32 %v4019_v61, %v4000_v24  ;;  %v4039_v38 = vpop.f32.mrf.mxu1  ;;  %v4650_v61 = vld [vmem:[#allocation7 + $0x78] sm:$0xff]  ;;  %v4649_v24 = vld [vmem:[#allocation7 + $0x70] sm:$0xff] }
 0x71c   :  { %4586 = vmatpush.msra.mxu1 %v4505_v54  ;;  %v4079_v10 = vpop.f32.mrf.mxu3  ;;  %4618 = vmatpush.msra.mxu3 %v4545_v3  ;;  %v4540_v54 = vld [vmem:[#allocation4 + $0x1b0] sm:$0xff]  ;;  %v4639_v3 = vld [vmem:[#allocation7 + $0x20] sm:$0xff] }
 0x71d   :  { %4606 = vmatpush.msra.mxu2 %v4521_v2  ;;  %4567 = vmatpush.msra.mxu0 %v4488_v22  ;;  %v4040_v49 = vadd.f32 %v4039_v38, %v4020_v31  ;;  %v4538_v2 = vld [vmem:[#allocation4 + $0x1a0] sm:$0xff]  ;;  %v4648_v38 = vld [vmem:[#allocation7 + $0x68] sm:$0xff] }
 0x71e   :  { %4587 = vmatpush.msra.mxu1 %v4504_v17  ;;  %v4059_v36 = vpop.f32.mrf.mxu2  ;;  %4619 = vmatpush.msra.mxu3 %v4544_v18  ;;  %v4537_v17 = vld [vmem:[#allocation4 + $0x198] sm:$0xff] }
 0x71f   :  { %4607 = vmatpush.msra.mxu2 %v4520_v19  ;;  %4568 = vmatpush.msra.mxu0 %v4487_v57  ;;  %v4060_v46 = vadd.f32 %v4059_v36, %v4040_v49  ;;  %v4645_v49 = vld [vmem:[#allocation7 + $0x50] sm:$0xff] }
 0x720   :  { %4588 = vmatpush.msra.mxu1 %v4503_v26  ;;  %4620 = vmatpush.msra.mxu3 %v4543_v8  ;;  %v4535_v26 = vld [vmem:[#allocation4 + $0x188] sm:$0xff]  ;;  %v4637_v18 = vld [vmem:[#allocation7 + $0x10] sm:$0xff]  ;;  %v4691_v8 = vld [vmem:[#allocation10 + $0x78] sm:$0xff] }
 0x721   :  { %4608 = vmatpush.msra.mxu2 %v4519_v35  ;;  %4569 = vmatpush.msra.mxu0 %v4486_v0  ;;  %v4099_v4 = vpop.f32.mrf.mxu0  ;;  %v4080_v45 = vadd.f32 %v4079_v10, %v4060_v46  ;;  %v4643_v46 = vld [vmem:[#allocation7 + $0x40] sm:$0xff]  ;;  %v4642_v10 = vld [vmem:[#allocation7 + $0x38] sm:$0xff] }
 0x722   :  { %4589 = vmatpush.msra.mxu1 %v4502_v7  ;;  %4570 = vmatmul.f32.vlgmr.msra.gmra.mxu0 %v4482_v63 }
 0x723   :  { %4609 = vmatpush.msra.mxu2 %v4518_v9  ;;  %4590 = vmatmul.f32.vlgmr.msra.gmra.mxu1 %v4483_v62  ;;  %v4100_v47 = vadd.f32 %v4099_v4, %v4080_v45  ;;  %v4119_v30 = vpop.f32.mrf.mxu1  ;;  %v4640_v4 = vld [vmem:[#allocation7 + $0x28] sm:$0xff]  ;;  %v4638_v45 = vld [vmem:[#allocation7 + $0x18] sm:$0xff] }
 0x724   :  { %4610 = vmatmul.f32.vlgmr.msra.gmra.mxu2 %v4484_v40  ;;  %4621 = vmatpush.msra.mxu3 %v4542_v25  ;;  %v4159_v12 = vpop.f32.mrf.mxu3  ;;  %v4689_v25 = vld [vmem:[#allocation10 + $0x68] sm:$0xff] }
 0x725   :  { %v4120_v37 = vadd.f32 %v4119_v30, %v4100_v47  ;;  %4655 = vmatpush.msrb.mxu0 %v4650_v61  ;;  %v4636_v47 = vld [vmem:[#allocation7 + $0x8] sm:$0xff]  ;;  %v4635_v30 = vld [vmem:[#allocation7] sm:$0xff]  ;;  %4696 = vmatpush.msrb.mxu1 %v4691_v8 }
 0x726   :  { %v4139_v59 = vpop.f32.mrf.mxu2  ;;  %4622 = vmatpush.msra.mxu3 %v4541_v48  ;;  %v4687_v48 = vld [vmem:[#allocation10 + $0x58] sm:$0xff] }
 0x727   :  { %v4140_v52 = vadd.f32 %v4139_v59, %v4120_v37  ;;  %4656 = vmatpush.msrb.mxu0 %v4649_v24  ;;  %v4690_v59 = vld [vmem:[#allocation10 + $0x70] sm:$0xff]  ;;  %v4688_v37 = vld [vmem:[#allocation10 + $0x60] sm:$0xff] }
 0x728   :  { %4623 = vmatpush.msra.mxu3 %v4540_v54  ;;  %4697 = vmatpush.msrb.mxu1 %v4690_v59 }
 0x729   :  { %v4179_v14 = vpop.f32.mrf.mxu0  ;;  %v4160_v55 = vadd.f32 %v4159_v12, %v4140_v52  ;;  %4657 = vmatpush.msrb.mxu0 %v4648_v38  ;;  %v4686_v52 = vld [vmem:[#allocation10 + $0x50] sm:$0xff]  ;;  %v4685_v12 = vld [vmem:[#allocation10 + $0x48] sm:$0xff] }
 0x72a   :  { %4624 = vmatpush.msra.mxu3 %v4539_v13  ;;  %4698 = vmatpush.msrb.mxu1 %v4689_v25 }
 0x72b   :  { %v4180_v43 = vadd.f32 %v4179_v14, %v4160_v55  ;;  %v4199_v51 = vpop.f32.mrf.mxu1  ;;  %4658 = vmatpush.msrb.mxu0 %v4647_v34  ;;  %v4684_v14 = vld [vmem:[#allocation10 + $0x40] sm:$0xff]  ;;  %v4683_v55 = vld [vmem:[#allocation10 + $0x38] sm:$0xff] }
 0x72c   :  { %v4239_v23 = vpop.f32.mrf.mxu3  ;;  %4625 = vmatpush.msra.mxu3 %v4538_v2  ;;  %4699 = vmatpush.msrb.mxu1 %v4688_v37 }
 0x72d   :  { %v4200_v5 = vadd.f32 %v4199_v51, %v4180_v43  ;;  %4659 = vmatpush.msrb.mxu0 %v4646_v42  ;;  %v4736_v43 = vld [vmem:[#allocation6] ss:$0 sm:$0xff]  ;;  %v4682_v51 = vld [vmem:[#allocation10 + $0x30] sm:$0xff] }
 0x72e   :  { %v4219_v53 = vpop.f32.mrf.mxu2  ;;  %4626 = vmatpush.msra.mxu3 %v4537_v17  ;;  %4700 = vmatpush.msrb.mxu1 %v4687_v48 }
 0x72f   :  { %v4220_v33 = vadd.f32 %v4219_v53, %v4200_v5  ;;  %4660 = vmatpush.msrb.mxu0 %v4645_v49  ;;  %v4681_v5 = vld [vmem:[#allocation10 + $0x28] sm:$0xff] }
 0x730   :  { %4627 = vmatpush.msra.mxu3 %v4536_v20  ;;  %4701 = vmatpush.msrb.mxu1 %v4686_v52  ;;  %v4678_v20 = vld [vmem:[#allocation10 + $0x10] sm:$0xff] }
 0x731   :  { %v4259_v44 = vpop.f32.mrf.mxu0  ;;  %v4240_v22 = vadd.f32 %v4239_v23, %v4220_v33  ;;  %4661 = vmatpush.msrb.mxu0 %v4644_v27  ;;  %v4680_v33 = vld [vmem:[#allocation10 + $0x20] sm:$0xff]  ;;  %v4679_v23 = vld [vmem:[#allocation10 + $0x18] sm:$0xff] }
 0x732   :  { %4628 = vmatpush.msra.mxu3 %v4535_v26  ;;  %4702 = vmatpush.msrb.mxu1 %v4685_v12  ;;  %v4676_v26 = vld [vmem:[#allocation10] sm:$0xff] }
 0x733   :  { %v4260_v19 = vadd.f32 %v4259_v44, %v4240_v22  ;;  %v4279_v56 = vpop.f32.mrf.mxu1  ;;  %4662 = vmatpush.msrb.mxu0 %v4643_v46 }
 0x734   :  { %4629 = vmatpush.msra.mxu3 %v4534_v60  ;;  %v4319_v35 = vpop.f32.mrf.mxu3  ;;  %4703 = vmatpush.msrb.mxu1 %v4684_v14  ;;  %v4737_v60 = vld [vmem:[#allocation9] ss:$0 sm:$0xff] }
 0x735   :  { %v4280_v32 = vadd.f32 %v4279_v56, %v4260_v19  ;;  %4663 = vmatpush.msrb.mxu0 %v4642_v10 }
 0x736   :  { %v4299_v57 = vpop.f32.mrf.mxu2  ;;  %4704 = vmatpush.msrb.mxu1 %v4683_v55 }
 0x737   :  { %v4300_v41 = vadd.f32 %v4299_v57, %v4280_v32  ;;  %4664 = vmatpush.msrb.mxu0 %v4641_v29  ;;  %v4677_v57 = vld [vmem:[#allocation10 + $0x8] sm:$0xff] }
 0x738   :  { %4705 = vmatpush.msrb.mxu1 %v4682_v51 }
 0x739   :  { %v4320_v7 = vadd.f32 %v4319_v35, %v4300_v41  ;;  %4665 = vmatpush.msrb.mxu0 %v4640_v4 }
 0x73a   :  { %4706 = vmatpush.msrb.mxu1 %v4681_v5 }
 0x73b   :  { %v4339_v0 = vpop.f32.mrf.mxu0  ;;  %4666 = vmatpush.msrb.mxu0 %v4639_v3 }
 0x73c   :  { %v4340_v9 = vadd.f32 %v4339_v0, %v4320_v7  ;;  %4707 = vmatpush.msrb.mxu1 %v4680_v33  ;;  %v4738_v0 = vld [vmem:[#allocation12] ss:$0 sm:$0xff] }
 0x73d   :  { %4667 = vmatpush.msrb.mxu0 %v4638_v45 }
 0x73e   :  { %4708 = vmatpush.msrb.mxu1 %v4679_v23 }
 0x73f   :  { %4668 = vmatpush.msrb.mxu0 %v4637_v18 }
 0x740   :  { %4709 = vmatpush.msrb.mxu1 %v4678_v20 }
 0x741   :  { %4669 = vmatpush.msrb.mxu0 %v4636_v47 }
 0x742   :  { %4710 = vmatpush.msrb.mxu1 %v4677_v57 }
 0x743   :  { %v4379_v62 = vpop.f32.mrf.mxu2  ;;  %4670 = vmatpush.msrb.mxu0 %v4635_v30 }
 0x744   :  { %4711 = vmatpush.msrb.mxu1 %v4676_v26 }
 0x746   :  { %v4359_v63 = vpop.f32.mrf.mxu1 }
 0x747   :  { %v4360_v40 = vadd.f32 %v4359_v63, %v4340_v9 }
 0x748   :  { %v4399_v21 = vpop.f32.mrf.mxu3 }
 0x749   :  { %v4380_v15 = vadd.f32 %v4379_v62, %v4360_v40 }
 0x74b   :  { %v4400_v58 = vadd.f32 %v4399_v21, %v4380_v15 }
 0x77c   :  { %v4419_v39 = vpop.f32.mrf.mxu0 }
 0x77d   :  { %v4420_v6 = vadd.f32 %v4419_v39, %v4400_v58 }
 0x783   :  { %v4439_v1 = vpop.f32.mrf.mxu1 }
 0x784   :  { %v4440_v28 = vadd.f32 %v4439_v1, %v4420_v6  ;;  %v4459_v11 = vpop.f32.mrf.mxu2 }
 0x786   :  { %v4460_v50 = vadd.f32 %v4459_v11, %v4440_v28 }
 0x789   :  { %v4479_v16 = vpop.f32.mrf.mxu3 }
 0x78a   :  { %v4480_v31 = vadd.f32 %v4479_v16, %v4460_v50 }
 0x78c   :  { %v4485_v36 = vmax.f32 %v4480_v31, 0.0 }
 0x78e   :  { %4630 = vmatmul.f32.vlgmr.msra.gmra.mxu3 %v4485_v36 }
 0x79f   :  { %v4571_v53 = vpop.f32.mrf.mxu0 }
 0x7a0   :  { %v4572_v54 = vadd.f32 %v4736_v43, %v4571_v53  ;;  %v4591_v13 = vpop.f32.mrf.mxu1 }
 0x7a2   :  { %v4592_v44 = vadd.f32 %v4591_v13, %v4572_v54 }
 0x7a7   :  { %v4611_v2 = vpop.f32.mrf.mxu2 }
 0x7a8   :  { %v4612_v22 = vadd.f32 %v4611_v2, %v4592_v44 }
 0x811   :  { %v4631_v17 = vpop.f32.mrf.mxu3 }
 0x812   :  { %v4632_v19 = vadd.f32 %v4631_v17, %v4612_v22 }
 0x814   :  { %v4634_v56 = vmax.f32 %v4632_v19, 0.0 }
 0x816   :  { %4671 = vmatmul.f32.vlgmr.msrb.gmra.mxu0 %v4634_v56 }
 0x893   :  { %v4672_v32 = vpop.f32.mrf.mxu0 }
 0x894   :  { %v4673_v41 = vadd.f32 %v4737_v60, %v4672_v32 }
 0x896   :  { %v4675_v35 = vmax.f32 %v4673_v41, 0.0 }
 0x898   :  { %4712 = vmatmul.f32.vlgmr.msrb.gmra.mxu1 %v4675_v35 }
 0x915   :  { %v4713_v7 = vpop.f32.mrf.mxu1 }
 0x916   :  { %v4714_v9 = vadd.f32 %v4738_v0, %v4713_v7 }
 0x918   :  { %4716 = vst [vmem:[%s5633_s8] sm:$0xff] %v4714_v9 }
 0x919   :  { %4721 = vsyncpa [#allocation3], 1 }
 0x91a   :  { %4722 = vsyncpa [#allocation5], 1 }
 0x91b   :  { %4723 = vsyncpa [#allocation8], 1 }
 0x91c   :  { %4724 = vsyncpa [#allocation11], 1 }

</bundles_post_ra>
